<compile_context>
chip_gen: v7x
topology: tpu7x:2x2x1
jax: 0.10.0
libtpu: 0.0.40
codegen_flags: <defaults>
</compile_context>

<pallas_src>
import functools

import jax
import jax.numpy as jnp
from jax import lax
from jax.experimental import pallas as pl
from jax.experimental.pallas import tpu as pltpu

EPS = 1e-5  # nn.InstanceNorm2d default eps


def _round_up(x, m):
    return (x + m - 1) // m * m


def _vmem_limit_bytes():
    """~3/4 of this generation's physical VMEM, capped at 96 MiB."""
    try:
        phys = pltpu.get_tpu_info().vmem_capacity_bytes
        return int(min(phys * 3 // 4, 96 * 1024 * 1024))
    except Exception:
        return 48 * 1024 * 1024  # safe on every generation (v7x has 64 MiB)


# ----------------------------- kernel helpers (traced inside the kernel) ----

def _padded_rows(img, W, Wp):
    """(R, >=W, C) -> (R, Wp, C): [col 1 | cols 0..W-1 | col W-2 | zeros].

    Row r of the result is the ReflectionPad2d(1) row for image row r, laid out
    in the Wp-wide pseudo-row of the flattened pad scratch.  Built in f32
    (robust sublane concat); caller casts on store.  Sourcing the border
    columns from `img` (not from pad_ref) breaks the RAW dependency between
    the interior store and the border stores.
    """
    img = img.astype(jnp.float32)
    R, _, C = img.shape
    pieces = [img[:, 1:2, :], img[:, 0:W, :], img[:, W - 2:W - 1, :]]
    tail = Wp - (W + 2)
    if tail > 0:
        pieces.append(jnp.zeros((R, tail, C), jnp.float32))
    return jnp.concatenate(pieces, axis=1)


def _write_reflect_pad(pad_ref, img, H, W, Wp):
    """Write ReflectionPad2d(1)(img) into the flattened pad scratch.

    pad_ref: ((H+3)*Wp, C) ref; flat row r*Wp + c holds padded pixel (r, c).
    img:     (H, >=W, C) value; columns >= W (if any) are ignored.
    """
    pr = _padded_rows(img, W, Wp).astype(pad_ref.dtype)          # (H, Wp, C)
    HWp = H * Wp
    C = pr.shape[-1]
    # Interior padded rows 1..H: one aligned slab store (Wp % sublane tile == 0).
    pad_ref[Wp:Wp + HWp, :] = pr.reshape(HWp, C)
    # Top (padded row 0 = image row 1) / bottom (padded row H+1 = image row H-2).
    pad_ref[0:Wp, :] = pr[1:2].reshape(Wp, C)
    pad_ref[(H + 1) * Wp:(H + 2) * Wp, :] = pr[H - 2:H - 1].reshape(Wp, C)


def _conv3x3_accumulate(pad_ref, w_ref, acc_ref, Wp, HWp):
    """acc_ref (HWp, Cout) f32 = sum over 9 taps of contiguous slab @ w[tap].

    Tap (ky, kx) is the flat slab starting at ky*Wp + kx: slab element
    y*Wp + x is padded pixel (y+ky, x+kx), i.e. the correct conv input for
    every valid output column x < W.  Columns x >= W are alignment garbage
    (finite; excluded from the norm statistics and from the output).
    """
    for t in range(9):
        ky, kx = divmod(t, 3)
        start = ky * Wp + kx
        contrib = jnp.dot(pad_ref[start:start + HWp, :], w_ref[t],
                          preferred_element_type=jnp.float32)
        if t == 0:
            acc_ref[...] = contrib        # overwrite: saves the zero-init store
        else:
            acc_ref[...] += contrib


def _masked_instance_norm(y_flat, H, W, Wp):
    """Affine-free instance norm over valid pixels of y_flat (H*Wp, C), f32.

    Two-pass (mean, then centered sum of squares).  A tiny (Wp, C) column mask
    is applied after the cheap leading-axis partial reduce so the Wp-W
    alignment columns never enter the statistics.
    """
    C = y_flat.shape[-1]
    inv_n = 1.0 / (H * W)
    col_ok = lax.broadcasted_iota(jnp.int32, (Wp, C), 0) < W        # (Wp, C)
    y3 = y_flat.reshape(H, Wp, C)
    mean = jnp.sum(jnp.where(col_ok, jnp.sum(y3, axis=0), 0.0),
                   axis=0, keepdims=True) * inv_n                    # (1, C)
    centered = y_flat - mean                                         # (HWp, C)
    sq3 = (centered * centered).reshape(H, Wp, C)
    var = jnp.sum(jnp.where(col_ok, jnp.sum(sq3, axis=0), 0.0),
                  axis=0, keepdims=True) * inv_n                     # (1, C)
    return centered * lax.rsqrt(var + EPS)


# ----------------------------------------------------------------- kernel ---

def resnet_block_kernel(x_ref, w1_ref, w2_ref, o_ref, pad_ref, acc_ref, *,
                        H, W, Wp, C):
    HWp = H * Wp

    # Zero the tail pseudo-row: the last flattened tap over-reads two flat rows
    # past padded row H+1 (only into masked output positions); this keeps those
    # reads deterministic and finite.
    pad_ref[(H + 2) * Wp:(H + 3) * Wp, :] = jnp.zeros((Wp, C), pad_ref.dtype)

    # conv1 -> instance norm -> ReLU   (conv bias cancelled by the norm)
    _write_reflect_pad(pad_ref, x_ref[0], H, W, Wp)
    _conv3x3_accumulate(pad_ref, w1_ref, acc_ref, Wp, HWp)
    y = _masked_instance_norm(acc_ref[...], H, W, Wp)
    y = jnp.maximum(y, 0.0)                                        # ReLU(True)
    # TODO(synk): use_dropout=True (train-mode Dropout(0.5)) not implemented.

    # conv2 -> instance norm   (both scratch buffers reused)
    _write_reflect_pad(pad_ref, y.reshape(H, Wp, C), H, W, Wp)
    _conv3x3_accumulate(pad_ref, w2_ref, acc_ref, Wp, HWp)
    y = _masked_instance_norm(acc_ref[...], H, W, Wp)

    # Skip connection in f32; x re-read from its resident VMEM block rather
    # than kept live across both convs.
    out = x_ref[0].astype(jnp.float32) + y.reshape(H, Wp, C)[:, 0:W, :]
    o_ref[0] = out.astype(o_ref.dtype)


# ---------------------------------------------------------------- wrappers --

def resnet_block_nhwc(x_nhwc, w1k, w2k, *, compute_dtype=jnp.bfloat16):
    """Hot-path entry: x in NHWC, weights pre-packed as (9, Cin, Cout)."""
    N, H, W, C = x_nhwc.shape
    # Pseudo-row width: W+2 rounded up to the sublane tile of compute_dtype so
    # the slab stores / leading-dim collapses stay aligned (bf16 packs 16 rows).
    row_tile = 16 if jnp.dtype(compute_dtype).itemsize < 4 else 8
    Wp = _round_up(W + 2, row_tile)

    w1k = w1k.astype(compute_dtype)
    w2k = w2k.astype(compute_dtype)

    kernel = functools.partial(resnet_block_kernel, H=H, W=W, Wp=Wp, C=C)

    return pl.pallas_call(
        kernel,
        out_shape=jax.ShapeDtypeStruct((N, H, W, C), x_nhwc.dtype),
        grid_spec=pltpu.PrefetchScalarGridSpec(
            num_scalar_prefetch=0,
            grid=(N,),
            in_specs=[
                pl.BlockSpec((1, H, W, C), lambda n: (n, 0, 0, 0)),
                # Constant index_maps: weight blocks are not re-fetched per step.
                # TODO(synk): pipeline_mode=pl.Buffered(1) on these two specs on
                #             v7x to drop the pointless second weight buffer.
                pl.BlockSpec((9, C, C), lambda n: (0, 0, 0)),
                pl.BlockSpec((9, C, C), lambda n: (0, 0, 0)),
            ],
            out_specs=pl.BlockSpec((1, H, W, C), lambda n: (n, 0, 0, 0)),
            scratch_shapes=[
                # Flattened reflect-padded activations, reused by both convs.
                pltpu.VMEM(((H + 3) * Wp, C), compute_dtype),
                # f32 conv accumulator: 9 MXU taps accumulate in place.
                pltpu.VMEM((H * Wp, C), jnp.float32),
            ],
        ),
        compiler_params=pltpu.CompilerParams(
            dimension_semantics=("parallel",),
            vmem_limit_bytes=_vmem_limit_bytes(),
        ),
    )(x_nhwc, w1k, w2k)


def resnet_block(x_nchw, w1_oihw, b1, w2_oihw, b2, *,
                 compute_dtype=jnp.bfloat16):
    """PyTorch-layout wrapper: x (N, C, H, W), weights OIHW, biases accepted.

    The conv biases are NOT passed to the kernel: InstanceNorm2d(affine=False)
    subtracts the per-channel mean immediately after each conv, so the bias is
    exactly cancelled (dead compute + DMA).  In production keep the model in
    NHWC and pre-pack the weights once so the transposes below never hit the
    hot path.
    """
    del b1, b2  # mathematically cancelled by the affine-free instance norm
    N, C, H, W = x_nchw.shape
    x_nhwc = jnp.transpose(x_nchw, (0, 2, 3, 1))                     # -> NHWC

    def repack(w):  # (O, I, 3, 3) -> (ky*3+kx, I, O): each tap a (Cin,Cout) matmul
        return jnp.transpose(w, (2, 3, 1, 0)).reshape(9, C, C)

    out_nhwc = resnet_block_nhwc(x_nhwc, repack(w1_oihw), repack(w2_oihw),
                                 compute_dtype=compute_dtype)
    return jnp.transpose(out_nhwc, (0, 3, 1, 2))                     # -> NCHW


# ------------------------------------------------------- pure-JAX reference -

def reference(x, w1, b1, w2, b2):
    def conv(z, w, b):
        zp = jnp.pad(z, ((0, 0), (0, 0), (1, 1), (1, 1)), mode='reflect')
        y = lax.conv_general_dilated(
            zp, w, (1, 1), 'VALID',
            dimension_numbers=('NCHW', 'OIHW', 'NCHW'))
        return y + b[None, :, None, None]

    def inorm(y):
        m = jnp.mean(y, axis=(2, 3), keepdims=True)
        v = jnp.mean((y - m) ** 2, axis=(2, 3), keepdims=True)
        return (y - m) * lax.rsqrt(v + EPS)

    y = jnp.maximum(inorm(conv(x, w1, b1)), 0.0)
    y = inorm(conv(y, w2, b2))
    return x + y


# ------------------------------------------------------------------- main ---

if __name__ == "__main__":
    N, C, H, W = 2, 4, 16, 16
    key = jax.random.PRNGKey(0)
    kx, kw1, kb1, kw2, kb2 = jax.random.split(key, 5)

    x = jax.random.normal(kx, (N, C, H, W), jnp.float32)
    w1 = 0.1 * jax.random.normal(kw1, (C, C, 3, 3), jnp.float32)
    b1 = 0.1 * jax.random.normal(kb1, (C,), jnp.float32)
    w2 = 0.1 * jax.random.normal(kw2, (C, C, 3, 3), jnp.float32)
    b2 = 0.1 * jax.random.normal(kb2, (C,), jnp.float32)

    ref = reference(x, w1, b1, w2, b2)

    # f32 compute path: tight check against the pure-JAX reference.
    out_f32 = resnet_block(x, w1, b1, w2, b2, compute_dtype=jnp.float32)
    jax.block_until_ready(out_f32)
    assert out_f32.shape == (N, C, H, W)
    err_f32 = float(jnp.max(jnp.abs(out_f32 - ref)))
    assert err_f32 < 2e-4, f"f32 path max abs err {err_f32}"

    # Default bf16-MXU path: looser check (bf16 matmul inputs, f32 accum/norm).
    out_bf16 = resnet_block(x, w1, b1, w2, b2)
    jax.block_until_ready(out_bf16)
    assert out_bf16.shape == (N, C, H, W)
    err_bf16 = float(jnp.max(jnp.abs(out_bf16 - ref)))
    assert err_bf16 < 0.25, f"bf16 path max abs err {err_bf16}"

    print("KERNEL_OK")
</pallas_src>

<mosaic_0001>
module attributes {stable_mosaic.version = 11 : i64} {
  func.func @resnet_block_kernel(%arg0: i32, %arg1: memref<1x16x16x4xf32, #tpu.memory_space<vmem>>, %arg2: memref<9x4x4xf32, #tpu.memory_space<vmem>>, %arg3: memref<9x4x4xf32, #tpu.memory_space<vmem>>, %arg4: memref<1x16x16x4xf32, #tpu.memory_space<vmem>>, %arg5: memref<456x4xf32, #tpu.memory_space<vmem>>, %arg6: memref<384x4xf32, #tpu.memory_space<vmem>>) attributes {dimension_semantics = [#tpu.dimension_semantics<parallel>], iteration_bounds = array<i64: 2>, scalar_prefetch = 0 : i64, scratch_operands = 2 : i64, tpu.core_type = #tpu.core_type<tc>, window_params = [{transform_indices = @transform_0, window_bounds = array<i64: 1, 16, 16, 4>}, {pipeline_mode = #tpu.pipeline_mode<synchronous>, transform_indices = @transform_1, window_bounds = array<i64: 9, 4, 4>}, {pipeline_mode = #tpu.pipeline_mode<synchronous>, transform_indices = @transform_2, window_bounds = array<i64: 9, 4, 4>}, {transform_indices = @transform_3, window_bounds = array<i64: 1, 16, 16, 4>}]} {
    %cst = arith.constant 0.000000e+00 : f32
    %0 = vector.broadcast %cst : f32 to vector<24x4xf32>
    %c432 = arith.constant 432 : index
    %c0 = arith.constant 0 : index
    %1 = vector.load %arg5[%c432, %c0] : memref<456x4xf32, #tpu.memory_space<vmem>>, vector<24x4xf32>
    tpu.vector_store %arg5[%c432, %c0], %0 {strides = array<i32>} : memref<456x4xf32, #tpu.memory_space<vmem>>, vector<24x4xf32>,
    %c0_0 = arith.constant 0 : index
    %c0_1 = arith.constant 0 : index
    %c0_2 = arith.constant 0 : index
    %c0_3 = arith.constant 0 : index
    %2 = vector.load %arg1[%c0_0, %c0_1, %c0_2, %c0_3] : memref<1x16x16x4xf32, #tpu.memory_space<vmem>>, vector<1x16x16x4xf32>
    %3 = vector.shape_cast %2 : vector<1x16x16x4xf32> to vector<16x16x4xf32>
    %4 = vector.extract_strided_slice %3 {offsets = [0, 1, 0], sizes = [16, 1, 4], strides = [1, 1, 1]} : vector<16x16x4xf32> to vector<16x1x4xf32>
    %5 = vector.extract_strided_slice %3 {offsets = [0, 14, 0], sizes = [16, 1, 4], strides = [1, 1, 1]} : vector<16x16x4xf32> to vector<16x1x4xf32>
    %cst_4 = arith.constant 0.000000e+00 : f32
    %6 = vector.broadcast %cst_4 : f32 to vector<16x6x4xf32>
    %7 = tpu.concatenate %4, %3, %5, %6 in 1 : vector<16x1x4xf32>, vector<16x16x4xf32>, vector<16x1x4xf32>, vector<16x6x4xf32> -> vector<16x24x4xf32>
    %8 = vector.shape_cast %7 : vector<16x24x4xf32> to vector<384x4xf32>
    %c24 = arith.constant 24 : index
    %c0_5 = arith.constant 0 : index
    %9 = vector.load %arg5[%c24, %c0_5] : memref<456x4xf32, #tpu.memory_space<vmem>>, vector<384x4xf32>
    tpu.vector_store %arg5[%c24, %c0_5], %8 {strides = array<i32>} : memref<456x4xf32, #tpu.memory_space<vmem>>, vector<384x4xf32>,
    %10 = vector.extract_strided_slice %7 {offsets = [1, 0, 0], sizes = [1, 24, 4], strides = [1, 1, 1]} : vector<16x24x4xf32> to vector<1x24x4xf32>
    %11 = vector.shape_cast %10 : vector<1x24x4xf32> to vector<24x4xf32>
    %c0_6 = arith.constant 0 : index
    %c0_7 = arith.constant 0 : index
    %12 = vector.load %arg5[%c0_6, %c0_7] : memref<456x4xf32, #tpu.memory_space<vmem>>, vector<24x4xf32>
    tpu.vector_store %arg5[%c0_6, %c0_7], %11 {strides = array<i32>} : memref<456x4xf32, #tpu.memory_space<vmem>>, vector<24x4xf32>,
    %13 = vector.extract_strided_slice %7 {offsets = [14, 0, 0], sizes = [1, 24, 4], strides = [1, 1, 1]} : vector<16x24x4xf32> to vector<1x24x4xf32>
    %14 = vector.shape_cast %13 : vector<1x24x4xf32> to vector<24x4xf32>
    %c408 = arith.constant 408 : index
    %c0_8 = arith.constant 0 : index
    %15 = vector.load %arg5[%c408, %c0_8] : memref<456x4xf32, #tpu.memory_space<vmem>>, vector<24x4xf32>
    tpu.vector_store %arg5[%c408, %c0_8], %14 {strides = array<i32>} : memref<456x4xf32, #tpu.memory_space<vmem>>, vector<24x4xf32>,
    %c0_9 = arith.constant 0 : index
    %c0_10 = arith.constant 0 : index
    %16 = vector.load %arg5[%c0_9, %c0_10] : memref<456x4xf32, #tpu.memory_space<vmem>>, vector<384x4xf32>
    %c0_11 = arith.constant 0 : index
    %c0_12 = arith.constant 0 : index
    %c0_13 = arith.constant 0 : index
    %17 = vector.load %arg2[%c0_11, %c0_12, %c0_13] : memref<9x4x4xf32, #tpu.memory_space<vmem>>, vector<1x4x4xf32>
    %18 = vector.shape_cast %17 : vector<1x4x4xf32> to vector<4x4xf32>
    %cst_14 = arith.constant dense<0.000000e+00> : vector<384x4xf32>
    %19 = tpu.matmul %16, %18, %cst_14 {dimension_numbers = #tpu.dot_dimension_numbers<[1], [0], [0], [1], [0, 0, 1, 1], [], []>} : vector<384x4xf32>, vector<4x4xf32>, vector<384x4xf32> -> vector<384x4xf32>
    %c0_15 = arith.constant 0 : index
    %c0_16 = arith.constant 0 : index
    %20 = vector.load %arg6[%c0_15, %c0_16] : memref<384x4xf32, #tpu.memory_space<vmem>>, vector<384x4xf32>
    tpu.vector_store %arg6[%c0_15, %c0_16], %19 {strides = array<i32>} : memref<384x4xf32, #tpu.memory_space<vmem>>, vector<384x4xf32>,
    %c1 = arith.constant 1 : index
    %c0_17 = arith.constant 0 : index
    %21 = vector.load %arg5[%c1, %c0_17] : memref<456x4xf32, #tpu.memory_space<vmem>>, vector<384x4xf32>
    %c1_18 = arith.constant 1 : index
    %c0_19 = arith.constant 0 : index
    %c0_20 = arith.constant 0 : index
    %22 = vector.load %arg2[%c1_18, %c0_19, %c0_20] : memref<9x4x4xf32, #tpu.memory_space<vmem>>, vector<1x4x4xf32>
    %23 = vector.shape_cast %22 : vector<1x4x4xf32> to vector<4x4xf32>
    %cst_21 = arith.constant dense<0.000000e+00> : vector<384x4xf32>
    %24 = tpu.matmul %21, %23, %cst_21 {dimension_numbers = #tpu.dot_dimension_numbers<[1], [0], [0], [1], [0, 0, 1, 1], [], []>} : vector<384x4xf32>, vector<4x4xf32>, vector<384x4xf32> -> vector<384x4xf32>
    %c0_22 = arith.constant 0 : index
    %c0_23 = arith.constant 0 : index
    %25 = vector.load %arg6[%c0_22, %c0_23] : memref<384x4xf32, #tpu.memory_space<vmem>>, vector<384x4xf32>
    %26 = arith.addf %25, %24 : vector<384x4xf32>
    %c0_24 = arith.constant 0 : index
    %c0_25 = arith.constant 0 : index
    %27 = vector.load %arg6[%c0_24, %c0_25] : memref<384x4xf32, #tpu.memory_space<vmem>>, vector<384x4xf32>
    tpu.vector_store %arg6[%c0_24, %c0_25], %26 {strides = array<i32>} : memref<384x4xf32, #tpu.memory_space<vmem>>, vector<384x4xf32>,
    %c2 = arith.constant 2 : index
    %c0_26 = arith.constant 0 : index
    %28 = vector.load %arg5[%c2, %c0_26] : memref<456x4xf32, #tpu.memory_space<vmem>>, vector<384x4xf32>
    %c2_27 = arith.constant 2 : index
    %c0_28 = arith.constant 0 : index
    %c0_29 = arith.constant 0 : index
    %29 = vector.load %arg2[%c2_27, %c0_28, %c0_29] : memref<9x4x4xf32, #tpu.memory_space<vmem>>, vector<1x4x4xf32>
    %30 = vector.shape_cast %29 : vector<1x4x4xf32> to vector<4x4xf32>
    %cst_30 = arith.constant dense<0.000000e+00> : vector<384x4xf32>
    %31 = tpu.matmul %28, %30, %cst_30 {dimension_numbers = #tpu.dot_dimension_numbers<[1], [0], [0], [1], [0, 0, 1, 1], [], []>} : vector<384x4xf32>, vector<4x4xf32>, vector<384x4xf32> -> vector<384x4xf32>
    %c0_31 = arith.constant 0 : index
    %c0_32 = arith.constant 0 : index
    %32 = vector.load %arg6[%c0_31, %c0_32] : memref<384x4xf32, #tpu.memory_space<vmem>>, vector<384x4xf32>
    %33 = arith.addf %32, %31 : vector<384x4xf32>
    %c0_33 = arith.constant 0 : index
    %c0_34 = arith.constant 0 : index
    %34 = vector.load %arg6[%c0_33, %c0_34] : memref<384x4xf32, #tpu.memory_space<vmem>>, vector<384x4xf32>
    tpu.vector_store %arg6[%c0_33, %c0_34], %33 {strides = array<i32>} : memref<384x4xf32, #tpu.memory_space<vmem>>, vector<384x4xf32>,
    %c24_35 = arith.constant 24 : index
    %c0_36 = arith.constant 0 : index
    %35 = vector.load %arg5[%c24_35, %c0_36] : memref<456x4xf32, #tpu.memory_space<vmem>>, vector<384x4xf32>
    %c3 = arith.constant 3 : index
    %c0_37 = arith.constant 0 : index
    %c0_38 = arith.constant 0 : index
    %36 = vector.load %arg2[%c3, %c0_37, %c0_38] : memref<9x4x4xf32, #tpu.memory_space<vmem>>, vector<1x4x4xf32>
    %37 = vector.shape_cast %36 : vector<1x4x4xf32> to vector<4x4xf32>
    %cst_39 = arith.constant dense<0.000000e+00> : vector<384x4xf32>
    %38 = tpu.matmul %35, %37, %cst_39 {dimension_numbers = #tpu.dot_dimension_numbers<[1], [0], [0], [1], [0, 0, 1, 1], [], []>} : vector<384x4xf32>, vector<4x4xf32>, vector<384x4xf32> -> vector<384x4xf32>
    %c0_40 = arith.constant 0 : index
    %c0_41 = arith.constant 0 : index
    %39 = vector.load %arg6[%c0_40, %c0_41] : memref<384x4xf32, #tpu.memory_space<vmem>>, vector<384x4xf32>
    %40 = arith.addf %39, %38 : vector<384x4xf32>
    %c0_42 = arith.constant 0 : index
    %c0_43 = arith.constant 0 : index
    %41 = vector.load %arg6[%c0_42, %c0_43] : memref<384x4xf32, #tpu.memory_space<vmem>>, vector<384x4xf32>
    tpu.vector_store %arg6[%c0_42, %c0_43], %40 {strides = array<i32>} : memref<384x4xf32, #tpu.memory_space<vmem>>, vector<384x4xf32>,
    %c25 = arith.constant 25 : index
    %c0_44 = arith.constant 0 : index
    %42 = vector.load %arg5[%c25, %c0_44] : memref<456x4xf32, #tpu.memory_space<vmem>>, vector<384x4xf32>
    %c4 = arith.constant 4 : index
    %c0_45 = arith.constant 0 : index
    %c0_46 = arith.constant 0 : index
    %43 = vector.load %arg2[%c4, %c0_45, %c0_46] : memref<9x4x4xf32, #tpu.memory_space<vmem>>, vector<1x4x4xf32>
    %44 = vector.shape_cast %43 : vector<1x4x4xf32> to vector<4x4xf32>
    %cst_47 = arith.constant dense<0.000000e+00> : vector<384x4xf32>
    %45 = tpu.matmul %42, %44, %cst_47 {dimension_numbers = #tpu.dot_dimension_numbers<[1], [0], [0], [1], [0, 0, 1, 1], [], []>} : vector<384x4xf32>, vector<4x4xf32>, vector<384x4xf32> -> vector<384x4xf32>
    %c0_48 = arith.constant 0 : index
    %c0_49 = arith.constant 0 : index
    %46 = vector.load %arg6[%c0_48, %c0_49] : memref<384x4xf32, #tpu.memory_space<vmem>>, vector<384x4xf32>
    %47 = arith.addf %46, %45 : vector<384x4xf32>
    %c0_50 = arith.constant 0 : index
    %c0_51 = arith.constant 0 : index
    %48 = vector.load %arg6[%c0_50, %c0_51] : memref<384x4xf32, #tpu.memory_space<vmem>>, vector<384x4xf32>
    tpu.vector_store %arg6[%c0_50, %c0_51], %47 {strides = array<i32>} : memref<384x4xf32, #tpu.memory_space<vmem>>, vector<384x4xf32>,
    %c26 = arith.constant 26 : index
    %c0_52 = arith.constant 0 : index
    %49 = vector.load %arg5[%c26, %c0_52] : memref<456x4xf32, #tpu.memory_space<vmem>>, vector<384x4xf32>
    %c5 = arith.constant 5 : index
    %c0_53 = arith.constant 0 : index
    %c0_54 = arith.constant 0 : index
    %50 = vector.load %arg2[%c5, %c0_53, %c0_54] : memref<9x4x4xf32, #tpu.memory_space<vmem>>, vector<1x4x4xf32>
    %51 = vector.shape_cast %50 : vector<1x4x4xf32> to vector<4x4xf32>
    %cst_55 = arith.constant dense<0.000000e+00> : vector<384x4xf32>
    %52 = tpu.matmul %49, %51, %cst_55 {dimension_numbers = #tpu.dot_dimension_numbers<[1], [0], [0], [1], [0, 0, 1, 1], [], []>} : vector<384x4xf32>, vector<4x4xf32>, vector<384x4xf32> -> vector<384x4xf32>
    %c0_56 = arith.constant 0 : index
    %c0_57 = arith.constant 0 : index
    %53 = vector.load %arg6[%c0_56, %c0_57] : memref<384x4xf32, #tpu.memory_space<vmem>>, vector<384x4xf32>
    %54 = arith.addf %53, %52 : vector<384x4xf32>
    %c0_58 = arith.constant 0 : index
    %c0_59 = arith.constant 0 : index
    %55 = vector.load %arg6[%c0_58, %c0_59] : memref<384x4xf32, #tpu.memory_space<vmem>>, vector<384x4xf32>
    tpu.vector_store %arg6[%c0_58, %c0_59], %54 {strides = array<i32>} : memref<384x4xf32, #tpu.memory_space<vmem>>, vector<384x4xf32>,
    %c48 = arith.constant 48 : index
    %c0_60 = arith.constant 0 : index
    %56 = vector.load %arg5[%c48, %c0_60] : memref<456x4xf32, #tpu.memory_space<vmem>>, vector<384x4xf32>
    %c6 = arith.constant 6 : index
    %c0_61 = arith.constant 0 : index
    %c0_62 = arith.constant 0 : index
    %57 = vector.load %arg2[%c6, %c0_61, %c0_62] : memref<9x4x4xf32, #tpu.memory_space<vmem>>, vector<1x4x4xf32>
    %58 = vector.shape_cast %57 : vector<1x4x4xf32> to vector<4x4xf32>
    %cst_63 = arith.constant dense<0.000000e+00> : vector<384x4xf32>
    %59 = tpu.matmul %56, %58, %cst_63 {dimension_numbers = #tpu.dot_dimension_numbers<[1], [0], [0], [1], [0, 0, 1, 1], [], []>} : vector<384x4xf32>, vector<4x4xf32>, vector<384x4xf32> -> vector<384x4xf32>
    %c0_64 = arith.constant 0 : index
    %c0_65 = arith.constant 0 : index
    %60 = vector.load %arg6[%c0_64, %c0_65] : memref<384x4xf32, #tpu.memory_space<vmem>>, vector<384x4xf32>
    %61 = arith.addf %60, %59 : vector<384x4xf32>
    %c0_66 = arith.constant 0 : index
    %c0_67 = arith.constant 0 : index
    %62 = vector.load %arg6[%c0_66, %c0_67] : memref<384x4xf32, #tpu.memory_space<vmem>>, vector<384x4xf32>
    tpu.vector_store %arg6[%c0_66, %c0_67], %61 {strides = array<i32>} : memref<384x4xf32, #tpu.memory_space<vmem>>, vector<384x4xf32>,
    %c49 = arith.constant 49 : index
    %c0_68 = arith.constant 0 : index
    %63 = vector.load %arg5[%c49, %c0_68] : memref<456x4xf32, #tpu.memory_space<vmem>>, vector<384x4xf32>
    %c7 = arith.constant 7 : index
    %c0_69 = arith.constant 0 : index
    %c0_70 = arith.constant 0 : index
    %64 = vector.load %arg2[%c7, %c0_69, %c0_70] : memref<9x4x4xf32, #tpu.memory_space<vmem>>, vector<1x4x4xf32>
    %65 = vector.shape_cast %64 : vector<1x4x4xf32> to vector<4x4xf32>
    %cst_71 = arith.constant dense<0.000000e+00> : vector<384x4xf32>
    %66 = tpu.matmul %63, %65, %cst_71 {dimension_numbers = #tpu.dot_dimension_numbers<[1], [0], [0], [1], [0, 0, 1, 1], [], []>} : vector<384x4xf32>, vector<4x4xf32>, vector<384x4xf32> -> vector<384x4xf32>
    %c0_72 = arith.constant 0 : index
    %c0_73 = arith.constant 0 : index
    %67 = vector.load %arg6[%c0_72, %c0_73] : memref<384x4xf32, #tpu.memory_space<vmem>>, vector<384x4xf32>
    %68 = arith.addf %67, %66 : vector<384x4xf32>
    %c0_74 = arith.constant 0 : index
    %c0_75 = arith.constant 0 : index
    %69 = vector.load %arg6[%c0_74, %c0_75] : memref<384x4xf32, #tpu.memory_space<vmem>>, vector<384x4xf32>
    tpu.vector_store %arg6[%c0_74, %c0_75], %68 {strides = array<i32>} : memref<384x4xf32, #tpu.memory_space<vmem>>, vector<384x4xf32>,
    %c50 = arith.constant 50 : index
    %c0_76 = arith.constant 0 : index
    %70 = vector.load %arg5[%c50, %c0_76] : memref<456x4xf32, #tpu.memory_space<vmem>>, vector<384x4xf32>
    %c8 = arith.constant 8 : index
    %c0_77 = arith.constant 0 : index
    %c0_78 = arith.constant 0 : index
    %71 = vector.load %arg2[%c8, %c0_77, %c0_78] : memref<9x4x4xf32, #tpu.memory_space<vmem>>, vector<1x4x4xf32>
    %72 = vector.shape_cast %71 : vector<1x4x4xf32> to vector<4x4xf32>
    %cst_79 = arith.constant dense<0.000000e+00> : vector<384x4xf32>
    %73 = tpu.matmul %70, %72, %cst_79 {dimension_numbers = #tpu.dot_dimension_numbers<[1], [0], [0], [1], [0, 0, 1, 1], [], []>} : vector<384x4xf32>, vector<4x4xf32>, vector<384x4xf32> -> vector<384x4xf32>
    %c0_80 = arith.constant 0 : index
    %c0_81 = arith.constant 0 : index
    %74 = vector.load %arg6[%c0_80, %c0_81] : memref<384x4xf32, #tpu.memory_space<vmem>>, vector<384x4xf32>
    %75 = arith.addf %74, %73 : vector<384x4xf32>
    %c0_82 = arith.constant 0 : index
    %c0_83 = arith.constant 0 : index
    %76 = vector.load %arg6[%c0_82, %c0_83] : memref<384x4xf32, #tpu.memory_space<vmem>>, vector<384x4xf32>
    tpu.vector_store %arg6[%c0_82, %c0_83], %75 {strides = array<i32>} : memref<384x4xf32, #tpu.memory_space<vmem>>, vector<384x4xf32>,
    %c0_84 = arith.constant 0 : index
    %c0_85 = arith.constant 0 : index
    %77 = vector.load %arg6[%c0_84, %c0_85] : memref<384x4xf32, #tpu.memory_space<vmem>>, vector<384x4xf32>
    %78 = tpu.iota {dimensions = array<i32: 0>} : vector<24x4xi32>
    %c16_i32 = arith.constant 16 : i32
    %79 = vector.broadcast %c16_i32 : i32 to vector<24x4xi32>
    %80 = arith.cmpi slt, %78, %79 : vector<24x4xi32>
    %81 = vector.shape_cast %77 : vector<384x4xf32> to vector<16x24x4xf32>
    %cst_86 = arith.constant dense<0.000000e+00> : vector<24x4xf32>
    %82 = vector.multi_reduction <add>, %81, %cst_86 [0] : vector<16x24x4xf32> to vector<24x4xf32>
    %cst_87 = arith.constant 0.000000e+00 : f32
    %83 = vector.broadcast %cst_87 : f32 to vector<24x4xf32>
    %84 = arith.select %80, %82, %83 : vector<24x4xi1>, vector<24x4xf32>
    %cst_88 = arith.constant dense<0.000000e+00> : vector<4xf32>
    %85 = vector.multi_reduction <add>, %84, %cst_88 [0] : vector<24x4xf32> to vector<4xf32>
    %86 = vector.shape_cast %85 : vector<4xf32> to vector<1x4xf32>
    %cst_89 = arith.constant 3.906250e-03 : f32
    %87 = vector.broadcast %cst_89 : f32 to vector<1x4xf32>
    %88 = arith.mulf %86, %87 : vector<1x4xf32>
    %89 = vector.broadcast %88 : vector<1x4xf32> to vector<384x4xf32>
    %90 = arith.subf %77, %89 : vector<384x4xf32>
    %91 = arith.mulf %90, %90 : vector<384x4xf32>
    %92 = vector.shape_cast %91 : vector<384x4xf32> to vector<16x24x4xf32>
    %cst_90 = arith.constant dense<0.000000e+00> : vector<24x4xf32>
    %93 = vector.multi_reduction <add>, %92, %cst_90 [0] : vector<16x24x4xf32> to vector<24x4xf32>
    %cst_91 = arith.constant 0.000000e+00 : f32
    %94 = vector.broadcast %cst_91 : f32 to vector<24x4xf32>
    %95 = arith.select %80, %93, %94 : vector<24x4xi1>, vector<24x4xf32>
    %cst_92 = arith.constant dense<0.000000e+00> : vector<4xf32>
    %96 = vector.multi_reduction <add>, %95, %cst_92 [0] : vector<24x4xf32> to vector<4xf32>
    %97 = vector.shape_cast %96 : vector<4xf32> to vector<1x4xf32>
    %cst_93 = arith.constant 3.906250e-03 : f32
    %98 = vector.broadcast %cst_93 : f32 to vector<1x4xf32>
    %99 = arith.mulf %97, %98 : vector<1x4xf32>
    %cst_94 = arith.constant 9.99999974E-6 : f32
    %100 = vector.broadcast %cst_94 : f32 to vector<1x4xf32>
    %101 = arith.addf %99, %100 : vector<1x4xf32>
    %102 = math.rsqrt %101 : vector<1x4xf32>
    %103 = vector.broadcast %102 : vector<1x4xf32> to vector<384x4xf32>
    %104 = arith.mulf %90, %103 : vector<384x4xf32>
    %cst_95 = arith.constant 0.000000e+00 : f32
    %105 = vector.broadcast %cst_95 : f32 to vector<384x4xf32>
    %106 = arith.maximumf %104, %105 : vector<384x4xf32>
    %107 = vector.shape_cast %106 : vector<384x4xf32> to vector<16x24x4xf32>
    %108 = vector.extract_strided_slice %107 {offsets = [0, 1, 0], sizes = [16, 1, 4], strides = [1, 1, 1]} : vector<16x24x4xf32> to vector<16x1x4xf32>
    %109 = vector.extract_strided_slice %107 {offsets = [0, 0, 0], sizes = [16, 16, 4], strides = [1, 1, 1]} : vector<16x24x4xf32> to vector<16x16x4xf32>
    %110 = vector.extract_strided_slice %107 {offsets = [0, 14, 0], sizes = [16, 1, 4], strides = [1, 1, 1]} : vector<16x24x4xf32> to vector<16x1x4xf32>
    %cst_96 = arith.constant 0.000000e+00 : f32
    %111 = vector.broadcast %cst_96 : f32 to vector<16x6x4xf32>
    %112 = tpu.concatenate %108, %109, %110, %111 in 1 : vector<16x1x4xf32>, vector<16x16x4xf32>, vector<16x1x4xf32>, vector<16x6x4xf32> -> vector<16x24x4xf32>
    %113 = vector.shape_cast %112 : vector<16x24x4xf32> to vector<384x4xf32>
    %c24_97 = arith.constant 24 : index
    %c0_98 = arith.constant 0 : index
    %114 = vector.load %arg5[%c24_97, %c0_98] : memref<456x4xf32, #tpu.memory_space<vmem>>, vector<384x4xf32>
    tpu.vector_store %arg5[%c24_97, %c0_98], %113 {strides = array<i32>} : memref<456x4xf32, #tpu.memory_space<vmem>>, vector<384x4xf32>,
    %115 = vector.extract_strided_slice %112 {offsets = [1, 0, 0], sizes = [1, 24, 4], strides = [1, 1, 1]} : vector<16x24x4xf32> to vector<1x24x4xf32>
    %116 = vector.shape_cast %115 : vector<1x24x4xf32> to vector<24x4xf32>
    %c0_99 = arith.constant 0 : index
    %c0_100 = arith.constant 0 : index
    %117 = vector.load %arg5[%c0_99, %c0_100] : memref<456x4xf32, #tpu.memory_space<vmem>>, vector<24x4xf32>
    tpu.vector_store %arg5[%c0_99, %c0_100], %116 {strides = array<i32>} : memref<456x4xf32, #tpu.memory_space<vmem>>, vector<24x4xf32>,
    %118 = vector.extract_strided_slice %112 {offsets = [14, 0, 0], sizes = [1, 24, 4], strides = [1, 1, 1]} : vector<16x24x4xf32> to vector<1x24x4xf32>
    %119 = vector.shape_cast %118 : vector<1x24x4xf32> to vector<24x4xf32>
    %c408_101 = arith.constant 408 : index
    %c0_102 = arith.constant 0 : index
    %120 = vector.load %arg5[%c408_101, %c0_102] : memref<456x4xf32, #tpu.memory_space<vmem>>, vector<24x4xf32>
    tpu.vector_store %arg5[%c408_101, %c0_102], %119 {strides = array<i32>} : memref<456x4xf32, #tpu.memory_space<vmem>>, vector<24x4xf32>,
    %c0_103 = arith.constant 0 : index
    %c0_104 = arith.constant 0 : index
    %121 = vector.load %arg5[%c0_103, %c0_104] : memref<456x4xf32, #tpu.memory_space<vmem>>, vector<384x4xf32>
    %c0_105 = arith.constant 0 : index
    %c0_106 = arith.constant 0 : index
    %c0_107 = arith.constant 0 : index
    %122 = vector.load %arg3[%c0_105, %c0_106, %c0_107] : memref<9x4x4xf32, #tpu.memory_space<vmem>>, vector<1x4x4xf32>
    %123 = vector.shape_cast %122 : vector<1x4x4xf32> to vector<4x4xf32>
    %cst_108 = arith.constant dense<0.000000e+00> : vector<384x4xf32>
    %124 = tpu.matmul %121, %123, %cst_108 {dimension_numbers = #tpu.dot_dimension_numbers<[1], [0], [0], [1], [0, 0, 1, 1], [], []>} : vector<384x4xf32>, vector<4x4xf32>, vector<384x4xf32> -> vector<384x4xf32>
    %c0_109 = arith.constant 0 : index
    %c0_110 = arith.constant 0 : index
    %125 = vector.load %arg6[%c0_109, %c0_110] : memref<384x4xf32, #tpu.memory_space<vmem>>, vector<384x4xf32>
    tpu.vector_store %arg6[%c0_109, %c0_110], %124 {strides = array<i32>} : memref<384x4xf32, #tpu.memory_space<vmem>>, vector<384x4xf32>,
    %c1_111 = arith.constant 1 : index
    %c0_112 = arith.constant 0 : index
    %126 = vector.load %arg5[%c1_111, %c0_112] : memref<456x4xf32, #tpu.memory_space<vmem>>, vector<384x4xf32>
    %c1_113 = arith.constant 1 : index
    %c0_114 = arith.constant 0 : index
    %c0_115 = arith.constant 0 : index
    %127 = vector.load %arg3[%c1_113, %c0_114, %c0_115] : memref<9x4x4xf32, #tpu.memory_space<vmem>>, vector<1x4x4xf32>
    %128 = vector.shape_cast %127 : vector<1x4x4xf32> to vector<4x4xf32>
    %cst_116 = arith.constant dense<0.000000e+00> : vector<384x4xf32>
    %129 = tpu.matmul %126, %128, %cst_116 {dimension_numbers = #tpu.dot_dimension_numbers<[1], [0], [0], [1], [0, 0, 1, 1], [], []>} : vector<384x4xf32>, vector<4x4xf32>, vector<384x4xf32> -> vector<384x4xf32>
    %c0_117 = arith.constant 0 : index
    %c0_118 = arith.constant 0 : index
    %130 = vector.load %arg6[%c0_117, %c0_118] : memref<384x4xf32, #tpu.memory_space<vmem>>, vector<384x4xf32>
    %131 = arith.addf %130, %129 : vector<384x4xf32>
    %c0_119 = arith.constant 0 : index
    %c0_120 = arith.constant 0 : index
    %132 = vector.load %arg6[%c0_119, %c0_120] : memref<384x4xf32, #tpu.memory_space<vmem>>, vector<384x4xf32>
    tpu.vector_store %arg6[%c0_119, %c0_120], %131 {strides = array<i32>} : memref<384x4xf32, #tpu.memory_space<vmem>>, vector<384x4xf32>,
    %c2_121 = arith.constant 2 : index
    %c0_122 = arith.constant 0 : index
    %133 = vector.load %arg5[%c2_121, %c0_122] : memref<456x4xf32, #tpu.memory_space<vmem>>, vector<384x4xf32>
    %c2_123 = arith.constant 2 : index
    %c0_124 = arith.constant 0 : index
    %c0_125 = arith.constant 0 : index
    %134 = vector.load %arg3[%c2_123, %c0_124, %c0_125] : memref<9x4x4xf32, #tpu.memory_space<vmem>>, vector<1x4x4xf32>
    %135 = vector.shape_cast %134 : vector<1x4x4xf32> to vector<4x4xf32>
    %cst_126 = arith.constant dense<0.000000e+00> : vector<384x4xf32>
    %136 = tpu.matmul %133, %135, %cst_126 {dimension_numbers = #tpu.dot_dimension_numbers<[1], [0], [0], [1], [0, 0, 1, 1], [], []>} : vector<384x4xf32>, vector<4x4xf32>, vector<384x4xf32> -> vector<384x4xf32>
    %c0_127 = arith.constant 0 : index
    %c0_128 = arith.constant 0 : index
    %137 = vector.load %arg6[%c0_127, %c0_128] : memref<384x4xf32, #tpu.memory_space<vmem>>, vector<384x4xf32>
    %138 = arith.addf %137, %136 : vector<384x4xf32>
    %c0_129 = arith.constant 0 : index
    %c0_130 = arith.constant 0 : index
    %139 = vector.load %arg6[%c0_129, %c0_130] : memref<384x4xf32, #tpu.memory_space<vmem>>, vector<384x4xf32>
    tpu.vector_store %arg6[%c0_129, %c0_130], %138 {strides = array<i32>} : memref<384x4xf32, #tpu.memory_space<vmem>>, vector<384x4xf32>,
    %c24_131 = arith.constant 24 : index
    %c0_132 = arith.constant 0 : index
    %140 = vector.load %arg5[%c24_131, %c0_132] : memref<456x4xf32, #tpu.memory_space<vmem>>, vector<384x4xf32>
    %c3_133 = arith.constant 3 : index
    %c0_134 = arith.constant 0 : index
    %c0_135 = arith.constant 0 : index
    %141 = vector.load %arg3[%c3_133, %c0_134, %c0_135] : memref<9x4x4xf32, #tpu.memory_space<vmem>>, vector<1x4x4xf32>
    %142 = vector.shape_cast %141 : vector<1x4x4xf32> to vector<4x4xf32>
    %cst_136 = arith.constant dense<0.000000e+00> : vector<384x4xf32>
    %143 = tpu.matmul %140, %142, %cst_136 {dimension_numbers = #tpu.dot_dimension_numbers<[1], [0], [0], [1], [0, 0, 1, 1], [], []>} : vector<384x4xf32>, vector<4x4xf32>, vector<384x4xf32> -> vector<384x4xf32>
    %c0_137 = arith.constant 0 : index
    %c0_138 = arith.constant 0 : index
    %144 = vector.load %arg6[%c0_137, %c0_138] : memref<384x4xf32, #tpu.memory_space<vmem>>, vector<384x4xf32>
    %145 = arith.addf %144, %143 : vector<384x4xf32>
    %c0_139 = arith.constant 0 : index
    %c0_140 = arith.constant 0 : index
    %146 = vector.load %arg6[%c0_139, %c0_140] : memref<384x4xf32, #tpu.memory_space<vmem>>, vector<384x4xf32>
    tpu.vector_store %arg6[%c0_139, %c0_140], %145 {strides = array<i32>} : memref<384x4xf32, #tpu.memory_space<vmem>>, vector<384x4xf32>,
    %c25_141 = arith.constant 25 : index
    %c0_142 = arith.constant 0 : index
    %147 = vector.load %arg5[%c25_141, %c0_142] : memref<456x4xf32, #tpu.memory_space<vmem>>, vector<384x4xf32>
    %c4_143 = arith.constant 4 : index
    %c0_144 = arith.constant 0 : index
    %c0_145 = arith.constant 0 : index
    %148 = vector.load %arg3[%c4_143, %c0_144, %c0_145] : memref<9x4x4xf32, #tpu.memory_space<vmem>>, vector<1x4x4xf32>
    %149 = vector.shape_cast %148 : vector<1x4x4xf32> to vector<4x4xf32>
    %cst_146 = arith.constant dense<0.000000e+00> : vector<384x4xf32>
    %150 = tpu.matmul %147, %149, %cst_146 {dimension_numbers = #tpu.dot_dimension_numbers<[1], [0], [0], [1], [0, 0, 1, 1], [], []>} : vector<384x4xf32>, vector<4x4xf32>, vector<384x4xf32> -> vector<384x4xf32>
    %c0_147 = arith.constant 0 : index
    %c0_148 = arith.constant 0 : index
    %151 = vector.load %arg6[%c0_147, %c0_148] : memref<384x4xf32, #tpu.memory_space<vmem>>, vector<384x4xf32>
    %152 = arith.addf %151, %150 : vector<384x4xf32>
    %c0_149 = arith.constant 0 : index
    %c0_150 = arith.constant 0 : index
    %153 = vector.load %arg6[%c0_149, %c0_150] : memref<384x4xf32, #tpu.memory_space<vmem>>, vector<384x4xf32>
    tpu.vector_store %arg6[%c0_149, %c0_150], %152 {strides = array<i32>} : memref<384x4xf32, #tpu.memory_space<vmem>>, vector<384x4xf32>,
    %c26_151 = arith.constant 26 : index
    %c0_152 = arith.constant 0 : index
    %154 = vector.load %arg5[%c26_151, %c0_152] : memref<456x4xf32, #tpu.memory_space<vmem>>, vector<384x4xf32>
    %c5_153 = arith.constant 5 : index
    %c0_154 = arith.constant 0 : index
    %c0_155 = arith.constant 0 : index
    %155 = vector.load %arg3[%c5_153, %c0_154, %c0_155] : memref<9x4x4xf32, #tpu.memory_space<vmem>>, vector<1x4x4xf32>
    %156 = vector.shape_cast %155 : vector<1x4x4xf32> to vector<4x4xf32>
    %cst_156 = arith.constant dense<0.000000e+00> : vector<384x4xf32>
    %157 = tpu.matmul %154, %156, %cst_156 {dimension_numbers = #tpu.dot_dimension_numbers<[1], [0], [0], [1], [0, 0, 1, 1], [], []>} : vector<384x4xf32>, vector<4x4xf32>, vector<384x4xf32> -> vector<384x4xf32>
    %c0_157 = arith.constant 0 : index
    %c0_158 = arith.constant 0 : index
    %158 = vector.load %arg6[%c0_157, %c0_158] : memref<384x4xf32, #tpu.memory_space<vmem>>, vector<384x4xf32>
    %159 = arith.addf %158, %157 : vector<384x4xf32>
    %c0_159 = arith.constant 0 : index
    %c0_160 = arith.constant 0 : index
    %160 = vector.load %arg6[%c0_159, %c0_160] : memref<384x4xf32, #tpu.memory_space<vmem>>, vector<384x4xf32>
    tpu.vector_store %arg6[%c0_159, %c0_160], %159 {strides = array<i32>} : memref<384x4xf32, #tpu.memory_space<vmem>>, vector<384x4xf32>,
    %c48_161 = arith.constant 48 : index
    %c0_162 = arith.constant 0 : index
    %161 = vector.load %arg5[%c48_161, %c0_162] : memref<456x4xf32, #tpu.memory_space<vmem>>, vector<384x4xf32>
    %c6_163 = arith.constant 6 : index
    %c0_164 = arith.constant 0 : index
    %c0_165 = arith.constant 0 : index
    %162 = vector.load %arg3[%c6_163, %c0_164, %c0_165] : memref<9x4x4xf32, #tpu.memory_space<vmem>>, vector<1x4x4xf32>
    %163 = vector.shape_cast %162 : vector<1x4x4xf32> to vector<4x4xf32>
    %cst_166 = arith.constant dense<0.000000e+00> : vector<384x4xf32>
    %164 = tpu.matmul %161, %163, %cst_166 {dimension_numbers = #tpu.dot_dimension_numbers<[1], [0], [0], [1], [0, 0, 1, 1], [], []>} : vector<384x4xf32>, vector<4x4xf32>, vector<384x4xf32> -> vector<384x4xf32>
    %c0_167 = arith.constant 0 : index
    %c0_168 = arith.constant 0 : index
    %165 = vector.load %arg6[%c0_167, %c0_168] : memref<384x4xf32, #tpu.memory_space<vmem>>, vector<384x4xf32>
    %166 = arith.addf %165, %164 : vector<384x4xf32>
    %c0_169 = arith.constant 0 : index
    %c0_170 = arith.constant 0 : index
    %167 = vector.load %arg6[%c0_169, %c0_170] : memref<384x4xf32, #tpu.memory_space<vmem>>, vector<384x4xf32>
    tpu.vector_store %arg6[%c0_169, %c0_170], %166 {strides = array<i32>} : memref<384x4xf32, #tpu.memory_space<vmem>>, vector<384x4xf32>,
    %c49_171 = arith.constant 49 : index
    %c0_172 = arith.constant 0 : index
    %168 = vector.load %arg5[%c49_171, %c0_172] : memref<456x4xf32, #tpu.memory_space<vmem>>, vector<384x4xf32>
    %c7_173 = arith.constant 7 : index
    %c0_174 = arith.constant 0 : index
    %c0_175 = arith.constant 0 : index
    %169 = vector.load %arg3[%c7_173, %c0_174, %c0_175] : memref<9x4x4xf32, #tpu.memory_space<vmem>>, vector<1x4x4xf32>
    %170 = vector.shape_cast %169 : vector<1x4x4xf32> to vector<4x4xf32>
    %cst_176 = arith.constant dense<0.000000e+00> : vector<384x4xf32>
    %171 = tpu.matmul %168, %170, %cst_176 {dimension_numbers = #tpu.dot_dimension_numbers<[1], [0], [0], [1], [0, 0, 1, 1], [], []>} : vector<384x4xf32>, vector<4x4xf32>, vector<384x4xf32> -> vector<384x4xf32>
    %c0_177 = arith.constant 0 : index
    %c0_178 = arith.constant 0 : index
    %172 = vector.load %arg6[%c0_177, %c0_178] : memref<384x4xf32, #tpu.memory_space<vmem>>, vector<384x4xf32>
    %173 = arith.addf %172, %171 : vector<384x4xf32>
    %c0_179 = arith.constant 0 : index
    %c0_180 = arith.constant 0 : index
    %174 = vector.load %arg6[%c0_179, %c0_180] : memref<384x4xf32, #tpu.memory_space<vmem>>, vector<384x4xf32>
    tpu.vector_store %arg6[%c0_179, %c0_180], %173 {strides = array<i32>} : memref<384x4xf32, #tpu.memory_space<vmem>>, vector<384x4xf32>,
    %c50_181 = arith.constant 50 : index
    %c0_182 = arith.constant 0 : index
    %175 = vector.load %arg5[%c50_181, %c0_182] : memref<456x4xf32, #tpu.memory_space<vmem>>, vector<384x4xf32>
    %c8_183 = arith.constant 8 : index
    %c0_184 = arith.constant 0 : index
    %c0_185 = arith.constant 0 : index
    %176 = vector.load %arg3[%c8_183, %c0_184, %c0_185] : memref<9x4x4xf32, #tpu.memory_space<vmem>>, vector<1x4x4xf32>
    %177 = vector.shape_cast %176 : vector<1x4x4xf32> to vector<4x4xf32>
    %cst_186 = arith.constant dense<0.000000e+00> : vector<384x4xf32>
    %178 = tpu.matmul %175, %177, %cst_186 {dimension_numbers = #tpu.dot_dimension_numbers<[1], [0], [0], [1], [0, 0, 1, 1], [], []>} : vector<384x4xf32>, vector<4x4xf32>, vector<384x4xf32> -> vector<384x4xf32>
    %c0_187 = arith.constant 0 : index
    %c0_188 = arith.constant 0 : index
    %179 = vector.load %arg6[%c0_187, %c0_188] : memref<384x4xf32, #tpu.memory_space<vmem>>, vector<384x4xf32>
    %180 = arith.addf %179, %178 : vector<384x4xf32>
    %c0_189 = arith.constant 0 : index
    %c0_190 = arith.constant 0 : index
    %181 = vector.load %arg6[%c0_189, %c0_190] : memref<384x4xf32, #tpu.memory_space<vmem>>, vector<384x4xf32>
    tpu.vector_store %arg6[%c0_189, %c0_190], %180 {strides = array<i32>} : memref<384x4xf32, #tpu.memory_space<vmem>>, vector<384x4xf32>,
    %c0_191 = arith.constant 0 : index
    %c0_192 = arith.constant 0 : index
    %182 = vector.load %arg6[%c0_191, %c0_192] : memref<384x4xf32, #tpu.memory_space<vmem>>, vector<384x4xf32>
    %183 = tpu.iota {dimensions = array<i32: 0>} : vector<24x4xi32>
    %c16_i32_193 = arith.constant 16 : i32
    %184 = vector.broadcast %c16_i32_193 : i32 to vector<24x4xi32>
    %185 = arith.cmpi slt, %183, %184 : vector<24x4xi32>
    %186 = vector.shape_cast %182 : vector<384x4xf32> to vector<16x24x4xf32>
    %cst_194 = arith.constant dense<0.000000e+00> : vector<24x4xf32>
    %187 = vector.multi_reduction <add>, %186, %cst_194 [0] : vector<16x24x4xf32> to vector<24x4xf32>
    %cst_195 = arith.constant 0.000000e+00 : f32
    %188 = vector.broadcast %cst_195 : f32 to vector<24x4xf32>
    %189 = arith.select %185, %187, %188 : vector<24x4xi1>, vector<24x4xf32>
    %cst_196 = arith.constant dense<0.000000e+00> : vector<4xf32>
    %190 = vector.multi_reduction <add>, %189, %cst_196 [0] : vector<24x4xf32> to vector<4xf32>
    %191 = vector.shape_cast %190 : vector<4xf32> to vector<1x4xf32>
    %cst_197 = arith.constant 3.906250e-03 : f32
    %192 = vector.broadcast %cst_197 : f32 to vector<1x4xf32>
    %193 = arith.mulf %191, %192 : vector<1x4xf32>
    %194 = vector.broadcast %193 : vector<1x4xf32> to vector<384x4xf32>
    %195 = arith.subf %182, %194 : vector<384x4xf32>
    %196 = arith.mulf %195, %195 : vector<384x4xf32>
    %197 = vector.shape_cast %196 : vector<384x4xf32> to vector<16x24x4xf32>
    %cst_198 = arith.constant dense<0.000000e+00> : vector<24x4xf32>
    %198 = vector.multi_reduction <add>, %197, %cst_198 [0] : vector<16x24x4xf32> to vector<24x4xf32>
    %cst_199 = arith.constant 0.000000e+00 : f32
    %199 = vector.broadcast %cst_199 : f32 to vector<24x4xf32>
    %200 = arith.select %185, %198, %199 : vector<24x4xi1>, vector<24x4xf32>
    %cst_200 = arith.constant dense<0.000000e+00> : vector<4xf32>
    %201 = vector.multi_reduction <add>, %200, %cst_200 [0] : vector<24x4xf32> to vector<4xf32>
    %202 = vector.shape_cast %201 : vector<4xf32> to vector<1x4xf32>
    %cst_201 = arith.constant 3.906250e-03 : f32
    %203 = vector.broadcast %cst_201 : f32 to vector<1x4xf32>
    %204 = arith.mulf %202, %203 : vector<1x4xf32>
    %cst_202 = arith.constant 9.99999974E-6 : f32
    %205 = vector.broadcast %cst_202 : f32 to vector<1x4xf32>
    %206 = arith.addf %204, %205 : vector<1x4xf32>
    %207 = math.rsqrt %206 : vector<1x4xf32>
    %208 = vector.broadcast %207 : vector<1x4xf32> to vector<384x4xf32>
    %209 = arith.mulf %195, %208 : vector<384x4xf32>
    %c0_203 = arith.constant 0 : index
    %c0_204 = arith.constant 0 : index
    %c0_205 = arith.constant 0 : index
    %c0_206 = arith.constant 0 : index
    %210 = vector.load %arg1[%c0_203, %c0_204, %c0_205, %c0_206] : memref<1x16x16x4xf32, #tpu.memory_space<vmem>>, vector<1x16x16x4xf32>
    %211 = vector.shape_cast %210 : vector<1x16x16x4xf32> to vector<16x16x4xf32>
    %212 = vector.shape_cast %209 : vector<384x4xf32> to vector<16x24x4xf32>
    %213 = vector.extract_strided_slice %212 {offsets = [0, 0, 0], sizes = [16, 16, 4], strides = [1, 1, 1]} : vector<16x24x4xf32> to vector<16x16x4xf32>
    %214 = arith.addf %211, %213 : vector<16x16x4xf32>
    %c0_207 = arith.constant 0 : index
    %c0_208 = arith.constant 0 : index
    %c0_209 = arith.constant 0 : index
    %c0_210 = arith.constant 0 : index
    %215 = vector.load %arg4[%c0_207, %c0_208, %c0_209, %c0_210] : memref<1x16x16x4xf32, #tpu.memory_space<vmem>>, vector<1x16x16x4xf32>
    %216 = vector.shape_cast %215 : vector<1x16x16x4xf32> to vector<16x16x4xf32>
    %217 = vector.shape_cast %214 : vector<16x16x4xf32> to vector<1x16x16x4xf32>
    tpu.vector_store %arg4[%c0_207, %c0_208, %c0_209, %c0_210], %217 {strides = array<i32>} : memref<1x16x16x4xf32, #tpu.memory_space<vmem>>, vector<1x16x16x4xf32>,
    return
  }
  func.func @transform_0(%arg0: i32) -> (i32, i32, i32, i32) {
    %c0_i32 = arith.constant 0 : i32
    %c0_i32_0 = arith.constant 0 : i32
    %c0_i32_1 = arith.constant 0 : i32
    %c0_i32_2 = arith.constant 0 : i32
    return %arg0, %c0_i32, %c0_i32_0, %c0_i32_1 : i32, i32, i32, i32
  }
  func.func @transform_1(%arg0: i32) -> (i32, i32, i32) {
    %c0_i32 = arith.constant 0 : i32
    %c0_i32_0 = arith.constant 0 : i32
    %c0_i32_1 = arith.constant 0 : i32
    %c0_i32_2 = arith.constant 0 : i32
    return %c0_i32, %c0_i32_0, %c0_i32_1 : i32, i32, i32
  }
  func.func @transform_2(%arg0: i32) -> (i32, i32, i32) {
    %c0_i32 = arith.constant 0 : i32
    %c0_i32_0 = arith.constant 0 : i32
    %c0_i32_1 = arith.constant 0 : i32
    %c0_i32_2 = arith.constant 0 : i32
    return %c0_i32, %c0_i32_0, %c0_i32_1 : i32, i32, i32
  }
  func.func @transform_3(%arg0: i32) -> (i32, i32, i32, i32) {
    %c0_i32 = arith.constant 0 : i32
    %c0_i32_0 = arith.constant 0 : i32
    %c0_i32_1 = arith.constant 0 : i32
    %c0_i32_2 = arith.constant 0 : i32
    return %arg0, %c0_i32, %c0_i32_0, %c0_i32_1 : i32, i32, i32, i32
  }
}

</mosaic_0001>

<bundles_post_ra>
// kernel: tpu_custom_call.1
= control target key start
LH: loop header
LB: loop body
LE: loop exit
PB: predicated region body
PF: predicated region fallthrough
CT: control target
= control target key end

     0   :  { %s16377_s12 = smov 0   ;;  %s20759_s0 = inlined_call_operand.vmem [shape: f32[2,16,16,4], index: 0, kind: input, shape index: {}]   ;;  %s20760_s1 = inlined_call_operand.vmem [shape: f32[9,4,4], index: 1, kind: input, shape index: {}]   ;;  %s20761_s2 = inlined_call_operand.vmem [shape: f32[9,4,4], index: 2, kind: input, shape index: {}]   ;;  %s20762_s3 = inlined_call_operand.vmem [shape: f32[2,16,16,4], index: 3, kind: output, shape index: {}]  }
   0x1 LB: > { %s13210_s13 = sadd.s32 4294967295, %s16354_s12   ;;  %p13214_p0 = scmp.ge.s32.totalorder %s16354_s12, 1  ;;  %s16354_s12 = sphi %s16377_s12, %s13_s12  }
   0x2   : > { %p137_p1 = scmp.lt.s32.totalorder %s16354_s12, 3 }
   0x4   : > { %p138_p2 = pnand %p13214_p0, %p137_p1 }
   0x6   : > { %141 = sbr.rel (%p138_p2) target bundleno = 1699 (0x6a3), region = 32 }
   0xd   : > { %v551_v0 = vld [vmem:[%s20760_s1] sm:$0xf]  ;;  %vm696_vm0 = vcmask 1043456   ;;  %p161_p3 = scmp.lt.s32.totalorder %s13210_s13, 1  ;;  %v16392_v1 = vld [vmem:[%s20760_s1 + $0x8] sm:$0xf] }
   0xe   : > { %15003 = vmatprep.subr.msk.mxu0 %vm696_vm0, %v551_v0  ;;  %v13268_v2 = vld [vmem:[%s20760_s1 + $0x4] sm:$0xf]  ;;  %v16404_v3 = vld [vmem:[%s20760_s1 + $0xc] sm:$0xf]  ;;  %vm171_vm1 = vcmask 31744   ;;  %vm271_vm2 = vcmask 1040384  }
   0xf   : > { %15004 = vmatpush3.msk.msra.mxu0 %vm696_vm0, %v551_v0  ;;  %s20903_s13 = smov (!%p161_p3, %s13210_s13), 1  ;;  %15077 = vmatprep.subr.msk.mxu1 %vm696_vm0, %v13268_v2  ;;  %vm432_vm3 = vcmask 1041408  }
  0x10   : > { %15151 = vmatprep.subr.msk.mxu0 %vm696_vm0, %v16392_v1  ;;  %15078 = vmatpush3.msk.msra.mxu1 %vm696_vm0, %v13268_v2  ;;  %s14119_s22 = sshll.u32 %s20903_s13, 8 }
  0x11   : > { %15225 = vmatprep.subr.msk.mxu1 %vm696_vm0, %v16404_v3  ;;  %s16417_s25 = scalar_lea.vmem %s20759_s0, %s14119_s22  ;;  %s20640_s6 = scalar_lea.vmem %s20762_s3, %s14119_s22 }
  0x12   : > { %v177_v4 = vld [vmem:[%s16417_s25 + $0x10] sm:$0xff]  ;;  %v178_v5 = vld [vmem:[%s16417_s25 + $0x18] sm:$0xff]  ;;  %v175_v6 = vld [vmem:[%s16417_s25] sm:$0xff] }
  0x13   : > { %v224_v7 = vrot.slane %v177_v4, 1  ;;  %v275_v8 = vrot.slane %v177_v4, 7  ;;  %v276_v9 = vrot.slane %v178_v5, 7  ;;  %v369_v10 = vrot.slane %v178_v5, 5  ;;  %v176_v11 = vld [vmem:[%s16417_s25 + $0x8] sm:$0xff]  ;;  %v179_v12 = vld [vmem:[%s16417_s25 + $0x20] sm:$0xff] }
  0x14   : > { %v223_v13 = vrot.slane %v175_v6, 1  ;;  %v272_v14 = vrot.slane %v175_v6, 7  ;;  %v273_v15 = vrot.slane %v176_v11, 7  ;;  %v368_v16 = vrot.slane %v176_v11, 5  ;;  %v180_v17 = vld [vmem:[%s16417_s25 + $0x28] sm:$0xff]  ;;  %v181_v22 = vld [vmem:[%s16417_s25 + $0x30] sm:$0xff] }
  0x15   : > { %v401_v18 = vsel %vm271_vm2, %v224_v7, %v275_v8  ;;  %v277_v19 = vsel %vm271_vm2, %v275_v8, %v276_v9  ;;  %v417_v20 = vsel %vm271_vm2, %v276_v9, %v369_v10  ;;  %v225_v21 = vrot.slane %v179_v12, 1  ;;  %v182_v23 = vld [vmem:[%s16417_s25 + $0x38] sm:$0xff]  ;;  %v183_v28 = vld [vmem:[%s16417_s25 + $0x40] sm:$0xff]  ;;  %v184_v37 = vld [vmem:[%s16417_s25 + $0x48] sm:$0xff] }
  0x16   : > { %452 = vst.msk [vmem:[#allocation2 + $0x30] sm:$0xff] %vm171_vm1, %v401_v18  ;;  %497 = vst.msk [vmem:[#allocation2] sm:$0xff] %vm171_vm1, %v401_v18  ;;  %v434_v24 = vsel %vm432_vm3, %v417_v20, 0.0  ;;  %v400_v25 = vsel %vm271_vm2, %v223_v13, %v272_v14  ;;  %v274_v26 = vsel %vm271_vm2, %v272_v14, %v273_v15  ;;  %v416_v27 = vsel %vm271_vm2, %v273_v15, %v368_v16  ;;  %v185_v42 = vld [vmem:[%s16417_s25 + $0x50] sm:$0xff]  ;;  %v186_v43 = vld [vmem:[%s16417_s25 + $0x58] sm:$0xff] }
  0x17   : > { %498 = vst.msk [vmem:[#allocation2 + $0x8] sm:$0xff] %vm171_vm1, %v277_v19  ;;  %453 = vst.msk [vmem:[#allocation2 + $0x38] sm:$0xff] %vm171_vm1, %v277_v19  ;;  %v433_v29 = vsel %vm432_vm3, %v416_v27, 0.0  ;;  %v278_v30 = vrot.slane %v179_v12, 7  ;;  %v279_v31 = vrot.slane %v180_v17, 7  ;;  %v370_v32 = vrot.slane %v180_v17, 5 }
  0x18   : > { %499 = vst.msk [vmem:[#allocation2 + $0x10] sm:$0xff] %vm171_vm1, %v434_v24  ;;  %454 = vst.msk [vmem:[#allocation2 + $0x40] sm:$0xff] %vm171_vm1, %v434_v24  ;;  %v226_v33 = vrot.slane %v181_v22, 1  ;;  %v281_v34 = vrot.slane %v181_v22, 7  ;;  %v282_v35 = vrot.slane %v182_v23, 7  ;;  %v371_v36 = vrot.slane %v182_v23, 5 }
  0x19   : > { %449 = vst.msk [vmem:[#allocation2 + $0x18] sm:$0xff] %vm171_vm1, %v400_v25  ;;  %450 = vst.msk [vmem:[#allocation2 + $0x20] sm:$0xff] %vm171_vm1, %v274_v26  ;;  %v402_v38 = vsel %vm271_vm2, %v225_v21, %v278_v30  ;;  %v280_v39 = vsel %vm271_vm2, %v278_v30, %v279_v31  ;;  %v418_v40 = vsel %vm271_vm2, %v279_v31, %v370_v32  ;;  %v227_v41 = vrot.slane %v183_v28, 1  ;;  %v187_v48 = vld [vmem:[%s16417_s25 + $0x60] sm:$0xff]  ;;  %v188_v57 = vld [vmem:[%s16417_s25 + $0x68] sm:$0xff] }
  0x1a   : > { %451 = vst.msk [vmem:[#allocation2 + $0x28] sm:$0xff] %vm171_vm1, %v433_v29  ;;  %455 = vst.msk [vmem:[#allocation2 + $0x48] sm:$0xff] %vm171_vm1, %v402_v38  ;;  %v435_v44 = vsel %vm432_vm3, %v418_v40, 0.0  ;;  %v403_v45 = vsel %vm271_vm2, %v226_v33, %v281_v34  ;;  %v283_v46 = vsel %vm271_vm2, %v281_v34, %v282_v35  ;;  %v419_v47 = vsel %vm271_vm2, %v282_v35, %v371_v36  ;;  %v189_v58 = vld [vmem:[%s16417_s25 + $0x70] sm:$0xff]  ;;  %v190_v9 = vld [vmem:[%s16417_s25 + $0x78] sm:$0xff] }
  0x1b   : > { %456 = vst.msk [vmem:[#allocation2 + $0x50] sm:$0xff] %vm171_vm1, %v280_v39  ;;  %457 = vst.msk [vmem:[#allocation2 + $0x58] sm:$0xff] %vm171_vm1, %v435_v44  ;;  %v436_v49 = vsel %vm432_vm3, %v419_v47, 0.0  ;;  %v284_v50 = vrot.slane %v183_v28, 7  ;;  %v285_v51 = vrot.slane %v184_v37, 7  ;;  %v372_v52 = vrot.slane %v184_v37, 5 }
  0x1c   : > { %458 = vst.msk [vmem:[#allocation2 + $0x60] sm:$0xff] %vm171_vm1, %v403_v45  ;;  %459 = vst.msk [vmem:[#allocation2 + $0x68] sm:$0xff] %vm171_vm1, %v283_v46  ;;  %v228_v53 = vrot.slane %v185_v42, 1  ;;  %v287_v54 = vrot.slane %v185_v42, 7  ;;  %v288_v55 = vrot.slane %v186_v43, 7  ;;  %v373_v56 = vrot.slane %v186_v43, 5 }
  0x1d   : > { %460 = vst.msk [vmem:[#allocation2 + $0x70] sm:$0xff] %vm171_vm1, %v436_v49  ;;  %v503_v59 = vld [vmem:[#allocation2] sm:$0xff]  ;;  %v404_v62 = vsel %vm271_vm2, %v227_v41, %v284_v50  ;;  %v286_v63 = vsel %vm271_vm2, %v284_v50, %v285_v51  ;;  %v420_v0 = vsel %vm271_vm2, %v285_v51, %v372_v52  ;;  %v229_v2 = vrot.slane %v187_v48, 1  ;;  %v16480_v10 = vld [vmem:[%s20760_s1 + $0x10] sm:$0xf]  ;;  %v192_v21 = vld [vmem:[%s16417_s25 + $0x88] sm:$0xff] }
  0x1e   : > { %v504_v60 = vld [vmem:[#allocation2 + $0x8] sm:$0xff]  ;;  %15005 = vmatprep.mubr.msk.f32.mxu0 %vm171_vm1, %v503_v59  ;;  %461 = vst.msk [vmem:[#allocation2 + $0x78] sm:$0xff] %vm171_vm1, %v404_v62  ;;  %462 = vst.msk [vmem:[#allocation2 + $0x80] sm:$0xff] %vm171_vm1, %v286_v63  ;;  %v437_v5 = vsel %vm432_vm3, %v420_v0, 0.0  ;;  %v405_v6 = vsel %vm271_vm2, %v228_v53, %v287_v54  ;;  %v289_v7 = vsel %vm271_vm2, %v287_v54, %v288_v55  ;;  %v290_v13 = vrot.slane %v187_v48, 7  ;;  %v191_v15 = vld [vmem:[%s16417_s25 + $0x80] sm:$0xff] }
  0x1f   : > { %v1053_v61 = vld [vmem:[#allocation2 + $0x1] sm:$0xff]  ;;  %v505_v4 = vld [vmem:[#allocation2 + $0x10] sm:$0xff]  ;;  %v421_v8 = vsel %vm271_vm2, %v288_v55, %v373_v56  ;;  %15006 = vmatmul.mubr.msk.f32.vlgmr.msra.gmra.mrb[0].mxu0 %vm171_vm1, %v504_v60  ;;  %463 = vst.msk [vmem:[#allocation2 + $0x88] sm:$0xff] %vm171_vm1, %v437_v5  ;;  %464 = vst.msk [vmem:[#allocation2 + $0x90] sm:$0xff] %vm171_vm1, %v405_v6  ;;  %v291_v14 = vrot.slane %v188_v57, 7  ;;  %v374_v18 = vrot.slane %v188_v57, 5 }
  0x20   : > { %15079 = vmatprep.mubr.msk.f32.mxu1 %vm171_vm1, %v1053_v61  ;;  %v1054_v11 = vld [vmem:[#allocation2 + $0x9] sm:$0xff]  ;;  %465 = vst.msk [vmem:[#allocation2 + $0x98] sm:$0xff] %vm171_vm1, %v289_v7  ;;  %v438_v12 = vsel %vm432_vm3, %v421_v8, 0.0  ;;  %15152 = vmatpush3.msk.msra.mxu0 %vm696_vm0, %v16392_v1  ;;  %v16491_v16 = vld [vmem:[#allocation2 + $0x18] sm:$0xff]  ;;  %v230_v19 = vrot.slane %v189_v58, 1  ;;  %v293_v20 = vrot.slane %v189_v58, 7  ;;  %v406_v23 = vsel %vm271_vm2, %v229_v2, %v290_v13 }
  0x21   : > { %15008 = vmatprep.mubr.msk.f32.mxu0 %vm171_vm1, %v505_v4  ;;  %v1055_v17 = vld [vmem:[#allocation2 + $0x11] sm:$0xff]  ;;  %466 = vst.msk [vmem:[#allocation2 + $0xa0] sm:$0xff] %vm171_vm1, %v438_v12  ;;  %v16495_v22 = vld [vmem:[#allocation2 + $0x20] sm:$0xff]  ;;  %15080 = vmatmul.mubr.msk.f32.vlgmr.msra.gmra.mrb[0].mxu1 %vm171_vm1, %v1054_v11  ;;  %v292_v1 = vsel %vm271_vm2, %v290_v13, %v291_v14  ;;  %v294_v24 = vrot.slane %v190_v9, 7  ;;  %v375_v25 = vrot.slane %v190_v9, 5  ;;  %467 = vst.msk [vmem:[#allocation2 + $0xa8] sm:$0xff] %vm171_vm1, %v406_v23 }
  0x22   : > { %v193_v26 = vld [vmem:[%s16417_s25 + $0x90] sm:$0xff]  ;;  %15299 = vmatprep.subr.msk.mxu0 %vm696_vm0, %v16480_v10  ;;  %15082 = vmatprep.mubr.msk.f32.mxu1 %vm171_vm1, %v1055_v17  ;;  %v1056_v27 = vld [vmem:[#allocation2 + $0x19] sm:$0xff]  ;;  %468 = vst.msk [vmem:[#allocation2 + $0xb0] sm:$0xff] %vm171_vm1, %v292_v1  ;;  %v422_v28 = vsel %vm271_vm2, %v291_v14, %v374_v18  ;;  %v407_v29 = vsel %vm271_vm2, %v230_v19, %v293_v20  ;;  %v231_v30 = vrot.slane %v191_v15, 1  ;;  %v296_v31 = vrot.slane %v191_v15, 7  ;;  %v1057_v33 = vld [vmem:[#allocation2 + $0x21] sm:$0xff] }
  0x23   : > { %v194_v32 = vld [vmem:[%s16417_s25 + $0x98] sm:$0xff]  ;;  %15226 = vmatpush3.msk.msra.mxu1 %vm696_vm0, %v16404_v3  ;;  %15009 = vmatmul.mubr.msk.f32.gmra.mrb[2].mxu0 %vm171_vm1, %v16491_v16  ;;  %v439_v34 = vsel %vm432_vm3, %v422_v28, 0.0  ;;  %470 = vst.msk [vmem:[#allocation2 + $0xc0] sm:$0xff] %vm171_vm1, %v407_v29  ;;  %v295_v35 = vsel %vm271_vm2, %v293_v20, %v294_v24  ;;  %v423_v36 = vsel %vm271_vm2, %v294_v24, %v375_v25  ;;  %v297_v37 = vrot.slane %v192_v21, 7  ;;  %v195_v38 = vld [vmem:[%s16417_s25 + $0xa0] sm:$0xff]  ;;  %v196_v39 = vld [vmem:[%s16417_s25 + $0xa8] sm:$0xff] }
  0x24   : > { %15011 = vmatprep.mubr.msk.f32.mxu0 %vm171_vm1, %v16495_v22  ;;  %v16521_v40 = vld [vmem:[#allocation2 + $0x28] sm:$0xff]  ;;  %469 = vst.msk [vmem:[#allocation2 + $0xb8] sm:$0xff] %vm171_vm1, %v439_v34  ;;  %471 = vst.msk [vmem:[#allocation2 + $0xc8] sm:$0xff] %vm171_vm1, %v295_v35  ;;  %v440_v3 = vsel %vm432_vm3, %v423_v36, 0.0  ;;  %v408_v41 = vsel %vm271_vm2, %v231_v30, %v296_v31  ;;  %v376_v42 = vrot.slane %v192_v21, 5  ;;  %v232_v43 = vrot.slane %v193_v26, 1 }
  0x25   : > { %v16527_v44 = vld [vmem:[#allocation2 + $0x30] sm:$0xff]  ;;  %15083 = vmatmul.mubr.msk.f32.gmra.mrb[2].mxu1 %vm171_vm1, %v1056_v27  ;;  %472 = vst.msk [vmem:[#allocation2 + $0xd0] sm:$0xff] %vm171_vm1, %v440_v3  ;;  %473 = vst.msk [vmem:[#allocation2 + $0xd8] sm:$0xff] %vm171_vm1, %v408_v41  ;;  %v298_v45 = vsel %vm271_vm2, %v296_v31, %v297_v37  ;;  %v299_v46 = vrot.slane %v193_v26, 7  ;;  %v300_v47 = vrot.slane %v194_v32, 7  ;;  %v377_v48 = vrot.slane %v194_v32, 5 }
  0x26   : > { %15085 = vmatprep.mubr.msk.f32.mxu1 %vm171_vm1, %v1057_v33  ;;  %v1058_v49 = vld [vmem:[#allocation2 + $0x29] sm:$0xff]  ;;  %474 = vst.msk [vmem:[#allocation2 + $0xe0] sm:$0xff] %vm171_vm1, %v298_v45  ;;  %v424_v50 = vsel %vm271_vm2, %v297_v37, %v376_v42  ;;  %v233_v51 = vrot.slane %v195_v38, 1  ;;  %v302_v52 = vrot.slane %v195_v38, 7  ;;  %v303_v53 = vrot.slane %v196_v39, 7  ;;  %v198_v55 = vld [vmem:[%s16417_s25 + $0xb8] sm:$0xff] }
  0x27   : > { %v197_v54 = vld [vmem:[%s16417_s25 + $0xb0] sm:$0xff]  ;;  %15012 = vmatmul.mubr.msk.f32.gmra.mrb[4].mxu0 %vm171_vm1, %v16521_v40  ;;  %v441_v57 = vsel %vm432_vm3, %v424_v50, 0.0  ;;  %v409_v58 = vsel %vm271_vm2, %v232_v43, %v299_v46  ;;  %v301_v59 = vsel %vm271_vm2, %v299_v46, %v300_v47  ;;  %v425_v60 = vsel %vm271_vm2, %v300_v47, %v377_v48  ;;  %v199_v61 = vld [vmem:[%s16417_s25 + $0xc0] sm:$0xff]  ;;  %v16547_v62 = vld [vmem:[#allocation2 + $0x38] sm:$0xff] }
  0x28   : > { %v1059_v56 = vld [vmem:[#allocation2 + $0x31] sm:$0xff]  ;;  %15014 = vmatprep.mubr.msk.f32.mxu0 %vm171_vm1, %v16527_v44  ;;  %475 = vst.msk [vmem:[#allocation2 + $0xe8] sm:$0xff] %vm171_vm1, %v441_v57  ;;  %476 = vst.msk [vmem:[#allocation2 + $0xf0] sm:$0xff] %vm171_vm1, %v409_v58  ;;  %v442_v63 = vsel %vm432_vm3, %v425_v60, 0.0  ;;  %v410_v0 = vsel %vm271_vm2, %v233_v51, %v302_v52  ;;  %v304_v2 = vsel %vm271_vm2, %v302_v52, %v303_v53  ;;  %v378_v4 = vrot.slane %v196_v39, 5  ;;  %v200_v5 = vld [vmem:[%s16417_s25 + $0xc8] sm:$0xff] }
  0x29   : > { %477 = vst.msk [vmem:[#allocation2 + $0xf8] sm:$0xff] %vm171_vm1, %v301_v59  ;;  %v16556_v6 = vld [vmem:[#allocation2 + $0x40] sm:$0xff]  ;;  %15086 = vmatmul.mubr.msk.f32.gmra.mrb[4].mxu1 %vm171_vm1, %v1058_v49  ;;  %478 = vst.msk [vmem:[#allocation2 + $0x100] sm:$0xff] %vm171_vm1, %v442_v63  ;;  %v234_v7 = vrot.slane %v197_v54, 1  ;;  %v305_v8 = vrot.slane %v197_v54, 7  ;;  %v306_v9 = vrot.slane %v198_v55, 7 }
  0x2a   : > { %479 = vst.msk [vmem:[#allocation2 + $0x108] sm:$0xff] %vm171_vm1, %v410_v0  ;;  %480 = vst.msk [vmem:[#allocation2 + $0x110] sm:$0xff] %vm171_vm1, %v304_v2  ;;  %v16563_v11 = vld [vmem:[%s16417_s25 + $0xd0] sm:$0xff]  ;;  %15088 = vmatprep.mubr.msk.f32.mxu1 %vm171_vm1, %v1059_v56  ;;  %v1060_v12 = vld [vmem:[#allocation2 + $0x39] sm:$0xff]  ;;  %v426_v13 = vsel %vm271_vm2, %v303_v53, %v378_v4  ;;  %v379_v14 = vrot.slane %v198_v55, 5  ;;  %v235_v15 = vrot.slane %v199_v61, 1 }
  0x2b   : > { %v308_v17 = vrot.slane %v199_v61, 7  ;;  %15015 = vmatmul.mubr.msk.f32.gmra.mrb[6].mxu0 %vm171_vm1, %v16547_v62  ;;  %v1061_v18 = vld [vmem:[#allocation2 + $0x41] sm:$0xff]  ;;  %v443_v19 = vsel %vm432_vm3, %v426_v13, 0.0  ;;  %v411_v20 = vsel %vm271_vm2, %v234_v7, %v305_v8  ;;  %v307_v21 = vsel %vm271_vm2, %v305_v8, %v306_v9  ;;  %v16582_v28 = vld [vmem:[#allocation2 + $0x50] sm:$0xff]  ;;  %v16599_v37 = vld [vmem:[#allocation2 + $0x58] sm:$0xff] }
  0x2c   : > { %v309_v23 = vrot.slane %v200_v5, 7  ;;  %15017 = vmatprep.mubr.msk.f32.mxu0 %vm171_vm1, %v16556_v6  ;;  %v16574_v1 = vld [vmem:[#allocation2 + $0x48] sm:$0xff]  ;;  %481 = vst.msk [vmem:[#allocation2 + $0x118] sm:$0xff] %vm171_vm1, %v443_v19  ;;  %482 = vst.msk [vmem:[#allocation2 + $0x120] sm:$0xff] %vm171_vm1, %v411_v20  ;;  %v427_v24 = vsel %vm271_vm2, %v306_v9, %v379_v14  ;;  %v380_v26 = vrot.slane %v200_v5, 5  ;;  %v236_v27 = vrot.slane %v16563_v11, 1 }
  0x2d   : > { %483 = vst.msk [vmem:[#allocation2 + $0x128] sm:$0xff] %vm171_vm1, %v307_v21  ;;  %v412_v25 = vsel %vm271_vm2, %v235_v15, %v308_v17  ;;  %15089 = vmatmul.mubr.msk.f32.gmra.mrb[6].mxu1 %vm171_vm1, %v1060_v12  ;;  %v444_v29 = vsel %vm432_vm3, %v427_v24, 0.0  ;;  %v311_v31 = vrot.slane %v16563_v11, 7  ;;  %v1062_v32 = vld [vmem:[#allocation2 + $0x49] sm:$0xff]  ;;  %v1063_v34 = vld [vmem:[#allocation2 + $0x51] sm:$0xff]  ;;  %v16603_v38 = vld [vmem:[#allocation2 + $0x60] sm:$0xff] }
  0x2e   : > { %485 = vst.msk [vmem:[#allocation2 + $0x138] sm:$0xff] %vm171_vm1, %v412_v25  ;;  %v310_v30 = vsel %vm271_vm2, %v308_v17, %v309_v23  ;;  %15091 = vmatprep.mubr.msk.f32.mxu1 %vm171_vm1, %v1061_v18  ;;  %484 = vst.msk [vmem:[#allocation2 + $0x130] sm:$0xff] %vm171_vm1, %v444_v29  ;;  %v428_v33 = vsel %vm271_vm2, %v309_v23, %v380_v26  ;;  %v1064_v39 = vld [vmem:[#allocation2 + $0x59] sm:$0xff]  ;;  %v1065_v3 = vld [vmem:[#allocation2 + $0x61] sm:$0xff] }
  0x2f   : > { %486 = vst.msk [vmem:[#allocation2 + $0x140] sm:$0xff] %vm171_vm1, %v310_v30  ;;  %15018 = vmatmul.mubr.msk.f32.gmra.mrb[8].mxu0 %vm171_vm1, %v16574_v1  ;;  %v445_v35 = vsel %vm432_vm3, %v428_v33, 0.0  ;;  %v413_v36 = vsel %vm271_vm2, %v236_v27, %v311_v31  ;;  %v16611_v41 = vld [vmem:[#allocation2 + $0x68] sm:$0xff]  ;;  %v16613_v42 = vld [vmem:[#allocation2 + $0x70] sm:$0xff]  ;;  %v16623_v46 = vld [vmem:[#allocation2 + $0x78] sm:$0xff] }
  0x30   : > { %15020 = vmatprep.mubr.msk.f32.mxu0 %vm171_vm1, %v16582_v28  ;;  %487 = vst.msk [vmem:[#allocation2 + $0x148] sm:$0xff] %vm171_vm1, %v445_v35  ;;  %488 = vst.msk [vmem:[#allocation2 + $0x150] sm:$0xff] %vm171_vm1, %v413_v36  ;;  %v1066_v43 = vld [vmem:[#allocation2 + $0x69] sm:$0xff]  ;;  %v16619_v45 = vld [vmem:[#allocation2 + $0x71] sm:$0xff] }
  0x31   : > { %15092 = vmatmul.mubr.msk.f32.gmra.mrb[8].mxu1 %vm171_vm1, %v1062_v32  ;;  %v202_v47 = vld [vmem:[%s16417_s25 + $0xd8] sm:$0xff]  ;;  %v16626_v48 = vld [vmem:[#allocation2 + $0x80] sm:$0xff]  ;;  %v204_v55 = vld [vmem:[%s16417_s25 + $0xe8] sm:$0xff] }
  0x32   : > { %15094 = vmatprep.mubr.msk.f32.mxu1 %vm171_vm1, %v1063_v34  ;;  %v312_v49 = vrot.slane %v202_v47, 7  ;;  %v381_v50 = vrot.slane %v202_v47, 5  ;;  %v203_v51 = vld [vmem:[%s16417_s25 + $0xe0] sm:$0xff]  ;;  %v315_v59 = vrot.slane %v204_v55, 7  ;;  %v382_v60 = vrot.slane %v204_v55, 5  ;;  %v16642_v61 = vld [vmem:[%s16417_s25 + $0xf0] sm:$0xff] }
  0x33   : > { %15021 = vmatmul.mubr.msk.f32.gmra.mrb[10].mxu0 %vm171_vm1, %v16599_v37  ;;  %v16632_v52 = vld [vmem:[#allocation2 + $0x79] sm:$0xff]  ;;  %v237_v53 = vrot.slane %v203_v51, 1  ;;  %v314_v54 = vrot.slane %v203_v51, 7  ;;  %v16637_v56 = vld [vmem:[#allocation2 + $0x81] sm:$0xff]  ;;  %v238_v4 = vrot.slane %v16642_v61, 1  ;;  %v317_v5 = vrot.slane %v16642_v61, 7 }
  0x34   : > { %15023 = vmatprep.mubr.msk.f32.mxu0 %vm171_vm1, %v16603_v38  ;;  %v313_v57 = vsel %vm271_vm2, %v311_v31, %v312_v49  ;;  %v429_v58 = vsel %vm271_vm2, %v312_v49, %v381_v50  ;;  %v16646_v63 = vld [vmem:[#allocation2 + $0x88] sm:$0xff]  ;;  %v16653_v7 = vld [vmem:[#allocation2 + $0x90] sm:$0xff]  ;;  %v430_v9 = vsel %vm271_vm2, %v315_v59, %v382_v60  ;;  %v16681_v15 = vld [vmem:[#allocation2 + $0x98] sm:$0xff] }
  0x35   : > { %15095 = vmatmul.mubr.msk.f32.gmra.mrb[10].mxu1 %vm171_vm1, %v1064_v39  ;;  %489 = vst.msk [vmem:[#allocation2 + $0x158] sm:$0xff] %vm171_vm1, %v313_v57  ;;  %v446_v0 = vsel %vm432_vm3, %v429_v58, 0.0  ;;  %v414_v2 = vsel %vm271_vm2, %v237_v53, %v314_v54  ;;  %v316_v8 = vsel %vm271_vm2, %v314_v54, %v315_v59  ;;  %v16664_v11 = vld [vmem:[#allocation2 + $0x89] sm:$0xff]  ;;  %v447_v12 = vsel %vm432_vm3, %v430_v9, 0.0  ;;  %v16674_v14 = vld [vmem:[#allocation2 + $0x91] sm:$0xff]  ;;  %v16683_v17 = vld [vmem:[#allocation2 + $0xa0] sm:$0xff] }
  0x36   : > { %15097 = vmatprep.mubr.msk.f32.mxu1 %vm171_vm1, %v1065_v3  ;;  %490 = vst.msk [vmem:[#allocation2 + $0x160] sm:$0xff] %vm171_vm1, %v446_v0  ;;  %491 = vst.msk [vmem:[#allocation2 + $0x168] sm:$0xff] %vm171_vm1, %v414_v2  ;;  %v415_v13 = vsel %vm271_vm2, %v238_v4, %v317_v5  ;;  %v16689_v18 = vld [vmem:[#allocation2 + $0x99] sm:$0xff]  ;;  %v16693_v19 = vld [vmem:[#allocation2 + $0xa1] sm:$0xff] }
  0x37   : > { %15024 = vmatmul.mubr.msk.f32.gmra.mrb[12].mxu0 %vm171_vm1, %v16611_v41  ;;  %500 = vst.msk [vmem:[#allocation2 + $0x198] sm:$0xff] %vm171_vm1, %v414_v2  ;;  %492 = vst.msk [vmem:[#allocation2 + $0x170] sm:$0xff] %vm171_vm1, %v316_v8  ;;  %v16697_v20 = vld [vmem:[#allocation2 + $0xa8] sm:$0xff]  ;;  %v16699_v21 = vld [vmem:[#allocation2 + $0xb0] sm:$0xff] }
  0x38   : > { %15026 = vmatprep.mubr.msk.f32.mxu0 %vm171_vm1, %v16613_v42  ;;  %501 = vst.msk [vmem:[#allocation2 + $0x1a0] sm:$0xff] %vm171_vm1, %v316_v8  ;;  %493 = vst.msk [vmem:[#allocation2 + $0x178] sm:$0xff] %vm171_vm1, %v447_v12  ;;  %v1074_v23 = vld [vmem:[#allocation2 + $0xa9] sm:$0xff]  ;;  %v1075_v24 = vld [vmem:[#allocation2 + $0xb1] sm:$0xff] }
  0x39   : > { %15098 = vmatmul.mubr.msk.f32.gmra.mrb[12].mxu1 %vm171_vm1, %v1066_v43  ;;  %502 = vst.msk [vmem:[#allocation2 + $0x1a8] sm:$0xff] %vm171_vm1, %v447_v12  ;;  %494 = vst.msk [vmem:[#allocation2 + $0x180] sm:$0xff] %vm171_vm1, %v415_v13  ;;  %v16709_v25 = vld [vmem:[#allocation2 + $0xb8] sm:$0xff]  ;;  %v16711_v26 = vld [vmem:[#allocation2 + $0xc0] sm:$0xff] }
  0x3a   : > { %15100 = vmatprep.mubr.msk.f32.mxu1 %vm171_vm1, %v16619_v45  ;;  %v1076_v27 = vld [vmem:[#allocation2 + $0xb9] sm:$0xff]  ;;  %v1077_v29 = vld [vmem:[#allocation2 + $0xc1] sm:$0xff]  ;;  %v16721_v31 = vld [vmem:[#allocation2 + $0xd0] sm:$0xff] }
  0x3b   : > { %15027 = vmatmul.mubr.msk.f32.gmra.mrb[14].mxu0 %vm171_vm1, %v16623_v46  ;;  %v16719_v30 = vld [vmem:[#allocation2 + $0xc8] sm:$0xff]  ;;  %v1079_v33 = vld [vmem:[#allocation2 + $0xd1] sm:$0xff]  ;;  %v16731_v35 = vld [vmem:[#allocation2 + $0xe0] sm:$0xff] }
  0x3c   : > { %15029 = vmatprep.mubr.msk.f32.mxu0 %vm171_vm1, %v16626_v48  ;;  %v1078_v32 = vld [vmem:[#allocation2 + $0xc9] sm:$0xff]  ;;  %v16729_v34 = vld [vmem:[#allocation2 + $0xd8] sm:$0xff]  ;;  %v1081_v39 = vld [vmem:[#allocation2 + $0xe1] sm:$0xff] }
  0x3d   : > { %15101 = vmatmul.mubr.msk.f32.gmra.mrb[14].mxu1 %vm171_vm1, %v16632_v52  ;;  %v1080_v36 = vld [vmem:[#allocation2 + $0xd9] sm:$0xff]  ;;  %v16740_v3 = vld [vmem:[%s20760_s1 + $0x14] sm:$0xf]  ;;  %v16744_v43 = vld [vmem:[#allocation2 + $0xe8] sm:$0xff] }
  0x3e   : > { %15103 = vmatprep.mubr.msk.f32.mxu1 %vm171_vm1, %v16637_v56  ;;  %15373 = vmatprep.subr.msk.mxu1 %vm696_vm0, %v16740_v3  ;;  %v16748_v47 = vld [vmem:[#allocation2 + $0xf0] sm:$0xff]  ;;  %v16756_v51 = vld [vmem:[#allocation2 + $0xf8] sm:$0xff]  ;;  %v16759_v54 = vld [vmem:[#allocation2 + $0x100] sm:$0xff] }
  0x3f   : > { %15030 = vmatmul.mubr.msk.f32.gmra.mrb[16].mxu0 %vm171_vm1, %v16646_v63  ;;  %v1082_v49 = vld [vmem:[#allocation2 + $0xe9] sm:$0xff]  ;;  %v1083_v50 = vld [vmem:[#allocation2 + $0xf1] sm:$0xff]  ;;  %v1084_v58 = vld [vmem:[#allocation2 + $0xf9] sm:$0xff] }
  0x40   : > { %15032 = vmatprep.mubr.msk.f32.mxu0 %vm171_vm1, %v16653_v7  ;;  %v206_v53 = vld [vmem:[%s16417_s25 + $0xf8] sm:$0xff]  ;;  %v1085_v59 = vld [vmem:[#allocation2 + $0x101] sm:$0xff]  ;;  %v16775_v8 = vld [vmem:[#allocation2 + $0x110] sm:$0xff] }
  0x41   : > { %15104 = vmatmul.mubr.msk.f32.gmra.mrb[16].mxu1 %vm171_vm1, %v16664_v11  ;;  %v318_v55 = vrot.slane %v206_v53, 7  ;;  %v383_v57 = vrot.slane %v206_v53, 5  ;;  %v16771_v2 = vld [vmem:[#allocation2 + $0x108] sm:$0xff]  ;;  %v16784_v9 = vld [vmem:[#allocation2 + $0x118] sm:$0xff]  ;;  %v16786_v12 = vld [vmem:[#allocation2 + $0x120] sm:$0xff] }
  0x42   : > { %15106 = vmatprep.mubr.msk.f32.mxu1 %vm171_vm1, %v16674_v14  ;;  %v1086_v61 = vld [vmem:[#allocation2 + $0x109] sm:$0xff]  ;;  %v1088_v13 = vld [vmem:[#allocation2 + $0x119] sm:$0xff] }
  0x43   : > { %15033 = vmatmul.mubr.msk.f32.gmra.mrb[18].mxu0 %vm171_vm1, %v16681_v15  ;;  %v319_v60 = vsel %vm271_vm2, %v317_v5, %v318_v55  ;;  %v431_v0 = vsel %vm271_vm2, %v318_v55, %v383_v57  ;;  %v1087_v5 = vld [vmem:[#allocation2 + $0x111] sm:$0xff]  ;;  %v1094_v55 = vld [vmem:[#allocation2 + $0x149] sm:$0xff] }
  0x44   : > { %15035 = vmatprep.mubr.msk.f32.mxu0 %vm171_vm1, %v16683_v17  ;;  %495 = vst.msk [vmem:[#allocation2 + $0x188] sm:$0xff] %vm171_vm1, %v319_v60  ;;  %v448_v4 = vsel %vm432_vm3, %v431_v0, 0.0  ;;  %v16816_v53 = vld [vmem:[#allocation2 + $0x150] sm:$0xff]  ;;  %v1096_v60 = vld [vmem:[#allocation2 + $0x159] sm:$0xff]  ;;  %v1097_v0 = vld [vmem:[#allocation2 + $0x161] sm:$0xff] }
  0x45   : > { %15107 = vmatmul.mubr.msk.f32.gmra.mrb[18].mxu1 %vm171_vm1, %v16689_v18  ;;  %496 = vst.msk [vmem:[#allocation2 + $0x190] sm:$0xff] %vm171_vm1, %v448_v4  ;;  %v1095_v57 = vld [vmem:[#allocation2 + $0x151] sm:$0xff]  ;;  %v16834_v4 = vld [vmem:[#allocation2 + $0x168] sm:$0xff] }
  0x46   : > { %15109 = vmatprep.mubr.msk.f32.mxu1 %vm171_vm1, %v16693_v19 }
  0x47   : > { %15036 = vmatmul.mubr.msk.f32.gmra.mrb[20].mxu0 %vm171_vm1, %v16697_v20 }
  0x48   : > { %15038 = vmatprep.mubr.msk.f32.mxu0 %vm171_vm1, %v16699_v21 }
  0x49   : > { %15110 = vmatmul.mubr.msk.f32.gmra.mrb[20].mxu1 %vm171_vm1, %v1074_v23  ;;  %v1089_v23 = vld [vmem:[#allocation2 + $0x121] sm:$0xff] }
  0x4a   : > { %15112 = vmatprep.mubr.msk.f32.mxu1 %vm171_vm1, %v1075_v24  ;;  %v16794_v24 = vld [vmem:[#allocation2 + $0x128] sm:$0xff] }
  0x4b   : > { %15039 = vmatmul.mubr.msk.f32.gmra.mrb[22].mxu0 %vm171_vm1, %v16709_v25 }
  0x4c   : > { %15041 = vmatprep.mubr.msk.f32.mxu0 %vm171_vm1, %v16711_v26 }
  0x4d   : > { %15113 = vmatmul.mubr.msk.f32.gmra.mrb[22].mxu1 %vm171_vm1, %v1076_v27  ;;  %v16796_v27 = vld [vmem:[#allocation2 + $0x130] sm:$0xff] }
  0x4e   : > { %15115 = vmatprep.mubr.msk.f32.mxu1 %vm171_vm1, %v1077_v29  ;;  %v1090_v29 = vld [vmem:[#allocation2 + $0x129] sm:$0xff] }
  0x4f   : > { %15042 = vmatmul.mubr.msk.f32.gmra.mrb[24].mxu0 %vm171_vm1, %v16719_v30 }
  0x50   : > { %15044 = vmatprep.mubr.msk.f32.mxu0 %vm171_vm1, %v16721_v31 }
  0x51   : > { %15116 = vmatmul.mubr.msk.f32.gmra.mrb[24].mxu1 %vm171_vm1, %v1078_v32  ;;  %v1091_v32 = vld [vmem:[#allocation2 + $0x131] sm:$0xff] }
  0x52   : > { %15118 = vmatprep.mubr.msk.f32.mxu1 %vm171_vm1, %v1079_v33  ;;  %v16804_v33 = vld [vmem:[#allocation2 + $0x138] sm:$0xff] }
  0x53   : > { %15045 = vmatmul.mubr.msk.f32.gmra.mrb[26].mxu0 %vm171_vm1, %v16729_v34 }
  0x54   : > { %15047 = vmatprep.mubr.msk.f32.mxu0 %vm171_vm1, %v16731_v35 }
  0x55   : > { %15119 = vmatmul.mubr.msk.f32.gmra.mrb[26].mxu1 %vm171_vm1, %v1080_v36  ;;  %v16806_v36 = vld [vmem:[#allocation2 + $0x140] sm:$0xff] }
  0x56   : > { %15121 = vmatprep.mubr.msk.f32.mxu1 %vm171_vm1, %v1081_v39  ;;  %v1092_v39 = vld [vmem:[#allocation2 + $0x139] sm:$0xff] }
  0x57   : > { %15048 = vmatmul.mubr.msk.f32.gmra.mrb[28].mxu0 %vm171_vm1, %v16744_v43 }
  0x58   : > { %15050 = vmatprep.mubr.msk.f32.mxu0 %vm171_vm1, %v16748_v47 }
  0x59   : > { %15122 = vmatmul.mubr.msk.f32.gmra.mrb[28].mxu1 %vm171_vm1, %v1082_v49  ;;  %v1093_v49 = vld [vmem:[#allocation2 + $0x141] sm:$0xff] }
  0x5a   : > { %15124 = vmatprep.mubr.msk.f32.mxu1 %vm171_vm1, %v1083_v50  ;;  %v16814_v50 = vld [vmem:[#allocation2 + $0x148] sm:$0xff] }
  0x5b   : > { %15051 = vmatmul.mubr.msk.f32.gmra.mrb[30].mxu0 %vm171_vm1, %v16756_v51 }
  0x5c   : > { %15053 = vmatprep.mubr.msk.f32.mxu0 %vm171_vm1, %v16759_v54 }
  0x5d   : > { %15125 = vmatmul.mubr.msk.f32.gmra.mrb[30].mxu1 %vm171_vm1, %v1084_v58  ;;  %v16824_v58 = vld [vmem:[#allocation2 + $0x158] sm:$0xff] }
  0x5e   : > { %15127 = vmatprep.mubr.msk.f32.mxu1 %vm171_vm1, %v1085_v59  ;;  %v16826_v59 = vld [vmem:[#allocation2 + $0x160] sm:$0xff] }
  0x5f   : > { %15054 = vmatmul.mubr.msk.f32.gmra.mrb[32].mxu0 %vm171_vm1, %v16771_v2 }
  0x60   : > { %15056 = vmatprep.mubr.msk.f32.mxu0 %vm171_vm1, %v16775_v8 }
  0x61   : > { %15128 = vmatmul.mubr.msk.f32.gmra.mrb[32].mxu1 %vm171_vm1, %v1086_v61  ;;  %v16836_v61 = vld [vmem:[#allocation2 + $0x170] sm:$0xff] }
  0x62   : > { %15130 = vmatprep.mubr.msk.f32.mxu1 %vm171_vm1, %v1087_v5  ;;  %v1098_v5 = vld [vmem:[#allocation2 + $0x169] sm:$0xff] }
  0x63   : > { %15057 = vmatmul.mubr.msk.f32.gmra.mrb[34].mxu0 %vm171_vm1, %v16784_v9 }
  0x64   : > { %15059 = vmatprep.mubr.msk.f32.mxu0 %vm171_vm1, %v16786_v12 }
  0x65   : > { %15131 = vmatmul.mubr.msk.f32.gmra.mrb[34].mxu1 %vm171_vm1, %v1088_v13  ;;  %v1099_v13 = vld [vmem:[#allocation2 + $0x171] sm:$0xff] }
  0x66   : > { %15133 = vmatprep.mubr.msk.f32.mxu1 %vm171_vm1, %v1089_v23  ;;  %v16844_v23 = vld [vmem:[#allocation2 + $0x178] sm:$0xff] }
  0x67   : > { %15060 = vmatmul.mubr.msk.f32.gmra.mrb[36].mxu0 %vm171_vm1, %v16794_v24 }
  0x68   : > { %15062 = vmatprep.mubr.msk.f32.mxu0 %vm171_vm1, %v16796_v27 }
  0x69   : > { %15134 = vmatmul.mubr.msk.f32.gmra.mrb[36].mxu1 %vm171_vm1, %v1090_v29  ;;  %v1699_v29 = vld [vmem:[#allocation2 + $0x2] sm:$0xff] }
  0x6a   : > { %15136 = vmatprep.mubr.msk.f32.mxu1 %vm171_vm1, %v1091_v32  ;;  %v1100_v32 = vld [vmem:[#allocation2 + $0x179] sm:$0xff] }
  0x6b   : > { %15063 = vmatmul.mubr.msk.f32.gmra.mrb[38].mxu0 %vm171_vm1, %v16804_v33 }
  0x6c   : > { %15065 = vmatprep.mubr.msk.f32.mxu0 %vm171_vm1, %v16806_v36 }
  0x6d   : > { %15137 = vmatmul.mubr.msk.f32.gmra.mrb[38].mxu1 %vm171_vm1, %v1092_v39  ;;  %v1700_v39 = vld [vmem:[#allocation2 + $0xa] sm:$0xff] }
  0x6e   : > { %15139 = vmatprep.mubr.msk.f32.mxu1 %vm171_vm1, %v1093_v49  ;;  %v1701_v49 = vld [vmem:[#allocation2 + $0x12] sm:$0xff] }
  0x6f   : > { %15066 = vmatmul.mubr.msk.f32.gmra.mrb[40].mxu0 %vm171_vm1, %v16814_v50 }
  0x70   : > { %15068 = vmatprep.mubr.msk.f32.mxu0 %vm171_vm1, %v16816_v53 }
  0x71   : > { %15140 = vmatmul.mubr.msk.f32.gmra.mrb[40].mxu1 %vm171_vm1, %v1094_v55  ;;  %v16857_v55 = vld [vmem:[%s20760_s1 + $0x18] sm:$0xf] }
  0x72   : > { %15142 = vmatprep.mubr.msk.f32.mxu1 %vm171_vm1, %v1095_v57  ;;  %v16863_v57 = vld [vmem:[#allocation2 + $0x1a] sm:$0xff] }
  0x73   : > { %15069 = vmatmul.mubr.msk.f32.gmra.mrb[42].mxu0 %vm171_vm1, %v16824_v58 }
  0x74   : > { %15071 = vmatprep.mubr.msk.f32.mxu0 %vm171_vm1, %v16826_v59 }
  0x75   : > { %15143 = vmatmul.mubr.msk.f32.gmra.mrb[42].mxu1 %vm171_vm1, %v1096_v60  ;;  %v16865_v60 = vld [vmem:[#allocation2 + $0x22] sm:$0xff] }
  0x76   : > { %15145 = vmatprep.mubr.msk.f32.mxu1 %vm171_vm1, %v1097_v0  ;;  %v2391_v0 = vld [vmem:[#allocation2 + $0x188] sm:$0xff] }
  0x77   : > { %15072 = vmatmul.mubr.msk.f32.gmra.mrb[44].mxu0 %vm171_vm1, %v16834_v4 }
  0x78   : > { %15074 = vmatprep.mubr.msk.f32.mxu0 %vm171_vm1, %v16836_v61 }
  0x79   : > { %15146 = vmatmul.mubr.msk.f32.gmra.mrb[44].mxu1 %vm171_vm1, %v1098_v5  ;;  %v2991_v5 = vld [vmem:[#allocation2 + $0x19] sm:$0xff] }
  0x7a   : > { %15148 = vmatprep.mubr.msk.f32.mxu1 %vm171_vm1, %v1099_v13  ;;  %v2392_v13 = vld [vmem:[#allocation2 + $0x190] sm:$0xff] }
  0x7b   : > { %15075 = vmatmul.mubr.msk.f32.gmra.mrb[46].mxu0 %vm171_vm1, %v16844_v23 }
  0x7c   : > { %15153 = vmatprep.mubr.msk.f32.mxu0 %vm171_vm1, %v1699_v29  ;;  %v17151_v29 = vld [vmem:[%s20760_s1 + $0x20] sm:$0xf] }
  0x7d   : > { %15149 = vmatmul.mubr.msk.f32.gmra.mrb[46].mxu1 %vm171_vm1, %v1100_v32  ;;  %v17157_v32 = vld [vmem:[#allocation2 + $0x31] sm:$0xff] }
  0x7e   : > { %15227 = vmatprep.mubr.msk.f32.mxu1 %vm171_vm1, %v16491_v16  ;;  %v16881_v16 = vld [vmem:[#allocation2 + $0x32] sm:$0xff] }
  0x7f   : > { %15154 = vmatmul.mubr.msk.f32.vlgmr.msra.gmra.mrb[48].mxu0 %vm171_vm1, %v1700_v39  ;;  %v17159_v39 = vld [vmem:[#allocation2 + $0x39] sm:$0xff] }
  0x80   : > { %15300 = vmatpush3.msk.msra.mxu0 %vm696_vm0, %v16480_v10  ;;  %15156 = vmatprep.mubr.msk.f32.mxu0 %vm171_vm1, %v1701_v49  ;;  %v16879_v10 = vld [vmem:[#allocation2 + $0x2a] sm:$0xff]  ;;  %v17173_v49 = vld [vmem:[#allocation2 + $0x41] sm:$0xff] }
  0x81   : > { %15228 = vmatmul.mubr.msk.f32.vlgmr.msra.gmra.mrb[48].mxu1 %vm171_vm1, %v16495_v22  ;;  %15447 = vmatprep.subr.msk.mxu0 %vm696_vm0, %v16857_v55  ;;  %v16891_v22 = vld [vmem:[#allocation2 + $0x3a] sm:$0xff] }
  0x82   : > { %15230 = vmatprep.mubr.msk.f32.mxu1 %vm171_vm1, %v16521_v40  ;;  %15374 = vmatpush3.msk.msra.mxu1 %vm696_vm0, %v16740_v3  ;;  %v16893_v40 = vld [vmem:[#allocation2 + $0x42] sm:$0xff]  ;;  %v17042_v3 = vld [vmem:[#allocation2 + $0xfa] sm:$0xff] }
  0x83   : > { %15157 = vmatmul.mubr.msk.f32.gmra.mrb[50].mxu0 %vm171_vm1, %v16863_v57 }
  0x84   : > { %15159 = vmatprep.mubr.msk.f32.mxu0 %vm171_vm1, %v16865_v60 }
  0x85   : > { %15231 = vmatmul.mubr.msk.f32.gmra.mrb[50].mxu1 %vm171_vm1, %v16527_v44  ;;  %v16903_v44 = vld [vmem:[#allocation2 + $0x4a] sm:$0xff] }
  0x86   : > { %15233 = vmatprep.mubr.msk.f32.mxu1 %vm171_vm1, %v16547_v62  ;;  %v16905_v62 = vld [vmem:[#allocation2 + $0x52] sm:$0xff] }
  0x87   : > { %15160 = vmatmul.mubr.msk.f32.gmra.mrb[52].mxu0 %vm171_vm1, %v16879_v10 }
  0x88   : > { %15162 = vmatprep.mubr.msk.f32.mxu0 %vm171_vm1, %v16881_v16 }
  0x89   : > { %15234 = vmatmul.mubr.msk.f32.gmra.mrb[52].mxu1 %vm171_vm1, %v16556_v6  ;;  %v16915_v6 = vld [vmem:[#allocation2 + $0x5a] sm:$0xff] }
  0x8a   : > { %15236 = vmatprep.mubr.msk.f32.mxu1 %vm171_vm1, %v16574_v1  ;;  %v16917_v1 = vld [vmem:[#allocation2 + $0x62] sm:$0xff] }
  0x8b   : > { %15163 = vmatmul.mubr.msk.f32.gmra.mrb[54].mxu0 %vm171_vm1, %v16891_v22 }
  0x8c   : > { %15165 = vmatprep.mubr.msk.f32.mxu0 %vm171_vm1, %v16893_v40 }
  0x8d   : > { %15237 = vmatmul.mubr.msk.f32.gmra.mrb[54].mxu1 %vm171_vm1, %v16582_v28  ;;  %v16927_v28 = vld [vmem:[#allocation2 + $0x6a] sm:$0xff] }
  0x8e   : > { %15239 = vmatprep.mubr.msk.f32.mxu1 %vm171_vm1, %v16599_v37  ;;  %v16929_v37 = vld [vmem:[#allocation2 + $0x72] sm:$0xff] }
  0x8f   : > { %15166 = vmatmul.mubr.msk.f32.gmra.mrb[56].mxu0 %vm171_vm1, %v16903_v44 }
  0x90   : > { %15168 = vmatprep.mubr.msk.f32.mxu0 %vm171_vm1, %v16905_v62 }
  0x91   : > { %15240 = vmatmul.mubr.msk.f32.gmra.mrb[56].mxu1 %vm171_vm1, %v16603_v38  ;;  %v16939_v38 = vld [vmem:[#allocation2 + $0x7a] sm:$0xff] }
  0x92   : > { %15242 = vmatprep.mubr.msk.f32.mxu1 %vm171_vm1, %v16611_v41  ;;  %v16941_v41 = vld [vmem:[#allocation2 + $0x82] sm:$0xff] }
  0x93   : > { %15169 = vmatmul.mubr.msk.f32.gmra.mrb[58].mxu0 %vm171_vm1, %v16915_v6 }
  0x94   : > { %15171 = vmatprep.mubr.msk.f32.mxu0 %vm171_vm1, %v16917_v1 }
  0x95   : > { %15243 = vmatmul.mubr.msk.f32.gmra.mrb[58].mxu1 %vm171_vm1, %v16613_v42  ;;  %v16951_v42 = vld [vmem:[#allocation2 + $0x8a] sm:$0xff] }
  0x96   : > { %15245 = vmatprep.mubr.msk.f32.mxu1 %vm171_vm1, %v16623_v46  ;;  %v16953_v46 = vld [vmem:[#allocation2 + $0x92] sm:$0xff] }
  0x97   : > { %15172 = vmatmul.mubr.msk.f32.gmra.mrb[60].mxu0 %vm171_vm1, %v16927_v28 }
  0x98   : > { %15174 = vmatprep.mubr.msk.f32.mxu0 %vm171_vm1, %v16929_v37 }
  0x99   : > { %15246 = vmatmul.mubr.msk.f32.gmra.mrb[60].mxu1 %vm171_vm1, %v16626_v48  ;;  %v16963_v48 = vld [vmem:[#allocation2 + $0x9a] sm:$0xff] }
  0x9a   : > { %15248 = vmatprep.mubr.msk.f32.mxu1 %vm171_vm1, %v16646_v63  ;;  %v16965_v63 = vld [vmem:[#allocation2 + $0xa2] sm:$0xff] }
  0x9b   : > { %15175 = vmatmul.mubr.msk.f32.gmra.mrb[62].mxu0 %vm171_vm1, %v16939_v38 }
  0x9c   : > { %15177 = vmatprep.mubr.msk.f32.mxu0 %vm171_vm1, %v16941_v41 }
  0x9d   : > { %15249 = vmatmul.mubr.msk.f32.gmra.mrb[62].mxu1 %vm171_vm1, %v16653_v7  ;;  %v16975_v7 = vld [vmem:[#allocation2 + $0xaa] sm:$0xff] }
  0x9e   : > { %15251 = vmatprep.mubr.msk.f32.mxu1 %vm171_vm1, %v16681_v15  ;;  %v16977_v15 = vld [vmem:[#allocation2 + $0xb2] sm:$0xff] }
  0x9f   : > { %15178 = vmatmul.mubr.msk.f32.gmra.mrb[64].mxu0 %vm171_vm1, %v16951_v42 }
  0xa0   : > { %15180 = vmatprep.mubr.msk.f32.mxu0 %vm171_vm1, %v16953_v46 }
  0xa1   : > { %15252 = vmatmul.mubr.msk.f32.gmra.mrb[64].mxu1 %vm171_vm1, %v16683_v17  ;;  %v16987_v17 = vld [vmem:[#allocation2 + $0xba] sm:$0xff] }
  0xa2   : > { %15254 = vmatprep.mubr.msk.f32.mxu1 %vm171_vm1, %v16697_v20  ;;  %v16989_v20 = vld [vmem:[#allocation2 + $0xc2] sm:$0xff] }
  0xa3   : > { %15181 = vmatmul.mubr.msk.f32.gmra.mrb[66].mxu0 %vm171_vm1, %v16963_v48 }
  0xa4   : > { %15183 = vmatprep.mubr.msk.f32.mxu0 %vm171_vm1, %v16965_v63 }
  0xa5   : > { %15255 = vmatmul.mubr.msk.f32.gmra.mrb[66].mxu1 %vm171_vm1, %v16699_v21  ;;  %v16999_v21 = vld [vmem:[#allocation2 + $0xca] sm:$0xff] }
  0xa6   : > { %15257 = vmatprep.mubr.msk.f32.mxu1 %vm171_vm1, %v16709_v25  ;;  %v17001_v25 = vld [vmem:[#allocation2 + $0xd2] sm:$0xff] }
  0xa7   : > { %15184 = vmatmul.mubr.msk.f32.gmra.mrb[68].mxu0 %vm171_vm1, %v16975_v7 }
  0xa8   : > { %15186 = vmatprep.mubr.msk.f32.mxu0 %vm171_vm1, %v16977_v15 }
  0xa9   : > { %15258 = vmatmul.mubr.msk.f32.gmra.mrb[68].mxu1 %vm171_vm1, %v16711_v26  ;;  %v17011_v26 = vld [vmem:[#allocation2 + $0xda] sm:$0xff] }
  0xaa   : > { %15260 = vmatprep.mubr.msk.f32.mxu1 %vm171_vm1, %v16719_v30  ;;  %v17013_v30 = vld [vmem:[#allocation2 + $0xe2] sm:$0xff] }
  0xab   : > { %15187 = vmatmul.mubr.msk.f32.gmra.mrb[70].mxu0 %vm171_vm1, %v16987_v17 }
  0xac   : > { %15189 = vmatprep.mubr.msk.f32.mxu0 %vm171_vm1, %v16989_v20 }
  0xad   : > { %15261 = vmatmul.mubr.msk.f32.gmra.mrb[70].mxu1 %vm171_vm1, %v16721_v31  ;;  %v17023_v31 = vld [vmem:[#allocation2 + $0xea] sm:$0xff] }
  0xae   : > { %15263 = vmatprep.mubr.msk.f32.mxu1 %vm171_vm1, %v16729_v34  ;;  %v17025_v34 = vld [vmem:[#allocation2 + $0xf2] sm:$0xff] }
  0xaf   : > { %15190 = vmatmul.mubr.msk.f32.gmra.mrb[72].mxu0 %vm171_vm1, %v16999_v21 }
  0xb0   : > { %15192 = vmatprep.mubr.msk.f32.mxu0 %vm171_vm1, %v17001_v25 }
  0xb1   : > { %15264 = vmatmul.mubr.msk.f32.gmra.mrb[72].mxu1 %vm171_vm1, %v16731_v35  ;;  %v17034_v35 = vld [vmem:[%s20760_s1 + $0x1c] sm:$0xf] }
  0xb2   : > { %15266 = vmatprep.mubr.msk.f32.mxu1 %vm171_vm1, %v16744_v43  ;;  %15521 = vmatprep.subr.msk.mxu1 %vm696_vm0, %v17034_v35  ;;  %v17044_v43 = vld [vmem:[#allocation2 + $0x102] sm:$0xff] }
  0xb3   : > { %15193 = vmatmul.mubr.msk.f32.gmra.mrb[74].mxu0 %vm171_vm1, %v17011_v26 }
  0xb4   : > { %15195 = vmatprep.mubr.msk.f32.mxu0 %vm171_vm1, %v17013_v30 }
  0xb5   : > { %15267 = vmatmul.mubr.msk.f32.gmra.mrb[74].mxu1 %vm171_vm1, %v16748_v47  ;;  %v17054_v47 = vld [vmem:[#allocation2 + $0x10a] sm:$0xff] }
  0xb6   : > { %15269 = vmatprep.mubr.msk.f32.mxu1 %vm171_vm1, %v16756_v51  ;;  %v17056_v51 = vld [vmem:[#allocation2 + $0x112] sm:$0xff] }
  0xb7   : > { %15196 = vmatmul.mubr.msk.f32.gmra.mrb[76].mxu0 %vm171_vm1, %v17023_v31 }
  0xb8   : > { %15198 = vmatprep.mubr.msk.f32.mxu0 %vm171_vm1, %v17025_v34 }
  0xb9   : > { %15270 = vmatmul.mubr.msk.f32.gmra.mrb[76].mxu1 %vm171_vm1, %v16759_v54  ;;  %v17066_v54 = vld [vmem:[#allocation2 + $0x11a] sm:$0xff] }
  0xba   : > { %15272 = vmatprep.mubr.msk.f32.mxu1 %vm171_vm1, %v16771_v2  ;;  %v17068_v2 = vld [vmem:[#allocation2 + $0x122] sm:$0xff] }
  0xbb   : > { %15199 = vmatmul.mubr.msk.f32.gmra.mrb[78].mxu0 %vm171_vm1, %v17042_v3 }
  0xbc   : > { %15201 = vmatprep.mubr.msk.f32.mxu0 %vm171_vm1, %v17044_v43 }
  0xbd   : > { %15273 = vmatmul.mubr.msk.f32.gmra.mrb[78].mxu1 %vm171_vm1, %v16775_v8  ;;  %v17078_v8 = vld [vmem:[#allocation2 + $0x12a] sm:$0xff] }
  0xbe   : > { %15275 = vmatprep.mubr.msk.f32.mxu1 %vm171_vm1, %v16784_v9  ;;  %v17080_v9 = vld [vmem:[#allocation2 + $0x132] sm:$0xff] }
  0xbf   : > { %15202 = vmatmul.mubr.msk.f32.gmra.mrb[80].mxu0 %vm171_vm1, %v17054_v47 }
  0xc0   : > { %15204 = vmatprep.mubr.msk.f32.mxu0 %vm171_vm1, %v17056_v51 }
  0xc1   : > { %15276 = vmatmul.mubr.msk.f32.gmra.mrb[80].mxu1 %vm171_vm1, %v16786_v12  ;;  %v17090_v12 = vld [vmem:[#allocation2 + $0x13a] sm:$0xff] }
  0xc2   : > { %15278 = vmatprep.mubr.msk.f32.mxu1 %vm171_vm1, %v16794_v24  ;;  %v17092_v24 = vld [vmem:[#allocation2 + $0x142] sm:$0xff] }
  0xc3   : > { %15205 = vmatmul.mubr.msk.f32.gmra.mrb[82].mxu0 %vm171_vm1, %v17066_v54 }
  0xc4   : > { %15207 = vmatprep.mubr.msk.f32.mxu0 %vm171_vm1, %v17068_v2 }
  0xc5   : > { %15279 = vmatmul.mubr.msk.f32.gmra.mrb[82].mxu1 %vm171_vm1, %v16796_v27  ;;  %v17102_v27 = vld [vmem:[#allocation2 + $0x14a] sm:$0xff] }
  0xc6   : > { %15281 = vmatprep.mubr.msk.f32.mxu1 %vm171_vm1, %v16804_v33  ;;  %v17104_v33 = vld [vmem:[#allocation2 + $0x152] sm:$0xff] }
  0xc7   : > { %15208 = vmatmul.mubr.msk.f32.gmra.mrb[84].mxu0 %vm171_vm1, %v17078_v8 }
  0xc8   : > { %15210 = vmatprep.mubr.msk.f32.mxu0 %vm171_vm1, %v17080_v9 }
  0xc9   : > { %15282 = vmatmul.mubr.msk.f32.gmra.mrb[84].mxu1 %vm171_vm1, %v16806_v36  ;;  %v17114_v36 = vld [vmem:[#allocation2 + $0x15a] sm:$0xff] }
  0xca   : > { %15284 = vmatprep.mubr.msk.f32.mxu1 %vm171_vm1, %v16814_v50  ;;  %v17116_v50 = vld [vmem:[#allocation2 + $0x162] sm:$0xff] }
  0xcb   : > { %15211 = vmatmul.mubr.msk.f32.gmra.mrb[86].mxu0 %vm171_vm1, %v17090_v12 }
  0xcc   : > { %15213 = vmatprep.mubr.msk.f32.mxu0 %vm171_vm1, %v17092_v24 }
  0xcd   : > { %15285 = vmatmul.mubr.msk.f32.gmra.mrb[86].mxu1 %vm171_vm1, %v16816_v53  ;;  %v17126_v53 = vld [vmem:[#allocation2 + $0x16a] sm:$0xff] }
  0xce   : > { %15287 = vmatprep.mubr.msk.f32.mxu1 %vm171_vm1, %v16824_v58  ;;  %v17128_v58 = vld [vmem:[#allocation2 + $0x172] sm:$0xff] }
  0xcf   : > { %15214 = vmatmul.mubr.msk.f32.gmra.mrb[88].mxu0 %vm171_vm1, %v17102_v27 }
  0xd0   : > { %15216 = vmatprep.mubr.msk.f32.mxu0 %vm171_vm1, %v17104_v33 }
  0xd1   : > { %15288 = vmatmul.mubr.msk.f32.gmra.mrb[88].mxu1 %vm171_vm1, %v16826_v59  ;;  %v2390_v59 = vld [vmem:[#allocation2 + $0x180] sm:$0xff] }
  0xd2   : > { %15290 = vmatprep.mubr.msk.f32.mxu1 %vm171_vm1, %v16834_v4  ;;  %v17138_v4 = vld [vmem:[#allocation2 + $0x17a] sm:$0xff] }
  0xd3   : > { %15217 = vmatmul.mubr.msk.f32.gmra.mrb[90].mxu0 %vm171_vm1, %v17114_v36 }
  0xd4   : > { %15219 = vmatprep.mubr.msk.f32.mxu0 %vm171_vm1, %v17116_v50 }
  0xd5   : > { %15291 = vmatmul.mubr.msk.f32.gmra.mrb[90].mxu1 %vm171_vm1, %v16836_v61  ;;  %v2992_v61 = vld [vmem:[#allocation2 + $0x21] sm:$0xff] }
  0xd6   : > { %15293 = vmatprep.mubr.msk.f32.mxu1 %vm171_vm1, %v16844_v23  ;;  %v2993_v23 = vld [vmem:[#allocation2 + $0x29] sm:$0xff] }
  0xd7   : > { %15220 = vmatmul.mubr.msk.f32.gmra.mrb[92].mxu0 %vm171_vm1, %v17126_v53 }
  0xd8   : > { %15222 = vmatprep.mubr.msk.f32.mxu0 %vm171_vm1, %v17128_v58 }
  0xd9   : > { %15294 = vmatmul.mubr.msk.f32.gmra.mrb[92].mxu1 %vm171_vm1, %v2390_v59  ;;  %v3009_v59 = vld [vmem:[#allocation2 + $0xa9] sm:$0xff] }
  0xda   : > { %15296 = vmatprep.mubr.msk.f32.mxu1 %vm171_vm1, %v2391_v0 }
  0xdb   : > { %15223 = vmatmul.mubr.msk.f32.gmra.mrb[94].mxu0 %vm171_vm1, %v17138_v4 }
  0xdc   : > { %15301 = vmatprep.mubr.msk.f32.mxu0 %vm171_vm1, %v2991_v5 }
  0xdd   : > { %15297 = vmatmul.mubr.msk.f32.gmra.mrb[94].mxu1 %vm171_vm1, %v2392_v13 }
  0xde   : > { %15375 = vmatprep.mubr.msk.f32.mxu1 %vm171_vm1, %v16863_v57  ;;  %v17185_v57 = vld [vmem:[#allocation2 + $0x51] sm:$0xff] }
  0xdf   : > { %15302 = vmatmul.mubr.msk.f32.vlgmr.msra.gmra.mrb[96].mxu0 %vm171_vm1, %v2992_v61 }
  0xe0   : > { %15448 = vmatpush3.msk.msra.mxu0 %vm696_vm0, %v16857_v55  ;;  %15304 = vmatprep.mubr.msk.f32.mxu0 %vm171_vm1, %v2993_v23  ;;  %v17175_v55 = vld [vmem:[#allocation2 + $0x49] sm:$0xff] }
  0xe1   : > { %15376 = vmatmul.mubr.msk.f32.vlgmr.msra.gmra.mrb[96].mxu1 %vm171_vm1, %v16865_v60  ;;  %15595 = vmatprep.subr.msk.mxu0 %vm696_vm0, %v17151_v29  ;;  %v17187_v60 = vld [vmem:[#allocation2 + $0x59] sm:$0xff] }
  0xe2   : > { %15378 = vmatprep.mubr.msk.f32.mxu1 %vm171_vm1, %v16879_v10  ;;  %15522 = vmatpush3.msk.msra.mxu1 %vm696_vm0, %v17034_v35  ;;  %v17197_v10 = vld [vmem:[#allocation2 + $0x61] sm:$0xff] }
  0xe3   : > { %15305 = vmatmul.mubr.msk.f32.gmra.mrb[98].mxu0 %vm171_vm1, %v17157_v32 }
  0xe4   : > { %15307 = vmatprep.mubr.msk.f32.mxu0 %vm171_vm1, %v17159_v39 }
  0xe5   : > { %15379 = vmatmul.mubr.msk.f32.gmra.mrb[98].mxu1 %vm171_vm1, %v16881_v16  ;;  %v17199_v16 = vld [vmem:[#allocation2 + $0x69] sm:$0xff] }
  0xe6   : > { %15381 = vmatprep.mubr.msk.f32.mxu1 %vm171_vm1, %v16891_v22 }
  0xe7   : > { %15308 = vmatmul.mubr.msk.f32.gmra.mrb[100].mxu0 %vm171_vm1, %v17173_v49 }
  0xe8   : > { %15310 = vmatprep.mubr.msk.f32.mxu0 %vm171_vm1, %v17175_v55 }
  0xe9   : > { %15382 = vmatmul.mubr.msk.f32.gmra.mrb[100].mxu1 %vm171_vm1, %v16893_v40 }
  0xea   : > { %15384 = vmatprep.mubr.msk.f32.mxu1 %vm171_vm1, %v16903_v44 }
  0xeb   : > { %15311 = vmatmul.mubr.msk.f32.gmra.mrb[102].mxu0 %vm171_vm1, %v17185_v57 }
  0xec   : > { %15313 = vmatprep.mubr.msk.f32.mxu0 %vm171_vm1, %v17187_v60 }
  0xed   : > { %15385 = vmatmul.mubr.msk.f32.gmra.mrb[102].mxu1 %vm171_vm1, %v16905_v62 }
  0xee   : > { %15387 = vmatprep.mubr.msk.f32.mxu1 %vm171_vm1, %v16915_v6 }
  0xef   : > { %15314 = vmatmul.mubr.msk.f32.gmra.mrb[104].mxu0 %vm171_vm1, %v17197_v10 }
  0xf0   : > { %15316 = vmatprep.mubr.msk.f32.mxu0 %vm171_vm1, %v17199_v16 }
  0xf1   : > { %15388 = vmatmul.mubr.msk.f32.gmra.mrb[104].mxu1 %vm171_vm1, %v16917_v1 }
  0xf2   : > { %v15007_v22 = vpop.f32.mrb[0].mxu0  ;;  %15390 = vmatprep.mubr.msk.f32.mxu1 %vm171_vm1, %v16927_v28 }
  0xf3   : > { %1006 = vst.msk [vmem:[#allocation3 + $0x8] sm:$0xff] %vm171_vm1, %v15007_v22  ;;  %v766_v40 = vpop.f32.mrb[1].mxu0  ;;  %15317 = vmatmul.mubr.msk.f32.gmra.mrb[106].mxu0 %vm171_vm1, %v16619_v45  ;;  %v3011_v22 = vld [vmem:[#allocation2 + $0xb9] sm:$0xff] }
  0xf4   : > { %1005 = vst.msk [vmem:[#allocation3] sm:$0xff] %vm171_vm1, %v766_v40  ;;  %15319 = vmatprep.mubr.msk.f32.mxu0 %vm171_vm1, %v16632_v52  ;;  %v15081_v44 = vpop.f32.mrb[0].mxu1 }
  0xf5   : > { %v1316_v62 = vpop.f32.mrb[1].mxu1  ;;  %15391 = vmatmul.mubr.msk.f32.gmra.mrb[106].mxu1 %vm171_vm1, %v16929_v37 }
  0xf6   : > { %v15010_v6 = vpop.f32.mrb[2].mxu0  ;;  %15393 = vmatprep.mubr.msk.f32.mxu1 %vm171_vm1, %v16939_v38 }
  0xf7   : > { %1008 = vst.msk [vmem:[#allocation3 + $0x18] sm:$0xff] %vm171_vm1, %v15010_v6  ;;  %v776_v1 = vpop.f32.mrb[3].mxu0  ;;  %15320 = vmatmul.mubr.msk.f32.gmra.mrb[108].mxu0 %vm171_vm1, %v16637_v56 }
  0xf8   : > { %1007 = vst.msk [vmem:[#allocation3 + $0x10] sm:$0xff] %vm171_vm1, %v776_v1  ;;  %15322 = vmatprep.mubr.msk.f32.mxu0 %vm171_vm1, %v16664_v11  ;;  %v15084_v45 = vpop.f32.mrb[2].mxu1 }
  0xf9   : > { %v1326_v52 = vpop.f32.mrb[3].mxu1  ;;  %15394 = vmatmul.mubr.msk.f32.gmra.mrb[108].mxu1 %vm171_vm1, %v16941_v41 }
  0xfa   : > { %v15013_v28 = vpop.f32.mrb[4].mxu0  ;;  %v1556_v37 = vld [vmem:[#allocation3 + $0x8] sm:$0xff]  ;;  %15396 = vmatprep.mubr.msk.f32.mxu1 %vm171_vm1, %v16951_v42 }
  0xfb   : > { %1010 = vst.msk [vmem:[#allocation3 + $0x28] sm:$0xff] %vm171_vm1, %v15013_v28  ;;  %v1604_v38 = vadd.f32 %v15081_v44, %v1556_v37  ;;  %v786_v35 = vpop.f32.mrb[5].mxu0  ;;  %v1555_v56 = vld [vmem:[#allocation3] sm:$0xff]  ;;  %15323 = vmatmul.mubr.msk.f32.gmra.mrb[110].mxu0 %vm171_vm1, %v16674_v14 }
  0xfc   : > { %1009 = vst.msk [vmem:[#allocation3 + $0x20] sm:$0xff] %vm171_vm1, %v786_v35  ;;  %v1603_v11 = vadd.f32 %v1555_v56, %v1316_v62  ;;  %15325 = vmatprep.mubr.msk.f32.mxu0 %vm171_vm1, %v16689_v18  ;;  %v15087_v41 = vpop.f32.mrb[4].mxu1 }
  0xfd   : > { %1652 = vst.msk [vmem:[#allocation3 + $0x8] sm:$0xff] %vm171_vm1, %v1604_v38  ;;  %v1336_v0 = vpop.f32.mrb[5].mxu1  ;;  %15397 = vmatmul.mubr.msk.f32.gmra.mrb[110].mxu1 %vm171_vm1, %v16953_v46  ;;  %v3010_v46 = vld [vmem:[#allocation2 + $0xb1] sm:$0xff] }
  0xfe   : > { %1651 = vst.msk [vmem:[#allocation3] sm:$0xff] %vm171_vm1, %v1603_v11  ;;  %v15016_v42 = vpop.f32.mrb[6].mxu0  ;;  %v1558_v5 = vld [vmem:[#allocation3 + $0x18] sm:$0xff]  ;;  %15399 = vmatprep.mubr.msk.f32.mxu1 %vm171_vm1, %v16963_v48 }
  0xff   : > { %1012 = vst.msk [vmem:[#allocation3 + $0x38] sm:$0xff] %vm171_vm1, %v15016_v42  ;;  %v1606_v14 = vadd.f32 %v15084_v45, %v1558_v5  ;;  %v796_v13 = vpop.f32.mrb[7].mxu0  ;;  %v1557_v18 = vld [vmem:[#allocation3 + $0x10] sm:$0xff]  ;;  %15326 = vmatmul.mubr.msk.f32.gmra.mrb[112].mxu0 %vm171_vm1, %v16693_v19 }
 0x100   : > { %1011 = vst.msk [vmem:[#allocation3 + $0x30] sm:$0xff] %vm171_vm1, %v796_v13  ;;  %v1605_v61 = vadd.f32 %v1557_v18, %v1326_v52  ;;  %15328 = vmatprep.mubr.msk.f32.mxu0 %vm171_vm1, %v3009_v59  ;;  %v15090_v23 = vpop.f32.mrb[6].mxu1  ;;  %v3013_v52 = vld [vmem:[#allocation2 + $0xc9] sm:$0xff]  ;;  %v3015_v59 = vld [vmem:[#allocation2 + $0xd9] sm:$0xff] }
 0x101   : > { %1654 = vst.msk [vmem:[#allocation3 + $0x18] sm:$0xff] %vm171_vm1, %v1606_v14  ;;  %v1346_v40 = vpop.f32.mrb[7].mxu1  ;;  %15400 = vmatmul.mubr.msk.f32.gmra.mrb[112].mxu1 %vm171_vm1, %v16965_v63  ;;  %v3012_v63 = vld [vmem:[#allocation2 + $0xc1] sm:$0xff] }
 0x102   : > { %1653 = vst.msk [vmem:[#allocation3 + $0x10] sm:$0xff] %vm171_vm1, %v1605_v61  ;;  %v15019_v48 = vpop.f32.mrb[8].mxu0  ;;  %v1560_v44 = vld [vmem:[#allocation3 + $0x28] sm:$0xff]  ;;  %15402 = vmatprep.mubr.msk.f32.mxu1 %vm171_vm1, %v16975_v7 }
 0x103   : > { %1014 = vst.msk [vmem:[#allocation3 + $0x48] sm:$0xff] %vm171_vm1, %v15019_v48  ;;  %v1608_v19 = vadd.f32 %v15087_v41, %v1560_v44  ;;  %v806_v62 = vpop.f32.mrb[9].mxu0  ;;  %v1559_v6 = vld [vmem:[#allocation3 + $0x20] sm:$0xff]  ;;  %15329 = vmatmul.mubr.msk.f32.gmra.mrb[114].mxu0 %vm171_vm1, %v3010_v46 }
 0x104   : > { %1013 = vst.msk [vmem:[#allocation3 + $0x40] sm:$0xff] %vm171_vm1, %v806_v62  ;;  %v1607_v1 = vadd.f32 %v1559_v6, %v1336_v0  ;;  %15331 = vmatprep.mubr.msk.f32.mxu0 %vm171_vm1, %v3011_v22  ;;  %v15093_v45 = vpop.f32.mrb[8].mxu1  ;;  %v3017_v46 = vld [vmem:[#allocation2 + $0xe9] sm:$0xff]  ;;  %v3019_v6 = vld [vmem:[#allocation2 + $0xf9] sm:$0xff] }
 0x105   : > { %1656 = vst.msk [vmem:[#allocation3 + $0x28] sm:$0xff] %vm171_vm1, %v1608_v19  ;;  %v1356_v28 = vpop.f32.mrb[9].mxu1  ;;  %15403 = vmatmul.mubr.msk.f32.gmra.mrb[114].mxu1 %vm171_vm1, %v16977_v15  ;;  %v3014_v15 = vld [vmem:[#allocation2 + $0xd1] sm:$0xff] }
 0x106   : > { %1655 = vst.msk [vmem:[#allocation3 + $0x20] sm:$0xff] %vm171_vm1, %v1607_v1  ;;  %v15022_v7 = vpop.f32.mrb[10].mxu0  ;;  %v1562_v37 = vld [vmem:[#allocation3 + $0x38] sm:$0xff]  ;;  %15405 = vmatprep.mubr.msk.f32.mxu1 %vm171_vm1, %v16987_v17 }
 0x107   : > { %1016 = vst.msk [vmem:[#allocation3 + $0x58] sm:$0xff] %vm171_vm1, %v15022_v7  ;;  %v1610_v38 = vadd.f32 %v15090_v23, %v1562_v37  ;;  %v816_v35 = vpop.f32.mrb[11].mxu0  ;;  %v1561_v56 = vld [vmem:[#allocation3 + $0x30] sm:$0xff]  ;;  %15332 = vmatmul.mubr.msk.f32.gmra.mrb[116].mxu0 %vm171_vm1, %v3012_v63 }
 0x108   : > { %1015 = vst.msk [vmem:[#allocation3 + $0x50] sm:$0xff] %vm171_vm1, %v816_v35  ;;  %v1609_v11 = vadd.f32 %v1561_v56, %v1346_v40  ;;  %15334 = vmatprep.mubr.msk.f32.mxu0 %vm171_vm1, %v3013_v52  ;;  %v15096_v41 = vpop.f32.mrb[10].mxu1 }
 0x109   : > { %1658 = vst.msk [vmem:[#allocation3 + $0x38] sm:$0xff] %vm171_vm1, %v1610_v38  ;;  %v1366_v0 = vpop.f32.mrb[11].mxu1  ;;  %15406 = vmatmul.mubr.msk.f32.gmra.mrb[116].mxu1 %vm171_vm1, %v16989_v20  ;;  %v3016_v20 = vld [vmem:[#allocation2 + $0xe1] sm:$0xff]  ;;  %v3021_v38 = vld [vmem:[#allocation2 + $0x109] sm:$0xff] }
 0x10a   : > { %1657 = vst.msk [vmem:[#allocation3 + $0x30] sm:$0xff] %vm171_vm1, %v1609_v11  ;;  %v15025_v17 = vpop.f32.mrb[12].mxu0  ;;  %v1564_v42 = vld [vmem:[#allocation3 + $0x48] sm:$0xff]  ;;  %15408 = vmatprep.mubr.msk.f32.mxu1 %vm171_vm1, %v16999_v21 }
 0x10b   : > { %1018 = vst.msk [vmem:[#allocation3 + $0x68] sm:$0xff] %vm171_vm1, %v15025_v17  ;;  %v1612_v5 = vadd.f32 %v15093_v45, %v1564_v42  ;;  %v826_v14 = vpop.f32.mrb[13].mxu0  ;;  %v1563_v13 = vld [vmem:[#allocation3 + $0x40] sm:$0xff]  ;;  %15335 = vmatmul.mubr.msk.f32.gmra.mrb[118].mxu0 %vm171_vm1, %v3014_v15  ;;  %v3023_v17 = vld [vmem:[#allocation2 + $0x119] sm:$0xff] }
 0x10c   : > { %1017 = vst.msk [vmem:[#allocation3 + $0x60] sm:$0xff] %vm171_vm1, %v826_v14  ;;  %v1611_v18 = vadd.f32 %v1563_v13, %v1356_v28  ;;  %15337 = vmatprep.mubr.msk.f32.mxu0 %vm171_vm1, %v3015_v59  ;;  %v15099_v61 = vpop.f32.mrb[12].mxu1 }
 0x10d   : > { %1660 = vst.msk [vmem:[#allocation3 + $0x48] sm:$0xff] %vm171_vm1, %v1612_v5  ;;  %v1376_v23 = vpop.f32.mrb[13].mxu1  ;;  %15409 = vmatmul.mubr.msk.f32.gmra.mrb[118].mxu1 %vm171_vm1, %v17001_v25  ;;  %v3018_v25 = vld [vmem:[#allocation2 + $0xf1] sm:$0xff] }
 0x10e   : > { %1659 = vst.msk [vmem:[#allocation3 + $0x40] sm:$0xff] %vm171_vm1, %v1611_v18  ;;  %v15028_v21 = vpop.f32.mrb[14].mxu0  ;;  %v1566_v22 = vld [vmem:[#allocation3 + $0x58] sm:$0xff]  ;;  %15411 = vmatprep.mubr.msk.f32.mxu1 %vm171_vm1, %v17011_v26 }
 0x10f   : > { %1020 = vst.msk [vmem:[#allocation3 + $0x78] sm:$0xff] %vm171_vm1, %v15028_v21  ;;  %v1614_v40 = vadd.f32 %v15096_v41, %v1566_v22  ;;  %v836_v48 = vpop.f32.mrb[15].mxu0  ;;  %v1565_v44 = vld [vmem:[#allocation3 + $0x50] sm:$0xff]  ;;  %15338 = vmatmul.mubr.msk.f32.gmra.mrb[120].mxu0 %vm171_vm1, %v3016_v20 }
 0x110   : > { %1019 = vst.msk [vmem:[#allocation3 + $0x70] sm:$0xff] %vm171_vm1, %v836_v48  ;;  %v1613_v19 = vadd.f32 %v1565_v44, %v1366_v0  ;;  %15340 = vmatprep.mubr.msk.f32.mxu0 %vm171_vm1, %v3017_v46  ;;  %v15102_v62 = vpop.f32.mrb[14].mxu1  ;;  %v3025_v46 = vld [vmem:[#allocation2 + $0x129] sm:$0xff] }
 0x111   : > { %1662 = vst.msk [vmem:[#allocation3 + $0x58] sm:$0xff] %vm171_vm1, %v1614_v40  ;;  %v1386_v1 = vpop.f32.mrb[15].mxu1  ;;  %15412 = vmatmul.mubr.msk.f32.gmra.mrb[120].mxu1 %vm171_vm1, %v17013_v30  ;;  %v3020_v30 = vld [vmem:[#allocation2 + $0x101] sm:$0xff] }
 0x112   : > { %1661 = vst.msk [vmem:[#allocation3 + $0x50] sm:$0xff] %vm171_vm1, %v1613_v19  ;;  %v15031_v26 = vpop.f32.mrb[16].mxu0  ;;  %v1568_v63 = vld [vmem:[#allocation3 + $0x68] sm:$0xff]  ;;  %15414 = vmatprep.mubr.msk.f32.mxu1 %vm171_vm1, %v17023_v31 }
 0x113   : > { %1022 = vst.msk [vmem:[#allocation3 + $0x88] sm:$0xff] %vm171_vm1, %v15031_v26  ;;  %v1616_v45 = vadd.f32 %v15099_v61, %v1568_v63  ;;  %v846_v52 = vpop.f32.mrb[17].mxu0  ;;  %v1567_v28 = vld [vmem:[#allocation3 + $0x60] sm:$0xff]  ;;  %15341 = vmatmul.mubr.msk.f32.gmra.mrb[122].mxu0 %vm171_vm1, %v3018_v25  ;;  %v3026_v19 = vld [vmem:[#allocation2 + $0x131] sm:$0xff] }
 0x114   : > { %1021 = vst.msk [vmem:[#allocation3 + $0x80] sm:$0xff] %vm171_vm1, %v846_v52  ;;  %v1615_v7 = vadd.f32 %v1567_v28, %v1376_v23  ;;  %15343 = vmatprep.mubr.msk.f32.mxu0 %vm171_vm1, %v3019_v6  ;;  %v15105_v37 = vpop.f32.mrb[16].mxu1 }
 0x115   : > { %1664 = vst.msk [vmem:[#allocation3 + $0x68] sm:$0xff] %vm171_vm1, %v1616_v45  ;;  %v1396_v35 = vpop.f32.mrb[17].mxu1  ;;  %15415 = vmatmul.mubr.msk.f32.gmra.mrb[122].mxu1 %vm171_vm1, %v17025_v34  ;;  %v3022_v34 = vld [vmem:[#allocation2 + $0x111] sm:$0xff] }
 0x116   : > { %1663 = vst.msk [vmem:[#allocation3 + $0x60] sm:$0xff] %vm171_vm1, %v1615_v7  ;;  %v15034_v31 = vpop.f32.mrb[18].mxu0  ;;  %v1570_v56 = vld [vmem:[#allocation3 + $0x78] sm:$0xff]  ;;  %15417 = vmatprep.mubr.msk.f32.mxu1 %vm171_vm1, %v17042_v3  ;;  %v3029_v7 = vld [vmem:[#allocation2 + $0x149] sm:$0xff] }
 0x117   : > { %1024 = vst.msk [vmem:[#allocation3 + $0x98] sm:$0xff] %vm171_vm1, %v15034_v31  ;;  %v1618_v11 = vadd.f32 %v15102_v62, %v1570_v56  ;;  %v856_v15 = vpop.f32.mrb[19].mxu0  ;;  %v1569_v41 = vld [vmem:[#allocation3 + $0x70] sm:$0xff]  ;;  %15344 = vmatmul.mubr.msk.f32.gmra.mrb[124].mxu0 %vm171_vm1, %v3020_v30 }
 0x118   : > { %1023 = vst.msk [vmem:[#allocation3 + $0x90] sm:$0xff] %vm171_vm1, %v856_v15  ;;  %v1617_v59 = vadd.f32 %v1569_v41, %v1386_v1  ;;  %15346 = vmatprep.mubr.msk.f32.mxu0 %vm171_vm1, %v3021_v38  ;;  %v15108_v0 = vpop.f32.mrb[18].mxu1  ;;  %v3027_v62 = vld [vmem:[#allocation2 + $0x139] sm:$0xff] }
 0x119   : > { %1666 = vst.msk [vmem:[#allocation3 + $0x78] sm:$0xff] %vm171_vm1, %v1618_v11  ;;  %v1406_v42 = vpop.f32.mrb[19].mxu1  ;;  %15418 = vmatmul.mubr.msk.f32.gmra.mrb[124].mxu1 %vm171_vm1, %v17044_v43  ;;  %v3024_v43 = vld [vmem:[#allocation2 + $0x121] sm:$0xff]  ;;  %v3031_v15 = vld [vmem:[#allocation2 + $0x159] sm:$0xff] }
 0x11a   : > { %1665 = vst.msk [vmem:[#allocation3 + $0x70] sm:$0xff] %vm171_vm1, %v1617_v59  ;;  %v15037_v3 = vpop.f32.mrb[20].mxu0  ;;  %v1572_v5 = vld [vmem:[#allocation3 + $0x88] sm:$0xff]  ;;  %15420 = vmatprep.mubr.msk.f32.mxu1 %vm171_vm1, %v17054_v47  ;;  %v16356_v47 = vmov 0.0  }
 0x11b   : > { %1026 = vst.msk [vmem:[#allocation3 + $0xa8] sm:$0xff] %vm171_vm1, %v15037_v3  ;;  %v1620_v14 = vadd.f32 %v15105_v37, %v1572_v5  ;;  %v866_v13 = vpop.f32.mrb[21].mxu0  ;;  %v1571_v18 = vld [vmem:[#allocation3 + $0x80] sm:$0xff]  ;;  %15347 = vmatmul.mubr.msk.f32.gmra.mrb[126].mxu0 %vm171_vm1, %v3022_v34  ;;  %172 = vst.msk [vmem:[#allocation2 + $0x1b0] sm:$0xff] %vm171_vm1, %v16356_v47 }
 0x11c   : > { %1025 = vst.msk [vmem:[#allocation3 + $0xa0] sm:$0xff] %vm171_vm1, %v866_v13  ;;  %v1619_v20 = vadd.f32 %v1571_v18, %v1396_v35  ;;  %15349 = vmatprep.mubr.msk.f32.mxu0 %vm171_vm1, %v3023_v17  ;;  %v15111_v61 = vpop.f32.mrb[20].mxu1  ;;  %v3033_v5 = vld [vmem:[#allocation2 + $0x169] sm:$0xff] }
 0x11d   : > { %1668 = vst.msk [vmem:[#allocation3 + $0x88] sm:$0xff] %vm171_vm1, %v1620_v14  ;;  %v1416_v23 = vpop.f32.mrb[21].mxu1  ;;  %15421 = vmatmul.mubr.msk.f32.gmra.mrb[126].mxu1 %vm171_vm1, %v17056_v51 }
 0x11e   : > { %1667 = vst.msk [vmem:[#allocation3 + $0x80] sm:$0xff] %vm171_vm1, %v1619_v20  ;;  %v15040_v21 = vpop.f32.mrb[22].mxu0  ;;  %v1574_v22 = vld [vmem:[#allocation3 + $0x98] sm:$0xff]  ;;  %15423 = vmatprep.mubr.msk.f32.mxu1 %vm171_vm1, %v17066_v54 }
 0x11f   : > { %1028 = vst.msk [vmem:[#allocation3 + $0xb8] sm:$0xff] %vm171_vm1, %v15040_v21  ;;  %v1622_v40 = vadd.f32 %v15108_v0, %v1574_v22  ;;  %v876_v48 = vpop.f32.mrb[23].mxu0  ;;  %v1573_v44 = vld [vmem:[#allocation3 + $0x90] sm:$0xff]  ;;  %15350 = vmatmul.mubr.msk.f32.gmra.mrb[128].mxu0 %vm171_vm1, %v3024_v43 }
 0x120   : > { %1027 = vst.msk [vmem:[#allocation3 + $0xb0] sm:$0xff] %vm171_vm1, %v876_v48  ;;  %v1621_v51 = vadd.f32 %v1573_v44, %v1406_v42  ;;  %15352 = vmatprep.mubr.msk.f32.mxu0 %vm171_vm1, %v3025_v46  ;;  %v15114_v25 = vpop.f32.mrb[22].mxu1 }
 0x121   : > { %1670 = vst.msk [vmem:[#allocation3 + $0x98] sm:$0xff] %vm171_vm1, %v1622_v40  ;;  %v1426_v6 = vpop.f32.mrb[23].mxu1  ;;  %15424 = vmatmul.mubr.msk.f32.gmra.mrb[128].mxu1 %vm171_vm1, %v17068_v2  ;;  %v3028_v2 = vld [vmem:[#allocation2 + $0x141] sm:$0xff] }
 0x122   : > { %1669 = vst.msk [vmem:[#allocation3 + $0x90] sm:$0xff] %vm171_vm1, %v1621_v51  ;;  %v15043_v54 = vpop.f32.mrb[24].mxu0  ;;  %v1576_v1 = vld [vmem:[#allocation3 + $0xa8] sm:$0xff]  ;;  %15426 = vmatprep.mubr.msk.f32.mxu1 %vm171_vm1, %v17078_v8 }
 0x123   : > { %1030 = vst.msk [vmem:[#allocation3 + $0xc8] sm:$0xff] %vm171_vm1, %v15043_v54  ;;  %v1624_v26 = vadd.f32 %v15111_v61, %v1576_v1  ;;  %v886_v63 = vpop.f32.mrb[25].mxu0  ;;  %v1575_v45 = vld [vmem:[#allocation3 + $0xa0] sm:$0xff]  ;;  %15353 = vmatmul.mubr.msk.f32.gmra.mrb[130].mxu0 %vm171_vm1, %v3026_v19 }
 0x124   : > { %1029 = vst.msk [vmem:[#allocation3 + $0xc0] sm:$0xff] %vm171_vm1, %v886_v63  ;;  %v1623_v52 = vadd.f32 %v1575_v45, %v1416_v23  ;;  %15355 = vmatprep.mubr.msk.f32.mxu0 %vm171_vm1, %v3027_v62  ;;  %v15117_v28 = vpop.f32.mrb[24].mxu1  ;;  %v3035_v23 = vld [vmem:[#allocation2 + $0x179] sm:$0xff]  ;;  %v3037_v19 = vld [vmem:[#allocation2 + $0x189] sm:$0xff] }
 0x125   : > { %1672 = vst.msk [vmem:[#allocation3 + $0xa8] sm:$0xff] %vm171_vm1, %v1624_v26  ;;  %v1436_v30 = vpop.f32.mrb[25].mxu1  ;;  %15427 = vmatmul.mubr.msk.f32.gmra.mrb[130].mxu1 %vm171_vm1, %v17080_v9  ;;  %v3030_v9 = vld [vmem:[#allocation2 + $0x151] sm:$0xff] }
 0x126   : > { %1671 = vst.msk [vmem:[#allocation3 + $0xa0] sm:$0xff] %vm171_vm1, %v1623_v52  ;;  %v15046_v8 = vpop.f32.mrb[26].mxu0  ;;  %v1578_v37 = vld [vmem:[#allocation3 + $0xb8] sm:$0xff]  ;;  %15429 = vmatprep.mubr.msk.f32.mxu1 %vm171_vm1, %v17090_v12  ;;  %v3683_v63 = vld [vmem:[#allocation2 + $0x18a] sm:$0xff] }
 0x127   : > { %1032 = vst.msk [vmem:[#allocation3 + $0xd8] sm:$0xff] %vm171_vm1, %v15046_v8  ;;  %v1626_v38 = vadd.f32 %v15114_v25, %v1578_v37  ;;  %v896_v35 = vpop.f32.mrb[27].mxu0  ;;  %v1577_v31 = vld [vmem:[#allocation3 + $0xb0] sm:$0xff]  ;;  %15356 = vmatmul.mubr.msk.f32.gmra.mrb[132].mxu0 %vm171_vm1, %v3028_v2  ;;  %v4283_v2 = vld [vmem:[#allocation2 + $0x30] sm:$0xff] }
 0x128   : > { %1031 = vst.msk [vmem:[#allocation3 + $0xd0] sm:$0xff] %vm171_vm1, %v896_v35  ;;  %v1625_v56 = vadd.f32 %v1577_v31, %v1426_v6  ;;  %15358 = vmatprep.mubr.msk.f32.mxu0 %vm171_vm1, %v3029_v7  ;;  %v15120_v11 = vpop.f32.mrb[26].mxu1  ;;  %v3682_v6 = vld [vmem:[#allocation2 + $0x182] sm:$0xff]  ;;  %v4284_v31 = vld [vmem:[#allocation2 + $0x38] sm:$0xff] }
 0x129   : > { %1674 = vst.msk [vmem:[#allocation3 + $0xb8] sm:$0xff] %vm171_vm1, %v1626_v38  ;;  %v1446_v41 = vpop.f32.mrb[27].mxu1  ;;  %15430 = vmatmul.mubr.msk.f32.gmra.mrb[132].mxu1 %vm171_vm1, %v17092_v24  ;;  %v3032_v24 = vld [vmem:[#allocation2 + $0x161] sm:$0xff] }
 0x12a   : > { %1673 = vst.msk [vmem:[#allocation3 + $0xb0] sm:$0xff] %vm171_vm1, %v1625_v56  ;;  %v15049_v12 = vpop.f32.mrb[28].mxu0  ;;  %v1580_v59 = vld [vmem:[#allocation3 + $0xc8] sm:$0xff]  ;;  %15432 = vmatprep.mubr.msk.f32.mxu1 %vm171_vm1, %v17102_v27 }
 0x12b   : > { %1034 = vst.msk [vmem:[#allocation3 + $0xe8] sm:$0xff] %vm171_vm1, %v15049_v12  ;;  %v1628_v34 = vadd.f32 %v15117_v28, %v1580_v59  ;;  %v906_v0 = vpop.f32.mrb[29].mxu0  ;;  %v1579_v17 = vld [vmem:[#allocation3 + $0xc0] sm:$0xff]  ;;  %15359 = vmatmul.mubr.msk.f32.gmra.mrb[134].mxu0 %vm171_vm1, %v3030_v9  ;;  %v4285_v9 = vld [vmem:[#allocation2 + $0x40] sm:$0xff] }
 0x12c   : > { %1033 = vst.msk [vmem:[#allocation3 + $0xe0] sm:$0xff] %vm171_vm1, %v906_v0  ;;  %v1627_v42 = vadd.f32 %v1579_v17, %v1436_v30  ;;  %15361 = vmatprep.mubr.msk.f32.mxu0 %vm171_vm1, %v3031_v15  ;;  %v15123_v3 = vpop.f32.mrb[28].mxu1  ;;  %v3684_v30 = vld [vmem:[#allocation2 + $0x192] sm:$0xff]  ;;  %v4286_v17 = vld [vmem:[#allocation2 + $0x48] sm:$0xff] }
 0x12d   : > { %1676 = vst.msk [vmem:[#allocation3 + $0xc8] sm:$0xff] %vm171_vm1, %v1628_v34  ;;  %v1456_v14 = vpop.f32.mrb[29].mxu1  ;;  %15433 = vmatmul.mubr.msk.f32.gmra.mrb[134].mxu1 %vm171_vm1, %v17104_v33  ;;  %v3034_v33 = vld [vmem:[#allocation2 + $0x171] sm:$0xff] }
 0x12e   : > { %1675 = vst.msk [vmem:[#allocation3 + $0xc0] sm:$0xff] %vm171_vm1, %v1627_v42  ;;  %v15052_v27 = vpop.f32.mrb[30].mxu0  ;;  %v1582_v13 = vld [vmem:[#allocation3 + $0xd8] sm:$0xff]  ;;  %15435 = vmatprep.mubr.msk.f32.mxu1 %vm171_vm1, %v17114_v36 }
 0x12f   : > { %1036 = vst.msk [vmem:[#allocation3 + $0xf8] sm:$0xff] %vm171_vm1, %v15052_v27  ;;  %v1630_v18 = vadd.f32 %v15120_v11, %v1582_v13  ;;  %v916_v20 = vpop.f32.mrb[31].mxu0  ;;  %v1581_v43 = vld [vmem:[#allocation3 + $0xd0] sm:$0xff]  ;;  %15362 = vmatmul.mubr.msk.f32.gmra.mrb[136].mxu0 %vm171_vm1, %v3032_v24 }
 0x130   : > { %1035 = vst.msk [vmem:[#allocation3 + $0xf0] sm:$0xff] %vm171_vm1, %v916_v20  ;;  %v1629_v61 = vadd.f32 %v1581_v43, %v1446_v41  ;;  %15364 = vmatprep.mubr.msk.f32.mxu0 %vm171_vm1, %v3033_v5  ;;  %v15126_v46 = vpop.f32.mrb[30].mxu1  ;;  %v4289_v20 = vld [vmem:[#allocation2 + $0x60] sm:$0xff] }
 0x131   : > { %1678 = vst.msk [vmem:[#allocation3 + $0xd8] sm:$0xff] %vm171_vm1, %v1630_v18  ;;  %v1466_v47 = vpop.f32.mrb[31].mxu1  ;;  %15436 = vmatmul.mubr.msk.f32.gmra.mrb[136].mxu1 %vm171_vm1, %v17116_v50  ;;  %v3036_v50 = vld [vmem:[#allocation2 + $0x181] sm:$0xff] }
 0x132   : > { %1677 = vst.msk [vmem:[#allocation3 + $0xd0] sm:$0xff] %vm171_vm1, %v1629_v61  ;;  %v15055_v36 = vpop.f32.mrb[32].mxu0  ;;  %v1584_v21 = vld [vmem:[#allocation3 + $0xe8] sm:$0xff]  ;;  %15438 = vmatprep.mubr.msk.f32.mxu1 %vm171_vm1, %v17126_v53 }
 0x133   : > { %1038 = vst.msk [vmem:[#allocation3 + $0x108] sm:$0xff] %vm171_vm1, %v15055_v36  ;;  %v1632_v22 = vadd.f32 %v15123_v3, %v1584_v21  ;;  %v926_v40 = vpop.f32.mrb[33].mxu0  ;;  %v1583_v48 = vld [vmem:[#allocation3 + $0xe0] sm:$0xff]  ;;  %15365 = vmatmul.mubr.msk.f32.gmra.mrb[138].mxu0 %vm171_vm1, %v3034_v33  ;;  %v4291_v21 = vld [vmem:[#allocation2 + $0x70] sm:$0xff] }
 0x134   : > { %1037 = vst.msk [vmem:[#allocation3 + $0x100] sm:$0xff] %vm171_vm1, %v926_v40  ;;  %v1631_v44 = vadd.f32 %v1583_v48, %v1456_v14  ;;  %15367 = vmatprep.mubr.msk.f32.mxu0 %vm171_vm1, %v3035_v23  ;;  %v15129_v51 = vpop.f32.mrb[32].mxu1 }
 0x135   : > { %1680 = vst.msk [vmem:[#allocation3 + $0xe8] sm:$0xff] %vm171_vm1, %v1632_v22  ;;  %v1476_v25 = vpop.f32.mrb[33].mxu1  ;;  %15439 = vmatmul.mubr.msk.f32.gmra.mrb[138].mxu1 %vm171_vm1, %v17128_v58  ;;  %v3038_v58 = vld [vmem:[#allocation2 + $0x191] sm:$0xff] }
 0x136   : > { %1679 = vst.msk [vmem:[#allocation3 + $0xe0] sm:$0xff] %vm171_vm1, %v1631_v44  ;;  %v15058_v53 = vpop.f32.mrb[34].mxu0  ;;  %v1586_v62 = vld [vmem:[#allocation3 + $0xf8] sm:$0xff]  ;;  %15441 = vmatprep.mubr.msk.f32.mxu1 %vm171_vm1, %v17138_v4 }
 0x137   : > { %1040 = vst.msk [vmem:[#allocation3 + $0x118] sm:$0xff] %vm171_vm1, %v15058_v53  ;;  %v1634_v54 = vadd.f32 %v15126_v46, %v1586_v62  ;;  %v936_v1 = vpop.f32.mrb[35].mxu0  ;;  %v1585_v26 = vld [vmem:[#allocation3 + $0xf0] sm:$0xff]  ;;  %15368 = vmatmul.mubr.msk.f32.gmra.mrb[140].mxu0 %vm171_vm1, %v3036_v50  ;;  %v4293_v53 = vld [vmem:[#allocation2 + $0x80] sm:$0xff] }
 0x138   : > { %1039 = vst.msk [vmem:[#allocation3 + $0x110] sm:$0xff] %vm171_vm1, %v936_v1  ;;  %v1633_v45 = vadd.f32 %v1585_v26, %v1466_v47  ;;  %15370 = vmatprep.mubr.msk.f32.mxu0 %vm171_vm1, %v3037_v19  ;;  %v15132_v52 = vpop.f32.mrb[34].mxu1 }
 0x139   : > { %1682 = vst.msk [vmem:[#allocation3 + $0xf8] sm:$0xff] %vm171_vm1, %v1634_v54  ;;  %v1486_v4 = vpop.f32.mrb[35].mxu1  ;;  %15442 = vmatmul.mubr.msk.f32.gmra.mrb[140].mxu1 %vm171_vm1, %v3682_v6  ;;  %v4938_v54 = vld [vmem:[#allocation2 + $0x79] sm:$0xff] }
 0x13a   : > { %1681 = vst.msk [vmem:[#allocation3 + $0xf0] sm:$0xff] %vm171_vm1, %v1633_v45  ;;  %v15061_v28 = vpop.f32.mrb[36].mxu0  ;;  %v1588_v7 = vld [vmem:[#allocation3 + $0x108] sm:$0xff]  ;;  %15444 = vmatprep.mubr.msk.f32.mxu1 %vm171_vm1, %v3683_v63  ;;  %v4939_v45 = vld [vmem:[#allocation2 + $0x81] sm:$0xff] }
 0x13b   : > { %1042 = vst.msk [vmem:[#allocation3 + $0x128] sm:$0xff] %vm171_vm1, %v15061_v28  ;;  %v1636_v8 = vadd.f32 %v15129_v51, %v1588_v7  ;;  %v946_v37 = vpop.f32.mrb[37].mxu0  ;;  %v1587_v38 = vld [vmem:[#allocation3 + $0x100] sm:$0xff]  ;;  %15371 = vmatmul.mubr.msk.f32.gmra.mrb[142].mxu0 %vm171_vm1, %v3038_v58  ;;  %v4937_v51 = vld [vmem:[#allocation2 + $0x71] sm:$0xff] }
 0x13c   : > { %1041 = vst.msk [vmem:[#allocation3 + $0x120] sm:$0xff] %vm171_vm1, %v946_v37  ;;  %v1635_v35 = vadd.f32 %v1587_v38, %v1476_v25  ;;  %15449 = vmatprep.mubr.msk.f32.mxu0 %vm171_vm1, %v4283_v2  ;;  %v15135_v56 = vpop.f32.mrb[36].mxu1  ;;  %v4295_v2 = vld [vmem:[#allocation2 + $0x90] sm:$0xff] }
 0x13d   : > { %1684 = vst.msk [vmem:[#allocation3 + $0x108] sm:$0xff] %vm171_vm1, %v1636_v8  ;;  %v1496_v11 = vpop.f32.mrb[37].mxu1  ;;  %15445 = vmatmul.mubr.msk.f32.gmra.mrb[142].mxu1 %vm171_vm1, %v3684_v30  ;;  %v2202_v30 = vld [vmem:[#allocation3 + $0x8] sm:$0xff] }
 0x13e   : > { %1683 = vst.msk [vmem:[#allocation3 + $0x100] sm:$0xff] %vm171_vm1, %v1635_v35  ;;  %v15064_v15 = vpop.f32.mrb[38].mxu0  ;;  %v1590_v41 = vld [vmem:[#allocation3 + $0x118] sm:$0xff]  ;;  %15523 = vmatprep.mubr.msk.f32.mxu1 %vm171_vm1, %v17157_v32  ;;  %v4287_v32 = vld [vmem:[#allocation2 + $0x50] sm:$0xff] }
 0x13f   : > { %1044 = vst.msk [vmem:[#allocation3 + $0x138] sm:$0xff] %vm171_vm1, %v15064_v15  ;;  %v1638_v12 = vadd.f32 %v15132_v52, %v1590_v41  ;;  %v956_v59 = vpop.f32.mrb[39].mxu0  ;;  %v1589_v34 = vld [vmem:[#allocation3 + $0x110] sm:$0xff]  ;;  %15450 = vmatmul.mubr.msk.f32.vlgmr.msra.gmra.mrb[144].mxu0 %vm171_vm1, %v4284_v31  ;;  %v4940_v8 = vld [vmem:[#allocation2 + $0x89] sm:$0xff] }
 0x140   : > { %1043 = vst.msk [vmem:[#allocation3 + $0x130] sm:$0xff] %vm171_vm1, %v956_v59  ;;  %v1637_v0 = vadd.f32 %v1589_v34, %v1486_v4  ;;  %15596 = vmatpush3.msk.msra.mxu0 %vm696_vm0, %v17151_v29  ;;  %15452 = vmatprep.mubr.msk.f32.mxu0 %vm171_vm1, %v4285_v9  ;;  %v15138_v42 = vpop.f32.mrb[38].mxu1  ;;  %v4941_v9 = vld [vmem:[#allocation2 + $0x91] sm:$0xff]  ;;  %v4297_v59 = vld [vmem:[#allocation2 + $0xa0] sm:$0xff] }
 0x141   : > { %1686 = vst.msk [vmem:[#allocation3 + $0x118] sm:$0xff] %vm171_vm1, %v1638_v12  ;;  %v1506_v24 = vpop.f32.mrb[39].mxu1  ;;  %15524 = vmatmul.mubr.msk.f32.vlgmr.msra.gmra.mrb[144].mxu1 %vm171_vm1, %v17159_v39  ;;  %v4288_v39 = vld [vmem:[#allocation2 + $0x58] sm:$0xff] }
 0x142   : > { %1685 = vst.msk [vmem:[#allocation3 + $0x110] sm:$0xff] %vm171_vm1, %v1637_v0  ;;  %v15067_v3 = vpop.f32.mrb[40].mxu0  ;;  %v1592_v5 = vld [vmem:[#allocation3 + $0x128] sm:$0xff]  ;;  %15526 = vmatprep.mubr.msk.f32.mxu1 %vm171_vm1, %v17173_v49  ;;  %v4296_v41 = vld [vmem:[#allocation2 + $0x98] sm:$0xff] }
 0x143   : > { %1046 = vst.msk [vmem:[#allocation3 + $0x148] sm:$0xff] %vm171_vm1, %v15067_v3  ;;  %v1640_v29 = vadd.f32 %v15135_v56, %v1592_v5  ;;  %v966_v14 = vpop.f32.mrb[41].mxu0  ;;  %v1591_v27 = vld [vmem:[#allocation3 + $0x120] sm:$0xff]  ;;  %15453 = vmatmul.mubr.msk.f32.gmra.mrb[146].mxu0 %vm171_vm1, %v4286_v17 }
 0x144   : > { %1045 = vst.msk [vmem:[#allocation3 + $0x140] sm:$0xff] %vm171_vm1, %v966_v14  ;;  %v1639_v13 = vadd.f32 %v1591_v27, %v1496_v11  ;;  %15455 = vmatprep.mubr.msk.f32.mxu0 %vm171_vm1, %v4287_v32  ;;  %v15141_v18 = vpop.f32.mrb[40].mxu1  ;;  %v2201_v56 = vld [vmem:[#allocation3] sm:$0xff]  ;;  %v4942_v32 = vld [vmem:[#allocation2 + $0x99] sm:$0xff] }
 0x145   : > { %1688 = vst.msk [vmem:[#allocation3 + $0x128] sm:$0xff] %vm171_vm1, %v1640_v29  ;;  %v1516_v43 = vpop.f32.mrb[41].mxu1  ;;  %15527 = vmatmul.mubr.msk.f32.gmra.mrb[146].mxu1 %vm171_vm1, %v17175_v55  ;;  %v4290_v55 = vld [vmem:[#allocation2 + $0x68] sm:$0xff]  ;;  %v2203_v14 = vld [vmem:[#allocation3 + $0x10] sm:$0xff] }
 0x146   : > { %1687 = vst.msk [vmem:[#allocation3 + $0x120] sm:$0xff] %vm171_vm1, %v1639_v13  ;;  %v15070_v49 = vpop.f32.mrb[42].mxu0  ;;  %v1594_v61 = vld [vmem:[#allocation3 + $0x138] sm:$0xff]  ;;  %15529 = vmatprep.mubr.msk.f32.mxu1 %vm171_vm1, %v17185_v57 }
 0x147   : > { %1048 = vst.msk [vmem:[#allocation3 + $0x158] sm:$0xff] %vm171_vm1, %v15070_v49  ;;  %v1642_v33 = vadd.f32 %v15138_v42, %v1594_v61  ;;  %v976_v46 = vpop.f32.mrb[43].mxu0  ;;  %v1593_v23 = vld [vmem:[#allocation3 + $0x130] sm:$0xff]  ;;  %15456 = vmatmul.mubr.msk.f32.gmra.mrb[148].mxu0 %vm171_vm1, %v4288_v39  ;;  %v2204_v42 = vld [vmem:[#allocation3 + $0x18] sm:$0xff] }
 0x148   : > { %1047 = vst.msk [vmem:[#allocation3 + $0x150] sm:$0xff] %vm171_vm1, %v976_v46  ;;  %v1641_v47 = vadd.f32 %v1593_v23, %v1506_v24  ;;  %15458 = vmatprep.mubr.msk.f32.mxu0 %vm171_vm1, %v4289_v20  ;;  %v15144_v36 = vpop.f32.mrb[42].mxu1  ;;  %v4943_v27 = vld [vmem:[#allocation2 + $0xa1] sm:$0xff]  ;;  %v4944_v46 = vld [vmem:[#allocation2 + $0xa9] sm:$0xff] }
 0x149   : > { %1690 = vst.msk [vmem:[#allocation3 + $0x138] sm:$0xff] %vm171_vm1, %v1642_v33  ;;  %v1526_v22 = vpop.f32.mrb[43].mxu1  ;;  %15530 = vmatmul.mubr.msk.f32.gmra.mrb[148].mxu1 %vm171_vm1, %v17187_v60  ;;  %v4292_v60 = vld [vmem:[#allocation2 + $0x78] sm:$0xff]  ;;  %v2206_v33 = vld [vmem:[#allocation3 + $0x28] sm:$0xff] }
 0x14a   : > { %1689 = vst.msk [vmem:[#allocation3 + $0x130] sm:$0xff] %vm171_vm1, %v1641_v47  ;;  %v15073_v57 = vpop.f32.mrb[44].mxu0  ;;  %v1596_v40 = vld [vmem:[#allocation3 + $0x148] sm:$0xff]  ;;  %15532 = vmatprep.mubr.msk.f32.mxu1 %vm171_vm1, %v17197_v10 }
 0x14b   : > { %1050 = vst.msk [vmem:[#allocation3 + $0x168] sm:$0xff] %vm171_vm1, %v15073_v57  ;;  %v1644_v48 = vadd.f32 %v15141_v18, %v1596_v40  ;;  %v986_v44 = vpop.f32.mrb[45].mxu0  ;;  %v1595_v50 = vld [vmem:[#allocation3 + $0x140] sm:$0xff]  ;;  %15459 = vmatmul.mubr.msk.f32.gmra.mrb[150].mxu0 %vm171_vm1, %v4290_v55  ;;  %v4300_v57 = vld [vmem:[#allocation2 + $0xb8] sm:$0xff] }
 0x14c   : > { %1049 = vst.msk [vmem:[#allocation3 + $0x160] sm:$0xff] %vm171_vm1, %v986_v44  ;;  %v1643_v19 = vadd.f32 %v1595_v50, %v1516_v43  ;;  %15461 = vmatprep.mubr.msk.f32.mxu0 %vm171_vm1, %v4291_v21  ;;  %v15147_v25 = vpop.f32.mrb[44].mxu1  ;;  %v4298_v18 = vld [vmem:[#allocation2 + $0xa8] sm:$0xff]  ;;  %v4299_v43 = vld [vmem:[#allocation2 + $0xb0] sm:$0xff]  ;;  %v4301_v50 = vld [vmem:[#allocation2 + $0xc0] sm:$0xff] }
 0x14d   : > { %1692 = vst.msk [vmem:[#allocation3 + $0x148] sm:$0xff] %vm171_vm1, %v1644_v48  ;;  %v1536_v62 = vpop.f32.mrb[45].mxu1  ;;  %15533 = vmatmul.mubr.msk.f32.gmra.mrb[150].mxu1 %vm171_vm1, %v17199_v16  ;;  %v4294_v16 = vld [vmem:[#allocation2 + $0x88] sm:$0xff] }
 0x14e   : > { %1691 = vst.msk [vmem:[#allocation3 + $0x140] sm:$0xff] %vm171_vm1, %v1643_v19  ;;  %v15076_v10 = vpop.f32.mrb[46].mxu0  ;;  %v1598_v6 = vld [vmem:[#allocation3 + $0x158] sm:$0xff]  ;;  %15535 = vmatprep.mubr.msk.f32.mxu1 %vm171_vm1, %v4937_v51  ;;  %v2205_v55 = vld [vmem:[#allocation3 + $0x20] sm:$0xff] }
 0x14f   : > { %1052 = vst.msk [vmem:[#allocation3 + $0x178] sm:$0xff] %vm171_vm1, %v15076_v10  ;;  %v1646_v1 = vadd.f32 %v15144_v36, %v1598_v6  ;;  %v996_v26 = vpop.f32.mrb[47].mxu0  ;;  %v1597_v63 = vld [vmem:[#allocation3 + $0x150] sm:$0xff]  ;;  %15462 = vmatmul.mubr.msk.f32.gmra.mrb[152].mxu0 %vm171_vm1, %v4292_v60 }
 0x150   : > { %1051 = vst.msk [vmem:[#allocation3 + $0x170] sm:$0xff] %vm171_vm1, %v996_v26  ;;  %v1645_v58 = vadd.f32 %v1597_v63, %v1526_v22  ;;  %15464 = vmatprep.mubr.msk.f32.mxu0 %vm171_vm1, %v4293_v53  ;;  %v15150_v52 = vpop.f32.mrb[46].mxu1  ;;  %v4945_v36 = vld [vmem:[#allocation2 + $0xb1] sm:$0xff]  ;;  %v4946_v53 = vld [vmem:[#allocation2 + $0xb9] sm:$0xff]  ;;  %v4302_v63 = vld [vmem:[#allocation2 + $0xc8] sm:$0xff] }
 0x151   : > { %1694 = vst.msk [vmem:[#allocation3 + $0x158] sm:$0xff] %vm171_vm1, %v1646_v1  ;;  %v1546_v4 = vpop.f32.mrb[47].mxu1  ;;  %15536 = vmatmul.mubr.msk.f32.gmra.mrb[152].mxu1 %vm171_vm1, %v4938_v54  ;;  %v2207_v6 = vld [vmem:[#allocation3 + $0x30] sm:$0xff]  ;;  %v4947_v54 = vld [vmem:[#allocation2 + $0xc1] sm:$0xff] }
 0x152   : > { %1693 = vst.msk [vmem:[#allocation3 + $0x150] sm:$0xff] %vm171_vm1, %v1645_v58  ;;  %v1600_v28 = vld [vmem:[#allocation3 + $0x168] sm:$0xff]  ;;  %v15155_v7 = vpop.f32.mrb[48].mxu0  ;;  %15538 = vmatprep.mubr.msk.f32.mxu1 %vm171_vm1, %v4939_v45 }
 0x153   : > { %v1648_v37 = vadd.f32 %v15147_v25, %v1600_v28  ;;  %v2250_v38 = vadd.f32 %v15155_v7, %v2202_v30  ;;  %v1599_v35 = vld [vmem:[#allocation3 + $0x160] sm:$0xff]  ;;  %v1962_v31 = vpop.f32.mrb[49].mxu0  ;;  %15465 = vmatmul.mubr.msk.f32.gmra.mrb[154].mxu0 %vm171_vm1, %v4294_v16  ;;  %v2208_v25 = vld [vmem:[#allocation3 + $0x38] sm:$0xff]  ;;  %v2210_v7 = vld [vmem:[#allocation3 + $0x48] sm:$0xff] }
 0x154   : > { %v1647_v11 = vadd.f32 %v1599_v35, %v1536_v62  ;;  %v2249_v15 = vadd.f32 %v2201_v56, %v1962_v31  ;;  %15467 = vmatprep.mubr.msk.f32.mxu0 %vm171_vm1, %v4295_v2  ;;  %v15229_v12 = vpop.f32.mrb[48].mxu1  ;;  %v4948_v30 = vld [vmem:[#allocation2 + $0xc9] sm:$0xff]  ;;  %v4949_v35 = vld [vmem:[#allocation2 + $0xd1] sm:$0xff] }
 0x155   : > { %1696 = vst.msk [vmem:[#allocation3 + $0x168] sm:$0xff] %vm171_vm1, %v1648_v37  ;;  %2298 = vst.msk [vmem:[#allocation3 + $0x8] sm:$0xff] %vm171_vm1, %v2250_v38  ;;  %v2608_v34 = vpop.f32.mrb[49].mxu1  ;;  %15539 = vmatmul.mubr.msk.f32.gmra.mrb[154].mxu1 %vm171_vm1, %v4940_v8  ;;  %v2209_v38 = vld [vmem:[#allocation3 + $0x40] sm:$0xff] }
 0x156   : > { %1695 = vst.msk [vmem:[#allocation3 + $0x160] sm:$0xff] %vm171_vm1, %v1647_v11  ;;  %2297 = vst.msk [vmem:[#allocation3] sm:$0xff] %vm171_vm1, %v2249_v15  ;;  %v1602_v0 = vld [vmem:[#allocation3 + $0x178] sm:$0xff]  ;;  %v15158_v17 = vpop.f32.mrb[50].mxu0  ;;  %15541 = vmatprep.mubr.msk.f32.mxu1 %vm171_vm1, %v4941_v9  ;;  %v4304_v9 = vld [vmem:[#allocation2 + $0xd8] sm:$0xff] }
 0x157   : > { %v1650_v24 = vadd.f32 %v15150_v52, %v1602_v0  ;;  %v2252_v3 = vadd.f32 %v15158_v17, %v2204_v42  ;;  %v1601_v5 = vld [vmem:[#allocation3 + $0x170] sm:$0xff]  ;;  %v1972_v29 = vpop.f32.mrb[51].mxu0  ;;  %15468 = vmatmul.mubr.msk.f32.gmra.mrb[156].mxu0 %vm171_vm1, %v4296_v41  ;;  %v4303_v52 = vld [vmem:[#allocation2 + $0xd0] sm:$0xff]  ;;  %v2212_v17 = vld [vmem:[#allocation3 + $0x58] sm:$0xff] }
 0x158   : > { %v1649_v13 = vadd.f32 %v1601_v5, %v1546_v4  ;;  %v2251_v39 = vadd.f32 %v2203_v14, %v1972_v29  ;;  %15470 = vmatprep.mubr.msk.f32.mxu0 %vm171_vm1, %v4297_v59  ;;  %v15232_v20 = vpop.f32.mrb[50].mxu1  ;;  %v4950_v42 = vld [vmem:[#allocation2 + $0xd9] sm:$0xff]  ;;  %v4951_v5 = vld [vmem:[#allocation2 + $0xe1] sm:$0xff] }
 0x159   : > { %1698 = vst.msk [vmem:[#allocation3 + $0x178] sm:$0xff] %vm171_vm1, %v1650_v24  ;;  %2300 = vst.msk [vmem:[#allocation3 + $0x18] sm:$0xff] %vm171_vm1, %v2252_v3  ;;  %v2618_v49 = vpop.f32.mrb[51].mxu1  ;;  %15542 = vmatmul.mubr.msk.f32.gmra.mrb[156].mxu1 %vm171_vm1, %v4942_v32  ;;  %v2211_v3 = vld [vmem:[#allocation3 + $0x50] sm:$0xff] }
 0x15a   : > { %1697 = vst.msk [vmem:[#allocation3 + $0x170] sm:$0xff] %vm171_vm1, %v1649_v13  ;;  %2299 = vst.msk [vmem:[#allocation3 + $0x10] sm:$0xff] %vm171_vm1, %v2251_v39  ;;  %v15161_v61 = vpop.f32.mrb[52].mxu0  ;;  %15544 = vmatprep.mubr.msk.f32.mxu1 %vm171_vm1, %v4943_v27  ;;  %v4306_v27 = vld [vmem:[#allocation2 + $0xe8] sm:$0xff] }
 0x15b   : > { %v2254_v23 = vadd.f32 %v15161_v61, %v2206_v33  ;;  %v1982_v47 = vpop.f32.mrb[53].mxu0  ;;  %15471 = vmatmul.mubr.msk.f32.gmra.mrb[158].mxu0 %vm171_vm1, %v4298_v18  ;;  %v2214_v33 = vld [vmem:[#allocation3 + $0x68] sm:$0xff] }
 0x15c   : > { %v2253_v21 = vadd.f32 %v2205_v55, %v1982_v47  ;;  %v2848_v22 = vld [vmem:[#allocation3 + $0x8] sm:$0xff]  ;;  %15473 = vmatprep.mubr.msk.f32.mxu0 %vm171_vm1, %v4299_v43  ;;  %v15235_v40 = vpop.f32.mrb[52].mxu1  ;;  %v2213_v55 = vld [vmem:[#allocation3 + $0x60] sm:$0xff] }
 0x15d   : > { %2302 = vst.msk [vmem:[#allocation3 + $0x28] sm:$0xff] %vm171_vm1, %v2254_v23  ;;  %v2896_v48 = vadd.f32 %v15229_v12, %v2848_v22  ;;  %v2847_v44 = vld [vmem:[#allocation3] sm:$0xff]  ;;  %v2628_v51 = vpop.f32.mrb[53].mxu1  ;;  %15545 = vmatmul.mubr.msk.f32.gmra.mrb[158].mxu1 %vm171_vm1, %v4944_v46  ;;  %v4305_v12 = vld [vmem:[#allocation2 + $0xe0] sm:$0xff] }
 0x15e   : > { %2301 = vst.msk [vmem:[#allocation3 + $0x20] sm:$0xff] %vm171_vm1, %v2253_v21  ;;  %v2895_v19 = vadd.f32 %v2847_v44, %v2608_v34  ;;  %v15164_v60 = vpop.f32.mrb[54].mxu0  ;;  %15547 = vmatprep.mubr.msk.f32.mxu1 %vm171_vm1, %v4945_v36  ;;  %v4952_v46 = vld [vmem:[#allocation2 + $0xe9] sm:$0xff]  ;;  %v4953_v36 = vld [vmem:[#allocation2 + $0xf1] sm:$0xff] }
 0x15f   : > { %2944 = vst.msk [vmem:[#allocation3 + $0x8] sm:$0xff] %vm171_vm1, %v2896_v48  ;;  %v2256_v62 = vadd.f32 %v15164_v60, %v2208_v25  ;;  %v1992_v10 = vpop.f32.mrb[55].mxu0  ;;  %15474 = vmatmul.mubr.msk.f32.gmra.mrb[160].mxu0 %vm171_vm1, %v4300_v57  ;;  %v4308_v57 = vld [vmem:[#allocation2 + $0xf8] sm:$0xff]  ;;  %v2216_v25 = vld [vmem:[#allocation3 + $0x78] sm:$0xff] }
 0x160   : > { %2943 = vst.msk [vmem:[#allocation3] sm:$0xff] %vm171_vm1, %v2895_v19  ;;  %v2255_v1 = vadd.f32 %v2207_v6, %v1992_v10  ;;  %v2850_v26 = vld [vmem:[#allocation3 + $0x18] sm:$0xff]  ;;  %15476 = vmatprep.mubr.msk.f32.mxu0 %vm171_vm1, %v4301_v50  ;;  %v15238_v45 = vpop.f32.mrb[54].mxu1  ;;  %v2215_v6 = vld [vmem:[#allocation3 + $0x70] sm:$0xff] }
 0x161   : > { %2304 = vst.msk [vmem:[#allocation3 + $0x38] sm:$0xff] %vm171_vm1, %v2256_v62  ;;  %v2898_v58 = vadd.f32 %v15232_v20, %v2850_v26  ;;  %v2849_v16 = vld [vmem:[#allocation3 + $0x10] sm:$0xff]  ;;  %v2638_v2 = vpop.f32.mrb[55].mxu1  ;;  %15548 = vmatmul.mubr.msk.f32.gmra.mrb[160].mxu1 %vm171_vm1, %v4946_v53  ;;  %v4307_v20 = vld [vmem:[#allocation2 + $0xf0] sm:$0xff]  ;;  %v4309_v50 = vld [vmem:[#allocation2 + $0x100] sm:$0xff] }
 0x162   : > { %2303 = vst.msk [vmem:[#allocation3 + $0x30] sm:$0xff] %vm171_vm1, %v2255_v1  ;;  %v2897_v4 = vadd.f32 %v2849_v16, %v2618_v49  ;;  %v15167_v28 = vpop.f32.mrb[56].mxu0  ;;  %15550 = vmatprep.mubr.msk.f32.mxu1 %vm171_vm1, %v4947_v54  ;;  %v4954_v53 = vld [vmem:[#allocation2 + $0xf9] sm:$0xff]  ;;  %v4955_v54 = vld [vmem:[#allocation2 + $0x101] sm:$0xff] }
 0x163   : > { %2946 = vst.msk [vmem:[#allocation3 + $0x18] sm:$0xff] %vm171_vm1, %v2898_v58  ;;  %v2258_v8 = vadd.f32 %v15167_v28, %v2210_v7  ;;  %v2002_v37 = vpop.f32.mrb[57].mxu0  ;;  %15477 = vmatmul.mubr.msk.f32.gmra.mrb[162].mxu0 %vm171_vm1, %v4302_v63  ;;  %v4310_v63 = vld [vmem:[#allocation2 + $0x108] sm:$0xff]  ;;  %v2218_v7 = vld [vmem:[#allocation3 + $0x88] sm:$0xff] }
 0x164   : > { %2945 = vst.msk [vmem:[#allocation3 + $0x10] sm:$0xff] %vm171_vm1, %v2897_v4  ;;  %v2257_v31 = vadd.f32 %v2209_v38, %v2002_v37  ;;  %v2852_v56 = vld [vmem:[#allocation3 + $0x28] sm:$0xff]  ;;  %15479 = vmatprep.mubr.msk.f32.mxu0 %vm171_vm1, %v4303_v52  ;;  %v15241_v11 = vpop.f32.mrb[56].mxu1  ;;  %v2217_v38 = vld [vmem:[#allocation3 + $0x80] sm:$0xff] }
 0x165   : > { %2306 = vst.msk [vmem:[#allocation3 + $0x48] sm:$0xff] %vm171_vm1, %v2258_v8  ;;  %v2900_v15 = vadd.f32 %v15235_v40, %v2852_v56  ;;  %v2851_v41 = vld [vmem:[#allocation3 + $0x20] sm:$0xff]  ;;  %v2648_v59 = vpop.f32.mrb[57].mxu1  ;;  %15551 = vmatmul.mubr.msk.f32.gmra.mrb[162].mxu1 %vm171_vm1, %v4948_v30  ;;  %v4311_v52 = vld [vmem:[#allocation2 + $0x110] sm:$0xff] }
 0x166   : > { %2305 = vst.msk [vmem:[#allocation3 + $0x40] sm:$0xff] %vm171_vm1, %v2257_v31  ;;  %v2899_v34 = vadd.f32 %v2851_v41, %v2628_v51  ;;  %v15170_v0 = vpop.f32.mrb[58].mxu0  ;;  %15553 = vmatprep.mubr.msk.f32.mxu1 %vm171_vm1, %v4949_v35  ;;  %v4956_v30 = vld [vmem:[#allocation2 + $0x109] sm:$0xff]  ;;  %v4957_v35 = vld [vmem:[#allocation2 + $0x111] sm:$0xff] }
 0x167   : > { %2948 = vst.msk [vmem:[#allocation3 + $0x28] sm:$0xff] %vm171_vm1, %v2900_v15  ;;  %v2260_v32 = vadd.f32 %v15170_v0, %v2212_v17  ;;  %v2012_v24 = vpop.f32.mrb[59].mxu0  ;;  %15480 = vmatmul.mubr.msk.f32.gmra.mrb[164].mxu0 %vm171_vm1, %v4304_v9  ;;  %v4312_v9 = vld [vmem:[#allocation2 + $0x118] sm:$0xff]  ;;  %v2220_v17 = vld [vmem:[#allocation3 + $0x98] sm:$0xff] }
 0x168   : > { %2947 = vst.msk [vmem:[#allocation3 + $0x20] sm:$0xff] %vm171_vm1, %v2899_v34  ;;  %v2259_v29 = vadd.f32 %v2211_v3, %v2012_v24  ;;  %v2854_v14 = vld [vmem:[#allocation3 + $0x38] sm:$0xff]  ;;  %15482 = vmatprep.mubr.msk.f32.mxu0 %vm171_vm1, %v4305_v12  ;;  %v15244_v13 = vpop.f32.mrb[58].mxu1  ;;  %v2219_v3 = vld [vmem:[#allocation3 + $0x90] sm:$0xff] }
 0x169   : > { %2308 = vst.msk [vmem:[#allocation3 + $0x58] sm:$0xff] %vm171_vm1, %v2260_v32  ;;  %v2902_v39 = vadd.f32 %v15238_v45, %v2854_v14  ;;  %v2853_v18 = vld [vmem:[#allocation3 + $0x30] sm:$0xff]  ;;  %v2658_v43 = vpop.f32.mrb[59].mxu1  ;;  %15554 = vmatmul.mubr.msk.f32.gmra.mrb[164].mxu1 %vm171_vm1, %v4950_v42  ;;  %v4313_v12 = vld [vmem:[#allocation2 + $0x120] sm:$0xff] }
 0x16a   : > { %2307 = vst.msk [vmem:[#allocation3 + $0x50] sm:$0xff] %vm171_vm1, %v2259_v29  ;;  %v2901_v49 = vadd.f32 %v2853_v18, %v2638_v2  ;;  %v15173_v61 = vpop.f32.mrb[60].mxu0  ;;  %15556 = vmatprep.mubr.msk.f32.mxu1 %vm171_vm1, %v4951_v5  ;;  %v4958_v42 = vld [vmem:[#allocation2 + $0x119] sm:$0xff]  ;;  %v4959_v5 = vld [vmem:[#allocation2 + $0x121] sm:$0xff] }
 0x16b   : > { %2950 = vst.msk [vmem:[#allocation3 + $0x38] sm:$0xff] %vm171_vm1, %v2902_v39  ;;  %v2262_v23 = vadd.f32 %v15173_v61, %v2214_v33  ;;  %v2022_v47 = vpop.f32.mrb[61].mxu0  ;;  %15483 = vmatmul.mubr.msk.f32.gmra.mrb[166].mxu0 %vm171_vm1, %v4306_v27  ;;  %v4314_v27 = vld [vmem:[#allocation2 + $0x128] sm:$0xff]  ;;  %v2222_v33 = vld [vmem:[#allocation3 + $0xa8] sm:$0xff] }
 0x16c   : > { %2949 = vst.msk [vmem:[#allocation3 + $0x30] sm:$0xff] %vm171_vm1, %v2901_v49  ;;  %v2261_v21 = vadd.f32 %v2213_v55, %v2022_v47  ;;  %v2856_v22 = vld [vmem:[#allocation3 + $0x48] sm:$0xff]  ;;  %15485 = vmatprep.mubr.msk.f32.mxu0 %vm171_vm1, %v4307_v20  ;;  %v15247_v40 = vpop.f32.mrb[60].mxu1  ;;  %v2221_v55 = vld [vmem:[#allocation3 + $0xa0] sm:$0xff] }
 0x16d   : > { %2310 = vst.msk [vmem:[#allocation3 + $0x68] sm:$0xff] %vm171_vm1, %v2262_v23  ;;  %v2904_v48 = vadd.f32 %v15241_v11, %v2856_v22  ;;  %v2855_v44 = vld [vmem:[#allocation3 + $0x40] sm:$0xff]  ;;  %v2668_v51 = vpop.f32.mrb[61].mxu1  ;;  %15557 = vmatmul.mubr.msk.f32.gmra.mrb[166].mxu1 %vm171_vm1, %v4952_v46  ;;  %v4315_v20 = vld [vmem:[#allocation2 + $0x130] sm:$0xff] }
 0x16e   : > { %2309 = vst.msk [vmem:[#allocation3 + $0x60] sm:$0xff] %vm171_vm1, %v2261_v21  ;;  %v2903_v19 = vadd.f32 %v2855_v44, %v2648_v59  ;;  %v15176_v60 = vpop.f32.mrb[62].mxu0  ;;  %15559 = vmatprep.mubr.msk.f32.mxu1 %vm171_vm1, %v4953_v36  ;;  %v4960_v46 = vld [vmem:[#allocation2 + $0x129] sm:$0xff]  ;;  %v4961_v36 = vld [vmem:[#allocation2 + $0x131] sm:$0xff] }
 0x16f   : > { %2952 = vst.msk [vmem:[#allocation3 + $0x48] sm:$0xff] %vm171_vm1, %v2904_v48  ;;  %v2264_v62 = vadd.f32 %v15176_v60, %v2216_v25  ;;  %v2032_v10 = vpop.f32.mrb[63].mxu0  ;;  %15486 = vmatmul.mubr.msk.f32.gmra.mrb[168].mxu0 %vm171_vm1, %v4308_v57  ;;  %v4316_v57 = vld [vmem:[#allocation2 + $0x138] sm:$0xff]  ;;  %v2224_v25 = vld [vmem:[#allocation3 + $0xb8] sm:$0xff] }
 0x170   : > { %2951 = vst.msk [vmem:[#allocation3 + $0x40] sm:$0xff] %vm171_vm1, %v2903_v19  ;;  %v2263_v1 = vadd.f32 %v2215_v6, %v2032_v10  ;;  %v2858_v26 = vld [vmem:[#allocation3 + $0x58] sm:$0xff]  ;;  %15488 = vmatprep.mubr.msk.f32.mxu0 %vm171_vm1, %v4309_v50  ;;  %v15250_v45 = vpop.f32.mrb[62].mxu1  ;;  %v2223_v6 = vld [vmem:[#allocation3 + $0xb0] sm:$0xff] }
 0x171   : > { %2312 = vst.msk [vmem:[#allocation3 + $0x78] sm:$0xff] %vm171_vm1, %v2264_v62  ;;  %v2906_v58 = vadd.f32 %v15244_v13, %v2858_v26  ;;  %v2857_v16 = vld [vmem:[#allocation3 + $0x50] sm:$0xff]  ;;  %v2678_v2 = vpop.f32.mrb[63].mxu1  ;;  %15560 = vmatmul.mubr.msk.f32.gmra.mrb[168].mxu1 %vm171_vm1, %v4954_v53  ;;  %v4317_v50 = vld [vmem:[#allocation2 + $0x140] sm:$0xff] }
 0x172   : > { %2311 = vst.msk [vmem:[#allocation3 + $0x70] sm:$0xff] %vm171_vm1, %v2263_v1  ;;  %v2905_v4 = vadd.f32 %v2857_v16, %v2658_v43  ;;  %v15179_v28 = vpop.f32.mrb[64].mxu0  ;;  %15562 = vmatprep.mubr.msk.f32.mxu1 %vm171_vm1, %v4955_v54  ;;  %v4962_v53 = vld [vmem:[#allocation2 + $0x139] sm:$0xff]  ;;  %v4963_v54 = vld [vmem:[#allocation2 + $0x141] sm:$0xff] }
 0x173   : > { %2954 = vst.msk [vmem:[#allocation3 + $0x58] sm:$0xff] %vm171_vm1, %v2906_v58  ;;  %v2266_v8 = vadd.f32 %v15179_v28, %v2218_v7  ;;  %v2042_v37 = vpop.f32.mrb[65].mxu0  ;;  %15489 = vmatmul.mubr.msk.f32.gmra.mrb[170].mxu0 %vm171_vm1, %v4310_v63  ;;  %v4318_v63 = vld [vmem:[#allocation2 + $0x148] sm:$0xff]  ;;  %v2226_v7 = vld [vmem:[#allocation3 + $0xc8] sm:$0xff] }
 0x174   : > { %2953 = vst.msk [vmem:[#allocation3 + $0x50] sm:$0xff] %vm171_vm1, %v2905_v4  ;;  %v2265_v31 = vadd.f32 %v2217_v38, %v2042_v37  ;;  %v2860_v56 = vld [vmem:[#allocation3 + $0x68] sm:$0xff]  ;;  %15491 = vmatprep.mubr.msk.f32.mxu0 %vm171_vm1, %v4311_v52  ;;  %v15253_v11 = vpop.f32.mrb[64].mxu1  ;;  %v2225_v38 = vld [vmem:[#allocation3 + $0xc0] sm:$0xff] }
 0x175   : > { %2314 = vst.msk [vmem:[#allocation3 + $0x88] sm:$0xff] %vm171_vm1, %v2266_v8  ;;  %v2908_v15 = vadd.f32 %v15247_v40, %v2860_v56  ;;  %v2859_v41 = vld [vmem:[#allocation3 + $0x60] sm:$0xff]  ;;  %v2688_v59 = vpop.f32.mrb[65].mxu1  ;;  %15563 = vmatmul.mubr.msk.f32.gmra.mrb[170].mxu1 %vm171_vm1, %v4956_v30  ;;  %v4319_v52 = vld [vmem:[#allocation2 + $0x150] sm:$0xff] }
 0x176   : > { %2313 = vst.msk [vmem:[#allocation3 + $0x80] sm:$0xff] %vm171_vm1, %v2265_v31  ;;  %v2907_v34 = vadd.f32 %v2859_v41, %v2668_v51  ;;  %v15182_v0 = vpop.f32.mrb[66].mxu0  ;;  %15565 = vmatprep.mubr.msk.f32.mxu1 %vm171_vm1, %v4957_v35  ;;  %v4964_v30 = vld [vmem:[#allocation2 + $0x149] sm:$0xff]  ;;  %v4965_v35 = vld [vmem:[#allocation2 + $0x151] sm:$0xff] }
 0x177   : > { %2956 = vst.msk [vmem:[#allocation3 + $0x68] sm:$0xff] %vm171_vm1, %v2908_v15  ;;  %v2268_v32 = vadd.f32 %v15182_v0, %v2220_v17  ;;  %v2052_v24 = vpop.f32.mrb[67].mxu0  ;;  %15492 = vmatmul.mubr.msk.f32.gmra.mrb[172].mxu0 %vm171_vm1, %v4312_v9  ;;  %v4320_v9 = vld [vmem:[#allocation2 + $0x158] sm:$0xff]  ;;  %v2228_v17 = vld [vmem:[#allocation3 + $0xd8] sm:$0xff] }
 0x178   : > { %2955 = vst.msk [vmem:[#allocation3 + $0x60] sm:$0xff] %vm171_vm1, %v2907_v34  ;;  %v2267_v29 = vadd.f32 %v2219_v3, %v2052_v24  ;;  %v2862_v14 = vld [vmem:[#allocation3 + $0x78] sm:$0xff]  ;;  %15494 = vmatprep.mubr.msk.f32.mxu0 %vm171_vm1, %v4313_v12  ;;  %v15256_v13 = vpop.f32.mrb[66].mxu1  ;;  %v2227_v3 = vld [vmem:[#allocation3 + $0xd0] sm:$0xff] }
 0x179   : > { %2316 = vst.msk [vmem:[#allocation3 + $0x98] sm:$0xff] %vm171_vm1, %v2268_v32  ;;  %v2910_v39 = vadd.f32 %v15250_v45, %v2862_v14  ;;  %v2861_v18 = vld [vmem:[#allocation3 + $0x70] sm:$0xff]  ;;  %v2698_v43 = vpop.f32.mrb[67].mxu1  ;;  %15566 = vmatmul.mubr.msk.f32.gmra.mrb[172].mxu1 %vm171_vm1, %v4958_v42  ;;  %v4321_v12 = vld [vmem:[#allocation2 + $0x160] sm:$0xff] }
 0x17a   : > { %2315 = vst.msk [vmem:[#allocation3 + $0x90] sm:$0xff] %vm171_vm1, %v2267_v29  ;;  %v2909_v49 = vadd.f32 %v2861_v18, %v2678_v2  ;;  %v15185_v61 = vpop.f32.mrb[68].mxu0  ;;  %15568 = vmatprep.mubr.msk.f32.mxu1 %vm171_vm1, %v4959_v5  ;;  %v4966_v42 = vld [vmem:[#allocation2 + $0x159] sm:$0xff]  ;;  %v4967_v5 = vld [vmem:[#allocation2 + $0x161] sm:$0xff] }
 0x17b   : > { %2958 = vst.msk [vmem:[#allocation3 + $0x78] sm:$0xff] %vm171_vm1, %v2910_v39  ;;  %v2270_v23 = vadd.f32 %v15185_v61, %v2222_v33  ;;  %v2062_v47 = vpop.f32.mrb[69].mxu0  ;;  %15495 = vmatmul.mubr.msk.f32.gmra.mrb[174].mxu0 %vm171_vm1, %v4314_v27  ;;  %v4322_v27 = vld [vmem:[#allocation2 + $0x168] sm:$0xff]  ;;  %v2230_v33 = vld [vmem:[#allocation3 + $0xe8] sm:$0xff] }
 0x17c   : > { %2957 = vst.msk [vmem:[#allocation3 + $0x70] sm:$0xff] %vm171_vm1, %v2909_v49  ;;  %v2269_v21 = vadd.f32 %v2221_v55, %v2062_v47  ;;  %v2864_v22 = vld [vmem:[#allocation3 + $0x88] sm:$0xff]  ;;  %15497 = vmatprep.mubr.msk.f32.mxu0 %vm171_vm1, %v4315_v20  ;;  %v15259_v40 = vpop.f32.mrb[68].mxu1  ;;  %v2229_v55 = vld [vmem:[#allocation3 + $0xe0] sm:$0xff] }
 0x17d   : > { %2318 = vst.msk [vmem:[#allocation3 + $0xa8] sm:$0xff] %vm171_vm1, %v2270_v23  ;;  %v2912_v48 = vadd.f32 %v15253_v11, %v2864_v22  ;;  %v2863_v44 = vld [vmem:[#allocation3 + $0x80] sm:$0xff]  ;;  %v2708_v51 = vpop.f32.mrb[69].mxu1  ;;  %15569 = vmatmul.mubr.msk.f32.gmra.mrb[174].mxu1 %vm171_vm1, %v4960_v46  ;;  %v4323_v20 = vld [vmem:[#allocation2 + $0x170] sm:$0xff] }
 0x17e   : > { %2317 = vst.msk [vmem:[#allocation3 + $0xa0] sm:$0xff] %vm171_vm1, %v2269_v21  ;;  %v2911_v19 = vadd.f32 %v2863_v44, %v2688_v59  ;;  %v15188_v60 = vpop.f32.mrb[70].mxu0  ;;  %15571 = vmatprep.mubr.msk.f32.mxu1 %vm171_vm1, %v4961_v36  ;;  %v4968_v46 = vld [vmem:[#allocation2 + $0x169] sm:$0xff]  ;;  %v4969_v36 = vld [vmem:[#allocation2 + $0x171] sm:$0xff] }
 0x17f   : > { %2960 = vst.msk [vmem:[#allocation3 + $0x88] sm:$0xff] %vm171_vm1, %v2912_v48  ;;  %v2272_v62 = vadd.f32 %v15188_v60, %v2224_v25  ;;  %v2072_v10 = vpop.f32.mrb[71].mxu0  ;;  %15498 = vmatmul.mubr.msk.f32.gmra.mrb[176].mxu0 %vm171_vm1, %v4316_v57  ;;  %v4324_v57 = vld [vmem:[#allocation2 + $0x178] sm:$0xff]  ;;  %v2232_v25 = vld [vmem:[#allocation3 + $0xf8] sm:$0xff] }
 0x180   : > { %2959 = vst.msk [vmem:[#allocation3 + $0x80] sm:$0xff] %vm171_vm1, %v2911_v19  ;;  %v2271_v1 = vadd.f32 %v2223_v6, %v2072_v10  ;;  %v2866_v26 = vld [vmem:[#allocation3 + $0x98] sm:$0xff]  ;;  %15500 = vmatprep.mubr.msk.f32.mxu0 %vm171_vm1, %v4317_v50  ;;  %v15262_v45 = vpop.f32.mrb[70].mxu1  ;;  %v2231_v6 = vld [vmem:[#allocation3 + $0xf0] sm:$0xff] }
 0x181   : > { %2320 = vst.msk [vmem:[#allocation3 + $0xb8] sm:$0xff] %vm171_vm1, %v2272_v62  ;;  %v2914_v58 = vadd.f32 %v15256_v13, %v2866_v26  ;;  %v2865_v16 = vld [vmem:[#allocation3 + $0x90] sm:$0xff]  ;;  %v2718_v2 = vpop.f32.mrb[71].mxu1  ;;  %15572 = vmatmul.mubr.msk.f32.gmra.mrb[176].mxu1 %vm171_vm1, %v4962_v53  ;;  %v4325_v50 = vld [vmem:[#allocation2 + $0x180] sm:$0xff] }
 0x182   : > { %2319 = vst.msk [vmem:[#allocation3 + $0xb0] sm:$0xff] %vm171_vm1, %v2271_v1  ;;  %v2913_v4 = vadd.f32 %v2865_v16, %v2698_v43  ;;  %v15191_v28 = vpop.f32.mrb[72].mxu0  ;;  %15574 = vmatprep.mubr.msk.f32.mxu1 %vm171_vm1, %v4963_v54  ;;  %v4970_v53 = vld [vmem:[#allocation2 + $0x179] sm:$0xff]  ;;  %v4971_v54 = vld [vmem:[#allocation2 + $0x181] sm:$0xff] }
 0x183   : > { %2962 = vst.msk [vmem:[#allocation3 + $0x98] sm:$0xff] %vm171_vm1, %v2914_v58  ;;  %v2274_v8 = vadd.f32 %v15191_v28, %v2226_v7  ;;  %v2082_v37 = vpop.f32.mrb[73].mxu0  ;;  %15501 = vmatmul.mubr.msk.f32.gmra.mrb[178].mxu0 %vm171_vm1, %v4318_v63  ;;  %v4326_v63 = vld [vmem:[#allocation2 + $0x188] sm:$0xff]  ;;  %v2234_v7 = vld [vmem:[#allocation3 + $0x108] sm:$0xff] }
 0x184   : > { %2961 = vst.msk [vmem:[#allocation3 + $0x90] sm:$0xff] %vm171_vm1, %v2913_v4  ;;  %v2273_v31 = vadd.f32 %v2225_v38, %v2082_v37  ;;  %v2868_v56 = vld [vmem:[#allocation3 + $0xa8] sm:$0xff]  ;;  %15503 = vmatprep.mubr.msk.f32.mxu0 %vm171_vm1, %v4319_v52  ;;  %v15265_v11 = vpop.f32.mrb[72].mxu1  ;;  %v2233_v38 = vld [vmem:[#allocation3 + $0x100] sm:$0xff] }
 0x185   : > { %2322 = vst.msk [vmem:[#allocation3 + $0xc8] sm:$0xff] %vm171_vm1, %v2274_v8  ;;  %v2916_v15 = vadd.f32 %v15259_v40, %v2868_v56  ;;  %v2867_v41 = vld [vmem:[#allocation3 + $0xa0] sm:$0xff]  ;;  %v2728_v59 = vpop.f32.mrb[73].mxu1  ;;  %15575 = vmatmul.mubr.msk.f32.gmra.mrb[178].mxu1 %vm171_vm1, %v4964_v30  ;;  %v4327_v52 = vld [vmem:[#allocation2 + $0x190] sm:$0xff] }
 0x186   : > { %2321 = vst.msk [vmem:[#allocation3 + $0xc0] sm:$0xff] %vm171_vm1, %v2273_v31  ;;  %v2915_v34 = vadd.f32 %v2867_v41, %v2708_v51  ;;  %v15194_v0 = vpop.f32.mrb[74].mxu0  ;;  %15577 = vmatprep.mubr.msk.f32.mxu1 %vm171_vm1, %v4965_v35  ;;  %v4972_v30 = vld [vmem:[#allocation2 + $0x189] sm:$0xff]  ;;  %v4973_v35 = vld [vmem:[#allocation2 + $0x191] sm:$0xff] }
 0x187   : > { %2964 = vst.msk [vmem:[#allocation3 + $0xa8] sm:$0xff] %vm171_vm1, %v2916_v15  ;;  %v2276_v32 = vadd.f32 %v15194_v0, %v2228_v17  ;;  %v2092_v24 = vpop.f32.mrb[75].mxu0  ;;  %15504 = vmatmul.mubr.msk.f32.gmra.mrb[180].mxu0 %vm171_vm1, %v4320_v9  ;;  %v4328_v9 = vld [vmem:[#allocation2 + $0x198] sm:$0xff]  ;;  %v2236_v17 = vld [vmem:[#allocation3 + $0x118] sm:$0xff] }
 0x188   : > { %2963 = vst.msk [vmem:[#allocation3 + $0xa0] sm:$0xff] %vm171_vm1, %v2915_v34  ;;  %v2275_v29 = vadd.f32 %v2227_v3, %v2092_v24  ;;  %v2870_v14 = vld [vmem:[#allocation3 + $0xb8] sm:$0xff]  ;;  %15506 = vmatprep.mubr.msk.f32.mxu0 %vm171_vm1, %v4321_v12  ;;  %v15268_v13 = vpop.f32.mrb[74].mxu1  ;;  %v2235_v3 = vld [vmem:[#allocation3 + $0x110] sm:$0xff] }
 0x189   : > { %2324 = vst.msk [vmem:[#allocation3 + $0xd8] sm:$0xff] %vm171_vm1, %v2276_v32  ;;  %v2918_v39 = vadd.f32 %v15262_v45, %v2870_v14  ;;  %v2869_v18 = vld [vmem:[#allocation3 + $0xb0] sm:$0xff]  ;;  %v2738_v43 = vpop.f32.mrb[75].mxu1  ;;  %15578 = vmatmul.mubr.msk.f32.gmra.mrb[180].mxu1 %vm171_vm1, %v4966_v42  ;;  %v4329_v12 = vld [vmem:[#allocation2 + $0x1a0] sm:$0xff] }
 0x18a   : > { %2323 = vst.msk [vmem:[#allocation3 + $0xd0] sm:$0xff] %vm171_vm1, %v2275_v29  ;;  %v2917_v49 = vadd.f32 %v2869_v18, %v2718_v2  ;;  %v15197_v61 = vpop.f32.mrb[76].mxu0  ;;  %15580 = vmatprep.mubr.msk.f32.mxu1 %vm171_vm1, %v4967_v5  ;;  %v4974_v42 = vld [vmem:[#allocation2 + $0x199] sm:$0xff]  ;;  %v4975_v5 = vld [vmem:[#allocation2 + $0x1a1] sm:$0xff] }
 0x18b   : > { %2966 = vst.msk [vmem:[#allocation3 + $0xb8] sm:$0xff] %vm171_vm1, %v2918_v39  ;;  %v2278_v23 = vadd.f32 %v15197_v61, %v2230_v33  ;;  %v2102_v47 = vpop.f32.mrb[77].mxu0  ;;  %15507 = vmatmul.mubr.msk.f32.gmra.mrb[182].mxu0 %vm171_vm1, %v4322_v27  ;;  %v4330_v27 = vld [vmem:[#allocation2 + $0x1a8] sm:$0xff]  ;;  %v2238_v33 = vld [vmem:[#allocation3 + $0x128] sm:$0xff] }
 0x18c   : > { %2965 = vst.msk [vmem:[#allocation3 + $0xb0] sm:$0xff] %vm171_vm1, %v2917_v49  ;;  %v2277_v21 = vadd.f32 %v2229_v55, %v2102_v47  ;;  %v2872_v22 = vld [vmem:[#allocation3 + $0xc8] sm:$0xff]  ;;  %15509 = vmatprep.mubr.msk.f32.mxu0 %vm171_vm1, %v4323_v20  ;;  %v15271_v40 = vpop.f32.mrb[76].mxu1  ;;  %v2237_v55 = vld [vmem:[#allocation3 + $0x120] sm:$0xff] }
 0x18d   : > { %2326 = vst.msk [vmem:[#allocation3 + $0xe8] sm:$0xff] %vm171_vm1, %v2278_v23  ;;  %v2920_v48 = vadd.f32 %v15265_v11, %v2872_v22  ;;  %v2871_v44 = vld [vmem:[#allocation3 + $0xc0] sm:$0xff]  ;;  %v2748_v51 = vpop.f32.mrb[77].mxu1  ;;  %15581 = vmatmul.mubr.msk.f32.gmra.mrb[182].mxu1 %vm171_vm1, %v4968_v46  ;;  %v5575_v20 = vld [vmem:[#allocation2 + $0x32] sm:$0xff]  ;;  %v5576_v22 = vld [vmem:[#allocation2 + $0x3a] sm:$0xff] }
 0x18e   : > { %2325 = vst.msk [vmem:[#allocation3 + $0xe0] sm:$0xff] %vm171_vm1, %v2277_v21  ;;  %v2919_v19 = vadd.f32 %v2871_v44, %v2728_v59  ;;  %v15200_v60 = vpop.f32.mrb[78].mxu0  ;;  %15583 = vmatprep.mubr.msk.f32.mxu1 %vm171_vm1, %v4969_v36  ;;  %v4976_v46 = vld [vmem:[#allocation2 + $0x1a9] sm:$0xff] }
 0x18f   : > { %2968 = vst.msk [vmem:[#allocation3 + $0xc8] sm:$0xff] %vm171_vm1, %v2920_v48  ;;  %v2280_v62 = vadd.f32 %v15200_v60, %v2232_v25  ;;  %v2112_v10 = vpop.f32.mrb[79].mxu0  ;;  %15510 = vmatmul.mubr.msk.f32.gmra.mrb[184].mxu0 %vm171_vm1, %v4324_v57  ;;  %v5577_v44 = vld [vmem:[#allocation2 + $0x42] sm:$0xff] }
 0x190   : > { %2967 = vst.msk [vmem:[#allocation3 + $0xc0] sm:$0xff] %vm171_vm1, %v2919_v19  ;;  %v2279_v1 = vadd.f32 %v2231_v6, %v2112_v10  ;;  %v2874_v26 = vld [vmem:[#allocation3 + $0xd8] sm:$0xff]  ;;  %15512 = vmatprep.mubr.msk.f32.mxu0 %vm171_vm1, %v4325_v50  ;;  %v15274_v45 = vpop.f32.mrb[78].mxu1 }
 0x191   : > { %2328 = vst.msk [vmem:[#allocation3 + $0xf8] sm:$0xff] %vm171_vm1, %v2280_v62  ;;  %v2922_v58 = vadd.f32 %v15268_v13, %v2874_v26  ;;  %v2873_v16 = vld [vmem:[#allocation3 + $0xd0] sm:$0xff]  ;;  %v2758_v2 = vpop.f32.mrb[79].mxu1  ;;  %15584 = vmatmul.mubr.msk.f32.gmra.mrb[184].mxu1 %vm171_vm1, %v4970_v53  ;;  %v2240_v60 = vld [vmem:[#allocation3 + $0x138] sm:$0xff] }
 0x192   : > { %2327 = vst.msk [vmem:[#allocation3 + $0xf0] sm:$0xff] %vm171_vm1, %v2279_v1  ;;  %v2921_v4 = vadd.f32 %v2873_v16, %v2738_v43  ;;  %v15203_v28 = vpop.f32.mrb[80].mxu0  ;;  %15586 = vmatprep.mubr.msk.f32.mxu1 %vm171_vm1, %v4971_v54  ;;  %v2239_v62 = vld [vmem:[#allocation3 + $0x130] sm:$0xff]  ;;  %v5578_v54 = vld [vmem:[#allocation2 + $0x4a] sm:$0xff] }
 0x193   : > { %2970 = vst.msk [vmem:[#allocation3 + $0xd8] sm:$0xff] %vm171_vm1, %v2922_v58  ;;  %v2282_v8 = vadd.f32 %v15203_v28, %v2234_v7  ;;  %v2122_v37 = vpop.f32.mrb[81].mxu0  ;;  %15513 = vmatmul.mubr.msk.f32.gmra.mrb[186].mxu0 %vm171_vm1, %v4326_v63  ;;  %v2241_v7 = vld [vmem:[#allocation3 + $0x140] sm:$0xff] }
 0x194   : > { %2969 = vst.msk [vmem:[#allocation3 + $0xd0] sm:$0xff] %vm171_vm1, %v2921_v4  ;;  %v2281_v31 = vadd.f32 %v2233_v38, %v2122_v37  ;;  %v2876_v56 = vld [vmem:[#allocation3 + $0xe8] sm:$0xff]  ;;  %15515 = vmatprep.mubr.msk.f32.mxu0 %vm171_vm1, %v4327_v52  ;;  %v15277_v11 = vpop.f32.mrb[80].mxu1  ;;  %v5580_v37 = vld [vmem:[#allocation2 + $0x5a] sm:$0xff] }
 0x195   : > { %2330 = vst.msk [vmem:[#allocation3 + $0x108] sm:$0xff] %vm171_vm1, %v2282_v8  ;;  %v2924_v15 = vadd.f32 %v15271_v40, %v2876_v56  ;;  %v2875_v41 = vld [vmem:[#allocation3 + $0xe0] sm:$0xff]  ;;  %v2768_v59 = vpop.f32.mrb[81].mxu1  ;;  %15587 = vmatmul.mubr.msk.f32.gmra.mrb[186].mxu1 %vm171_vm1, %v4972_v30 }
 0x196   : > { %2329 = vst.msk [vmem:[#allocation3 + $0x100] sm:$0xff] %vm171_vm1, %v2281_v31  ;;  %v2923_v34 = vadd.f32 %v2875_v41, %v2748_v51  ;;  %v15206_v0 = vpop.f32.mrb[82].mxu0  ;;  %15589 = vmatprep.mubr.msk.f32.mxu1 %vm171_vm1, %v4973_v35  ;;  %v5581_v56 = vld [vmem:[#allocation2 + $0x62] sm:$0xff] }
 0x197   : > { %2972 = vst.msk [vmem:[#allocation3 + $0xe8] sm:$0xff] %vm171_vm1, %v2924_v15  ;;  %v2284_v32 = vadd.f32 %v15206_v0, %v2236_v17  ;;  %v2132_v24 = vpop.f32.mrb[83].mxu0  ;;  %15516 = vmatmul.mubr.msk.f32.gmra.mrb[188].mxu0 %vm171_vm1, %v4328_v9  ;;  %v2244_v41 = vld [vmem:[#allocation3 + $0x158] sm:$0xff] }
 0x198   : > { %2971 = vst.msk [vmem:[#allocation3 + $0xe0] sm:$0xff] %vm171_vm1, %v2923_v34  ;;  %v2283_v29 = vadd.f32 %v2235_v3, %v2132_v24  ;;  %v2878_v14 = vld [vmem:[#allocation3 + $0xf8] sm:$0xff]  ;;  %15518 = vmatprep.mubr.msk.f32.mxu0 %vm171_vm1, %v4329_v12  ;;  %v15280_v13 = vpop.f32.mrb[82].mxu1  ;;  %v2243_v34 = vld [vmem:[#allocation3 + $0x150] sm:$0xff] }
 0x199   : > { %2332 = vst.msk [vmem:[#allocation3 + $0x118] sm:$0xff] %vm171_vm1, %v2284_v32  ;;  %v2926_v39 = vadd.f32 %v15274_v45, %v2878_v14  ;;  %v2877_v18 = vld [vmem:[#allocation3 + $0xf0] sm:$0xff]  ;;  %v2778_v43 = vpop.f32.mrb[83].mxu1  ;;  %15590 = vmatmul.mubr.msk.f32.gmra.mrb[188].mxu1 %vm171_vm1, %v4974_v42  ;;  %v5582_v42 = vld [vmem:[#allocation2 + $0x6a] sm:$0xff] }
 0x19a   : > { %2331 = vst.msk [vmem:[#allocation3 + $0x110] sm:$0xff] %vm171_vm1, %v2283_v29  ;;  %v2925_v49 = vadd.f32 %v2877_v18, %v2758_v2  ;;  %v15209_v61 = vpop.f32.mrb[84].mxu0  ;;  %15592 = vmatprep.mubr.msk.f32.mxu1 %vm171_vm1, %v4975_v5  ;;  %v5579_v45 = vld [vmem:[#allocation2 + $0x52] sm:$0xff] }
 0x19b   : > { %2974 = vst.msk [vmem:[#allocation3 + $0xf8] sm:$0xff] %vm171_vm1, %v2926_v39  ;;  %v2286_v23 = vadd.f32 %v15209_v61, %v2238_v33  ;;  %v2142_v47 = vpop.f32.mrb[85].mxu0  ;;  %15519 = vmatmul.mubr.msk.f32.gmra.mrb[190].mxu0 %vm171_vm1, %v4330_v27  ;;  %v2242_v2 = vld [vmem:[#allocation3 + $0x148] sm:$0xff]  ;;  %v5584_v61 = vld [vmem:[#allocation2 + $0x7a] sm:$0xff] }
 0x19c   : > { %2973 = vst.msk [vmem:[#allocation3 + $0xf0] sm:$0xff] %vm171_vm1, %v2925_v49  ;;  %v2285_v36 = vadd.f32 %v2237_v55, %v2142_v47  ;;  %v2880_v21 = vld [vmem:[#allocation3 + $0x108] sm:$0xff]  ;;  %15597 = vmatprep.mubr.msk.f32.mxu0 %vm171_vm1, %v5575_v20  ;;  %v15283_v57 = vpop.f32.mrb[84].mxu1  ;;  %v2245_v20 = vld [vmem:[#allocation3 + $0x160] sm:$0xff] }
 0x19d   : > { %2334 = vst.msk [vmem:[#allocation3 + $0x128] sm:$0xff] %vm171_vm1, %v2286_v23  ;;  %v2928_v40 = vadd.f32 %v15277_v11, %v2880_v21  ;;  %v2879_v48 = vld [vmem:[#allocation3 + $0x100] sm:$0xff]  ;;  %v2788_v50 = vpop.f32.mrb[85].mxu1  ;;  %15593 = vmatmul.mubr.msk.f32.gmra.mrb[190].mxu1 %vm171_vm1, %v4976_v46  ;;  %v5583_v5 = vld [vmem:[#allocation2 + $0x72] sm:$0xff] }
 0x19e   : > { %2333 = vst.msk [vmem:[#allocation3 + $0x120] sm:$0xff] %vm171_vm1, %v2285_v36  ;;  %v2927_v51 = vadd.f32 %v2879_v48, %v2768_v59  ;;  %v15212_v19 = vpop.f32.mrb[86].mxu0  ;;  %v5585_v47 = vld [vmem:[#allocation2 + $0x82] sm:$0xff]  ;;  %v2247_v48 = vld [vmem:[#allocation3 + $0x170] sm:$0xff] }
 0x19f   : > { %2976 = vst.msk [vmem:[#allocation3 + $0x108] sm:$0xff] %vm171_vm1, %v2928_v40  ;;  %v2288_v25 = vadd.f32 %v15212_v19, %v2240_v60  ;;  %v2152_v53 = vpop.f32.mrb[87].mxu0  ;;  %15598 = vmatmul.mubr.msk.f32.vlgmr.msra.gmra.mrb[192].mxu0 %vm171_vm1, %v5576_v22  ;;  %v2248_v22 = vld [vmem:[#allocation3 + $0x178] sm:$0xff] }
 0x1a0   : > { %2975 = vst.msk [vmem:[#allocation3 + $0x100] sm:$0xff] %vm171_vm1, %v2927_v51  ;;  %v2287_v10 = vadd.f32 %v2239_v62, %v2152_v53  ;;  %v2882_v6 = vld [vmem:[#allocation3 + $0x118] sm:$0xff]  ;;  %15600 = vmatprep.mubr.msk.f32.mxu0 %vm171_vm1, %v5577_v44  ;;  %v15286_v1 = vpop.f32.mrb[86].mxu1  ;;  %v5586_v51 = vld [vmem:[#allocation2 + $0x8a] sm:$0xff]  ;;  %v5587_v53 = vld [vmem:[#allocation2 + $0x92] sm:$0xff] }
 0x1a1   : > { %2336 = vst.msk [vmem:[#allocation3 + $0x138] sm:$0xff] %vm171_vm1, %v2288_v25  ;;  %v2930_v26 = vadd.f32 %v15280_v13, %v2882_v6  ;;  %v2881_v63 = vld [vmem:[#allocation3 + $0x110] sm:$0xff]  ;;  %v2798_v58 = vpop.f32.mrb[87].mxu1  ;;  %v2246_v13 = vld [vmem:[#allocation3 + $0x168] sm:$0xff] }
 0x1a2   : > { %2335 = vst.msk [vmem:[#allocation3 + $0x130] sm:$0xff] %vm171_vm1, %v2287_v10  ;;  %v2929_v16 = vadd.f32 %v2881_v63, %v2778_v43  ;;  %v15215_v52 = vpop.f32.mrb[88].mxu0  ;;  %v3493_v63 = vld [vmem:[#allocation3] sm:$0xff] }
 0x1a3   : > { %2978 = vst.msk [vmem:[#allocation3 + $0x118] sm:$0xff] %vm171_vm1, %v2930_v26  ;;  %v2290_v4 = vadd.f32 %v15215_v52, %v2242_v2  ;;  %v2162_v28 = vpop.f32.mrb[89].mxu0  ;;  %15601 = vmatmul.mubr.msk.f32.gmra.mrb[194].mxu0 %vm171_vm1, %v5578_v54  ;;  %v3494_v54 = vld [vmem:[#allocation3 + $0x8] sm:$0xff] }
 0x1a4   : > { %2977 = vst.msk [vmem:[#allocation3 + $0x110] sm:$0xff] %vm171_vm1, %v2929_v16  ;;  %v2289_v30 = vadd.f32 %v2241_v7, %v2162_v28  ;;  %v2884_v8 = vld [vmem:[#allocation3 + $0x128] sm:$0xff]  ;;  %15603 = vmatprep.mubr.msk.f32.mxu0 %vm171_vm1, %v5579_v45  ;;  %v15289_v38 = vpop.f32.mrb[88].mxu1  ;;  %v5588_v16 = vld [vmem:[#allocation2 + $0x9a] sm:$0xff]  ;;  %v5589_v28 = vld [vmem:[#allocation2 + $0xa2] sm:$0xff] }
 0x1a5   : > { %2338 = vst.msk [vmem:[#allocation3 + $0x148] sm:$0xff] %vm171_vm1, %v2290_v4  ;;  %v2932_v35 = vadd.f32 %v15283_v57, %v2884_v8  ;;  %v2883_v31 = vld [vmem:[#allocation3 + $0x120] sm:$0xff]  ;;  %v2808_v9 = vpop.f32.mrb[89].mxu1 }
 0x1a6   : > { %2337 = vst.msk [vmem:[#allocation3 + $0x140] sm:$0xff] %vm171_vm1, %v2289_v30  ;;  %v2931_v11 = vadd.f32 %v2883_v31, %v2788_v50  ;;  %v15218_v15 = vpop.f32.mrb[90].mxu0  ;;  %v3495_v31 = vld [vmem:[#allocation3 + $0x10] sm:$0xff] }
 0x1a7   : > { %2980 = vst.msk [vmem:[#allocation3 + $0x128] sm:$0xff] %vm171_vm1, %v2932_v35  ;;  %v2292_v12 = vadd.f32 %v15218_v15, %v2244_v41  ;;  %v2172_v59 = vpop.f32.mrb[91].mxu0  ;;  %15604 = vmatmul.mubr.msk.f32.gmra.mrb[196].mxu0 %vm171_vm1, %v5580_v37  ;;  %v3496_v37 = vld [vmem:[#allocation3 + $0x18] sm:$0xff] }
 0x1a8   : > { %2979 = vst.msk [vmem:[#allocation3 + $0x120] sm:$0xff] %vm171_vm1, %v2931_v11  ;;  %v2291_v0 = vadd.f32 %v2243_v34, %v2172_v59  ;;  %v2886_v17 = vld [vmem:[#allocation3 + $0x138] sm:$0xff]  ;;  %15606 = vmatprep.mubr.msk.f32.mxu0 %vm171_vm1, %v5581_v56  ;;  %v15292_v32 = vpop.f32.mrb[90].mxu1  ;;  %v5590_v11 = vld [vmem:[#allocation2 + $0xaa] sm:$0xff]  ;;  %v5591_v59 = vld [vmem:[#allocation2 + $0xb2] sm:$0xff] }
 0x1a9   : > { %2340 = vst.msk [vmem:[#allocation3 + $0x158] sm:$0xff] %vm171_vm1, %v2292_v12  ;;  %v2934_v24 = vadd.f32 %v15286_v1, %v2886_v17  ;;  %v2885_v3 = vld [vmem:[#allocation3 + $0x130] sm:$0xff]  ;;  %v2818_v29 = vpop.f32.mrb[91].mxu1 }
 0x1aa   : > { %2339 = vst.msk [vmem:[#allocation3 + $0x150] sm:$0xff] %vm171_vm1, %v2291_v0  ;;  %v2933_v14 = vadd.f32 %v2885_v3, %v2798_v58  ;;  %v15221_v27 = vpop.f32.mrb[92].mxu0  ;;  %v3497_v3 = vld [vmem:[#allocation3 + $0x20] sm:$0xff] }
 0x1ab   : > { %2982 = vst.msk [vmem:[#allocation3 + $0x138] sm:$0xff] %vm171_vm1, %v2934_v24  ;;  %v2294_v39 = vadd.f32 %v15221_v27, %v2246_v13  ;;  %v2182_v18 = vpop.f32.mrb[93].mxu0  ;;  %15607 = vmatmul.mubr.msk.f32.gmra.mrb[198].mxu0 %vm171_vm1, %v5582_v42  ;;  %v3498_v42 = vld [vmem:[#allocation3 + $0x28] sm:$0xff] }
 0x1ac   : > { %2981 = vst.msk [vmem:[#allocation3 + $0x130] sm:$0xff] %vm171_vm1, %v2933_v14  ;;  %v2293_v43 = vadd.f32 %v2245_v20, %v2182_v18  ;;  %v2888_v49 = vld [vmem:[#allocation3 + $0x148] sm:$0xff]  ;;  %15609 = vmatprep.mubr.msk.f32.mxu0 %vm171_vm1, %v5583_v5  ;;  %v15295_v33 = vpop.f32.mrb[92].mxu1  ;;  %v5592_v14 = vld [vmem:[#allocation2 + $0xba] sm:$0xff]  ;;  %v5593_v18 = vld [vmem:[#allocation2 + $0xc2] sm:$0xff] }
 0x1ad   : > { %2342 = vst.msk [vmem:[#allocation3 + $0x168] sm:$0xff] %vm171_vm1, %v2294_v39  ;;  %v2936_v46 = vadd.f32 %v15289_v38, %v2888_v49  ;;  %v2887_v23 = vld [vmem:[#allocation3 + $0x140] sm:$0xff]  ;;  %v2828_v55 = vpop.f32.mrb[93].mxu1 }
 0x1ae   : > { %2341 = vst.msk [vmem:[#allocation3 + $0x160] sm:$0xff] %vm171_vm1, %v2293_v43  ;;  %v2935_v36 = vadd.f32 %v2887_v23, %v2808_v9  ;;  %v15224_v21 = vpop.f32.mrb[94].mxu0  ;;  %v3499_v23 = vld [vmem:[#allocation3 + $0x30] sm:$0xff] }
 0x1af   : > { %2984 = vst.msk [vmem:[#allocation3 + $0x148] sm:$0xff] %vm171_vm1, %v2936_v46  ;;  %v2296_v57 = vadd.f32 %v15224_v21, %v2248_v22  ;;  %v2192_v40 = vpop.f32.mrb[95].mxu0  ;;  %15610 = vmatmul.mubr.msk.f32.gmra.mrb[200].mxu0 %vm171_vm1, %v5584_v61  ;;  %v3500_v61 = vld [vmem:[#allocation3 + $0x38] sm:$0xff] }
 0x1b0   : > { %2983 = vst.msk [vmem:[#allocation3 + $0x140] sm:$0xff] %vm171_vm1, %v2935_v36  ;;  %v2295_v44 = vadd.f32 %v2247_v48, %v2192_v40  ;;  %v2890_v50 = vld [vmem:[#allocation3 + $0x158] sm:$0xff]  ;;  %15612 = vmatprep.mubr.msk.f32.mxu0 %vm171_vm1, %v5585_v47  ;;  %v15298_v19 = vpop.f32.mrb[94].mxu1  ;;  %v5594_v36 = vld [vmem:[#allocation2 + $0xca] sm:$0xff]  ;;  %v5595_v40 = vld [vmem:[#allocation2 + $0xd2] sm:$0xff] }
 0x1b1   : > { %2344 = vst.msk [vmem:[#allocation3 + $0x178] sm:$0xff] %vm171_vm1, %v2296_v57  ;;  %v2938_v60 = vadd.f32 %v15292_v32, %v2890_v50  ;;  %v2889_v25 = vld [vmem:[#allocation3 + $0x150] sm:$0xff]  ;;  %v2838_v62 = vpop.f32.mrb[95].mxu1 }
 0x1b2   : > { %2343 = vst.msk [vmem:[#allocation3 + $0x170] sm:$0xff] %vm171_vm1, %v2295_v44  ;;  %v2937_v10 = vadd.f32 %v2889_v25, %v2818_v29  ;;  %v15303_v6 = vpop.f32.mrb[96].mxu0  ;;  %v3501_v25 = vld [vmem:[#allocation3 + $0x40] sm:$0xff] }
 0x1b3   : > { %2986 = vst.msk [vmem:[#allocation3 + $0x158] sm:$0xff] %vm171_vm1, %v2938_v60  ;;  %v3542_v1 = vadd.f32 %v15303_v6, %v3494_v54  ;;  %v3254_v26 = vpop.f32.mrb[97].mxu0  ;;  %15613 = vmatmul.mubr.msk.f32.gmra.mrb[202].mxu0 %vm171_vm1, %v5586_v51  ;;  %v3502_v51 = vld [vmem:[#allocation3 + $0x48] sm:$0xff] }
 0x1b4   : > { %2985 = vst.msk [vmem:[#allocation3 + $0x150] sm:$0xff] %vm171_vm1, %v2937_v10  ;;  %v3541_v45 = vadd.f32 %v3493_v63, %v3254_v26  ;;  %v2892_v58 = vld [vmem:[#allocation3 + $0x168] sm:$0xff]  ;;  %15615 = vmatprep.mubr.msk.f32.mxu0 %vm171_vm1, %v5587_v53  ;;  %v15377_v52 = vpop.f32.mrb[96].mxu1  ;;  %v5596_v10 = vld [vmem:[#allocation2 + $0xda] sm:$0xff]  ;;  %v5597_v26 = vld [vmem:[#allocation2 + $0xe2] sm:$0xff] }
 0x1b5   : > { %3590 = vst.msk [vmem:[#allocation3 + $0x8] sm:$0xff] %vm171_vm1, %v3542_v1  ;;  %v2940_v2 = vadd.f32 %v15295_v33, %v2892_v58  ;;  %v2891_v4 = vld [vmem:[#allocation3 + $0x160] sm:$0xff]  ;;  %v3900_v7 = vpop.f32.mrb[97].mxu1 }
 0x1b6   : > { %3589 = vst.msk [vmem:[#allocation3] sm:$0xff] %vm171_vm1, %v3541_v45  ;;  %v2939_v30 = vadd.f32 %v2891_v4, %v2828_v55  ;;  %v15306_v8 = vpop.f32.mrb[98].mxu0  ;;  %v3503_v4 = vld [vmem:[#allocation3 + $0x50] sm:$0xff] }
 0x1b7   : > { %2988 = vst.msk [vmem:[#allocation3 + $0x168] sm:$0xff] %vm171_vm1, %v2940_v2  ;;  %v3544_v38 = vadd.f32 %v15306_v8, %v3496_v37  ;;  %v3264_v35 = vpop.f32.mrb[99].mxu0  ;;  %15616 = vmatmul.mubr.msk.f32.gmra.mrb[204].mxu0 %vm171_vm1, %v5588_v16  ;;  %v3504_v16 = vld [vmem:[#allocation3 + $0x58] sm:$0xff] }
 0x1b8   : > { %2987 = vst.msk [vmem:[#allocation3 + $0x160] sm:$0xff] %vm171_vm1, %v2939_v30  ;;  %v3543_v56 = vadd.f32 %v3495_v31, %v3264_v35  ;;  %v2894_v9 = vld [vmem:[#allocation3 + $0x178] sm:$0xff]  ;;  %15618 = vmatprep.mubr.msk.f32.mxu0 %vm171_vm1, %v5589_v28  ;;  %v15380_v15 = vpop.f32.mrb[98].mxu1  ;;  %v5598_v30 = vld [vmem:[#allocation2 + $0xea] sm:$0xff]  ;;  %v5599_v35 = vld [vmem:[#allocation2 + $0xf2] sm:$0xff] }
 0x1b9   : > { %3592 = vst.msk [vmem:[#allocation3 + $0x18] sm:$0xff] %vm171_vm1, %v3544_v38  ;;  %v2942_v41 = vadd.f32 %v15298_v19, %v2894_v9  ;;  %v2893_v12 = vld [vmem:[#allocation3 + $0x170] sm:$0xff]  ;;  %v3910_v34 = vpop.f32.mrb[99].mxu1 }
 0x1ba   : > { %3591 = vst.msk [vmem:[#allocation3 + $0x10] sm:$0xff] %vm171_vm1, %v3543_v56  ;;  %v2941_v0 = vadd.f32 %v2893_v12, %v2838_v62  ;;  %v15309_v17 = vpop.f32.mrb[100].mxu0  ;;  %v3505_v12 = vld [vmem:[#allocation3 + $0x60] sm:$0xff] }
 0x1bb   : > { %2990 = vst.msk [vmem:[#allocation3 + $0x178] sm:$0xff] %vm171_vm1, %v2942_v41  ;;  %v3546_v32 = vadd.f32 %v15309_v17, %v3498_v42  ;;  %v3274_v24 = vpop.f32.mrb[101].mxu0  ;;  %15619 = vmatmul.mubr.msk.f32.gmra.mrb[206].mxu0 %vm171_vm1, %v5590_v11  ;;  %v3506_v11 = vld [vmem:[#allocation3 + $0x68] sm:$0xff] }
 0x1bc   : > { %2989 = vst.msk [vmem:[#allocation3 + $0x170] sm:$0xff] %vm171_vm1, %v2941_v0  ;;  %v3545_v5 = vadd.f32 %v3497_v3, %v3274_v24  ;;  %v4140_v29 = vld [vmem:[#allocation3 + $0x8] sm:$0xff]  ;;  %15621 = vmatprep.mubr.msk.f32.mxu0 %vm171_vm1, %v5591_v59  ;;  %v15383_v27 = vpop.f32.mrb[100].mxu1  ;;  %v5600_v0 = vld [vmem:[#allocation2 + $0xfa] sm:$0xff]  ;;  %v5601_v24 = vld [vmem:[#allocation2 + $0x102] sm:$0xff] }
 0x1bd   : > { %3594 = vst.msk [vmem:[#allocation3 + $0x28] sm:$0xff] %vm171_vm1, %v3546_v32  ;;  %v4188_v13 = vadd.f32 %v15377_v52, %v4140_v29  ;;  %v4139_v39 = vld [vmem:[#allocation3] sm:$0xff]  ;;  %v3920_v20 = vpop.f32.mrb[101].mxu1 }
 0x1be   : > { %3593 = vst.msk [vmem:[#allocation3 + $0x20] sm:$0xff] %vm171_vm1, %v3545_v5  ;;  %v4187_v43 = vadd.f32 %v4139_v39, %v3900_v7  ;;  %v15312_v49 = vpop.f32.mrb[102].mxu0  ;;  %v3507_v39 = vld [vmem:[#allocation3 + $0x70] sm:$0xff] }
 0x1bf   : > { %4236 = vst.msk [vmem:[#allocation3 + $0x8] sm:$0xff] %vm171_vm1, %v4188_v13  ;;  %v3548_v33 = vadd.f32 %v15312_v49, %v3500_v61  ;;  %v3284_v46 = vpop.f32.mrb[103].mxu0  ;;  %15622 = vmatmul.mubr.msk.f32.gmra.mrb[208].mxu0 %vm171_vm1, %v5592_v14  ;;  %v3508_v14 = vld [vmem:[#allocation3 + $0x78] sm:$0xff] }
 0x1c0   : > { %4235 = vst.msk [vmem:[#allocation3] sm:$0xff] %vm171_vm1, %v4187_v43  ;;  %v3547_v47 = vadd.f32 %v3499_v23, %v3284_v46  ;;  %v4142_v55 = vld [vmem:[#allocation3 + $0x18] sm:$0xff]  ;;  %15624 = vmatprep.mubr.msk.f32.mxu0 %vm171_vm1, %v5593_v18  ;;  %v15386_v21 = vpop.f32.mrb[102].mxu1  ;;  %v5602_v43 = vld [vmem:[#allocation2 + $0x10a] sm:$0xff]  ;;  %v5603_v46 = vld [vmem:[#allocation2 + $0x112] sm:$0xff] }
 0x1c1   : > { %3596 = vst.msk [vmem:[#allocation3 + $0x38] sm:$0xff] %vm171_vm1, %v3548_v33  ;;  %v4190_v22 = vadd.f32 %v15380_v15, %v4142_v55  ;;  %v4141_v57 = vld [vmem:[#allocation3 + $0x10] sm:$0xff]  ;;  %v3930_v48 = vpop.f32.mrb[103].mxu1 }
 0x1c2   : > { %3595 = vst.msk [vmem:[#allocation3 + $0x30] sm:$0xff] %vm171_vm1, %v3547_v47  ;;  %v4189_v44 = vadd.f32 %v4141_v57, %v3910_v34  ;;  %v15315_v50 = vpop.f32.mrb[104].mxu0  ;;  %v3509_v57 = vld [vmem:[#allocation3 + $0x80] sm:$0xff] }
 0x1c3   : > { %4238 = vst.msk [vmem:[#allocation3 + $0x18] sm:$0xff] %vm171_vm1, %v4190_v22  ;;  %v3550_v19 = vadd.f32 %v15315_v50, %v3502_v51  ;;  %v3294_v60 = vpop.f32.mrb[105].mxu0  ;;  %15625 = vmatmul.mubr.msk.f32.gmra.mrb[210].mxu0 %vm171_vm1, %v5594_v36  ;;  %v3510_v36 = vld [vmem:[#allocation3 + $0x88] sm:$0xff] }
 0x1c4   : > { %4237 = vst.msk [vmem:[#allocation3 + $0x10] sm:$0xff] %vm171_vm1, %v4189_v44  ;;  %v3549_v53 = vadd.f32 %v3501_v25, %v3294_v60  ;;  %v4144_v62 = vld [vmem:[#allocation3 + $0x28] sm:$0xff]  ;;  %15627 = vmatprep.mubr.msk.f32.mxu0 %vm171_vm1, %v5595_v40  ;;  %v15389_v6 = vpop.f32.mrb[104].mxu1  ;;  %v5604_v44 = vld [vmem:[#allocation2 + $0x11a] sm:$0xff]  ;;  %v5605_v60 = vld [vmem:[#allocation2 + $0x122] sm:$0xff] }
 0x1c5   : > { %3598 = vst.msk [vmem:[#allocation3 + $0x48] sm:$0xff] %vm171_vm1, %v3550_v19  ;;  %v4192_v54 = vadd.f32 %v15383_v27, %v4144_v62  ;;  %v4143_v1 = vld [vmem:[#allocation3 + $0x20] sm:$0xff]  ;;  %v3940_v63 = vpop.f32.mrb[105].mxu1 }
 0x1c6   : > { %3597 = vst.msk [vmem:[#allocation3 + $0x40] sm:$0xff] %vm171_vm1, %v3549_v53  ;;  %v4191_v45 = vadd.f32 %v4143_v1, %v3920_v20  ;;  %v15318_v58 = vpop.f32.mrb[106].mxu0  ;;  %v3511_v1 = vld [vmem:[#allocation3 + $0x90] sm:$0xff] }
 0x1c7   : > { %4240 = vst.msk [vmem:[#allocation3 + $0x28] sm:$0xff] %vm171_vm1, %v4192_v54  ;;  %v3552_v52 = vadd.f32 %v15318_v58, %v3504_v16  ;;  %v3304_v2 = vpop.f32.mrb[107].mxu0  ;;  %15628 = vmatmul.mubr.msk.f32.gmra.mrb[212].mxu0 %vm171_vm1, %v5596_v10  ;;  %v3512_v10 = vld [vmem:[#allocation3 + $0x98] sm:$0xff] }
 0x1c8   : > { %4239 = vst.msk [vmem:[#allocation3 + $0x20] sm:$0xff] %vm171_vm1, %v4191_v45  ;;  %v3551_v28 = vadd.f32 %v3503_v4, %v3304_v2  ;;  %v4146_v7 = vld [vmem:[#allocation3 + $0x38] sm:$0xff]  ;;  %15630 = vmatprep.mubr.msk.f32.mxu0 %vm171_vm1, %v5597_v26  ;;  %v15392_v8 = vpop.f32.mrb[106].mxu1  ;;  %v5606_v45 = vld [vmem:[#allocation2 + $0x12a] sm:$0xff]  ;;  %v5607_v2 = vld [vmem:[#allocation2 + $0x132] sm:$0xff] }
 0x1c9   : > { %3600 = vst.msk [vmem:[#allocation3 + $0x58] sm:$0xff] %vm171_vm1, %v3552_v52  ;;  %v4194_v37 = vadd.f32 %v15386_v21, %v4146_v7  ;;  %v4145_v38 = vld [vmem:[#allocation3 + $0x30] sm:$0xff]  ;;  %v3950_v31 = vpop.f32.mrb[107].mxu1 }
 0x1ca   : > { %3599 = vst.msk [vmem:[#allocation3 + $0x50] sm:$0xff] %vm171_vm1, %v3551_v28  ;;  %v4193_v56 = vadd.f32 %v4145_v38, %v3930_v48  ;;  %v15321_v9 = vpop.f32.mrb[108].mxu0  ;;  %v3513_v38 = vld [vmem:[#allocation3 + $0xa0] sm:$0xff] }
 0x1cb   : > { %4242 = vst.msk [vmem:[#allocation3 + $0x38] sm:$0xff] %vm171_vm1, %v4194_v37  ;;  %v3554_v15 = vadd.f32 %v15321_v9, %v3506_v11  ;;  %v3314_v41 = vpop.f32.mrb[109].mxu0  ;;  %15631 = vmatmul.mubr.msk.f32.gmra.mrb[214].mxu0 %vm171_vm1, %v5598_v30  ;;  %v3514_v30 = vld [vmem:[#allocation3 + $0xa8] sm:$0xff] }
 0x1cc   : > { %4241 = vst.msk [vmem:[#allocation3 + $0x30] sm:$0xff] %vm171_vm1, %v4193_v56  ;;  %v3553_v59 = vadd.f32 %v3505_v12, %v3314_v41  ;;  %v4148_v34 = vld [vmem:[#allocation3 + $0x48] sm:$0xff]  ;;  %15633 = vmatprep.mubr.msk.f32.mxu0 %vm171_vm1, %v5599_v35  ;;  %v15395_v17 = vpop.f32.mrb[108].mxu1  ;;  %v5608_v56 = vld [vmem:[#allocation2 + $0x13a] sm:$0xff]  ;;  %v5609_v41 = vld [vmem:[#allocation2 + $0x142] sm:$0xff] }
 0x1cd   : > { %3602 = vst.msk [vmem:[#allocation3 + $0x68] sm:$0xff] %vm171_vm1, %v3554_v15  ;;  %v4196_v42 = vadd.f32 %v15389_v6, %v4148_v34  ;;  %v4147_v32 = vld [vmem:[#allocation3 + $0x40] sm:$0xff]  ;;  %v3960_v3 = vpop.f32.mrb[109].mxu1 }
 0x1ce   : > { %3601 = vst.msk [vmem:[#allocation3 + $0x60] sm:$0xff] %vm171_vm1, %v3553_v59  ;;  %v4195_v5 = vadd.f32 %v4147_v32, %v3940_v63  ;;  %v15324_v29 = vpop.f32.mrb[110].mxu0  ;;  %v3515_v32 = vld [vmem:[#allocation3 + $0xb0] sm:$0xff] }
 0x1cf   : > { %4244 = vst.msk [vmem:[#allocation3 + $0x48] sm:$0xff] %vm171_vm1, %v4196_v42  ;;  %v3556_v27 = vadd.f32 %v15324_v29, %v3508_v14  ;;  %v3324_v13 = vpop.f32.mrb[111].mxu0  ;;  %15634 = vmatmul.mubr.msk.f32.gmra.mrb[216].mxu0 %vm171_vm1, %v5600_v0  ;;  %v3516_v0 = vld [vmem:[#allocation3 + $0xb8] sm:$0xff] }
 0x1d0   : > { %4243 = vst.msk [vmem:[#allocation3 + $0x40] sm:$0xff] %vm171_vm1, %v4195_v5  ;;  %v3555_v18 = vadd.f32 %v3507_v39, %v3324_v13  ;;  %v4150_v20 = vld [vmem:[#allocation3 + $0x58] sm:$0xff]  ;;  %15636 = vmatprep.mubr.msk.f32.mxu0 %vm171_vm1, %v5601_v24  ;;  %v15398_v49 = vpop.f32.mrb[110].mxu1  ;;  %v5610_v5 = vld [vmem:[#allocation2 + $0x14a] sm:$0xff]  ;;  %v5611_v13 = vld [vmem:[#allocation2 + $0x152] sm:$0xff] }
 0x1d1   : > { %3604 = vst.msk [vmem:[#allocation3 + $0x78] sm:$0xff] %vm171_vm1, %v3556_v27  ;;  %v4198_v61 = vadd.f32 %v15392_v8, %v4150_v20  ;;  %v4149_v33 = vld [vmem:[#allocation3 + $0x50] sm:$0xff]  ;;  %v3970_v23 = vpop.f32.mrb[111].mxu1 }
 0x1d2   : > { %3603 = vst.msk [vmem:[#allocation3 + $0x70] sm:$0xff] %vm171_vm1, %v3555_v18  ;;  %v4197_v47 = vadd.f32 %v4149_v33, %v3950_v31  ;;  %v15327_v55 = vpop.f32.mrb[112].mxu0  ;;  %v3517_v33 = vld [vmem:[#allocation3 + $0xc0] sm:$0xff] }
 0x1d3   : > { %4246 = vst.msk [vmem:[#allocation3 + $0x58] sm:$0xff] %vm171_vm1, %v4198_v61  ;;  %v3558_v21 = vadd.f32 %v15327_v55, %v3510_v36  ;;  %v3334_v22 = vpop.f32.mrb[113].mxu0  ;;  %15637 = vmatmul.mubr.msk.f32.gmra.mrb[218].mxu0 %vm171_vm1, %v5602_v43  ;;  %v3518_v43 = vld [vmem:[#allocation3 + $0xc8] sm:$0xff] }
 0x1d4   : > { %4245 = vst.msk [vmem:[#allocation3 + $0x50] sm:$0xff] %vm171_vm1, %v4197_v47  ;;  %v3557_v40 = vadd.f32 %v3509_v57, %v3334_v22  ;;  %v4152_v48 = vld [vmem:[#allocation3 + $0x68] sm:$0xff]  ;;  %15639 = vmatprep.mubr.msk.f32.mxu0 %vm171_vm1, %v5603_v46  ;;  %v15401_v50 = vpop.f32.mrb[112].mxu1  ;;  %v5612_v47 = vld [vmem:[#allocation2 + $0x15a] sm:$0xff]  ;;  %v5613_v22 = vld [vmem:[#allocation2 + $0x162] sm:$0xff] }
 0x1d5   : > { %3606 = vst.msk [vmem:[#allocation3 + $0x88] sm:$0xff] %vm171_vm1, %v3558_v21  ;;  %v4200_v51 = vadd.f32 %v15395_v17, %v4152_v48  ;;  %v4151_v19 = vld [vmem:[#allocation3 + $0x60] sm:$0xff]  ;;  %v3980_v25 = vpop.f32.mrb[113].mxu1 }
 0x1d6   : > { %3605 = vst.msk [vmem:[#allocation3 + $0x80] sm:$0xff] %vm171_vm1, %v3557_v40  ;;  %v4199_v53 = vadd.f32 %v4151_v19, %v3960_v3  ;;  %v15330_v62 = vpop.f32.mrb[114].mxu0  ;;  %v3519_v19 = vld [vmem:[#allocation3 + $0xd0] sm:$0xff] }
 0x1d7   : > { %4248 = vst.msk [vmem:[#allocation3 + $0x68] sm:$0xff] %vm171_vm1, %v4200_v51  ;;  %v3560_v6 = vadd.f32 %v15330_v62, %v3512_v10  ;;  %v3344_v54 = vpop.f32.mrb[115].mxu0  ;;  %15640 = vmatmul.mubr.msk.f32.gmra.mrb[220].mxu0 %vm171_vm1, %v5604_v44  ;;  %v3520_v44 = vld [vmem:[#allocation3 + $0xd8] sm:$0xff] }
 0x1d8   : > { %4247 = vst.msk [vmem:[#allocation3 + $0x60] sm:$0xff] %vm171_vm1, %v4199_v53  ;;  %v3559_v26 = vadd.f32 %v3511_v1, %v3344_v54  ;;  %v4154_v63 = vld [vmem:[#allocation3 + $0x78] sm:$0xff]  ;;  %15642 = vmatprep.mubr.msk.f32.mxu0 %vm171_vm1, %v5605_v60  ;;  %v15404_v58 = vpop.f32.mrb[114].mxu1  ;;  %v5614_v53 = vld [vmem:[#allocation2 + $0x16a] sm:$0xff]  ;;  %v5615_v54 = vld [vmem:[#allocation2 + $0x172] sm:$0xff] }
 0x1d9   : > { %3608 = vst.msk [vmem:[#allocation3 + $0x98] sm:$0xff] %vm171_vm1, %v3560_v6  ;;  %v4202_v16 = vadd.f32 %v15398_v49, %v4154_v63  ;;  %v4153_v52 = vld [vmem:[#allocation3 + $0x70] sm:$0xff]  ;;  %v3990_v4 = vpop.f32.mrb[115].mxu1 }
 0x1da   : > { %3607 = vst.msk [vmem:[#allocation3 + $0x90] sm:$0xff] %vm171_vm1, %v3559_v26  ;;  %v4201_v28 = vadd.f32 %v4153_v52, %v3970_v23  ;;  %v15333_v7 = vpop.f32.mrb[116].mxu0  ;;  %v3521_v52 = vld [vmem:[#allocation3 + $0xe0] sm:$0xff] }
 0x1db   : > { %4250 = vst.msk [vmem:[#allocation3 + $0x78] sm:$0xff] %vm171_vm1, %v4202_v16  ;;  %v3562_v8 = vadd.f32 %v15333_v7, %v3514_v30  ;;  %v3354_v37 = vpop.f32.mrb[117].mxu0  ;;  %15643 = vmatmul.mubr.msk.f32.gmra.mrb[222].mxu0 %vm171_vm1, %v5606_v45  ;;  %v3522_v45 = vld [vmem:[#allocation3 + $0xe8] sm:$0xff] }
 0x1dc   : > { %4249 = vst.msk [vmem:[#allocation3 + $0x70] sm:$0xff] %vm171_vm1, %v4201_v28  ;;  %v3561_v35 = vadd.f32 %v3513_v38, %v3354_v37  ;;  %v4156_v31 = vld [vmem:[#allocation3 + $0x88] sm:$0xff]  ;;  %15645 = vmatprep.mubr.msk.f32.mxu0 %vm171_vm1, %v5607_v2  ;;  %v15407_v9 = vpop.f32.mrb[116].mxu1  ;;  %v5616_v28 = vld [vmem:[#allocation2 + $0x17a] sm:$0xff]  ;;  %v5617_v37 = vld [vmem:[#allocation2 + $0x182] sm:$0xff] }
 0x1dd   : > { %3610 = vst.msk [vmem:[#allocation3 + $0xa8] sm:$0xff] %vm171_vm1, %v3562_v8  ;;  %v4204_v11 = vadd.f32 %v15401_v50, %v4156_v31  ;;  %v4155_v15 = vld [vmem:[#allocation3 + $0x80] sm:$0xff]  ;;  %v4000_v12 = vpop.f32.mrb[117].mxu1 }
 0x1de   : > { %3609 = vst.msk [vmem:[#allocation3 + $0xa0] sm:$0xff] %vm171_vm1, %v3561_v35  ;;  %v4203_v59 = vadd.f32 %v4155_v15, %v3980_v25  ;;  %v15336_v34 = vpop.f32.mrb[118].mxu0  ;;  %v3523_v15 = vld [vmem:[#allocation3 + $0xf0] sm:$0xff] }
 0x1df   : > { %4252 = vst.msk [vmem:[#allocation3 + $0x88] sm:$0xff] %vm171_vm1, %v4204_v11  ;;  %v3564_v17 = vadd.f32 %v15336_v34, %v3516_v0  ;;  %v3364_v42 = vpop.f32.mrb[119].mxu0  ;;  %15646 = vmatmul.mubr.msk.f32.gmra.mrb[224].mxu0 %vm171_vm1, %v5608_v56  ;;  %v3524_v56 = vld [vmem:[#allocation3 + $0xf8] sm:$0xff] }
 0x1e0   : > { %4251 = vst.msk [vmem:[#allocation3 + $0x80] sm:$0xff] %vm171_vm1, %v4203_v59  ;;  %v3563_v24 = vadd.f32 %v3515_v32, %v3364_v42  ;;  %v4158_v3 = vld [vmem:[#allocation3 + $0x98] sm:$0xff]  ;;  %15648 = vmatprep.mubr.msk.f32.mxu0 %vm171_vm1, %v5609_v41  ;;  %v15410_v29 = vpop.f32.mrb[118].mxu1  ;;  %v5618_v59 = vld [vmem:[#allocation2 + $0x18a] sm:$0xff]  ;;  %v5619_v42 = vld [vmem:[#allocation2 + $0x192] sm:$0xff] }
 0x1e1   : > { %3612 = vst.msk [vmem:[#allocation3 + $0xb8] sm:$0xff] %vm171_vm1, %v3564_v17  ;;  %v4206_v14 = vadd.f32 %v15404_v58, %v4158_v3  ;;  %v4157_v27 = vld [vmem:[#allocation3 + $0x90] sm:$0xff]  ;;  %v4010_v39 = vpop.f32.mrb[119].mxu1 }
 0x1e2   : > { %3611 = vst.msk [vmem:[#allocation3 + $0xb0] sm:$0xff] %vm171_vm1, %v3563_v24  ;;  %v4205_v18 = vadd.f32 %v4157_v27, %v3990_v4  ;;  %v15339_v20 = vpop.f32.mrb[120].mxu0  ;;  %v3525_v27 = vld [vmem:[#allocation3 + $0x100] sm:$0xff] }
 0x1e3   : > { %4254 = vst.msk [vmem:[#allocation3 + $0x98] sm:$0xff] %vm171_vm1, %v4206_v14  ;;  %v3566_v49 = vadd.f32 %v15339_v20, %v3518_v43  ;;  %v3374_v61 = vpop.f32.mrb[121].mxu0  ;;  %15649 = vmatmul.mubr.msk.f32.gmra.mrb[226].mxu0 %vm171_vm1, %v5610_v5  ;;  %v3526_v5 = vld [vmem:[#allocation3 + $0x108] sm:$0xff] }
 0x1e4   : > { %4253 = vst.msk [vmem:[#allocation3 + $0x90] sm:$0xff] %vm171_vm1, %v4205_v18  ;;  %v3565_v46 = vadd.f32 %v3517_v33, %v3374_v61  ;;  %v4160_v23 = vld [vmem:[#allocation3 + $0xa8] sm:$0xff]  ;;  %15651 = vmatprep.mubr.msk.f32.mxu0 %vm171_vm1, %v5611_v13  ;;  %v15413_v55 = vpop.f32.mrb[120].mxu1  ;;  %v5620_v18 = vld [vmem:[#allocation2 + $0x19a] sm:$0xff]  ;;  %v5621_v61 = vld [vmem:[#allocation2 + $0x1a2] sm:$0xff] }
 0x1e5   : > { %3614 = vst.msk [vmem:[#allocation3 + $0xc8] sm:$0xff] %vm171_vm1, %v3566_v49  ;;  %v4208_v36 = vadd.f32 %v15407_v9, %v4160_v23  ;;  %v4159_v21 = vld [vmem:[#allocation3 + $0xa0] sm:$0xff]  ;;  %v4020_v57 = vpop.f32.mrb[121].mxu1 }
 0x1e6   : > { %3613 = vst.msk [vmem:[#allocation3 + $0xc0] sm:$0xff] %vm171_vm1, %v3565_v46  ;;  %v4207_v40 = vadd.f32 %v4159_v21, %v4000_v12  ;;  %v15342_v48 = vpop.f32.mrb[122].mxu0  ;;  %v3527_v21 = vld [vmem:[#allocation3 + $0x110] sm:$0xff] }
 0x1e7   : > { %4256 = vst.msk [vmem:[#allocation3 + $0xa8] sm:$0xff] %vm171_vm1, %v4208_v36  ;;  %v3568_v50 = vadd.f32 %v15342_v48, %v3520_v44  ;;  %v3384_v51 = vpop.f32.mrb[123].mxu0  ;;  %15652 = vmatmul.mubr.msk.f32.gmra.mrb[228].mxu0 %vm171_vm1, %v5612_v47  ;;  %v3528_v47 = vld [vmem:[#allocation3 + $0x118] sm:$0xff] }
 0x1e8   : > { %4255 = vst.msk [vmem:[#allocation3 + $0xa0] sm:$0xff] %vm171_vm1, %v4207_v40  ;;  %v3567_v60 = vadd.f32 %v3519_v19, %v3384_v51  ;;  %v4162_v25 = vld [vmem:[#allocation3 + $0xb8] sm:$0xff]  ;;  %15654 = vmatprep.mubr.msk.f32.mxu0 %vm171_vm1, %v5613_v22  ;;  %v15416_v62 = vpop.f32.mrb[122].mxu1  ;;  %v5622_v40 = vld [vmem:[#allocation2 + $0x1aa] sm:$0xff] }
 0x1e9   : > { %3616 = vst.msk [vmem:[#allocation3 + $0xd8] sm:$0xff] %vm171_vm1, %v3568_v50  ;;  %v4210_v10 = vadd.f32 %v15410_v29, %v4162_v25  ;;  %v4161_v6 = vld [vmem:[#allocation3 + $0xb0] sm:$0xff]  ;;  %v4030_v1 = vpop.f32.mrb[123].mxu1  ;;  %v3530_v25 = vld [vmem:[#allocation3 + $0x128] sm:$0xff] }
 0x1ea   : > { %3615 = vst.msk [vmem:[#allocation3 + $0xd0] sm:$0xff] %vm171_vm1, %v3567_v60  ;;  %v4209_v26 = vadd.f32 %v4161_v6, %v4010_v39  ;;  %v15345_v63 = vpop.f32.mrb[124].mxu0 }
 0x1eb   : > { %4258 = vst.msk [vmem:[#allocation3 + $0xb8] sm:$0xff] %vm171_vm1, %v4210_v10  ;;  %v3570_v58 = vadd.f32 %v15345_v63, %v3522_v45  ;;  %v3394_v16 = vpop.f32.mrb[125].mxu0  ;;  %15655 = vmatmul.mubr.msk.f32.gmra.mrb[230].mxu0 %vm171_vm1, %v5614_v53  ;;  %v3529_v10 = vld [vmem:[#allocation3 + $0x120] sm:$0xff] }
 0x1ec   : > { %4257 = vst.msk [vmem:[#allocation3 + $0xb0] sm:$0xff] %vm171_vm1, %v4209_v26  ;;  %v3569_v2 = vadd.f32 %v3521_v52, %v3394_v16  ;;  %v4164_v4 = vld [vmem:[#allocation3 + $0xc8] sm:$0xff]  ;;  %15657 = vmatprep.mubr.msk.f32.mxu0 %vm171_vm1, %v5615_v54  ;;  %v15419_v7 = vpop.f32.mrb[124].mxu1  ;;  %v3532_v52 = vld [vmem:[#allocation3 + $0x138] sm:$0xff] }
 0x1ed   : > { %3618 = vst.msk [vmem:[#allocation3 + $0xe8] sm:$0xff] %vm171_vm1, %v3570_v58  ;;  %v4212_v30 = vadd.f32 %v15413_v55, %v4164_v4  ;;  %v4163_v8 = vld [vmem:[#allocation3 + $0xc0] sm:$0xff]  ;;  %v4040_v38 = vpop.f32.mrb[125].mxu1 }
 0x1ee   : > { %3617 = vst.msk [vmem:[#allocation3 + $0xe0] sm:$0xff] %vm171_vm1, %v3569_v2  ;;  %v4211_v35 = vadd.f32 %v4163_v8, %v4020_v57  ;;  %v15348_v31 = vpop.f32.mrb[126].mxu0 }
 0x1ef   : > { %4260 = vst.msk [vmem:[#allocation3 + $0xc8] sm:$0xff] %vm171_vm1, %v4212_v30  ;;  %v3572_v9 = vadd.f32 %v15348_v31, %v3524_v56  ;;  %v3404_v11 = vpop.f32.mrb[127].mxu0  ;;  %15658 = vmatmul.mubr.msk.f32.gmra.mrb[232].mxu0 %vm171_vm1, %v5616_v28  ;;  %v3531_v28 = vld [vmem:[#allocation3 + $0x130] sm:$0xff] }
 0x1f0   : > { %4259 = vst.msk [vmem:[#allocation3 + $0xc0] sm:$0xff] %vm171_vm1, %v4211_v35  ;;  %v3571_v41 = vadd.f32 %v3523_v15, %v3404_v11  ;;  %v4166_v12 = vld [vmem:[#allocation3 + $0xd8] sm:$0xff]  ;;  %15660 = vmatprep.mubr.msk.f32.mxu0 %vm171_vm1, %v5617_v37  ;;  %v15422_v34 = vpop.f32.mrb[126].mxu1 }
 0x1f1   : > { %3620 = vst.msk [vmem:[#allocation3 + $0xf8] sm:$0xff] %vm171_vm1, %v3572_v9  ;;  %v4214_v0 = vadd.f32 %v15416_v62, %v4166_v12  ;;  %v4165_v17 = vld [vmem:[#allocation3 + $0xd0] sm:$0xff]  ;;  %v4050_v32 = vpop.f32.mrb[127].mxu1  ;;  %v3534_v9 = vld [vmem:[#allocation3 + $0x148] sm:$0xff] }
 0x1f2   : > { %3619 = vst.msk [vmem:[#allocation3 + $0xf0] sm:$0xff] %vm171_vm1, %v3571_v41  ;;  %v4213_v24 = vadd.f32 %v4165_v17, %v4030_v1  ;;  %v15351_v3 = vpop.f32.mrb[128].mxu0  ;;  %v3533_v41 = vld [vmem:[#allocation3 + $0x140] sm:$0xff] }
 0x1f3   : > { %4262 = vst.msk [vmem:[#allocation3 + $0xd8] sm:$0xff] %vm171_vm1, %v4214_v0  ;;  %v3574_v29 = vadd.f32 %v15351_v3, %v3526_v5  ;;  %v3414_v14 = vpop.f32.mrb[129].mxu0  ;;  %15661 = vmatmul.mubr.msk.f32.gmra.mrb[234].mxu0 %vm171_vm1, %v5618_v59  ;;  %v3536_v3 = vld [vmem:[#allocation3 + $0x158] sm:$0xff] }
 0x1f4   : > { %4261 = vst.msk [vmem:[#allocation3 + $0xd0] sm:$0xff] %vm171_vm1, %v4213_v24  ;;  %v3573_v13 = vadd.f32 %v3525_v27, %v3414_v14  ;;  %v4168_v39 = vld [vmem:[#allocation3 + $0xe8] sm:$0xff]  ;;  %15663 = vmatprep.mubr.msk.f32.mxu0 %vm171_vm1, %v5619_v42  ;;  %v15425_v20 = vpop.f32.mrb[128].mxu1  ;;  %v3535_v14 = vld [vmem:[#allocation3 + $0x150] sm:$0xff] }
 0x1f5   : > { %3622 = vst.msk [vmem:[#allocation3 + $0x108] sm:$0xff] %vm171_vm1, %v3574_v29  ;;  %v4216_v43 = vadd.f32 %v15419_v7, %v4168_v39  ;;  %v4167_v49 = vld [vmem:[#allocation3 + $0xe0] sm:$0xff]  ;;  %v4060_v33 = vpop.f32.mrb[129].mxu1 }
 0x1f6   : > { %3621 = vst.msk [vmem:[#allocation3 + $0x100] sm:$0xff] %vm171_vm1, %v3573_v13  ;;  %v4215_v46 = vadd.f32 %v4167_v49, %v4040_v38  ;;  %v15354_v23 = vpop.f32.mrb[130].mxu0 }
 0x1f7   : > { %4264 = vst.msk [vmem:[#allocation3 + $0xe8] sm:$0xff] %vm171_vm1, %v4216_v43  ;;  %v3576_v55 = vadd.f32 %v15354_v23, %v3528_v47  ;;  %v3424_v36 = vpop.f32.mrb[131].mxu0  ;;  %15664 = vmatmul.mubr.msk.f32.gmra.mrb[236].mxu0 %vm171_vm1, %v5620_v18  ;;  %v3537_v47 = vld [vmem:[#allocation3 + $0x160] sm:$0xff] }
 0x1f8   : > { %4263 = vst.msk [vmem:[#allocation3 + $0xe0] sm:$0xff] %vm171_vm1, %v4215_v46  ;;  %v3575_v22 = vadd.f32 %v3527_v21, %v3424_v36  ;;  %v4170_v57 = vld [vmem:[#allocation3 + $0xf8] sm:$0xff]  ;;  %15666 = vmatprep.mubr.msk.f32.mxu0 %vm171_vm1, %v5621_v61  ;;  %v15428_v48 = vpop.f32.mrb[130].mxu1 }
 0x1f9   : > { %3624 = vst.msk [vmem:[#allocation3 + $0x118] sm:$0xff] %vm171_vm1, %v3576_v55  ;;  %v4218_v44 = vadd.f32 %v15422_v34, %v4170_v57  ;;  %v4169_v50 = vld [vmem:[#allocation3 + $0xf0] sm:$0xff]  ;;  %v4070_v51 = vpop.f32.mrb[131].mxu1 }
 0x1fa   : > { %3623 = vst.msk [vmem:[#allocation3 + $0x110] sm:$0xff] %vm171_vm1, %v3575_v22  ;;  %v4217_v19 = vadd.f32 %v4169_v50, %v4050_v32  ;;  %v15357_v60 = vpop.f32.mrb[132].mxu0  ;;  %v3540_v50 = vld [vmem:[#allocation3 + $0x178] sm:$0xff] }
 0x1fb   : > { %4266 = vst.msk [vmem:[#allocation3 + $0xf8] sm:$0xff] %vm171_vm1, %v4218_v44  ;;  %v3578_v53 = vadd.f32 %v15357_v60, %v3530_v25  ;;  %v3434_v62 = vpop.f32.mrb[133].mxu0  ;;  %15667 = vmatmul.mubr.msk.f32.gmra.mrb[238].mxu0 %vm171_vm1, %v5622_v40  ;;  %v3539_v60 = vld [vmem:[#allocation3 + $0x170] sm:$0xff] }
 0x1fc   : > { %4265 = vst.msk [vmem:[#allocation3 + $0xf0] sm:$0xff] %vm171_vm1, %v4217_v19  ;;  %v3577_v6 = vadd.f32 %v3529_v10, %v3434_v62  ;;  %v4172_v54 = vld [vmem:[#allocation3 + $0x108] sm:$0xff]  ;;  %v15431_v1 = vpop.f32.mrb[132].mxu1 }
 0x1fd   : > { %3626 = vst.msk [vmem:[#allocation3 + $0x128] sm:$0xff] %vm171_vm1, %v3578_v53  ;;  %v4220_v26 = vadd.f32 %v15425_v20, %v4172_v54  ;;  %v4171_v63 = vld [vmem:[#allocation3 + $0x100] sm:$0xff]  ;;  %v4080_v45 = vpop.f32.mrb[133].mxu1 }
 0x1fe   : > { %3625 = vst.msk [vmem:[#allocation3 + $0x120] sm:$0xff] %vm171_vm1, %v3577_v6  ;;  %v4219_v58 = vadd.f32 %v4171_v63, %v4060_v33  ;;  %v15360_v16 = vpop.f32.mrb[134].mxu0  ;;  %v3538_v33 = vld [vmem:[#allocation3 + $0x168] sm:$0xff] }
 0x1ff   : > { %4268 = vst.msk [vmem:[#allocation3 + $0x108] sm:$0xff] %vm171_vm1, %v4220_v26  ;;  %v3580_v2 = vadd.f32 %v15360_v16, %v3532_v52  ;;  %v3444_v4 = vpop.f32.mrb[135].mxu0  ;;  %v4786_v63 = vld [vmem:[#allocation3 + $0x8] sm:$0xff]  ;;  %v4785_v16 = vld [vmem:[#allocation3] sm:$0xff] }
 0x200   : > { %4267 = vst.msk [vmem:[#allocation3 + $0x100] sm:$0xff] %vm171_vm1, %v4219_v58  ;;  %v3579_v7 = vadd.f32 %v3531_v28, %v3444_v4  ;;  %v4174_v30 = vld [vmem:[#allocation3 + $0x118] sm:$0xff]  ;;  %v15434_v8 = vpop.f32.mrb[134].mxu1 }
 0x201   : > { %3628 = vst.msk [vmem:[#allocation3 + $0x138] sm:$0xff] %vm171_vm1, %v3580_v2  ;;  %v4222_v37 = vadd.f32 %v15428_v48, %v4174_v30  ;;  %v4173_v38 = vld [vmem:[#allocation3 + $0x110] sm:$0xff]  ;;  %v4090_v35 = vpop.f32.mrb[135].mxu1 }
 0x202   : > { %3627 = vst.msk [vmem:[#allocation3 + $0x130] sm:$0xff] %vm171_vm1, %v3579_v7  ;;  %v4221_v31 = vadd.f32 %v4173_v38, %v4070_v51  ;;  %v15363_v56 = vpop.f32.mrb[136].mxu0  ;;  %v4788_v38 = vld [vmem:[#allocation3 + $0x18] sm:$0xff] }
 0x203   : > { %4270 = vst.msk [vmem:[#allocation3 + $0x118] sm:$0xff] %vm171_vm1, %v4222_v37  ;;  %v3582_v11 = vadd.f32 %v15363_v56, %v3534_v9  ;;  %v3454_v15 = vpop.f32.mrb[137].mxu0  ;;  %v4787_v56 = vld [vmem:[#allocation3 + $0x10] sm:$0xff] }
 0x204   : > { %4269 = vst.msk [vmem:[#allocation3 + $0x110] sm:$0xff] %vm171_vm1, %v4221_v31  ;;  %v3581_v12 = vadd.f32 %v3533_v41, %v3454_v15  ;;  %v4176_v59 = vld [vmem:[#allocation3 + $0x128] sm:$0xff]  ;;  %v15437_v34 = vpop.f32.mrb[136].mxu1 }
 0x205   : > { %3630 = vst.msk [vmem:[#allocation3 + $0x148] sm:$0xff] %vm171_vm1, %v3582_v11  ;;  %v4224_v0 = vadd.f32 %v15431_v1, %v4176_v59  ;;  %v4175_v17 = vld [vmem:[#allocation3 + $0x120] sm:$0xff]  ;;  %v4100_v42 = vpop.f32.mrb[137].mxu1 }
 0x206   : > { %3629 = vst.msk [vmem:[#allocation3 + $0x140] sm:$0xff] %vm171_vm1, %v3581_v12  ;;  %v4223_v32 = vadd.f32 %v4175_v17, %v4080_v45  ;;  %v15366_v24 = vpop.f32.mrb[138].mxu0  ;;  %v4790_v17 = vld [vmem:[#allocation3 + $0x28] sm:$0xff] }
 0x207   : > { %4272 = vst.msk [vmem:[#allocation3 + $0x128] sm:$0xff] %vm171_vm1, %v4224_v0  ;;  %v3584_v5 = vadd.f32 %v15366_v24, %v3536_v3  ;;  %v3464_v29 = vpop.f32.mrb[139].mxu0  ;;  %v4789_v24 = vld [vmem:[#allocation3 + $0x20] sm:$0xff] }
 0x208   : > { %4271 = vst.msk [vmem:[#allocation3 + $0x120] sm:$0xff] %vm171_vm1, %v4223_v32  ;;  %v3583_v27 = vadd.f32 %v3535_v14, %v3464_v29  ;;  %v4178_v13 = vld [vmem:[#allocation3 + $0x138] sm:$0xff]  ;;  %v15440_v39 = vpop.f32.mrb[138].mxu1 }
 0x209   : > { %3632 = vst.msk [vmem:[#allocation3 + $0x158] sm:$0xff] %vm171_vm1, %v3584_v5  ;;  %v4226_v18 = vadd.f32 %v15434_v8, %v4178_v13  ;;  %v4177_v20 = vld [vmem:[#allocation3 + $0x130] sm:$0xff]  ;;  %v4110_v43 = vpop.f32.mrb[139].mxu1 }
 0x20a   : > { %3631 = vst.msk [vmem:[#allocation3 + $0x150] sm:$0xff] %vm171_vm1, %v3583_v27  ;;  %v4225_v49 = vadd.f32 %v4177_v20, %v4090_v35  ;;  %v15369_v61 = vpop.f32.mrb[140].mxu0  ;;  %v4792_v20 = vld [vmem:[#allocation3 + $0x38] sm:$0xff] }
 0x20b   : > { %4274 = vst.msk [vmem:[#allocation3 + $0x138] sm:$0xff] %vm171_vm1, %v4226_v18  ;;  %v3586_v46 = vadd.f32 %v15369_v61, %v3538_v33  ;;  %v3474_v23 = vpop.f32.mrb[141].mxu0  ;;  %v4791_v61 = vld [vmem:[#allocation3 + $0x30] sm:$0xff] }
 0x20c   : > { %4273 = vst.msk [vmem:[#allocation3 + $0x130] sm:$0xff] %vm171_vm1, %v4225_v49  ;;  %v3585_v55 = vadd.f32 %v3537_v47, %v3474_v23  ;;  %v4180_v36 = vld [vmem:[#allocation3 + $0x148] sm:$0xff]  ;;  %v15443_v21 = vpop.f32.mrb[140].mxu1 }
 0x20d   : > { %3634 = vst.msk [vmem:[#allocation3 + $0x168] sm:$0xff] %vm171_vm1, %v3586_v46  ;;  %v4228_v22 = vadd.f32 %v15437_v34, %v4180_v36  ;;  %v4179_v57 = vld [vmem:[#allocation3 + $0x140] sm:$0xff]  ;;  %v4120_v40 = vpop.f32.mrb[141].mxu1 }
 0x20e   : > { %3633 = vst.msk [vmem:[#allocation3 + $0x160] sm:$0xff] %vm171_vm1, %v3585_v55  ;;  %v4227_v48 = vadd.f32 %v4179_v57, %v4100_v42  ;;  %v15372_v44 = vpop.f32.mrb[142].mxu0  ;;  %v4794_v57 = vld [vmem:[#allocation3 + $0x48] sm:$0xff] }
 0x20f   : > { %4276 = vst.msk [vmem:[#allocation3 + $0x148] sm:$0xff] %vm171_vm1, %v4228_v22  ;;  %v3588_v51 = vadd.f32 %v15372_v44, %v3540_v50  ;;  %v3484_v19 = vpop.f32.mrb[143].mxu0  ;;  %v4793_v44 = vld [vmem:[#allocation3 + $0x40] sm:$0xff] }
 0x210   : > { %4275 = vst.msk [vmem:[#allocation3 + $0x140] sm:$0xff] %vm171_vm1, %v4227_v48  ;;  %v3587_v25 = vadd.f32 %v3539_v60, %v3484_v19  ;;  %v4182_v53 = vld [vmem:[#allocation3 + $0x158] sm:$0xff]  ;;  %v15446_v62 = vpop.f32.mrb[142].mxu1 }
 0x211   : > { %3636 = vst.msk [vmem:[#allocation3 + $0x178] sm:$0xff] %vm171_vm1, %v3588_v51  ;;  %v4230_v10 = vadd.f32 %v15440_v39, %v4182_v53  ;;  %v4181_v6 = vld [vmem:[#allocation3 + $0x150] sm:$0xff]  ;;  %v4130_v54 = vpop.f32.mrb[143].mxu1 }
 0x212   : > { %3635 = vst.msk [vmem:[#allocation3 + $0x170] sm:$0xff] %vm171_vm1, %v3587_v25  ;;  %v4229_v1 = vadd.f32 %v4181_v6, %v4110_v43  ;;  %v15451_v26 = vpop.f32.mrb[144].mxu0  ;;  %v4796_v6 = vld [vmem:[#allocation3 + $0x58] sm:$0xff] }
 0x213   : > { %4278 = vst.msk [vmem:[#allocation3 + $0x158] sm:$0xff] %vm171_vm1, %v4230_v10  ;;  %v4834_v45 = vadd.f32 %v15451_v26, %v4786_v63  ;;  %v4546_v58 = vpop.f32.mrb[145].mxu0  ;;  %v4795_v26 = vld [vmem:[#allocation3 + $0x50] sm:$0xff] }
 0x214   : > { %4277 = vst.msk [vmem:[#allocation3 + $0x150] sm:$0xff] %vm171_vm1, %v4229_v1  ;;  %v4833_v52 = vadd.f32 %v4785_v16, %v4546_v58  ;;  %v4184_v2 = vld [vmem:[#allocation3 + $0x168] sm:$0xff]  ;;  %v15525_v4 = vpop.f32.mrb[144].mxu1 }
 0x215   : > { %4882 = vst.msk [vmem:[#allocation3 + $0x8] sm:$0xff] %vm171_vm1, %v4834_v45  ;;  %v4232_v28 = vadd.f32 %v15443_v21, %v4184_v2  ;;  %v4183_v7 = vld [vmem:[#allocation3 + $0x160] sm:$0xff]  ;;  %v5192_v30 = vpop.f32.mrb[145].mxu1 }
 0x216   : > { %4881 = vst.msk [vmem:[#allocation3] sm:$0xff] %vm171_vm1, %v4833_v52  ;;  %v4231_v8 = vadd.f32 %v4183_v7, %v4120_v40  ;;  %v15454_v37 = vpop.f32.mrb[146].mxu0  ;;  %v4798_v7 = vld [vmem:[#allocation3 + $0x68] sm:$0xff] }
 0x217   : > { %4280 = vst.msk [vmem:[#allocation3 + $0x168] sm:$0xff] %vm171_vm1, %v4232_v28  ;;  %v4836_v35 = vadd.f32 %v15454_v37, %v4788_v38  ;;  %v4556_v31 = vpop.f32.mrb[147].mxu0  ;;  %v4797_v37 = vld [vmem:[#allocation3 + $0x60] sm:$0xff] }
 0x218   : > { %4279 = vst.msk [vmem:[#allocation3 + $0x160] sm:$0xff] %vm171_vm1, %v4231_v8  ;;  %v4835_v9 = vadd.f32 %v4787_v56, %v4556_v31  ;;  %v4186_v11 = vld [vmem:[#allocation3 + $0x178] sm:$0xff]  ;;  %v15528_v15 = vpop.f32.mrb[146].mxu1 }
 0x219   : > { %4884 = vst.msk [vmem:[#allocation3 + $0x18] sm:$0xff] %vm171_vm1, %v4836_v35  ;;  %v4234_v41 = vadd.f32 %v15446_v62, %v4186_v11  ;;  %v4185_v12 = vld [vmem:[#allocation3 + $0x170] sm:$0xff]  ;;  %v5202_v59 = vpop.f32.mrb[147].mxu1 }
 0x21a   : > { %4883 = vst.msk [vmem:[#allocation3 + $0x10] sm:$0xff] %vm171_vm1, %v4835_v9  ;;  %v4233_v34 = vadd.f32 %v4185_v12, %v4130_v54  ;;  %v15457_v0 = vpop.f32.mrb[148].mxu0  ;;  %v4800_v12 = vld [vmem:[#allocation3 + $0x78] sm:$0xff] }
 0x21b   : > { %4282 = vst.msk [vmem:[#allocation3 + $0x178] sm:$0xff] %vm171_vm1, %v4234_v41  ;;  %v4838_v42 = vadd.f32 %v15457_v0, %v4790_v17  ;;  %v4566_v32 = vpop.f32.mrb[149].mxu0  ;;  %v4799_v0 = vld [vmem:[#allocation3 + $0x70] sm:$0xff] }
 0x21c   : > { %4281 = vst.msk [vmem:[#allocation3 + $0x170] sm:$0xff] %vm171_vm1, %v4233_v34  ;;  %v4837_v3 = vadd.f32 %v4789_v24, %v4566_v32  ;;  %v5432_v5 = vld [vmem:[#allocation3 + $0x8] sm:$0xff]  ;;  %v15531_v29 = vpop.f32.mrb[148].mxu1 }
 0x21d   : > { %4886 = vst.msk [vmem:[#allocation3 + $0x28] sm:$0xff] %vm171_vm1, %v4838_v42  ;;  %v5480_v14 = vadd.f32 %v15525_v4, %v5432_v5  ;;  %v5431_v27 = vld [vmem:[#allocation3] sm:$0xff]  ;;  %v5212_v13 = vpop.f32.mrb[149].mxu1 }
 0x21e   : > { %4885 = vst.msk [vmem:[#allocation3 + $0x20] sm:$0xff] %vm171_vm1, %v4837_v3  ;;  %v5479_v39 = vadd.f32 %v5431_v27, %v5192_v30  ;;  %v15460_v18 = vpop.f32.mrb[150].mxu0  ;;  %v4802_v27 = vld [vmem:[#allocation3 + $0x88] sm:$0xff] }
 0x21f   : > { %5528 = vst.msk [vmem:[#allocation3 + $0x8] sm:$0xff] %vm171_vm1, %v5480_v14  ;;  %v4840_v43 = vadd.f32 %v15460_v18, %v4792_v20  ;;  %v4576_v49 = vpop.f32.mrb[151].mxu0  ;;  %v4801_v18 = vld [vmem:[#allocation3 + $0x80] sm:$0xff] }
 0x220   : > { %5527 = vst.msk [vmem:[#allocation3] sm:$0xff] %vm171_vm1, %v5479_v39  ;;  %v4839_v33 = vadd.f32 %v4791_v61, %v4576_v49  ;;  %v5434_v46 = vld [vmem:[#allocation3 + $0x18] sm:$0xff]  ;;  %v15534_v23 = vpop.f32.mrb[150].mxu1 }
 0x221   : > { %4888 = vst.msk [vmem:[#allocation3 + $0x38] sm:$0xff] %vm171_vm1, %v4840_v43  ;;  %v5482_v47 = vadd.f32 %v15528_v15, %v5434_v46  ;;  %v5433_v55 = vld [vmem:[#allocation3 + $0x10] sm:$0xff]  ;;  %v5222_v36 = vpop.f32.mrb[151].mxu1 }
 0x222   : > { %4887 = vst.msk [vmem:[#allocation3 + $0x30] sm:$0xff] %vm171_vm1, %v4839_v33  ;;  %v5481_v21 = vadd.f32 %v5433_v55, %v5202_v59  ;;  %v15463_v22 = vpop.f32.mrb[152].mxu0  ;;  %v4804_v55 = vld [vmem:[#allocation3 + $0x98] sm:$0xff] }
 0x223   : > { %5530 = vst.msk [vmem:[#allocation3 + $0x18] sm:$0xff] %vm171_vm1, %v5482_v47  ;;  %v4842_v40 = vadd.f32 %v15463_v22, %v4794_v57  ;;  %v4586_v48 = vpop.f32.mrb[153].mxu0  ;;  %v4803_v22 = vld [vmem:[#allocation3 + $0x90] sm:$0xff] }
 0x224   : > { %5529 = vst.msk [vmem:[#allocation3 + $0x10] sm:$0xff] %vm171_vm1, %v5481_v21  ;;  %v4841_v50 = vadd.f32 %v4793_v44, %v4586_v48  ;;  %v5436_v51 = vld [vmem:[#allocation3 + $0x28] sm:$0xff]  ;;  %v15537_v19 = vpop.f32.mrb[152].mxu1 }
 0x225   : > { %4890 = vst.msk [vmem:[#allocation3 + $0x48] sm:$0xff] %vm171_vm1, %v4842_v40  ;;  %v5484_v60 = vadd.f32 %v15531_v29, %v5436_v51  ;;  %v5435_v25 = vld [vmem:[#allocation3 + $0x20] sm:$0xff]  ;;  %v5232_v53 = vpop.f32.mrb[153].mxu1 }
 0x226   : > { %4889 = vst.msk [vmem:[#allocation3 + $0x40] sm:$0xff] %vm171_vm1, %v4841_v50  ;;  %v5483_v62 = vadd.f32 %v5435_v25, %v5212_v13  ;;  %v15466_v10 = vpop.f32.mrb[154].mxu0  ;;  %v4806_v25 = vld [vmem:[#allocation3 + $0xa8] sm:$0xff] }
 0x227   : > { %5532 = vst.msk [vmem:[#allocation3 + $0x28] sm:$0xff] %vm171_vm1, %v5484_v60  ;;  %v4844_v54 = vadd.f32 %v15466_v10, %v4796_v6  ;;  %v4596_v1 = vpop.f32.mrb[155].mxu0  ;;  %v4805_v10 = vld [vmem:[#allocation3 + $0xa0] sm:$0xff] }
 0x228   : > { %5531 = vst.msk [vmem:[#allocation3 + $0x20] sm:$0xff] %vm171_vm1, %v5483_v62  ;;  %v4843_v63 = vadd.f32 %v4795_v26, %v4596_v1  ;;  %v5438_v45 = vld [vmem:[#allocation3 + $0x38] sm:$0xff]  ;;  %v15540_v58 = vpop.f32.mrb[154].mxu1 }
 0x229   : > { %4892 = vst.msk [vmem:[#allocation3 + $0x58] sm:$0xff] %vm171_vm1, %v4844_v54  ;;  %v5486_v16 = vadd.f32 %v15534_v23, %v5438_v45  ;;  %v5437_v52 = vld [vmem:[#allocation3 + $0x30] sm:$0xff]  ;;  %v5242_v2 = vpop.f32.mrb[155].mxu1 }
 0x22a   : > { %4891 = vst.msk [vmem:[#allocation3 + $0x50] sm:$0xff] %vm171_vm1, %v4843_v63  ;;  %v5485_v4 = vadd.f32 %v5437_v52, %v5222_v36  ;;  %v15469_v28 = vpop.f32.mrb[156].mxu0  ;;  %v4808_v52 = vld [vmem:[#allocation3 + $0xb8] sm:$0xff] }
 0x22b   : > { %5534 = vst.msk [vmem:[#allocation3 + $0x38] sm:$0xff] %vm171_vm1, %v5486_v16  ;;  %v4846_v30 = vadd.f32 %v15469_v28, %v4798_v7  ;;  %v4606_v8 = vpop.f32.mrb[157].mxu0  ;;  %v4807_v28 = vld [vmem:[#allocation3 + $0xb0] sm:$0xff] }
 0x22c   : > { %5533 = vst.msk [vmem:[#allocation3 + $0x30] sm:$0xff] %vm171_vm1, %v5485_v4  ;;  %v4845_v38 = vadd.f32 %v4797_v37, %v4606_v8  ;;  %v5440_v35 = vld [vmem:[#allocation3 + $0x48] sm:$0xff]  ;;  %v15543_v31 = vpop.f32.mrb[156].mxu1 }
 0x22d   : > { %4894 = vst.msk [vmem:[#allocation3 + $0x68] sm:$0xff] %vm171_vm1, %v4846_v30  ;;  %v5488_v56 = vadd.f32 %v15537_v19, %v5440_v35  ;;  %v5439_v9 = vld [vmem:[#allocation3 + $0x40] sm:$0xff]  ;;  %v5252_v11 = vpop.f32.mrb[157].mxu1 }
 0x22e   : > { %4893 = vst.msk [vmem:[#allocation3 + $0x60] sm:$0xff] %vm171_vm1, %v4845_v38  ;;  %v5487_v15 = vadd.f32 %v5439_v9, %v5232_v53  ;;  %v15472_v41 = vpop.f32.mrb[158].mxu0  ;;  %v4810_v9 = vld [vmem:[#allocation3 + $0xc8] sm:$0xff] }
 0x22f   : > { %5536 = vst.msk [vmem:[#allocation3 + $0x48] sm:$0xff] %vm171_vm1, %v5488_v56  ;;  %v4848_v59 = vadd.f32 %v15472_v41, %v4800_v12  ;;  %v4616_v34 = vpop.f32.mrb[159].mxu0  ;;  %v4809_v41 = vld [vmem:[#allocation3 + $0xc0] sm:$0xff] }
 0x230   : > { %5535 = vst.msk [vmem:[#allocation3 + $0x40] sm:$0xff] %vm171_vm1, %v5487_v15  ;;  %v4847_v17 = vadd.f32 %v4799_v0, %v4616_v34  ;;  %v5442_v42 = vld [vmem:[#allocation3 + $0x58] sm:$0xff]  ;;  %v15546_v32 = vpop.f32.mrb[158].mxu1 }
 0x231   : > { %4896 = vst.msk [vmem:[#allocation3 + $0x78] sm:$0xff] %vm171_vm1, %v4848_v59  ;;  %v5490_v24 = vadd.f32 %v15540_v58, %v5442_v42  ;;  %v5441_v3 = vld [vmem:[#allocation3 + $0x50] sm:$0xff]  ;;  %v5262_v5 = vpop.f32.mrb[159].mxu1 }
 0x232   : > { %4895 = vst.msk [vmem:[#allocation3 + $0x70] sm:$0xff] %vm171_vm1, %v4847_v17  ;;  %v5489_v29 = vadd.f32 %v5441_v3, %v5242_v2  ;;  %v15475_v14 = vpop.f32.mrb[160].mxu0  ;;  %v4812_v3 = vld [vmem:[#allocation3 + $0xd8] sm:$0xff] }
 0x233   : > { %5538 = vst.msk [vmem:[#allocation3 + $0x58] sm:$0xff] %vm171_vm1, %v5490_v24  ;;  %v4850_v13 = vadd.f32 %v15475_v14, %v4802_v27  ;;  %v4626_v39 = vpop.f32.mrb[161].mxu0  ;;  %v4811_v14 = vld [vmem:[#allocation3 + $0xd0] sm:$0xff] }
 0x234   : > { %5537 = vst.msk [vmem:[#allocation3 + $0x50] sm:$0xff] %vm171_vm1, %v5489_v29  ;;  %v4849_v20 = vadd.f32 %v4801_v18, %v4626_v39  ;;  %v5444_v43 = vld [vmem:[#allocation3 + $0x68] sm:$0xff]  ;;  %v15549_v49 = vpop.f32.mrb[160].mxu1 }
 0x235   : > { %4898 = vst.msk [vmem:[#allocation3 + $0x88] sm:$0xff] %vm171_vm1, %v4850_v13  ;;  %v5492_v61 = vadd.f32 %v15543_v31, %v5444_v43  ;;  %v5443_v33 = vld [vmem:[#allocation3 + $0x60] sm:$0xff]  ;;  %v5272_v46 = vpop.f32.mrb[161].mxu1 }
 0x236   : > { %4897 = vst.msk [vmem:[#allocation3 + $0x80] sm:$0xff] %vm171_vm1, %v4849_v20  ;;  %v5491_v23 = vadd.f32 %v5443_v33, %v5252_v11  ;;  %v15478_v47 = vpop.f32.mrb[162].mxu0  ;;  %v4814_v33 = vld [vmem:[#allocation3 + $0xe8] sm:$0xff] }
 0x237   : > { %5540 = vst.msk [vmem:[#allocation3 + $0x68] sm:$0xff] %vm171_vm1, %v5492_v61  ;;  %v4852_v36 = vadd.f32 %v15478_v47, %v4804_v55  ;;  %v4636_v21 = vpop.f32.mrb[163].mxu0  ;;  %v4813_v47 = vld [vmem:[#allocation3 + $0xe0] sm:$0xff] }
 0x238   : > { %5539 = vst.msk [vmem:[#allocation3 + $0x60] sm:$0xff] %vm171_vm1, %v5491_v23  ;;  %v4851_v57 = vadd.f32 %v4803_v22, %v4636_v21  ;;  %v5446_v40 = vld [vmem:[#allocation3 + $0x78] sm:$0xff]  ;;  %v15552_v48 = vpop.f32.mrb[162].mxu1 }
 0x239   : > { %4900 = vst.msk [vmem:[#allocation3 + $0x98] sm:$0xff] %vm171_vm1, %v4852_v36  ;;  %v5494_v44 = vadd.f32 %v15546_v32, %v5446_v40  ;;  %v5445_v50 = vld [vmem:[#allocation3 + $0x70] sm:$0xff]  ;;  %v5282_v51 = vpop.f32.mrb[163].mxu1 }
 0x23a   : > { %4899 = vst.msk [vmem:[#allocation3 + $0x90] sm:$0xff] %vm171_vm1, %v4851_v57  ;;  %v5493_v19 = vadd.f32 %v5445_v50, %v5262_v5  ;;  %v15481_v60 = vpop.f32.mrb[164].mxu0  ;;  %v4816_v50 = vld [vmem:[#allocation3 + $0xf8] sm:$0xff] }
 0x23b   : > { %5542 = vst.msk [vmem:[#allocation3 + $0x78] sm:$0xff] %vm171_vm1, %v5494_v44  ;;  %v4854_v53 = vadd.f32 %v15481_v60, %v4806_v25  ;;  %v4646_v62 = vpop.f32.mrb[165].mxu0  ;;  %v4815_v60 = vld [vmem:[#allocation3 + $0xf0] sm:$0xff] }
 0x23c   : > { %5541 = vst.msk [vmem:[#allocation3 + $0x70] sm:$0xff] %vm171_vm1, %v5493_v19  ;;  %v4853_v6 = vadd.f32 %v4805_v10, %v4646_v62  ;;  %v5448_v54 = vld [vmem:[#allocation3 + $0x88] sm:$0xff]  ;;  %v15555_v1 = vpop.f32.mrb[164].mxu1 }
 0x23d   : > { %4902 = vst.msk [vmem:[#allocation3 + $0xa8] sm:$0xff] %vm171_vm1, %v4854_v53  ;;  %v5496_v26 = vadd.f32 %v15549_v49, %v5448_v54  ;;  %v5447_v63 = vld [vmem:[#allocation3 + $0x80] sm:$0xff]  ;;  %v5292_v45 = vpop.f32.mrb[165].mxu1 }
 0x23e   : > { %4901 = vst.msk [vmem:[#allocation3 + $0xa0] sm:$0xff] %vm171_vm1, %v4853_v6  ;;  %v5495_v58 = vadd.f32 %v5447_v63, %v5272_v46  ;;  %v15484_v16 = vpop.f32.mrb[166].mxu0  ;;  %v4818_v63 = vld [vmem:[#allocation3 + $0x108] sm:$0xff] }
 0x23f   : > { %5544 = vst.msk [vmem:[#allocation3 + $0x88] sm:$0xff] %vm171_vm1, %v5496_v26  ;;  %v4856_v2 = vadd.f32 %v15484_v16, %v4808_v52  ;;  %v4656_v4 = vpop.f32.mrb[167].mxu0  ;;  %v4817_v16 = vld [vmem:[#allocation3 + $0x100] sm:$0xff] }
 0x240   : > { %5543 = vst.msk [vmem:[#allocation3 + $0x80] sm:$0xff] %vm171_vm1, %v5495_v58  ;;  %v4855_v7 = vadd.f32 %v4807_v28, %v4656_v4  ;;  %v5450_v30 = vld [vmem:[#allocation3 + $0x98] sm:$0xff]  ;;  %v15558_v8 = vpop.f32.mrb[166].mxu1 }
 0x241   : > { %4904 = vst.msk [vmem:[#allocation3 + $0xb8] sm:$0xff] %vm171_vm1, %v4856_v2  ;;  %v5498_v37 = vadd.f32 %v15552_v48, %v5450_v30  ;;  %v5449_v38 = vld [vmem:[#allocation3 + $0x90] sm:$0xff]  ;;  %v5302_v35 = vpop.f32.mrb[167].mxu1 }
 0x242   : > { %4903 = vst.msk [vmem:[#allocation3 + $0xb0] sm:$0xff] %vm171_vm1, %v4855_v7  ;;  %v5497_v31 = vadd.f32 %v5449_v38, %v5282_v51  ;;  %v15487_v56 = vpop.f32.mrb[168].mxu0  ;;  %v4820_v38 = vld [vmem:[#allocation3 + $0x118] sm:$0xff] }
 0x243   : > { %5546 = vst.msk [vmem:[#allocation3 + $0x98] sm:$0xff] %vm171_vm1, %v5498_v37  ;;  %v4858_v11 = vadd.f32 %v15487_v56, %v4810_v9  ;;  %v4666_v15 = vpop.f32.mrb[169].mxu0  ;;  %v4819_v56 = vld [vmem:[#allocation3 + $0x110] sm:$0xff] }
 0x244   : > { %5545 = vst.msk [vmem:[#allocation3 + $0x90] sm:$0xff] %vm171_vm1, %v5497_v31  ;;  %v4857_v12 = vadd.f32 %v4809_v41, %v4666_v15  ;;  %v5452_v59 = vld [vmem:[#allocation3 + $0xa8] sm:$0xff]  ;;  %v15561_v34 = vpop.f32.mrb[168].mxu1 }
 0x245   : > { %4906 = vst.msk [vmem:[#allocation3 + $0xc8] sm:$0xff] %vm171_vm1, %v4858_v11  ;;  %v5500_v0 = vadd.f32 %v15555_v1, %v5452_v59  ;;  %v5451_v17 = vld [vmem:[#allocation3 + $0xa0] sm:$0xff]  ;;  %v5312_v42 = vpop.f32.mrb[169].mxu1 }
 0x246   : > { %4905 = vst.msk [vmem:[#allocation3 + $0xc0] sm:$0xff] %vm171_vm1, %v4857_v12  ;;  %v5499_v32 = vadd.f32 %v5451_v17, %v5292_v45  ;;  %v15490_v24 = vpop.f32.mrb[170].mxu0  ;;  %v4822_v17 = vld [vmem:[#allocation3 + $0x128] sm:$0xff] }
 0x247   : > { %5548 = vst.msk [vmem:[#allocation3 + $0xa8] sm:$0xff] %vm171_vm1, %v5500_v0  ;;  %v4860_v5 = vadd.f32 %v15490_v24, %v4812_v3  ;;  %v4676_v29 = vpop.f32.mrb[171].mxu0  ;;  %v4821_v24 = vld [vmem:[#allocation3 + $0x120] sm:$0xff] }
 0x248   : > { %5547 = vst.msk [vmem:[#allocation3 + $0xa0] sm:$0xff] %vm171_vm1, %v5499_v32  ;;  %v4859_v27 = vadd.f32 %v4811_v14, %v4676_v29  ;;  %v5454_v13 = vld [vmem:[#allocation3 + $0xb8] sm:$0xff]  ;;  %v15564_v39 = vpop.f32.mrb[170].mxu1 }
 0x249   : > { %4908 = vst.msk [vmem:[#allocation3 + $0xd8] sm:$0xff] %vm171_vm1, %v4860_v5  ;;  %v5502_v18 = vadd.f32 %v15558_v8, %v5454_v13  ;;  %v5453_v20 = vld [vmem:[#allocation3 + $0xb0] sm:$0xff]  ;;  %v5322_v43 = vpop.f32.mrb[171].mxu1 }
 0x24a   : > { %4907 = vst.msk [vmem:[#allocation3 + $0xd0] sm:$0xff] %vm171_vm1, %v4859_v27  ;;  %v5501_v49 = vadd.f32 %v5453_v20, %v5302_v35  ;;  %v15493_v61 = vpop.f32.mrb[172].mxu0  ;;  %v4824_v20 = vld [vmem:[#allocation3 + $0x138] sm:$0xff] }
 0x24b   : > { %5550 = vst.msk [vmem:[#allocation3 + $0xb8] sm:$0xff] %vm171_vm1, %v5502_v18  ;;  %v4862_v46 = vadd.f32 %v15493_v61, %v4814_v33  ;;  %v4686_v23 = vpop.f32.mrb[173].mxu0  ;;  %v4823_v61 = vld [vmem:[#allocation3 + $0x130] sm:$0xff] }
 0x24c   : > { %5549 = vst.msk [vmem:[#allocation3 + $0xb0] sm:$0xff] %vm171_vm1, %v5501_v49  ;;  %v4861_v55 = vadd.f32 %v4813_v47, %v4686_v23  ;;  %v5456_v36 = vld [vmem:[#allocation3 + $0xc8] sm:$0xff]  ;;  %v15567_v21 = vpop.f32.mrb[172].mxu1 }
 0x24d   : > { %4910 = vst.msk [vmem:[#allocation3 + $0xe8] sm:$0xff] %vm171_vm1, %v4862_v46  ;;  %v5504_v22 = vadd.f32 %v15561_v34, %v5456_v36  ;;  %v5455_v57 = vld [vmem:[#allocation3 + $0xc0] sm:$0xff]  ;;  %v5332_v40 = vpop.f32.mrb[173].mxu1 }
 0x24e   : > { %4909 = vst.msk [vmem:[#allocation3 + $0xe0] sm:$0xff] %vm171_vm1, %v4861_v55  ;;  %v5503_v48 = vadd.f32 %v5455_v57, %v5312_v42  ;;  %v15496_v44 = vpop.f32.mrb[174].mxu0  ;;  %v4826_v57 = vld [vmem:[#allocation3 + $0x148] sm:$0xff] }
 0x24f   : > { %5552 = vst.msk [vmem:[#allocation3 + $0xc8] sm:$0xff] %vm171_vm1, %v5504_v22  ;;  %v4864_v51 = vadd.f32 %v15496_v44, %v4816_v50  ;;  %v4696_v19 = vpop.f32.mrb[175].mxu0  ;;  %v4825_v44 = vld [vmem:[#allocation3 + $0x140] sm:$0xff] }
 0x250   : > { %5551 = vst.msk [vmem:[#allocation3 + $0xc0] sm:$0xff] %vm171_vm1, %v5503_v48  ;;  %v4863_v25 = vadd.f32 %v4815_v60, %v4696_v19  ;;  %v5458_v53 = vld [vmem:[#allocation3 + $0xd8] sm:$0xff]  ;;  %v15570_v62 = vpop.f32.mrb[174].mxu1 }
 0x251   : > { %4912 = vst.msk [vmem:[#allocation3 + $0xf8] sm:$0xff] %vm171_vm1, %v4864_v51  ;;  %v5506_v10 = vadd.f32 %v15564_v39, %v5458_v53  ;;  %v5457_v6 = vld [vmem:[#allocation3 + $0xd0] sm:$0xff]  ;;  %v5342_v54 = vpop.f32.mrb[175].mxu1 }
 0x252   : > { %4911 = vst.msk [vmem:[#allocation3 + $0xf0] sm:$0xff] %vm171_vm1, %v4863_v25  ;;  %v5505_v1 = vadd.f32 %v5457_v6, %v5322_v43  ;;  %v15499_v26 = vpop.f32.mrb[176].mxu0  ;;  %v4828_v6 = vld [vmem:[#allocation3 + $0x158] sm:$0xff] }
 0x253   : > { %5554 = vst.msk [vmem:[#allocation3 + $0xd8] sm:$0xff] %vm171_vm1, %v5506_v10  ;;  %v4866_v45 = vadd.f32 %v15499_v26, %v4818_v63  ;;  %v4706_v58 = vpop.f32.mrb[177].mxu0  ;;  %v4827_v26 = vld [vmem:[#allocation3 + $0x150] sm:$0xff] }
 0x254   : > { %5553 = vst.msk [vmem:[#allocation3 + $0xd0] sm:$0xff] %vm171_vm1, %v5505_v1  ;;  %v4865_v52 = vadd.f32 %v4817_v16, %v4706_v58  ;;  %v5460_v2 = vld [vmem:[#allocation3 + $0xe8] sm:$0xff]  ;;  %v15573_v4 = vpop.f32.mrb[176].mxu1 }
 0x255   : > { %4914 = vst.msk [vmem:[#allocation3 + $0x108] sm:$0xff] %vm171_vm1, %v4866_v45  ;;  %v5508_v28 = vadd.f32 %v15567_v21, %v5460_v2  ;;  %v5459_v7 = vld [vmem:[#allocation3 + $0xe0] sm:$0xff]  ;;  %v5352_v30 = vpop.f32.mrb[177].mxu1 }
 0x256   : > { %4913 = vst.msk [vmem:[#allocation3 + $0x100] sm:$0xff] %vm171_vm1, %v4865_v52  ;;  %v5507_v8 = vadd.f32 %v5459_v7, %v5332_v40  ;;  %v15502_v37 = vpop.f32.mrb[178].mxu0  ;;  %v4830_v7 = vld [vmem:[#allocation3 + $0x168] sm:$0xff] }
 0x257   : > { %5556 = vst.msk [vmem:[#allocation3 + $0xe8] sm:$0xff] %vm171_vm1, %v5508_v28  ;;  %v4868_v35 = vadd.f32 %v15502_v37, %v4820_v38  ;;  %v4716_v31 = vpop.f32.mrb[179].mxu0  ;;  %v4829_v37 = vld [vmem:[#allocation3 + $0x160] sm:$0xff] }
 0x258   : > { %5555 = vst.msk [vmem:[#allocation3 + $0xe0] sm:$0xff] %vm171_vm1, %v5507_v8  ;;  %v4867_v9 = vadd.f32 %v4819_v56, %v4716_v31  ;;  %v5462_v11 = vld [vmem:[#allocation3 + $0xf8] sm:$0xff]  ;;  %v15576_v15 = vpop.f32.mrb[178].mxu1 }
 0x259   : > { %4916 = vst.msk [vmem:[#allocation3 + $0x118] sm:$0xff] %vm171_vm1, %v4868_v35  ;;  %v5510_v41 = vadd.f32 %v15570_v62, %v5462_v11  ;;  %v5461_v12 = vld [vmem:[#allocation3 + $0xf0] sm:$0xff]  ;;  %v5362_v59 = vpop.f32.mrb[179].mxu1 }
 0x25a   : > { %4915 = vst.msk [vmem:[#allocation3 + $0x110] sm:$0xff] %vm171_vm1, %v4867_v9  ;;  %v5509_v34 = vadd.f32 %v5461_v12, %v5342_v54  ;;  %v15505_v0 = vpop.f32.mrb[180].mxu0  ;;  %v4832_v12 = vld [vmem:[#allocation3 + $0x178] sm:$0xff] }
 0x25b   : > { %5558 = vst.msk [vmem:[#allocation3 + $0xf8] sm:$0xff] %vm171_vm1, %v5510_v41  ;;  %v4870_v42 = vadd.f32 %v15505_v0, %v4822_v17  ;;  %v4726_v32 = vpop.f32.mrb[181].mxu0  ;;  %v4831_v0 = vld [vmem:[#allocation3 + $0x170] sm:$0xff] }
 0x25c   : > { %5557 = vst.msk [vmem:[#allocation3 + $0xf0] sm:$0xff] %vm171_vm1, %v5509_v34  ;;  %v4869_v3 = vadd.f32 %v4821_v24, %v4726_v32  ;;  %v5464_v5 = vld [vmem:[#allocation3 + $0x108] sm:$0xff]  ;;  %v15579_v29 = vpop.f32.mrb[180].mxu1 }
 0x25d   : > { %4918 = vst.msk [vmem:[#allocation3 + $0x128] sm:$0xff] %vm171_vm1, %v4870_v42  ;;  %v5512_v14 = vadd.f32 %v15573_v4, %v5464_v5  ;;  %v5463_v27 = vld [vmem:[#allocation3 + $0x100] sm:$0xff]  ;;  %v5372_v13 = vpop.f32.mrb[181].mxu1 }
 0x25e   : > { %4917 = vst.msk [vmem:[#allocation3 + $0x120] sm:$0xff] %vm171_vm1, %v4869_v3  ;;  %v5511_v39 = vadd.f32 %v5463_v27, %v5352_v30  ;;  %v15508_v18 = vpop.f32.mrb[182].mxu0  ;;  %v6078_v27 = vld [vmem:[#allocation3 + $0x8] sm:$0xff] }
 0x25f   : > { %5560 = vst.msk [vmem:[#allocation3 + $0x108] sm:$0xff] %vm171_vm1, %v5512_v14  ;;  %v4872_v43 = vadd.f32 %v15508_v18, %v4824_v20  ;;  %v4736_v49 = vpop.f32.mrb[183].mxu0  ;;  %v6077_v18 = vld [vmem:[#allocation3] sm:$0xff] }
 0x260   : > { %5559 = vst.msk [vmem:[#allocation3 + $0x100] sm:$0xff] %vm171_vm1, %v5511_v39  ;;  %v4871_v33 = vadd.f32 %v4823_v61, %v4736_v49  ;;  %v5466_v46 = vld [vmem:[#allocation3 + $0x118] sm:$0xff]  ;;  %v15582_v23 = vpop.f32.mrb[182].mxu1 }
 0x261   : > { %4920 = vst.msk [vmem:[#allocation3 + $0x138] sm:$0xff] %vm171_vm1, %v4872_v43  ;;  %v5514_v47 = vadd.f32 %v15576_v15, %v5466_v46  ;;  %v5465_v55 = vld [vmem:[#allocation3 + $0x110] sm:$0xff]  ;;  %v5382_v36 = vpop.f32.mrb[183].mxu1 }
 0x262   : > { %4919 = vst.msk [vmem:[#allocation3 + $0x130] sm:$0xff] %vm171_vm1, %v4871_v33  ;;  %v5513_v21 = vadd.f32 %v5465_v55, %v5362_v59  ;;  %v15511_v22 = vpop.f32.mrb[184].mxu0 }
 0x263   : > { %5562 = vst.msk [vmem:[#allocation3 + $0x118] sm:$0xff] %vm171_vm1, %v5514_v47  ;;  %v4874_v40 = vadd.f32 %v15511_v22, %v4826_v57  ;;  %v4746_v48 = vpop.f32.mrb[185].mxu0 }
 0x264   : > { %5561 = vst.msk [vmem:[#allocation3 + $0x110] sm:$0xff] %vm171_vm1, %v5513_v21  ;;  %v4873_v50 = vadd.f32 %v4825_v44, %v4746_v48  ;;  %v5468_v51 = vld [vmem:[#allocation3 + $0x128] sm:$0xff]  ;;  %v15585_v19 = vpop.f32.mrb[184].mxu1 }
 0x265   : > { %4922 = vst.msk [vmem:[#allocation3 + $0x148] sm:$0xff] %vm171_vm1, %v4874_v40  ;;  %v5516_v60 = vadd.f32 %v15579_v29, %v5468_v51  ;;  %v5467_v25 = vld [vmem:[#allocation3 + $0x120] sm:$0xff]  ;;  %v5392_v53 = vpop.f32.mrb[185].mxu1 }
 0x266   : > { %4921 = vst.msk [vmem:[#allocation3 + $0x140] sm:$0xff] %vm171_vm1, %v4873_v50  ;;  %v5515_v62 = vadd.f32 %v5467_v25, %v5372_v13  ;;  %v15514_v10 = vpop.f32.mrb[186].mxu0  ;;  %v6082_v50 = vld [vmem:[#allocation3 + $0x28] sm:$0xff] }
 0x267   : > { %5564 = vst.msk [vmem:[#allocation3 + $0x128] sm:$0xff] %vm171_vm1, %v5516_v60  ;;  %v4876_v54 = vadd.f32 %v15514_v10, %v4828_v6  ;;  %v4756_v1 = vpop.f32.mrb[187].mxu0  ;;  %v6081_v60 = vld [vmem:[#allocation3 + $0x20] sm:$0xff] }
 0x268   : > { %5563 = vst.msk [vmem:[#allocation3 + $0x120] sm:$0xff] %vm171_vm1, %v5515_v62  ;;  %v4875_v63 = vadd.f32 %v4827_v26, %v4756_v1  ;;  %v5470_v45 = vld [vmem:[#allocation3 + $0x138] sm:$0xff]  ;;  %v15588_v58 = vpop.f32.mrb[186].mxu1 }
 0x269   : > { %4924 = vst.msk [vmem:[#allocation3 + $0x158] sm:$0xff] %vm171_vm1, %v4876_v54  ;;  %v5518_v16 = vadd.f32 %v15582_v23, %v5470_v45  ;;  %v5469_v52 = vld [vmem:[#allocation3 + $0x130] sm:$0xff]  ;;  %v5402_v2 = vpop.f32.mrb[187].mxu1  ;;  %v6080_v23 = vld [vmem:[#allocation3 + $0x18] sm:$0xff] }
 0x26a   : > { %4923 = vst.msk [vmem:[#allocation3 + $0x150] sm:$0xff] %vm171_vm1, %v4875_v63  ;;  %v5517_v4 = vadd.f32 %v5469_v52, %v5382_v36  ;;  %v15517_v28 = vpop.f32.mrb[188].mxu0  ;;  %v6079_v36 = vld [vmem:[#allocation3 + $0x10] sm:$0xff]  ;;  %v6084_v62 = vld [vmem:[#allocation3 + $0x38] sm:$0xff]  ;;  %v6086_v63 = vld [vmem:[#allocation3 + $0x48] sm:$0xff] }
 0x26b   : > { %5566 = vst.msk [vmem:[#allocation3 + $0x138] sm:$0xff] %vm171_vm1, %v5518_v16  ;;  %v4878_v30 = vadd.f32 %v15517_v28, %v4830_v7  ;;  %v4766_v8 = vpop.f32.mrb[189].mxu0  ;;  %v6083_v54 = vld [vmem:[#allocation3 + $0x30] sm:$0xff]  ;;  %v6085_v16 = vld [vmem:[#allocation3 + $0x40] sm:$0xff] }
 0x26c   : > { %5565 = vst.msk [vmem:[#allocation3 + $0x130] sm:$0xff] %vm171_vm1, %v5517_v4  ;;  %v4877_v38 = vadd.f32 %v4829_v37, %v4766_v8  ;;  %v5472_v35 = vld [vmem:[#allocation3 + $0x148] sm:$0xff]  ;;  %v15591_v31 = vpop.f32.mrb[188].mxu1  ;;  %v6088_v4 = vld [vmem:[#allocation3 + $0x58] sm:$0xff] }
 0x26d   : > { %4926 = vst.msk [vmem:[#allocation3 + $0x168] sm:$0xff] %vm171_vm1, %v4878_v30  ;;  %v5520_v56 = vadd.f32 %v15585_v19, %v5472_v35  ;;  %v5471_v9 = vld [vmem:[#allocation3 + $0x140] sm:$0xff]  ;;  %v5412_v11 = vpop.f32.mrb[189].mxu1  ;;  %v6087_v30 = vld [vmem:[#allocation3 + $0x50] sm:$0xff] }
 0x26e   : > { %4925 = vst.msk [vmem:[#allocation3 + $0x160] sm:$0xff] %vm171_vm1, %v4877_v38  ;;  %v5519_v15 = vadd.f32 %v5471_v9, %v5392_v53  ;;  %v15520_v41 = vpop.f32.mrb[190].mxu0  ;;  %v6090_v38 = vld [vmem:[#allocation3 + $0x68] sm:$0xff] }
 0x26f   : > { %5568 = vst.msk [vmem:[#allocation3 + $0x148] sm:$0xff] %vm171_vm1, %v5520_v56  ;;  %v4880_v59 = vadd.f32 %v15520_v41, %v4832_v12  ;;  %v4776_v34 = vpop.f32.mrb[191].mxu0  ;;  %v6089_v56 = vld [vmem:[#allocation3 + $0x60] sm:$0xff] }
 0x270   : > { %5567 = vst.msk [vmem:[#allocation3 + $0x140] sm:$0xff] %vm171_vm1, %v5519_v15  ;;  %v4879_v17 = vadd.f32 %v4831_v0, %v4776_v34  ;;  %v5474_v42 = vld [vmem:[#allocation3 + $0x158] sm:$0xff]  ;;  %v15594_v32 = vpop.f32.mrb[190].mxu1 }
 0x271   : > { %4928 = vst.msk [vmem:[#allocation3 + $0x178] sm:$0xff] %vm171_vm1, %v4880_v59  ;;  %v5522_v24 = vadd.f32 %v15588_v58, %v5474_v42  ;;  %v5473_v3 = vld [vmem:[#allocation3 + $0x150] sm:$0xff]  ;;  %v5422_v5 = vpop.f32.mrb[191].mxu1  ;;  %v6092_v15 = vld [vmem:[#allocation3 + $0x78] sm:$0xff] }
 0x272   : > { %4927 = vst.msk [vmem:[#allocation3 + $0x170] sm:$0xff] %vm171_vm1, %v4879_v17  ;;  %v5521_v29 = vadd.f32 %v5473_v3, %v5402_v2  ;;  %v15599_v14 = vpop.f32.mrb[192].mxu0  ;;  %v6091_v59 = vld [vmem:[#allocation3 + $0x70] sm:$0xff]  ;;  %v6094_v17 = vld [vmem:[#allocation3 + $0x88] sm:$0xff] }
 0x273   : > { %5570 = vst.msk [vmem:[#allocation3 + $0x158] sm:$0xff] %vm171_vm1, %v5522_v24  ;;  %v6126_v13 = vadd.f32 %v15599_v14, %v6078_v27  ;;  %v5838_v39 = vpop.f32.mrb[193].mxu0  ;;  %v6093_v24 = vld [vmem:[#allocation3 + $0x80] sm:$0xff] }
 0x274   : > { %5569 = vst.msk [vmem:[#allocation3 + $0x150] sm:$0xff] %vm171_vm1, %v5521_v29  ;;  %v6125_v20 = vadd.f32 %v6077_v18, %v5838_v39  ;;  %v5476_v43 = vld [vmem:[#allocation3 + $0x168] sm:$0xff]  ;;  %v6096_v29 = vld [vmem:[#allocation3 + $0x98] sm:$0xff] }
 0x275   : > { %6174 = vst.msk [vmem:[#allocation3 + $0x8] sm:$0xff] %vm171_vm1, %v6126_v13  ;;  %v5524_v49 = vadd.f32 %v15591_v31, %v5476_v43  ;;  %v5475_v61 = vld [vmem:[#allocation3 + $0x160] sm:$0xff]  ;;  %v6095_v13 = vld [vmem:[#allocation3 + $0x90] sm:$0xff] }
 0x276   : > { %6173 = vst.msk [vmem:[#allocation3] sm:$0xff] %vm171_vm1, %v6125_v20  ;;  %v5523_v33 = vadd.f32 %v5475_v61, %v5412_v11  ;;  %v15602_v46 = vpop.f32.mrb[194].mxu0  ;;  %v6098_v20 = vld [vmem:[#allocation3 + $0xa8] sm:$0xff]  ;;  %v6097_v61 = vld [vmem:[#allocation3 + $0xa0] sm:$0xff] }
 0x277   : > { %5572 = vst.msk [vmem:[#allocation3 + $0x168] sm:$0xff] %vm171_vm1, %v5524_v49  ;;  %v6128_v47 = vadd.f32 %v15602_v46, %v6080_v23  ;;  %v5848_v55 = vpop.f32.mrb[195].mxu0  ;;  %v6100_v23 = vld [vmem:[#allocation3 + $0xb8] sm:$0xff] }
 0x278   : > { %5571 = vst.msk [vmem:[#allocation3 + $0x160] sm:$0xff] %vm171_vm1, %v5523_v33  ;;  %v6127_v21 = vadd.f32 %v6079_v36, %v5848_v55  ;;  %v5478_v22 = vld [vmem:[#allocation3 + $0x178] sm:$0xff]  ;;  %v6099_v36 = vld [vmem:[#allocation3 + $0xb0] sm:$0xff] }
 0x279   : > { %6176 = vst.msk [vmem:[#allocation3 + $0x18] sm:$0xff] %vm171_vm1, %v6128_v47  ;;  %v5526_v57 = vadd.f32 %v15594_v32, %v5478_v22  ;;  %v5477_v40 = vld [vmem:[#allocation3 + $0x170] sm:$0xff] }
 0x27a   : > { %6175 = vst.msk [vmem:[#allocation3 + $0x10] sm:$0xff] %vm171_vm1, %v6127_v21  ;;  %v5525_v48 = vadd.f32 %v5477_v40, %v5422_v5  ;;  %v15605_v44 = vpop.f32.mrb[196].mxu0 }
 0x27b   : > { %5574 = vst.msk [vmem:[#allocation3 + $0x178] sm:$0xff] %vm171_vm1, %v5526_v57  ;;  %v6130_v51 = vadd.f32 %v15605_v44, %v6082_v50  ;;  %v5858_v19 = vpop.f32.mrb[197].mxu0  ;;  %v6102_v57 = vld [vmem:[#allocation3 + $0xc8] sm:$0xff]  ;;  %v6101_v44 = vld [vmem:[#allocation3 + $0xc0] sm:$0xff] }
 0x27c   : > { %5573 = vst.msk [vmem:[#allocation3 + $0x170] sm:$0xff] %vm171_vm1, %v5525_v48  ;;  %v6129_v25 = vadd.f32 %v6081_v60, %v5858_v19  ;;  %v6104_v19 = vld [vmem:[#allocation3 + $0xd8] sm:$0xff] }
 0x27d   : > { %6178 = vst.msk [vmem:[#allocation3 + $0x28] sm:$0xff] %vm171_vm1, %v6130_v51 }
 0x27e   : > { %6177 = vst.msk [vmem:[#allocation3 + $0x20] sm:$0xff] %vm171_vm1, %v6129_v25  ;;  %v15608_v53 = vpop.f32.mrb[198].mxu0 }
 0x27f   : > { %v6132_v10 = vadd.f32 %v15608_v53, %v6084_v62  ;;  %v5868_v6 = vpop.f32.mrb[199].mxu0  ;;  %v6103_v53 = vld [vmem:[#allocation3 + $0xd0] sm:$0xff] }
 0x280   : > { %v6131_v1 = vadd.f32 %v6083_v54, %v5868_v6  ;;  %v6106_v54 = vld [vmem:[#allocation3 + $0xe8] sm:$0xff] }
 0x281   : > { %6180 = vst.msk [vmem:[#allocation3 + $0x38] sm:$0xff] %vm171_vm1, %v6132_v10  ;;  %v17893_v10 = vld [vmem:[#allocation3 + $0x18] sm:$0xff] }
 0x282   : > { %6179 = vst.msk [vmem:[#allocation3 + $0x30] sm:$0xff] %vm171_vm1, %v6131_v1  ;;  %v15611_v26 = vpop.f32.mrb[200].mxu0  ;;  %v6105_v1 = vld [vmem:[#allocation3 + $0xe0] sm:$0xff] }
 0x283   : > { %v6134_v45 = vadd.f32 %v15611_v26, %v6086_v63  ;;  %v5878_v58 = vpop.f32.mrb[201].mxu0  ;;  %v17897_v26 = vld [vmem:[#allocation3] sm:$0xff] }
 0x284   : > { %v6133_v52 = vadd.f32 %v6085_v16, %v5878_v58 }
 0x285   : > { %6182 = vst.msk [vmem:[#allocation3 + $0x48] sm:$0xff] %vm171_vm1, %v6134_v45  ;;  %v17899_v63 = vld [vmem:[#allocation3 + $0x20] sm:$0xff] }
 0x286   : > { %6181 = vst.msk [vmem:[#allocation3 + $0x40] sm:$0xff] %vm171_vm1, %v6133_v52  ;;  %v15614_v2 = vpop.f32.mrb[202].mxu0  ;;  %v6277_v52 = vsel %vm171_vm1, %v17893_v10, 0.0 }
 0x287   : > { %v6136_v28 = vadd.f32 %v15614_v2, %v6088_v4  ;;  %v5888_v7 = vpop.f32.mrb[203].mxu0  ;;  %v17905_v4 = vld [vmem:[#allocation3 + $0x8] sm:$0xff] }
 0x288   : > { %v6135_v8 = vadd.f32 %v6087_v30, %v5888_v7  ;;  %v6308_v7 = vsel %vm171_vm1, %v17899_v63, 0.0 }
 0x289   : > { %6184 = vst.msk [vmem:[#allocation3 + $0x58] sm:$0xff] %vm171_vm1, %v6136_v28  ;;  %v17901_v45 = vld [vmem:[#allocation3 + $0x30] sm:$0xff]  ;;  %v6276_v28 = vsel %vm171_vm1, %v17897_v26, 0.0 }
 0x28a   : > { %6183 = vst.msk [vmem:[#allocation3 + $0x50] sm:$0xff] %vm171_vm1, %v6135_v8  ;;  %v15617_v37 = vpop.f32.mrb[204].mxu0  ;;  %v6279_v30 = vsel %vm171_vm1, %v17901_v45, 0.0 }
 0x28b   : > { %v6138_v35 = vadd.f32 %v15617_v37, %v6090_v38  ;;  %v5898_v31 = vpop.f32.mrb[205].mxu0  ;;  %v6108_v37 = vld [vmem:[#allocation3 + $0xf8] sm:$0xff]  ;;  %v6278_v38 = vadd.f32 %v6277_v52, %v6276_v28 }
 0x28c   : > { %v6137_v9 = vadd.f32 %v6089_v56, %v5898_v31  ;;  %v17917_v31 = vld [vmem:[#allocation3 + $0x48] sm:$0xff] }
 0x28d   : > { %6186 = vst.msk [vmem:[#allocation3 + $0x68] sm:$0xff] %vm171_vm1, %v6138_v35  ;;  %v17915_v35 = vld [vmem:[#allocation3 + $0x38] sm:$0xff] }
 0x28e   : > { %6185 = vst.msk [vmem:[#allocation3 + $0x60] sm:$0xff] %vm171_vm1, %v6137_v9  ;;  %v15620_v11 = vpop.f32.mrb[206].mxu0 }
 0x28f   : > { %v6140_v41 = vadd.f32 %v15620_v11, %v6092_v15  ;;  %v5908_v12 = vpop.f32.mrb[207].mxu0  ;;  %v6107_v11 = vld [vmem:[#allocation3 + $0xf0] sm:$0xff]  ;;  %v6307_v15 = vsel %vm171_vm1, %v17905_v4, 0.0 }
 0x290   : > { %v6139_v34 = vadd.f32 %v6091_v59, %v5908_v12  ;;  %v6309_v12 = vadd.f32 %v6308_v7, %v6307_v15  ;;  %v6280_v59 = vadd.f32 %v6279_v30, %v6278_v38 }
 0x291   : > { %6188 = vst.msk [vmem:[#allocation3 + $0x78] sm:$0xff] %vm171_vm1, %v6140_v41 }
 0x292   : > { %6187 = vst.msk [vmem:[#allocation3 + $0x70] sm:$0xff] %vm171_vm1, %v6139_v34  ;;  %v15623_v0 = vpop.f32.mrb[208].mxu0  ;;  %v17921_v34 = vld [vmem:[#allocation3 + $0x50] sm:$0xff] }
 0x293   : > { %v6142_v42 = vadd.f32 %v15623_v0, %v6094_v17  ;;  %v5918_v32 = vpop.f32.mrb[209].mxu0  ;;  %v6310_v17 = vsel %vm171_vm1, %v17915_v35, 0.0 }
 0x294   : > { %v6141_v3 = vadd.f32 %v6093_v24, %v5918_v32  ;;  %v6110_v24 = vld [vmem:[#allocation3 + $0x108] sm:$0xff] }
 0x295   : > { %6190 = vst.msk [vmem:[#allocation3 + $0x88] sm:$0xff] %vm171_vm1, %v6142_v42  ;;  %v17923_v0 = vld [vmem:[#allocation3 + $0x60] sm:$0xff]  ;;  %v6281_v42 = vsel %vm171_vm1, %v17917_v31, 0.0 }
 0x296   : > { %6189 = vst.msk [vmem:[#allocation3 + $0x80] sm:$0xff] %vm171_vm1, %v6141_v3  ;;  %v15626_v5 = vpop.f32.mrb[210].mxu0 }
 0x297   : > { %v6144_v14 = vadd.f32 %v15626_v5, %v6096_v29  ;;  %v5928_v27 = vpop.f32.mrb[211].mxu0  ;;  %v6109_v29 = vld [vmem:[#allocation3 + $0x100] sm:$0xff] }
 0x298   : > { %v6143_v39 = vadd.f32 %v6095_v13, %v5928_v27  ;;  %v6283_v27 = vsel %vm171_vm1, %v17923_v0, 0.0 }
 0x299   : > { %6192 = vst.msk [vmem:[#allocation3 + $0x98] sm:$0xff] %vm171_vm1, %v6144_v14  ;;  %v6312_v14 = vsel %vm171_vm1, %v17921_v34, 0.0 }
 0x29a   : > { %6191 = vst.msk [vmem:[#allocation3 + $0x90] sm:$0xff] %vm171_vm1, %v6143_v39  ;;  %v15629_v18 = vpop.f32.mrb[212].mxu0  ;;  %v6311_v39 = vadd.f32 %v6310_v17, %v6309_v12 }
 0x29b   : > { %v6146_v43 = vadd.f32 %v15629_v18, %v6098_v20  ;;  %v5938_v49 = vpop.f32.mrb[213].mxu0  ;;  %v6282_v18 = vadd.f32 %v6281_v42, %v6280_v59  ;;  %v17935_v20 = vld [vmem:[#allocation3 + $0x68] sm:$0xff] }
 0x29c   : > { %v6145_v33 = vadd.f32 %v6097_v61, %v5938_v49  ;;  %v6112_v61 = vld [vmem:[#allocation3 + $0x118] sm:$0xff] }
 0x29d   : > { %6194 = vst.msk [vmem:[#allocation3 + $0xa8] sm:$0xff] %vm171_vm1, %v6146_v43  ;;  %v17937_v43 = vld [vmem:[#allocation3 + $0x78] sm:$0xff] }
 0x29e   : > { %6193 = vst.msk [vmem:[#allocation3 + $0xa0] sm:$0xff] %vm171_vm1, %v6145_v33  ;;  %v15632_v46 = vpop.f32.mrb[214].mxu0  ;;  %v6313_v33 = vadd.f32 %v6312_v14, %v6311_v39 }
 0x29f   : > { %v6148_v47 = vadd.f32 %v15632_v46, %v6100_v23  ;;  %v5948_v55 = vpop.f32.mrb[215].mxu0  ;;  %v6284_v46 = vadd.f32 %v6283_v27, %v6282_v18  ;;  %v17941_v23 = vld [vmem:[#allocation3 + $0x80] sm:$0xff] }
 0x2a0   : > { %v6147_v21 = vadd.f32 %v6099_v36, %v5948_v55 }
 0x2a1   : > { %6196 = vst.msk [vmem:[#allocation3 + $0xb8] sm:$0xff] %vm171_vm1, %v6148_v47  ;;  %v17943_v47 = vld [vmem:[#allocation3 + $0x90] sm:$0xff] }
 0x2a2   : > { %6195 = vst.msk [vmem:[#allocation3 + $0xb0] sm:$0xff] %vm171_vm1, %v6147_v21  ;;  %v15635_v22 = vpop.f32.mrb[216].mxu0  ;;  %v6111_v21 = vld [vmem:[#allocation3 + $0x110] sm:$0xff] }
 0x2a3   : > { %v6150_v40 = vadd.f32 %v15635_v22, %v6102_v57  ;;  %v5958_v48 = vpop.f32.mrb[217].mxu0  ;;  %v6314_v22 = vsel %vm171_vm1, %v17935_v20, 0.0  ;;  %v6285_v57 = vsel %vm171_vm1, %v17937_v43, 0.0 }
 0x2a4   : > { %v6149_v50 = vadd.f32 %v6101_v44, %v5958_v48  ;;  %v6316_v48 = vsel %vm171_vm1, %v17941_v23, 0.0  ;;  %v6287_v44 = vsel %vm171_vm1, %v17943_v47, 0.0 }
 0x2a5   : > { %6198 = vst.msk [vmem:[#allocation3 + $0xc8] sm:$0xff] %vm171_vm1, %v6150_v40 }
 0x2a6   : > { %6197 = vst.msk [vmem:[#allocation3 + $0xc0] sm:$0xff] %vm171_vm1, %v6149_v50  ;;  %v15638_v51 = vpop.f32.mrb[218].mxu0 }
 0x2a7   : > { %v6152_v60 = vadd.f32 %v15638_v51, %v6104_v19  ;;  %v5968_v25 = vpop.f32.mrb[219].mxu0  ;;  %v6114_v51 = vld [vmem:[#allocation3 + $0x128] sm:$0xff]  ;;  %v6315_v19 = vadd.f32 %v6314_v22, %v6313_v33 }
 0x2a8   : > { %v6151_v62 = vadd.f32 %v6103_v53, %v5968_v25  ;;  %v17955_v25 = vld [vmem:[#allocation3 + $0x98] sm:$0xff]  ;;  %v17957_v53 = vld [vmem:[#allocation3 + $0xa8] sm:$0xff] }
 0x2a9   : > { %6200 = vst.msk [vmem:[#allocation3 + $0xd8] sm:$0xff] %vm171_vm1, %v6152_v60  ;;  %v6286_v60 = vadd.f32 %v6285_v57, %v6284_v46  ;;  %v17959_v52 = vld [vmem:[#allocation3 + $0xb0] sm:$0xff]  ;;  %v6318_v28 = vsel %vm171_vm1, %v17955_v25, 0.0  ;;  %v6289_v7 = vsel %vm171_vm1, %v17957_v53, 0.0 }
 0x2aa   : > { %6199 = vst.msk [vmem:[#allocation3 + $0xd0] sm:$0xff] %vm171_vm1, %v6151_v62  ;;  %v15641_v6 = vpop.f32.mrb[220].mxu0 }
 0x2ab   : > { %v6154_v58 = vadd.f32 %v15641_v6, %v6106_v54  ;;  %v5978_v16 = vpop.f32.mrb[221].mxu0  ;;  %v6113_v54 = vld [vmem:[#allocation3 + $0x120] sm:$0xff] }
 0x2ac   : > { %v6153_v2 = vadd.f32 %v6105_v1, %v5978_v16  ;;  %v6288_v16 = vadd.f32 %v6287_v44, %v6286_v60  ;;  %v17973_v59 = vld [vmem:[#allocation3 + $0xc8] sm:$0xff]  ;;  %v6119_v44 = vld [vmem:[#allocation3 + $0x150] sm:$0xff] }
 0x2ad   : > { %6202 = vst.msk [vmem:[#allocation3 + $0xe8] sm:$0xff] %vm171_vm1, %v6154_v58  ;;  %v6317_v58 = vadd.f32 %v6316_v48, %v6315_v19  ;;  %v6322_v39 = vsel %vm171_vm1, %v17973_v59, 0.0 }
 0x2ae   : > { %6201 = vst.msk [vmem:[#allocation3 + $0xe0] sm:$0xff] %vm171_vm1, %v6153_v2  ;;  %v15644_v8 = vpop.f32.mrb[222].mxu0  ;;  %v17961_v2 = vld [vmem:[#allocation3 + $0xc0] sm:$0xff]  ;;  %v6290_v12 = vadd.f32 %v6289_v7, %v6288_v16 }
 0x2af   : > { %v6156_v56 = vadd.f32 %v15644_v8, %v6108_v37  ;;  %v5988_v9 = vpop.f32.mrb[223].mxu0  ;;  %v6116_v8 = vld [vmem:[#allocation3 + $0x138] sm:$0xff]  ;;  %v6121_v7 = vld [vmem:[#allocation3 + $0x160] sm:$0xff] }
 0x2b0   : > { %v6155_v41 = vadd.f32 %v6107_v11, %v5988_v9  ;;  %v6320_v9 = vsel %vm171_vm1, %v17959_v52, 0.0  ;;  %v6291_v11 = vsel %vm171_vm1, %v17961_v2, 0.0  ;;  %v17975_v17 = vld [vmem:[#allocation3 + $0xd8] sm:$0xff] }
 0x2b1   : > { %6204 = vst.msk [vmem:[#allocation3 + $0xf8] sm:$0xff] %vm171_vm1, %v6156_v56  ;;  %v6115_v56 = vld [vmem:[#allocation3 + $0x130] sm:$0xff]  ;;  %v6293_v18 = vsel %vm171_vm1, %v17975_v17, 0.0 }
 0x2b2   : > { %6203 = vst.msk [vmem:[#allocation3 + $0xf0] sm:$0xff] %vm171_vm1, %v6155_v41  ;;  %v15647_v32 = vpop.f32.mrb[224].mxu0  ;;  %v6319_v41 = vadd.f32 %v6318_v28, %v6317_v58  ;;  %v6122_v58 = vld [vmem:[#allocation3 + $0x168] sm:$0xff] }
 0x2b3   : > { %v6158_v3 = vadd.f32 %v15647_v32, %v6110_v24  ;;  %v5998_v5 = vpop.f32.mrb[225].mxu0  ;;  %v6118_v32 = vld [vmem:[#allocation3 + $0x148] sm:$0xff] }
 0x2b4   : > { %v6157_v13 = vadd.f32 %v6109_v29, %v5998_v5  ;;  %v6321_v24 = vadd.f32 %v6320_v9, %v6319_v41  ;;  %v6124_v41 = vld [vmem:[#allocation3 + $0x178] sm:$0xff] }
 0x2b5   : > { %6206 = vst.msk [vmem:[#allocation3 + $0x108] sm:$0xff] %vm171_vm1, %v6158_v3  ;;  %v6292_v3 = vadd.f32 %v6291_v11, %v6290_v12  ;;  %v17979_v5 = vld [vmem:[#allocation3 + $0xe0] sm:$0xff] }
 0x2b6   : > { %6205 = vst.msk [vmem:[#allocation3 + $0x100] sm:$0xff] %vm171_vm1, %v6157_v13  ;;  %v15650_v49 = vpop.f32.mrb[226].mxu0  ;;  %v6117_v13 = vld [vmem:[#allocation3 + $0x140] sm:$0xff] }
 0x2b7   : > { %v6160_v55 = vadd.f32 %v15650_v49, %v6112_v61  ;;  %v6008_v36 = vpop.f32.mrb[227].mxu0  ;;  %v6324_v61 = vsel %vm171_vm1, %v17979_v5, 0.0 }
 0x2b8   : > { %v6159_v40 = vadd.f32 %v6111_v21, %v6008_v36  ;;  %v6323_v36 = vadd.f32 %v6322_v39, %v6321_v24  ;;  %v6294_v21 = vadd.f32 %v6293_v18, %v6292_v3  ;;  %v17993_v22 = vld [vmem:[#allocation3 + $0xf8] sm:$0xff] }
 0x2b9   : > { %6208 = vst.msk [vmem:[#allocation3 + $0x118] sm:$0xff] %vm171_vm1, %v6160_v55  ;;  %v17981_v29 = vld [vmem:[#allocation3 + $0xf0] sm:$0xff]  ;;  %v6120_v55 = vld [vmem:[#allocation3 + $0x158] sm:$0xff] }
 0x2ba   : > { %6207 = vst.msk [vmem:[#allocation3 + $0x110] sm:$0xff] %vm171_vm1, %v6159_v40  ;;  %v15653_v50 = vpop.f32.mrb[228].mxu0  ;;  %v6295_v33 = vsel %vm171_vm1, %v17981_v29, 0.0 }
 0x2bb   : > { %v6162_v62 = vadd.f32 %v15653_v50, %v6114_v51  ;;  %v6018_v6 = vpop.f32.mrb[229].mxu0  ;;  %v6325_v51 = vadd.f32 %v6324_v61, %v6323_v36  ;;  %v6296_v19 = vadd.f32 %v6295_v33, %v6294_v21 }
 0x2bc   : > { %v6161_v1 = vadd.f32 %v6113_v54, %v6018_v6  ;;  %v17995_v57 = vld [vmem:[#allocation3 + $0x108] sm:$0xff]  ;;  %v6326_v6 = vsel %vm171_vm1, %v17993_v22, 0.0 }
 0x2bd   : > { %6210 = vst.msk [vmem:[#allocation3 + $0x128] sm:$0xff] %vm171_vm1, %v6162_v62  ;;  %v6297_v54 = vsel %vm171_vm1, %v17995_v57, 0.0 }
 0x2be   : > { %6209 = vst.msk [vmem:[#allocation3 + $0x120] sm:$0xff] %vm171_vm1, %v6161_v1  ;;  %v15656_v30 = vpop.f32.mrb[230].mxu0 }
 0x2bf   : > { %v6164_v37 = vadd.f32 %v15656_v30, %v6116_v8  ;;  %v6028_v38 = vpop.f32.mrb[231].mxu0 }
 0x2c0   : > { %v6163_v15 = vadd.f32 %v6115_v56, %v6028_v38  ;;  %v6327_v38 = vadd.f32 %v6326_v6, %v6325_v51  ;;  %v6298_v56 = vadd.f32 %v6297_v54, %v6296_v19 }
 0x2c1   : > { %6212 = vst.msk [vmem:[#allocation3 + $0x138] sm:$0xff] %vm171_vm1, %v6164_v37  ;;  %v17997_v60 = vld [vmem:[#allocation3 + $0x110] sm:$0xff] }
 0x2c2   : > { %6211 = vst.msk [vmem:[#allocation3 + $0x130] sm:$0xff] %vm171_vm1, %v6163_v15  ;;  %v15659_v42 = vpop.f32.mrb[232].mxu0  ;;  %v6328_v30 = vsel %vm171_vm1, %v17997_v60, 0.0 }
 0x2c3   : > { %v6166_v14 = vadd.f32 %v15659_v42, %v6118_v32  ;;  %v6038_v27 = vpop.f32.mrb[233].mxu0  ;;  %v6329_v12 = vadd.f32 %v6328_v30, %v6327_v38 }
 0x2c4   : > { %v6165_v49 = vadd.f32 %v6117_v13, %v6038_v27  ;;  %v18011_v9 = vld [vmem:[#allocation3 + $0x128] sm:$0xff] }
 0x2c5   : > { %6214 = vst.msk [vmem:[#allocation3 + $0x148] sm:$0xff] %vm171_vm1, %v6166_v14  ;;  %v17999_v62 = vld [vmem:[#allocation3 + $0x120] sm:$0xff]  ;;  %v6123_v14 = vld [vmem:[#allocation3 + $0x170] sm:$0xff]  ;;  %v6330_v27 = vsel %vm171_vm1, %v18011_v9, 0.0 }
 0x2c6   : > { %6213 = vst.msk [vmem:[#allocation3 + $0x140] sm:$0xff] %vm171_vm1, %v6165_v49  ;;  %v15662_v46 = vpop.f32.mrb[234].mxu0  ;;  %v6299_v8 = vsel %vm171_vm1, %v17999_v62, 0.0  ;;  %v6331_v33 = vadd.f32 %v6330_v27, %v6329_v12 }
 0x2c7   : > { %v6168_v40 = vadd.f32 %v15662_v46, %v6120_v55  ;;  %v6048_v48 = vpop.f32.mrb[235].mxu0  ;;  %v6300_v42 = vadd.f32 %v6299_v8, %v6298_v56  ;;  %v6996_v56 = vld [vmem:[%s20761_s2] sm:$0xf] }
 0x2c8   : > { %v6167_v50 = vadd.f32 %v6119_v44, %v6048_v48  ;;  %v18013_v11 = vld [vmem:[#allocation3 + $0x138] sm:$0xff]  ;;  %15669 = vmatprep.subr.msk.mxu1 %vm696_vm0, %v6996_v56 }
 0x2c9   : > { %6216 = vst.msk [vmem:[#allocation3 + $0x158] sm:$0xff] %vm171_vm1, %v6168_v40  ;;  %v6301_v13 = vsel %vm171_vm1, %v18013_v11, 0.0  ;;  %15670 = vmatpush3.msk.msra.mxu1 %vm696_vm0, %v6996_v56 }
 0x2ca   : > { %6215 = vst.msk [vmem:[#allocation3 + $0x150] sm:$0xff] %vm171_vm1, %v6167_v50  ;;  %v15665_v1 = vpop.f32.mrb[236].mxu0  ;;  %v6302_v46 = vadd.f32 %v6301_v13, %v6300_v42 }
 0x2cb   : > { %v6170_v16 = vadd.f32 %v15665_v1, %v6122_v58  ;;  %v6058_v28 = vpop.f32.mrb[237].mxu0 }
 0x2cc   : > { %v6169_v37 = vadd.f32 %v6121_v7, %v6058_v28 }
 0x2cd   : > { %6218 = vst.msk [vmem:[#allocation3 + $0x168] sm:$0xff] %vm171_vm1, %v6170_v16  ;;  %v18017_v32 = vld [vmem:[#allocation3 + $0x140] sm:$0xff] }
 0x2ce   : > { %6217 = vst.msk [vmem:[#allocation3 + $0x160] sm:$0xff] %vm171_vm1, %v6169_v37  ;;  %v15668_v15 = vpop.f32.mrb[238].mxu0  ;;  %v6332_v49 = vsel %vm171_vm1, %v18017_v32, 0.0 }
 0x2cf   : > { %v6172_v24 = vadd.f32 %v15668_v15, %v6124_v41  ;;  %v6068_v3 = vpop.f32.mrb[239].mxu0  ;;  %v6333_v21 = vadd.f32 %v6332_v49, %v6331_v33  ;;  %v13717_v15 = vld [vmem:[%s20761_s2 + $0x4] sm:$0xf] }
 0x2d0   : > { %v6171_v39 = vadd.f32 %v6123_v14, %v6068_v3  ;;  %v18031_v55 = vld [vmem:[#allocation3 + $0x158] sm:$0xff]  ;;  %15743 = vmatprep.subr.msk.mxu0 %vm696_vm0, %v13717_v15 }
 0x2d1   : > { %v18023_v18 = vld [vmem:[#allocation3 + $0x150] sm:$0xff]  ;;  %6220 = vst.msk [vmem:[#allocation3 + $0x178] sm:$0xff] %vm171_vm1, %v6172_v24  ;;  %v6334_v48 = vsel %vm171_vm1, %v18031_v55, 0.0  ;;  %15744 = vmatpush3.msk.msra.mxu0 %vm696_vm0, %v13717_v15  ;;  %v18068_v24 = vld [vmem:[%s20761_s2 + $0x8] sm:$0xf] }
 0x2d2   : > { %v6303_v61 = vsel %vm171_vm1, %v18023_v18, 0.0  ;;  %6219 = vst.msk [vmem:[#allocation3 + $0x170] sm:$0xff] %vm171_vm1, %v6171_v39  ;;  %v6335_v50 = vadd.f32 %v6334_v48, %v6333_v21  ;;  %20806 = vst [vmem:[#allocation4_spill] sm:$0xff] %v18068_v24  ;;  %15817 = vmatprep.subr.msk.mxu1 %vm696_vm0, %v18068_v24 }
 0x2d3   : > { %v6304_v40 = vadd.f32 %v6303_v61, %v6302_v46 }
 0x2d4   : > { %v18033_v36 = vld [vmem:[#allocation3 + $0x168] sm:$0xff] }
 0x2d5   : > { %v6305_v44 = vsel %vm171_vm1, %v18033_v36, 0.0 }
 0x2d6   : > { %v6306_v51 = vadd.f32 %v6305_v44, %v6304_v40 }
 0x2d8   : > { %v6372_v1 = vsel %vm171_vm1, %v6306_v51, 0.0 }
 0x2d9   : > { %v18039_v19 = vld [vmem:[#allocation3 + $0x170] sm:$0xff] }
 0x2da   : > { %v6336_v6 = vsel %vm171_vm1, %v18039_v19, 0.0 }
 0x2db   : > { %v6337_v54 = vadd.f32 %v6336_v6, %v6335_v50 }
 0x2dd   : > { %v6373_v58 = vsel %vm171_vm1, %v6337_v54, 0.0 }
 0x2de   : > { %v6374_v16 = vadd.f32 %v6373_v58, %v6372_v1 }
 0x2e0   : > { %v6377_v28 = vrot.slane %v6374_v16, 4 }
 0x2e2   : > { %v6378_v7 = vadd.f32 %v6377_v28, %v6374_v16 }
 0x2e4   : > { %v6379_v30 = vrot.slane %v6378_v7, 2 }
 0x2e6   : > { %v6380_v8 = vadd.f32 %v6379_v30, %v6378_v7 }
 0x2e8   : > { %v6381_v37 = vrot.slane %v6380_v8, 1 }
 0x2ea   : > { %v6382_v38 = vadd.f32 %v6381_v37, %v6380_v8 }
 0x2ec   : > { %v18054_v41 = vmul.f32 0.00390625, %v6382_v38 }
 0x2ee   : > { %v18059_v12 = vsub.f32 %v17897_v26, %v18054_v41  ;;  %v18063_v42 = vsub.f32 %v17893_v10, %v18054_v41  ;;  %v18072_v3 = vsub.f32 %v17901_v45, %v18054_v41  ;;  %v18078_v26 = vsub.f32 %v17905_v4, %v18054_v41 }
 0x2ef   : > { %v18082_v10 = vsub.f32 %v17899_v63, %v18054_v41  ;;  %v18086_v14 = vsub.f32 %v17917_v31, %v18054_v41  ;;  %v18094_v13 = vsub.f32 %v17915_v35, %v18054_v41  ;;  %v18098_v4 = vsub.f32 %v17923_v0, %v18054_v41 }
 0x2f0   : > { %v6432_v27 = vmul.f32 %v18059_v12, %v18059_v12  ;;  %v6435_v45 = vmul.f32 %v18063_v42, %v18063_v42  ;;  %v6438_v63 = vmul.f32 %v18072_v3, %v18072_v3  ;;  %v18104_v31 = vsub.f32 %v17921_v34, %v18054_v41 }
 0x2f1   : > { %v18108_v39 = vsub.f32 %v17937_v43, %v18054_v41  ;;  %v6433_v49 = vmul.f32 %v18078_v26, %v18078_v26  ;;  %v6436_v35 = vmul.f32 %v18082_v10, %v18082_v10  ;;  %v6441_v0 = vmul.f32 %v18086_v14, %v18086_v14 }
 0x2f2   : > { %v6480_v61 = vsel %vm171_vm1, %v6432_v27, 0.0  ;;  %v6481_v33 = vsel %vm171_vm1, %v6435_v45, 0.0  ;;  %v18120_v34 = vsub.f32 %v17935_v20, %v18054_v41  ;;  %v18124_v43 = vsub.f32 %v17943_v47, %v18054_v41 }
 0x2f3   : > { %v6482_v46 = vadd.f32 %v6481_v33, %v6480_v61  ;;  %v6439_v21 = vmul.f32 %v18094_v13, %v18094_v13  ;;  %v6444_v40 = vmul.f32 %v18098_v4, %v18098_v4  ;;  %v6483_v48 = vsel %vm171_vm1, %v6438_v63, 0.0 }
 0x2f4   : > { %v18133_v44 = vsub.f32 %v17941_v23, %v18054_v41  ;;  %v18137_v20 = vsub.f32 %v17957_v53, %v18054_v41  ;;  %v6442_v47 = vmul.f32 %v18104_v31, %v18104_v31  ;;  %v6447_v51 = vmul.f32 %v18108_v39, %v18108_v39 }
 0x2f5   : > { %v6484_v50 = vadd.f32 %v6483_v48, %v6482_v46  ;;  %v6485_v6 = vsel %vm171_vm1, %v6441_v0, 0.0  ;;  %v6511_v54 = vsel %vm171_vm1, %v6433_v49, 0.0  ;;  %v6512_v1 = vsel %vm171_vm1, %v6436_v35, 0.0 }
 0x2f6   : > { %v18148_v23 = vsub.f32 %v17955_v25, %v18054_v41  ;;  %v18152_v53 = vsub.f32 %v17961_v2, %v18054_v41  ;;  %v6513_v16 = vadd.f32 %v6512_v1, %v6511_v54  ;;  %v6445_v28 = vmul.f32 %v18120_v34, %v18120_v34 }
 0x2f7   : > { %v6486_v58 = vadd.f32 %v6485_v6, %v6484_v50  ;;  %v6450_v7 = vmul.f32 %v18124_v43, %v18124_v43  ;;  %v6487_v30 = vsel %vm171_vm1, %v6444_v40, 0.0  ;;  %v6514_v8 = vsel %vm171_vm1, %v6439_v21, 0.0 }
 0x2f8   : > { %v18162_v25 = vsub.f32 %v17959_v52, %v18054_v41  ;;  %v18166_v2 = vsub.f32 %v17975_v17, %v18054_v41  ;;  %v6515_v38 = vadd.f32 %v6514_v8, %v6513_v16  ;;  %v6448_v56 = vmul.f32 %v18133_v44, %v18133_v44 }
 0x2f9   : > { %v6488_v37 = vadd.f32 %v6487_v30, %v6486_v58  ;;  %v6453_v15 = vmul.f32 %v18137_v20, %v18137_v20  ;;  %v6489_v27 = vsel %vm171_vm1, %v6447_v51, 0.0  ;;  %v6516_v45 = vsel %vm171_vm1, %v6442_v47, 0.0 }
 0x2fa   : > { %v18176_v52 = vsub.f32 %v17973_v59, %v18054_v41  ;;  %v18180_v17 = vsub.f32 %v17981_v29, %v18054_v41  ;;  %v6517_v49 = vadd.f32 %v6516_v45, %v6515_v38  ;;  %v6451_v35 = vmul.f32 %v18148_v23, %v18148_v23 }
 0x2fb   : > { %v6490_v63 = vadd.f32 %v6489_v27, %v6488_v37  ;;  %v6456_v0 = vmul.f32 %v18152_v53, %v18152_v53  ;;  %v6491_v61 = vsel %vm171_vm1, %v6450_v7, 0.0  ;;  %v6518_v33 = vsel %vm171_vm1, %v6445_v28, 0.0 }
 0x2fc   : > { %v18190_v59 = vsub.f32 %v17979_v5, %v18054_v41  ;;  %v18194_v29 = vsub.f32 %v17995_v57, %v18054_v41  ;;  %v6519_v21 = vadd.f32 %v6518_v33, %v6517_v49  ;;  %v6454_v40 = vmul.f32 %v18162_v25, %v18162_v25 }
 0x2fd   : > { %v6492_v46 = vadd.f32 %v6491_v61, %v6490_v63  ;;  %v6459_v48 = vmul.f32 %v18166_v2, %v18166_v2  ;;  %v6493_v47 = vsel %vm171_vm1, %v6453_v15, 0.0  ;;  %v6520_v50 = vsel %vm171_vm1, %v6448_v56, 0.0 }
 0x2fe   : > { %v18204_v5 = vsub.f32 %v17993_v22, %v18054_v41  ;;  %v18208_v57 = vsub.f32 %v17999_v62, %v18054_v41  ;;  %v6521_v6 = vadd.f32 %v6520_v50, %v6519_v21  ;;  %v6457_v54 = vmul.f32 %v18176_v52, %v18176_v52 }
 0x2ff   : > { %v6494_v51 = vadd.f32 %v6493_v47, %v6492_v46  ;;  %v6462_v1 = vmul.f32 %v18180_v17, %v18180_v17  ;;  %v6495_v58 = vsel %vm171_vm1, %v6456_v0, 0.0  ;;  %v6522_v16 = vsel %vm171_vm1, %v6451_v35, 0.0 }
 0x300   : > { %v18218_v22 = vsub.f32 %v17997_v60, %v18054_v41  ;;  %v18222_v62 = vsub.f32 %v18013_v11, %v18054_v41  ;;  %v6523_v7 = vadd.f32 %v6522_v16, %v6521_v6  ;;  %v6460_v30 = vmul.f32 %v18190_v59, %v18190_v59 }
 0x301   : > { %v6496_v28 = vadd.f32 %v6495_v58, %v6494_v51  ;;  %v6465_v8 = vmul.f32 %v18194_v29, %v18194_v29  ;;  %v6497_v37 = vsel %vm171_vm1, %v6459_v48, 0.0  ;;  %v6524_v38 = vsel %vm171_vm1, %v6454_v40, 0.0 }
 0x302   : > { %v18232_v60 = vsub.f32 %v18011_v9, %v18054_v41  ;;  %v18236_v11 = vsub.f32 %v18023_v18, %v18054_v41  ;;  %v6525_v15 = vadd.f32 %v6524_v38, %v6523_v7  ;;  %v6463_v27 = vmul.f32 %v18204_v5, %v18204_v5 }
 0x303   : > { %v6498_v56 = vadd.f32 %v6497_v37, %v6496_v28  ;;  %v6468_v45 = vmul.f32 %v18208_v57, %v18208_v57  ;;  %v6499_v63 = vsel %vm171_vm1, %v6462_v1, 0.0  ;;  %v6526_v49 = vsel %vm171_vm1, %v6457_v54, 0.0 }
 0x304   : > { %v18246_v9 = vsub.f32 %v18017_v32, %v18054_v41  ;;  %v6429_v18 = vsub.f32 %v18033_v36, %v18054_v41  ;;  %v6527_v0 = vadd.f32 %v6526_v49, %v6525_v15  ;;  %v6466_v61 = vmul.f32 %v18218_v22, %v18218_v22 }
 0x305   : > { %v6500_v35 = vadd.f32 %v6499_v63, %v6498_v56  ;;  %v6471_v33 = vmul.f32 %v18222_v62, %v18222_v62  ;;  %v6501_v46 = vsel %vm171_vm1, %v6465_v8, 0.0  ;;  %v6528_v21 = vsel %vm171_vm1, %v6460_v30, 0.0 }
 0x306   : > { %v18258_v40 = vsub.f32 %v18031_v55, %v18054_v41  ;;  %v6529_v48 = vadd.f32 %v6528_v21, %v6527_v0  ;;  %v6469_v36 = vmul.f32 %v18232_v60, %v18232_v60  ;;  %v6474_v47 = vmul.f32 %v18236_v11, %v18236_v11 }
 0x307   : > { %v6502_v32 = vadd.f32 %v6501_v46, %v6500_v35  ;;  %v6503_v50 = vsel %vm171_vm1, %v6468_v45, 0.0  ;;  %v6530_v51 = vsel %vm171_vm1, %v6463_v27, 0.0  ;;  %v6430_v6 = vsub.f32 %v18039_v19, %v18054_v41 }
 0x308   : > { %v6531_v1 = vadd.f32 %v6530_v51, %v6529_v48  ;;  %v6472_v55 = vmul.f32 %v18246_v9, %v18246_v9  ;;  %v6477_v58 = vmul.f32 %v6429_v18, %v6429_v18  ;;  %v6505_v16 = vsel %vm171_vm1, %v6471_v33, 0.0 }
 0x309   : > { %v6504_v54 = vadd.f32 %v6503_v50, %v6502_v32  ;;  %v6532_v28 = vsel %vm171_vm1, %v6466_v61, 0.0  ;;  %v6475_v8 = vmul.f32 %v18258_v40, %v18258_v40  ;;  %v6507_v37 = vsel %vm171_vm1, %v6474_v47, 0.0 }
 0x30a   : > { %v6533_v30 = vadd.f32 %v6532_v28, %v6531_v1  ;;  %v6534_v38 = vsel %vm171_vm1, %v6469_v36, 0.0  ;;  %v6478_v56 = vmul.f32 %v6430_v6, %v6430_v6  ;;  %v6509_v15 = vsel %vm171_vm1, %v6477_v58, 0.0 }
 0x30b   : > { %v6506_v7 = vadd.f32 %v6505_v16, %v6504_v54  ;;  %v6536_v27 = vsel %vm171_vm1, %v6472_v55, 0.0  ;;  %v6538_v49 = vsel %vm171_vm1, %v6475_v8, 0.0 }
 0x30c   : > { %v6535_v41 = vadd.f32 %v6534_v38, %v6533_v30  ;;  %v6540_v0 = vsel %vm171_vm1, %v6478_v56, 0.0 }
 0x30d   : > { %v6508_v19 = vadd.f32 %v6507_v37, %v6506_v7 }
 0x30e   : > { %v6537_v63 = vadd.f32 %v6536_v27, %v6535_v41 }
 0x30f   : > { %v6510_v45 = vadd.f32 %v6509_v15, %v6508_v19 }
 0x310   : > { %v6539_v35 = vadd.f32 %v6538_v49, %v6537_v63 }
 0x311   : > { %v6576_v33 = vsel %vm171_vm1, %v6510_v45, 0.0 }
 0x312   : > { %v6541_v61 = vadd.f32 %v6540_v0, %v6539_v35 }
 0x314   : > { %v6577_v46 = vsel %vm171_vm1, %v6541_v61, 0.0 }
 0x315   : > { %v6578_v21 = vadd.f32 %v6577_v46, %v6576_v33 }
 0x317   : > { %v6581_v32 = vrot.slane %v6578_v21, 4 }
 0x319   : > { %v6582_v48 = vadd.f32 %v6581_v32, %v6578_v21 }
 0x31b   : > { %v6583_v36 = vrot.slane %v6582_v48, 2 }
 0x31d   : > { %v6584_v47 = vadd.f32 %v6583_v36, %v6582_v48 }
 0x31f   : > { %v6585_v50 = vrot.slane %v6584_v47, 1 }
 0x321   : > { %v6586_v51 = vadd.f32 %v6585_v50, %v6584_v47 }
 0x323   : > { %v6587_v54 = vmul.f32 0.00390625, %v6586_v51 }
 0x325   : > { %v6588_v1 = vadd.f32 1e-05, %v6587_v54  ;;  %v18404_v54 = vld [vmem:[%s20761_s2 + $0xc] sm:$0xf] }
 0x326   : > { %20807 = vst [vmem:[#allocation5_spill] sm:$0xff] %v18404_v54  ;;  %15891 = vmatprep.subr.msk.mxu0 %vm696_vm0, %v18404_v54 }
 0x327   : > { %16344 = vrsqrt.f32 %v6588_v1 }
 0x331   : > { %v16345_v55 = vpop.eup %16344 }
 0x332   : > { %v6620_v58 = vmul.f32 %v16345_v55, %v6429_v18  ;;  %v6621_v16 = vmul.f32 %v16345_v55, %v6430_v6  ;;  %v18283_v28 = vmul.f32 %v16345_v55, %v18059_v12  ;;  %v18286_v7 = vmul.f32 %v16345_v55, %v18078_v26 }
 0x333   : > { %v18289_v30 = vmul.f32 %v16345_v55, %v18063_v42  ;;  %v18292_v8 = vmul.f32 %v16345_v55, %v18082_v10  ;;  %v18295_v37 = vmul.f32 %v16345_v55, %v18072_v3  ;;  %v18298_v38 = vmul.f32 %v16345_v55, %v18094_v13 }
 0x334   : > { %v6652_v18 = vmax.f32 %v6620_v58, 0.0  ;;  %v6653_v6 = vmax.f32 %v6621_v16, 0.0  ;;  %v18301_v12 = vmul.f32 %v16345_v55, %v18086_v14  ;;  %v18304_v26 = vmul.f32 %v16345_v55, %v18104_v31 }
 0x335   : > { %v18307_v42 = vmul.f32 %v16345_v55, %v18098_v4  ;;  %v18310_v10 = vmul.f32 %v16345_v55, %v18120_v34  ;;  %v18313_v3 = vmul.f32 %v16345_v55, %v18108_v39  ;;  %v18316_v13 = vmul.f32 %v16345_v55, %v18133_v44 }
 0x336   : > { %v18318_v19 = vrot.slane %v6652_v18, 7  ;;  %v6764_v41 = vrot.slane %v6653_v6, 7  ;;  %v6829_v14 = vrot.slane %v6653_v6, 5  ;;  %v18321_v56 = vmul.f32 %v16345_v55, %v18124_v43 }
 0x337   : > { %v18324_v31 = vmul.f32 %v16345_v55, %v18148_v23  ;;  %v18327_v4 = vmul.f32 %v16345_v55, %v18137_v20  ;;  %v18330_v34 = vmul.f32 %v16345_v55, %v18162_v25  ;;  %v18333_v39 = vmul.f32 %v16345_v55, %v18152_v53 }
 0x338   : > { %v6765_v44 = vsel %vm271_vm2, %v18318_v19, %v6764_v41  ;;  %v6877_v15 = vsel %vm271_vm2, %v6764_v41, %v6829_v14  ;;  %v18339_v43 = vmul.f32 %v16345_v55, %v18176_v52  ;;  %v18342_v23 = vmul.f32 %v16345_v55, %v18166_v2 }
 0x339   : > { %v6893_v20 = vsel %vm432_vm3, %v6877_v15, 0.0  ;;  %v18346_v27 = vmul.f32 %v16345_v55, %v18190_v59  ;;  %v18349_v25 = vmul.f32 %v16345_v55, %v18180_v17  ;;  %v18352_v53 = vmul.f32 %v16345_v55, %v18204_v5  ;;  %6940 = vst.msk [vmem:[#allocation2 + $0x188] sm:$0xff] %vm171_vm1, %v6765_v44 }
 0x33a   : > { %v18356_v45 = vmul.f32 %v16345_v55, %v18194_v29  ;;  %v18359_v52 = vmul.f32 %v16345_v55, %v18218_v22  ;;  %v18362_v2 = vmul.f32 %v16345_v55, %v18208_v57  ;;  %v18365_v59 = vmul.f32 %v16345_v55, %v18232_v60  ;;  %6941 = vst.msk [vmem:[#allocation2 + $0x190] sm:$0xff] %vm171_vm1, %v6893_v20 }
 0x33b   : > { %v18369_v17 = vmul.f32 %v16345_v55, %v18222_v62  ;;  %v18372_v5 = vmul.f32 %v16345_v55, %v18246_v9  ;;  %v18375_v29 = vmul.f32 %v16345_v55, %v18236_v11  ;;  %v18378_v22 = vmul.f32 %v16345_v55, %v18258_v40 }
 0x33c   : > { %v18380_v63 = vrot.slane %v6652_v18, 1  ;;  %v6622_v57 = vmax.f32 %v18283_v28, 0.0  ;;  %v20766_v60 = vmax.f32 %v18286_v7, 0.0  ;;  %v6624_v49 = vmax.f32 %v18289_v30, 0.0 }
 0x33d   : > { %v20768_v62 = vmax.f32 %v18292_v8, 0.0  ;;  %v6626_v35 = vmax.f32 %v18295_v37, 0.0  ;;  %v20767_v9 = vmax.f32 %v18298_v38, 0.0  ;;  %v6628_v11 = vmax.f32 %v18301_v12, 0.0 }
 0x33e   : > { %v20769_v0 = vmax.f32 %v18304_v26, 0.0  ;;  %v6630_v40 = vmax.f32 %v18307_v42, 0.0  ;;  %v20772_v61 = vmax.f32 %v18310_v10, 0.0  ;;  %v6632_v33 = vmax.f32 %v18313_v3, 0.0 }
 0x33f   : > { %v20771_v46 = vmax.f32 %v18316_v13, 0.0  ;;  %v6634_v21 = vmax.f32 %v18321_v56, 0.0  ;;  %v20773_v32 = vmax.f32 %v18324_v31, 0.0  ;;  %v6636_v48 = vmax.f32 %v18327_v4, 0.0 }
 0x340   : > { %v6638_v47 = vmax.f32 %v18333_v39, 0.0  ;;  %v6640_v51 = vmax.f32 %v18342_v23, 0.0  ;;  %v6642_v55 = vmax.f32 %v18349_v25, 0.0  ;;  %v20763_v16 = vmax.f32 %v18356_v45, 0.0 }
 0x341   : > { %v6646_v30 = vmax.f32 %v18362_v2, 0.0  ;;  %v20764_v18 = vmax.f32 %v18369_v17, 0.0  ;;  %v20765_v12 = vmax.f32 %v18375_v29, 0.0  ;;  %v18419_v3 = vrot.slane %v6622_v57, 1 }
 0x342   : > { %v18421_v41 = vrot.slane %v6624_v49, 1  ;;  %v18423_v14 = vrot.slane %v6626_v35, 1  ;;  %v18425_v56 = vrot.slane %v6628_v11, 1  ;;  %v18427_v4 = vrot.slane %v6630_v40, 1 }
 0x343   : > { %v18429_v39 = vrot.slane %v6632_v33, 1  ;;  %v18431_v44 = vrot.slane %v6634_v21, 1  ;;  %v18433_v15 = vrot.slane %v6636_v48, 1  ;;  %v18435_v23 = vrot.slane %v6638_v47, 1 }
 0x344   : > { %20808 = vst [vmem:[#allocation6_spill] sm:$0xff] %v18421_v41  ;;  %v18437_v20 = vrot.slane %v6640_v51, 1  ;;  %v18439_v25 = vrot.slane %v6642_v55, 1  ;;  %v18443_v2 = vrot.slane %v20763_v16, 1  ;;  %v18445_v42 = vrot.slane %v6646_v30, 1 }
 0x345   : > { %v18449_v6 = vrot.slane %v20764_v18, 1  ;;  %v18453_v37 = vrot.slane %v20765_v12, 1  ;;  %v18455_v28 = vrot.slane %v6622_v57, 7  ;;  %v18459_v58 = vrot.slane %v20766_v60, 7 }
 0x346   : > { %v18461_v1 = vrot.slane %v6624_v49, 7  ;;  %v18465_v16 = vrot.slane %v20768_v62, 7  ;;  %v18467_v50 = vrot.slane %v6626_v35, 7  ;;  %v18471_v18 = vrot.slane %v20767_v9, 7 }
 0x347   : > { %v6720_v57 = vsel %vm271_vm2, %v18455_v28, %v18459_v58  ;;  %v18476_v12 = vrot.slane %v6628_v11, 7  ;;  %v18480_v49 = vrot.slane %v20769_v0, 7  ;;  %v18482_v60 = vrot.slane %v6630_v40, 7 }
 0x348   : > { %20809 = vst [vmem:[#allocation7_spill] sm:$0xff] %v18461_v1  ;;  %v6723_v35 = vsel %vm271_vm2, %v18461_v1, %v18465_v16  ;;  %v6726_v9 = vsel %vm271_vm2, %v18467_v50, %v18471_v18  ;;  %v18492_v62 = vrot.slane %v20772_v61, 7  ;;  %v18494_v11 = vrot.slane %v6632_v33, 7  ;;  %6895 = vst.msk [vmem:[#allocation2 + $0x20] sm:$0xff] %vm171_vm1, %v6720_v57 }
 0x349   : > { %v6729_v40 = vsel %vm271_vm2, %v18476_v12, %v18480_v49  ;;  %v18502_v0 = vrot.slane %v20771_v46, 7  ;;  %v18504_v36 = vrot.slane %v6634_v21, 7  ;;  %v18508_v54 = vrot.slane %v20773_v32, 7  ;;  %6898 = vst.msk [vmem:[#allocation2 + $0x38] sm:$0xff] %vm171_vm1, %v6723_v35  ;;  %6901 = vst.msk [vmem:[#allocation2 + $0x50] sm:$0xff] %vm171_vm1, %v6726_v9 }
 0x34a   : > { %20810 = vst [vmem:[#allocation8_spill] sm:$0xff] %v18492_v62  ;;  %6943 = vst.msk [vmem:[#allocation2 + $0x8] sm:$0xff] %vm171_vm1, %v6723_v35  ;;  %v6732_v33 = vsel %vm271_vm2, %v18482_v60, %v18492_v62  ;;  %v18516_v57 = vrot.slane %v6636_v48, 7  ;;  %v20813_v46 = vmax.f32 %v18330_v34, 0.0  ;;  %v6742_v61 = vrot.slane %v6638_v47, 7 }
 0x34b   : > { %20811 = vst [vmem:[#allocation9_spill] sm:$0xff] %v18502_v0  ;;  %20812 = vst [vmem:[#allocation10_spill] sm:$0xff] %v18508_v54  ;;  %v6735_v32 = vsel %vm271_vm2, %v18494_v11, %v18502_v0  ;;  %v6738_v9 = vsel %vm271_vm2, %v18504_v36, %v18508_v54  ;;  %v20815_v35 = vmax.f32 %v18339_v43, 0.0  ;;  %v6745_v48 = vrot.slane %v6640_v51, 7 }
 0x34c   : > { %v18520_v21 = vrot.slane %v20813_v46, 7  ;;  %6904 = vst.msk [vmem:[#allocation2 + $0x68] sm:$0xff] %vm171_vm1, %v6729_v40  ;;  %6907 = vst.msk [vmem:[#allocation2 + $0x80] sm:$0xff] %vm171_vm1, %v6732_v33  ;;  %v20817_v47 = vmax.f32 %v18346_v27, 0.0  ;;  %v6748_v41 = vrot.slane %v6642_v55, 7  ;;  %v20819_v1 = vmax.f32 %v18352_v53, 0.0 }
 0x34d   : > { %v18531_v24 = vrot.slane %v20815_v35, 7  ;;  %6910 = vst.msk [vmem:[#allocation2 + $0x98] sm:$0xff] %vm171_vm1, %v6735_v32  ;;  %6913 = vst.msk [vmem:[#allocation2 + $0xb0] sm:$0xff] %vm171_vm1, %v6738_v9  ;;  %v20821_v33 = vmax.f32 %v18356_v45, 0.0  ;;  %v20824_v55 = vmax.f32 %v18365_v59, 0.0  ;;  %v20826_v45 = vmax.f32 %v18369_v17, 0.0 }
 0x34e   : > { %20814 = vst [vmem:[#allocation11_spill] sm:$0xff] %v18520_v21  ;;  %v6741_v46 = vsel %vm271_vm2, %v18516_v57, %v18520_v21  ;;  %v18539_v40 = vrot.slane %v20817_v47, 7  ;;  %v18543_v0 = vrot.slane %v20819_v1, 7  ;;  %v20822_v21 = vmax.f32 %v18359_v52, 0.0 }
 0x34f   : > { %20816 = vst [vmem:[#allocation12_spill] sm:$0xff] %v18531_v24  ;;  %v6744_v51 = vsel %vm271_vm2, %v6742_v61, %v18531_v24  ;;  %v6751_v35 = vrot.slane %v20821_v33, 7  ;;  %v6754_v47 = vrot.slane %v6646_v30, 7  ;;  %6916 = vst.msk [vmem:[#allocation2 + $0xc8] sm:$0xff] %vm171_vm1, %v6741_v46  ;;  %v18562_v9 = vrot.slane %v20824_v55, 7 }
 0x350   : > { %20818 = vst [vmem:[#allocation13_spill] sm:$0xff] %v18539_v40  ;;  %20820 = vst [vmem:[#allocation14_spill] sm:$0xff] %v18543_v0  ;;  %v18553_v54 = vrot.slane %v20822_v21, 7  ;;  %v6747_v1 = vsel %vm271_vm2, %v6745_v48, %v18539_v40  ;;  %v6750_v32 = vsel %vm271_vm2, %v6748_v41, %v18543_v0  ;;  %v6757_v33 = vrot.slane %v20826_v45, 7 }
 0x351   : > { %20825 = vst [vmem:[#allocation16_spill] sm:$0xff] %v18562_v9  ;;  %6919 = vst.msk [vmem:[#allocation2 + $0xe0] sm:$0xff] %vm171_vm1, %v6744_v51  ;;  %v20827_v21 = vmax.f32 %v18372_v5, 0.0  ;;  %v20829_v40 = vmax.f32 %v18375_v29, 0.0  ;;  %v20830_v0 = vmax.f32 %v18378_v22, 0.0  ;;  %v6756_v17 = vsel %vm271_vm2, %v6754_v47, %v18562_v9 }
 0x352   : > { %20823 = vst [vmem:[#allocation15_spill] sm:$0xff] %v18553_v54  ;;  %v6753_v30 = vsel %vm271_vm2, %v6751_v35, %v18553_v54  ;;  %6922 = vst.msk [vmem:[#allocation2 + $0xf8] sm:$0xff] %vm171_vm1, %v6747_v1  ;;  %v20832_v51 = vmax.f32 %v18286_v7, 0.0  ;;  %v20833_v45 = vmax.f32 %v18292_v8, 0.0  ;;  %v20834_v29 = vmax.f32 %v18298_v38, 0.0 }
 0x353   : > { %v18571_v46 = vrot.slane %v20827_v21, 7  ;;  %v6760_v24 = vrot.slane %v20829_v40, 7  ;;  %v18577_v62 = vrot.slane %v20830_v0, 7  ;;  %6925 = vst.msk [vmem:[#allocation2 + $0x110] sm:$0xff] %vm171_vm1, %v6750_v32  ;;  %6928 = vst.msk [vmem:[#allocation2 + $0x128] sm:$0xff] %vm171_vm1, %v6753_v30  ;;  %v20835_v32 = vmax.f32 %v18304_v26, 0.0 }
 0x354   : > { %v6814_v55 = vrot.slane %v20832_v51, 5  ;;  %v6815_v21 = vrot.slane %v20833_v45, 5  ;;  %v6816_v40 = vrot.slane %v20834_v29, 5  ;;  %v20836_v7 = vmax.f32 %v18310_v10, 0.0  ;;  %6931 = vst.msk [vmem:[#allocation2 + $0x140] sm:$0xff] %vm171_vm1, %v6756_v17 }
 0x355   : > { %20828 = vst [vmem:[#allocation17_spill] sm:$0xff] %v18571_v46  ;;  %20831 = vst [vmem:[#allocation18_spill] sm:$0xff] %v18577_v62  ;;  %v6759_v0 = vsel %vm271_vm2, %v6757_v33, %v18571_v46  ;;  %v6762_v1 = vsel %vm271_vm2, %v6760_v24, %v18577_v62  ;;  %v6817_v9 = vrot.slane %v20835_v32, 5  ;;  %v20837_v8 = vmax.f32 %v18316_v13, 0.0 }
 0x356   : > { %v6818_v51 = vrot.slane %v20836_v7, 5  ;;  %v20838_v45 = vmax.f32 %v18324_v31, 0.0  ;;  %v20839_v29 = vmax.f32 %v18330_v34, 0.0  ;;  %v20840_v54 = vmax.f32 %v18339_v43, 0.0  ;;  %6934 = vst.msk [vmem:[#allocation2 + $0x158] sm:$0xff] %vm171_vm1, %v6759_v0  ;;  %6937 = vst.msk [vmem:[#allocation2 + $0x170] sm:$0xff] %vm171_vm1, %v6762_v1 }
 0x357   : > { %v6819_v38 = vrot.slane %v20837_v8, 5  ;;  %6946 = vst.msk [vmem:[#allocation2 + $0x1a0] sm:$0xff] %vm171_vm1, %v6762_v1  ;;  %v20841_v26 = vmax.f32 %v18346_v27, 0.0  ;;  %v20842_v13 = vmax.f32 %v18352_v53, 0.0  ;;  %v20843_v31 = vmax.f32 %v18359_v52, 0.0 }
 0x358   : > { %v6820_v30 = vrot.slane %v20838_v45, 5  ;;  %v6821_v46 = vrot.slane %v20839_v29, 5  ;;  %v6822_v62 = vrot.slane %v20840_v54, 5  ;;  %v20844_v34 = vmax.f32 %v18365_v59, 0.0 }
 0x359   : > { %v6823_v10 = vrot.slane %v20841_v26, 5  ;;  %v6824_v17 = vrot.slane %v20842_v13, 5  ;;  %v6825_v32 = vrot.slane %v20843_v31, 5  ;;  %v20845_v43 = vmax.f32 %v18372_v5, 0.0  ;;  %v20858_v31 = vld [vmem:[#allocation7_spill] sm:$0xff] }
 0x35a   : > { %v6826_v7 = vrot.slane %v20844_v34, 5  ;;  %v20846_v0 = vmax.f32 %v18378_v22, 0.0  ;;  %v6846_v27 = vsel %vm271_vm2, %v18419_v3, %v18455_v28  ;;  %v6848_v53 = vsel %vm271_vm2, %v18423_v14, %v18467_v50 }
 0x35b   : > { %v6827_v54 = vrot.slane %v20845_v43, 5  ;;  %v6849_v52 = vsel %vm271_vm2, %v18425_v56, %v18476_v12  ;;  %v6850_v59 = vsel %vm271_vm2, %v18427_v4, %v18482_v60  ;;  %v6851_v5 = vsel %vm271_vm2, %v18429_v39, %v18494_v11  ;;  %6894 = vst.msk [vmem:[#allocation2 + $0x18] sm:$0xff] %vm171_vm1, %v6846_v27  ;;  %6900 = vst.msk [vmem:[#allocation2 + $0x48] sm:$0xff] %vm171_vm1, %v6848_v53  ;;  %v20850_v4 = vld [vmem:[#allocation11_spill] sm:$0xff]  ;;  %v18750_v53 = vld [vmem:[%s20761_s2 + $0x10] sm:$0xf] }
 0x35c   : > { %v6828_v8 = vrot.slane %v20846_v0, 5  ;;  %v6852_v22 = vsel %vm271_vm2, %v18431_v44, %v18504_v36  ;;  %v6853_v50 = vsel %vm271_vm2, %v18433_v15, %v18516_v57  ;;  %v6854_v28 = vsel %vm271_vm2, %v18435_v23, %v6742_v61  ;;  %6903 = vst.msk [vmem:[#allocation2 + $0x60] sm:$0xff] %vm171_vm1, %v6849_v52  ;;  %6906 = vst.msk [vmem:[#allocation2 + $0x78] sm:$0xff] %vm171_vm1, %v6850_v59  ;;  %v20851_v44 = vld [vmem:[#allocation12_spill] sm:$0xff]  ;;  %v20852_v23 = vld [vmem:[#allocation13_spill] sm:$0xff] }
 0x35d   : > { %v6855_v60 = vsel %vm271_vm2, %v18437_v20, %v6745_v48  ;;  %v6856_v12 = vsel %vm271_vm2, %v18439_v25, %v6748_v41  ;;  %6909 = vst.msk [vmem:[#allocation2 + $0x90] sm:$0xff] %vm171_vm1, %v6851_v5  ;;  %6912 = vst.msk [vmem:[#allocation2 + $0xa8] sm:$0xff] %vm171_vm1, %v6852_v22  ;;  %v6857_v36 = vsel %vm271_vm2, %v18443_v2, %v6751_v35  ;;  %v20853_v25 = vld [vmem:[#allocation14_spill] sm:$0xff]  ;;  %v20855_v57 = vld [vmem:[#allocation16_spill] sm:$0xff] }
 0x35e   : > { %v6858_v61 = vsel %vm271_vm2, %v18445_v42, %v6754_v47  ;;  %v6859_v3 = vsel %vm271_vm2, %v18449_v6, %v6757_v33  ;;  %v6860_v41 = vsel %vm271_vm2, %v18453_v37, %v6760_v24  ;;  %6915 = vst.msk [vmem:[#allocation2 + $0xc0] sm:$0xff] %vm171_vm1, %v6853_v50  ;;  %6918 = vst.msk [vmem:[#allocation2 + $0xd8] sm:$0xff] %vm171_vm1, %v6854_v28  ;;  %v20856_v35 = vld [vmem:[#allocation17_spill] sm:$0xff]  ;;  %v20860_v52 = vld [vmem:[#allocation4_spill] sm:$0xff] }
 0x35f   : > { %6921 = vst.msk [vmem:[#allocation2 + $0xf0] sm:$0xff] %vm171_vm1, %v6855_v60  ;;  %6924 = vst.msk [vmem:[#allocation2 + $0x108] sm:$0xff] %vm171_vm1, %v6856_v12  ;;  %v6861_v14 = vsel %vm271_vm2, %v18380_v63, %v18318_v19  ;;  %v6862_v42 = vsel %vm271_vm2, %v18459_v58, %v6814_v55  ;;  %v6863_v6 = vsel %vm271_vm2, %v18465_v16, %v6815_v21  ;;  %v20847_v63 = vld [vmem:[#allocation8_spill] sm:$0xff]  ;;  %v20848_v16 = vld [vmem:[#allocation9_spill] sm:$0xff] }
 0x360   : > { %v6864_v24 = vsel %vm271_vm2, %v18471_v18, %v6816_v40  ;;  %6927 = vst.msk [vmem:[#allocation2 + $0x120] sm:$0xff] %vm171_vm1, %v6857_v36  ;;  %6930 = vst.msk [vmem:[#allocation2 + $0x138] sm:$0xff] %vm171_vm1, %v6858_v61  ;;  %v6865_v19 = vsel %vm271_vm2, %v18480_v49, %v6817_v9  ;;  %v6866_v58 = vsel %vm271_vm2, %v20847_v63, %v6818_v51  ;;  %v20849_v18 = vld [vmem:[#allocation10_spill] sm:$0xff]  ;;  %v20854_v49 = vld [vmem:[#allocation15_spill] sm:$0xff] }
 0x361   : > { %6933 = vst.msk [vmem:[#allocation2 + $0x150] sm:$0xff] %vm171_vm1, %v6859_v3  ;;  %6936 = vst.msk [vmem:[#allocation2 + $0x168] sm:$0xff] %vm171_vm1, %v6860_v41  ;;  %v6867_v37 = vsel %vm271_vm2, %v20848_v16, %v6819_v38  ;;  %v6868_v56 = vsel %vm271_vm2, %v20849_v18, %v6820_v30  ;;  %v6869_v39 = vsel %vm271_vm2, %v20850_v4, %v6821_v46  ;;  %v20857_v9 = vld [vmem:[#allocation18_spill] sm:$0xff]  ;;  %v6879_v46 = vsel %vm432_vm3, %v6863_v6, 0.0  ;;  %v20861_v59 = vld [vmem:[#allocation5_spill] sm:$0xff] }
 0x362   : > { %6945 = vst.msk [vmem:[#allocation2 + $0x198] sm:$0xff] %vm171_vm1, %v6860_v41  ;;  %6939 = vst.msk [vmem:[#allocation2 + $0x180] sm:$0xff] %vm171_vm1, %v6861_v14  ;;  %v6870_v15 = vsel %vm271_vm2, %v20851_v44, %v6822_v62  ;;  %v6871_v20 = vsel %vm271_vm2, %v20852_v23, %v6823_v10  ;;  %v6872_v2 = vsel %vm271_vm2, %v20853_v25, %v6824_v17  ;;  %v6878_v62 = vsel %vm432_vm3, %v6862_v42, 0.0  ;;  %v18758_v5 = vld [vmem:[#allocation2 + $0x18] sm:$0xff]  ;;  %v18768_v50 = vld [vmem:[#allocation2 + $0x20] sm:$0xff] }
 0x363   : > { %v6873_v11 = vsel %vm271_vm2, %v20854_v49, %v6825_v32  ;;  %v6874_v48 = vsel %vm271_vm2, %v20855_v57, %v6826_v7  ;;  %v6875_v47 = vsel %vm271_vm2, %v20856_v35, %v6827_v54  ;;  %v6876_v33 = vsel %vm271_vm2, %v20857_v9, %v6828_v8  ;;  %6896 = vst.msk [vmem:[#allocation2 + $0x28] sm:$0xff] %vm171_vm1, %v6878_v62  ;;  %v20859_v32 = vld [vmem:[#allocation6_spill] sm:$0xff]  ;;  %v6949_v7 = vld [vmem:[#allocation2 + $0x8] sm:$0xff] }
 0x364   : > { %v6880_v55 = vsel %vm432_vm3, %v6864_v24, 0.0  ;;  %v6881_v21 = vsel %vm432_vm3, %v6865_v19, 0.0  ;;  %v6882_v40 = vsel %vm432_vm3, %v6866_v58, 0.0  ;;  %v6883_v1 = vsel %vm432_vm3, %v6867_v37, 0.0  ;;  %6899 = vst.msk [vmem:[#allocation2 + $0x40] sm:$0xff] %vm171_vm1, %v6879_v46  ;;  %6944 = vst.msk [vmem:[#allocation2 + $0x10] sm:$0xff] %vm171_vm1, %v6879_v46 }
 0x365   : > { %v6884_v51 = vsel %vm432_vm3, %v6868_v56, 0.0  ;;  %v6885_v38 = vsel %vm432_vm3, %v6869_v39, 0.0  ;;  %6902 = vst.msk [vmem:[#allocation2 + $0x58] sm:$0xff] %vm171_vm1, %v6880_v55  ;;  %6905 = vst.msk [vmem:[#allocation2 + $0x70] sm:$0xff] %vm171_vm1, %v6881_v21  ;;  %v6886_v45 = vsel %vm432_vm3, %v6870_v15, 0.0  ;;  %v6887_v30 = vsel %vm432_vm3, %v6871_v20, 0.0 }
 0x366   : > { %v6888_v29 = vsel %vm432_vm3, %v6872_v2, 0.0  ;;  %v6889_v26 = vsel %vm432_vm3, %v6873_v11, 0.0  ;;  %6908 = vst.msk [vmem:[#allocation2 + $0x88] sm:$0xff] %vm171_vm1, %v6882_v40  ;;  %6911 = vst.msk [vmem:[#allocation2 + $0xa0] sm:$0xff] %vm171_vm1, %v6883_v1  ;;  %v6890_v10 = vsel %vm432_vm3, %v6874_v48, 0.0  ;;  %v6891_v13 = vsel %vm432_vm3, %v6875_v47, 0.0 }
 0x367   : > { %6914 = vst.msk [vmem:[#allocation2 + $0xb8] sm:$0xff] %vm171_vm1, %v6884_v51  ;;  %6917 = vst.msk [vmem:[#allocation2 + $0xd0] sm:$0xff] %vm171_vm1, %v6885_v38  ;;  %v6892_v17 = vsel %vm432_vm3, %v6876_v33, 0.0  ;;  %v6847_v34 = vsel %vm271_vm2, %v20859_v32, %v20858_v31  ;;  %v18760_v22 = vld [vmem:[#allocation2 + $0x19] sm:$0xff]  ;;  %v18808_v6 = vld [vmem:[#allocation2 + $0x48] sm:$0xff] }
 0x368   : > { %6920 = vst.msk [vmem:[#allocation2 + $0xe8] sm:$0xff] %vm171_vm1, %v6886_v45  ;;  %6923 = vst.msk [vmem:[#allocation2 + $0x100] sm:$0xff] %vm171_vm1, %v6887_v30  ;;  %v18792_v3 = vld [vmem:[#allocation2 + $0x38] sm:$0xff]  ;;  %v18810_v24 = vld [vmem:[#allocation2 + $0x49] sm:$0xff] }
 0x369   : > { %6926 = vst.msk [vmem:[#allocation2 + $0x118] sm:$0xff] %vm171_vm1, %v6888_v29  ;;  %6929 = vst.msk [vmem:[#allocation2 + $0x130] sm:$0xff] %vm171_vm1, %v6889_v26  ;;  %v18816_v19 = vld [vmem:[#allocation2 + $0x50] sm:$0xff]  ;;  %v18832_v37 = vld [vmem:[#allocation2 + $0x60] sm:$0xff] }
 0x36a   : > { %6932 = vst.msk [vmem:[#allocation2 + $0x148] sm:$0xff] %vm171_vm1, %v6890_v10  ;;  %6935 = vst.msk [vmem:[#allocation2 + $0x160] sm:$0xff] %vm171_vm1, %v6891_v13  ;;  %v18770_v28 = vld [vmem:[#allocation2 + $0x21] sm:$0xff]  ;;  %v18856_v15 = vld [vmem:[#allocation2 + $0x78] sm:$0xff] }
 0x36b   : > { %6938 = vst.msk [vmem:[#allocation2 + $0x178] sm:$0xff] %vm171_vm1, %v6892_v17  ;;  %6947 = vst.msk [vmem:[#allocation2 + $0x1a8] sm:$0xff] %vm171_vm1, %v6892_v17  ;;  %v7498_v43 = vld [vmem:[#allocation2 + $0x9] sm:$0xff]  ;;  %v7499_v27 = vld [vmem:[#allocation2 + $0x11] sm:$0xff] }
 0x36c   : > { %6942 = vst.msk [vmem:[#allocation2] sm:$0xff] %vm171_vm1, %v6847_v34  ;;  %6897 = vst.msk [vmem:[#allocation2 + $0x30] sm:$0xff] %vm171_vm1, %v6847_v34  ;;  %v6950_v8 = vld [vmem:[#allocation2 + $0x10] sm:$0xff]  ;;  %v18776_v60 = vld [vmem:[#allocation2 + $0x28] sm:$0xff] }
 0x36d   : > { %v18794_v41 = vld [vmem:[#allocation2 + $0x39] sm:$0xff]  ;;  %v18802_v42 = vld [vmem:[#allocation2 + $0x41] sm:$0xff]  ;;  %v18818_v63 = vld [vmem:[#allocation2 + $0x51] sm:$0xff] }
 0x36e   : > { %v18800_v14 = vld [vmem:[#allocation2 + $0x40] sm:$0xff]  ;;  %v18824_v58 = vld [vmem:[#allocation2 + $0x58] sm:$0xff]  ;;  %v18840_v56 = vld [vmem:[#allocation2 + $0x68] sm:$0xff] }
 0x36f   : > { %v18826_v16 = vld [vmem:[#allocation2 + $0x59] sm:$0xff]  ;;  %v18834_v18 = vld [vmem:[#allocation2 + $0x61] sm:$0xff]  ;;  %v18842_v4 = vld [vmem:[#allocation2 + $0x69] sm:$0xff] }
 0x370   : > { %v18848_v39 = vld [vmem:[#allocation2 + $0x70] sm:$0xff]  ;;  %v18858_v23 = vld [vmem:[#allocation2 + $0x79] sm:$0xff]  ;;  %v18866_v25 = vld [vmem:[#allocation2 + $0x81] sm:$0xff] }
 0x371   : > { %v18850_v44 = vld [vmem:[#allocation2 + $0x71] sm:$0xff]  ;;  %20862 = vst [vmem:[#allocation8_spill] sm:$0xff] %v18858_v23  ;;  %v18864_v20 = vld [vmem:[#allocation2 + $0x80] sm:$0xff]  ;;  %20863 = vst [vmem:[#allocation9_spill] sm:$0xff] %v18866_v25 }
 0x372   : > { %v18872_v2 = vld [vmem:[#allocation2 + $0x88] sm:$0xff]  ;;  %v18880_v11 = vld [vmem:[#allocation2 + $0x90] sm:$0xff]  ;;  %v18888_v48 = vld [vmem:[#allocation2 + $0x98] sm:$0xff] }
 0x373   : > { %v6948_v54 = vld [vmem:[#allocation2] sm:$0xff]  ;;  %v18778_v12 = vld [vmem:[#allocation2 + $0x29] sm:$0xff]  ;;  %v18786_v61 = vld [vmem:[#allocation2 + $0x31] sm:$0xff] }
 0x374   : > { %v7497_v0 = vld [vmem:[#allocation2 + $0x1] sm:$0xff]  ;;  %15671 = vmatprep.mubr.msk.f32.mxu1 %vm171_vm1, %v6948_v54  ;;  %v18784_v36 = vld [vmem:[#allocation2 + $0x30] sm:$0xff]  ;;  %v18890_v35 = vld [vmem:[#allocation2 + $0x99] sm:$0xff] }
 0x375   : > { %15745 = vmatprep.mubr.msk.f32.mxu0 %vm171_vm1, %v7497_v0  ;;  %15672 = vmatmul.mubr.msk.f32.vlgmr.msra.gmra.mrb[192].mxu1 %vm171_vm1, %v6949_v7  ;;  %v18874_v49 = vld [vmem:[#allocation2 + $0x89] sm:$0xff]  ;;  %v18882_v57 = vld [vmem:[#allocation2 + $0x91] sm:$0xff]  ;;  %20866 = vst [vmem:[#allocation12_spill] sm:$0xff] %v18890_v35  ;;  %v18896_v47 = vld [vmem:[#allocation2 + $0xa0] sm:$0xff] }
 0x376   : > { %15746 = vmatmul.mubr.msk.f32.vlgmr.msra.gmra.mrb[240].mxu0 %vm171_vm1, %v7498_v43  ;;  %15818 = vmatpush3.msk.msra.mxu1 %vm696_vm0, %v20860_v52  ;;  %20864 = vst [vmem:[#allocation10_spill] sm:$0xff] %v18874_v49  ;;  %20865 = vst [vmem:[#allocation11_spill] sm:$0xff] %v18882_v57  ;;  %v18898_v9 = vld [vmem:[#allocation2 + $0xa1] sm:$0xff]  ;;  %v18906_v62 = vld [vmem:[#allocation2 + $0xa9] sm:$0xff] }
 0x377   : > { %15674 = vmatprep.mubr.msk.f32.mxu1 %vm171_vm1, %v6950_v8  ;;  %15748 = vmatprep.mubr.msk.f32.mxu0 %vm171_vm1, %v7499_v27  ;;  %20867 = vst [vmem:[#allocation13_spill] sm:$0xff] %v18898_v9  ;;  %v18904_v33 = vld [vmem:[#allocation2 + $0xa8] sm:$0xff]  ;;  %20868 = vst [vmem:[#allocation14_spill] sm:$0xff] %v18906_v62  ;;  %v18912_v46 = vld [vmem:[#allocation2 + $0xb0] sm:$0xff] }
 0x378   : > { %15892 = vmatpush3.msk.msra.mxu0 %vm696_vm0, %v20861_v59  ;;  %15965 = vmatprep.subr.msk.mxu1 %vm696_vm0, %v18750_v53  ;;  %v18914_v55 = vld [vmem:[#allocation2 + $0xb1] sm:$0xff]  ;;  %v18922_v40 = vld [vmem:[#allocation2 + $0xb9] sm:$0xff]  ;;  %v18930_v51 = vld [vmem:[#allocation2 + $0xc1] sm:$0xff] }
 0x379   : > { %15675 = vmatmul.mubr.msk.f32.gmra.mrb[194].mxu1 %vm171_vm1, %v18758_v5  ;;  %20869 = vst [vmem:[#allocation15_spill] sm:$0xff] %v18914_v55  ;;  %v18920_v21 = vld [vmem:[#allocation2 + $0xb8] sm:$0xff]  ;;  %20870 = vst [vmem:[#allocation16_spill] sm:$0xff] %v18922_v40  ;;  %v18928_v1 = vld [vmem:[#allocation2 + $0xc0] sm:$0xff] }
 0x37a   : > { %15749 = vmatmul.mubr.msk.f32.gmra.mrb[242].mxu0 %vm171_vm1, %v18760_v22  ;;  %15677 = vmatprep.mubr.msk.f32.mxu1 %vm171_vm1, %v18768_v50  ;;  %20871 = vst [vmem:[#allocation17_spill] sm:$0xff] %v18930_v51  ;;  %v18936_v38 = vld [vmem:[#allocation2 + $0xc8] sm:$0xff]  ;;  %v18944_v30 = vld [vmem:[#allocation2 + $0xd0] sm:$0xff]  ;;  %v18952_v26 = vld [vmem:[#allocation2 + $0xd8] sm:$0xff] }
 0x37b   : > { %15751 = vmatprep.mubr.msk.f32.mxu0 %vm171_vm1, %v18770_v28  ;;  %v18938_v45 = vld [vmem:[#allocation2 + $0xc9] sm:$0xff]  ;;  %v18946_v29 = vld [vmem:[#allocation2 + $0xd1] sm:$0xff]  ;;  %v18954_v10 = vld [vmem:[#allocation2 + $0xd9] sm:$0xff] }
 0x37c   : > { %20872 = vst [vmem:[#allocation18_spill] sm:$0xff] %v18938_v45  ;;  %20873 = vst [vmem:[#allocation7_spill] sm:$0xff] %v18946_v29  ;;  %v18960_v13 = vld [vmem:[#allocation2 + $0xe0] sm:$0xff]  ;;  %v18971_v31 = vld [vmem:[%s20761_s2 + $0x14] sm:$0xf] }
 0x37d   : > { %15678 = vmatmul.mubr.msk.f32.gmra.mrb[196].mxu1 %vm171_vm1, %v18776_v60  ;;  %20874 = vst [vmem:[#allocation6_spill] sm:$0xff] %v18954_v10  ;;  %v18962_v17 = vld [vmem:[#allocation2 + $0xe1] sm:$0xff]  ;;  %16039 = vmatprep.subr.msk.mxu0 %vm696_vm0, %v18971_v31  ;;  %v18977_v34 = vld [vmem:[#allocation2 + $0xe9] sm:$0xff]  ;;  %v18985_v43 = vld [vmem:[#allocation2 + $0xf1] sm:$0xff] }
 0x37e   : > { %15752 = vmatmul.mubr.msk.f32.gmra.mrb[244].mxu0 %vm171_vm1, %v18778_v12  ;;  %15680 = vmatprep.mubr.msk.f32.mxu1 %vm171_vm1, %v18784_v36  ;;  %20875 = vst [vmem:[#allocation4_spill] sm:$0xff] %v18962_v17  ;;  %v18975_v32 = vld [vmem:[#allocation2 + $0xe8] sm:$0xff]  ;;  %20876 = vst [vmem:[#allocation5_spill] sm:$0xff] %v18977_v34  ;;  %v18983_v7 = vld [vmem:[#allocation2 + $0xf0] sm:$0xff] }
 0x37f   : > { %15754 = vmatprep.mubr.msk.f32.mxu0 %vm171_vm1, %v18786_v61  ;;  %20877 = vst [vmem:[#allocation19_spill] sm:$0xff] %v18985_v43  ;;  %v18991_v54 = vld [vmem:[#allocation2 + $0xf8] sm:$0xff]  ;;  %v18999_v8 = vld [vmem:[#allocation2 + $0x100] sm:$0xff]  ;;  %v19007_v52 = vld [vmem:[#allocation2 + $0x108] sm:$0xff] }
 0x380   : > { %v18993_v0 = vld [vmem:[#allocation2 + $0xf9] sm:$0xff]  ;;  %v19001_v27 = vld [vmem:[#allocation2 + $0x101] sm:$0xff]  ;;  %v19009_v59 = vld [vmem:[#allocation2 + $0x109] sm:$0xff] }
 0x381   : > { %15681 = vmatmul.mubr.msk.f32.gmra.mrb[198].mxu1 %vm171_vm1, %v18792_v3  ;;  %20878 = vst [vmem:[#allocation20_spill] sm:$0xff] %v18993_v0  ;;  %20879 = vst [vmem:[#allocation21_spill] sm:$0xff] %v19001_v27 }
 0x382   : > { %15755 = vmatmul.mubr.msk.f32.gmra.mrb[246].mxu0 %vm171_vm1, %v18794_v41  ;;  %15683 = vmatprep.mubr.msk.f32.mxu1 %vm171_vm1, %v18800_v14  ;;  %20880 = vst [vmem:[#allocation22_spill] sm:$0xff] %v19009_v59 }
 0x383   : > { %15757 = vmatprep.mubr.msk.f32.mxu0 %vm171_vm1, %v18802_v42 }
 0x385   : > { %15684 = vmatmul.mubr.msk.f32.gmra.mrb[200].mxu1 %vm171_vm1, %v18808_v6 }
 0x386   : > { %15758 = vmatmul.mubr.msk.f32.gmra.mrb[248].mxu0 %vm171_vm1, %v18810_v24  ;;  %15686 = vmatprep.mubr.msk.f32.mxu1 %vm171_vm1, %v18816_v19 }
 0x387   : > { %15760 = vmatprep.mubr.msk.f32.mxu0 %vm171_vm1, %v18818_v63 }
 0x389   : > { %15687 = vmatmul.mubr.msk.f32.gmra.mrb[202].mxu1 %vm171_vm1, %v18824_v58 }
 0x38a   : > { %15761 = vmatmul.mubr.msk.f32.gmra.mrb[250].mxu0 %vm171_vm1, %v18826_v16  ;;  %15689 = vmatprep.mubr.msk.f32.mxu1 %vm171_vm1, %v18832_v37 }
 0x38b   : > { %15763 = vmatprep.mubr.msk.f32.mxu0 %vm171_vm1, %v18834_v18 }
 0x38d   : > { %15690 = vmatmul.mubr.msk.f32.gmra.mrb[204].mxu1 %vm171_vm1, %v18840_v56 }
 0x38e   : > { %15764 = vmatmul.mubr.msk.f32.gmra.mrb[252].mxu0 %vm171_vm1, %v18842_v4  ;;  %15692 = vmatprep.mubr.msk.f32.mxu1 %vm171_vm1, %v18848_v39 }
 0x38f   : > { %15766 = vmatprep.mubr.msk.f32.mxu0 %vm171_vm1, %v18850_v44 }
 0x391   : > { %15693 = vmatmul.mubr.msk.f32.gmra.mrb[206].mxu1 %vm171_vm1, %v18856_v15 }
 0x392   : > { %15767 = vmatmul.mubr.msk.f32.gmra.mrb[254].mxu0 %vm171_vm1, %v18858_v23  ;;  %15695 = vmatprep.mubr.msk.f32.mxu1 %vm171_vm1, %v18864_v20  ;;  %v19094_v23 = vld [vmem:[%s20761_s2 + $0x18] sm:$0xf] }
 0x393   : > { %15769 = vmatprep.mubr.msk.f32.mxu0 %vm171_vm1, %v18866_v25  ;;  %v7544_v25 = vld [vmem:[#allocation2 + $0x179] sm:$0xff] }
 0x395   : > { %15696 = vmatmul.mubr.msk.f32.gmra.mrb[208].mxu1 %vm171_vm1, %v18872_v2 }
 0x396   : > { %15770 = vmatmul.mubr.msk.f32.gmra.mrb[0].mxu0 %vm171_vm1, %v18874_v49  ;;  %15698 = vmatprep.mubr.msk.f32.mxu1 %vm171_vm1, %v18880_v11  ;;  %v7543_v49 = vld [vmem:[#allocation2 + $0x171] sm:$0xff] }
 0x397   : > { %15772 = vmatprep.mubr.msk.f32.mxu0 %vm171_vm1, %v18882_v57  ;;  %v7542_v57 = vld [vmem:[#allocation2 + $0x169] sm:$0xff] }
 0x399   : > { %15699 = vmatmul.mubr.msk.f32.gmra.mrb[210].mxu1 %vm171_vm1, %v18888_v48 }
 0x39a   : > { %15773 = vmatmul.mubr.msk.f32.gmra.mrb[2].mxu0 %vm171_vm1, %v18890_v35  ;;  %15701 = vmatprep.mubr.msk.f32.mxu1 %vm171_vm1, %v18896_v47  ;;  %v7541_v35 = vld [vmem:[#allocation2 + $0x161] sm:$0xff] }
 0x39b   : > { %15775 = vmatprep.mubr.msk.f32.mxu0 %vm171_vm1, %v18898_v9  ;;  %v7540_v9 = vld [vmem:[#allocation2 + $0x159] sm:$0xff] }
 0x39d   : > { %15702 = vmatmul.mubr.msk.f32.gmra.mrb[212].mxu1 %vm171_vm1, %v18904_v33 }
 0x39e   : > { %15776 = vmatmul.mubr.msk.f32.gmra.mrb[4].mxu0 %vm171_vm1, %v18906_v62  ;;  %15704 = vmatprep.mubr.msk.f32.mxu1 %vm171_vm1, %v18912_v46  ;;  %v7539_v62 = vld [vmem:[#allocation2 + $0x151] sm:$0xff] }
 0x39f   : > { %15778 = vmatprep.mubr.msk.f32.mxu0 %vm171_vm1, %v18914_v55  ;;  %v7538_v55 = vld [vmem:[#allocation2 + $0x149] sm:$0xff] }
 0x3a1   : > { %15705 = vmatmul.mubr.msk.f32.gmra.mrb[214].mxu1 %vm171_vm1, %v18920_v21 }
 0x3a2   : > { %15779 = vmatmul.mubr.msk.f32.gmra.mrb[6].mxu0 %vm171_vm1, %v18922_v40  ;;  %15707 = vmatprep.mubr.msk.f32.mxu1 %vm171_vm1, %v18928_v1  ;;  %v7537_v40 = vld [vmem:[#allocation2 + $0x141] sm:$0xff] }
 0x3a3   : > { %15781 = vmatprep.mubr.msk.f32.mxu0 %vm171_vm1, %v18930_v51  ;;  %v7536_v51 = vld [vmem:[#allocation2 + $0x139] sm:$0xff] }
 0x3a5   : > { %15708 = vmatmul.mubr.msk.f32.gmra.mrb[216].mxu1 %vm171_vm1, %v18936_v38 }
 0x3a6   : > { %15782 = vmatmul.mubr.msk.f32.gmra.mrb[8].mxu0 %vm171_vm1, %v18938_v45  ;;  %15710 = vmatprep.mubr.msk.f32.mxu1 %vm171_vm1, %v18944_v30  ;;  %v7535_v45 = vld [vmem:[#allocation2 + $0x131] sm:$0xff] }
 0x3a7   : > { %15784 = vmatprep.mubr.msk.f32.mxu0 %vm171_vm1, %v18946_v29  ;;  %v7534_v29 = vld [vmem:[#allocation2 + $0x129] sm:$0xff] }
 0x3a9   : > { %15711 = vmatmul.mubr.msk.f32.gmra.mrb[218].mxu1 %vm171_vm1, %v18952_v26 }
 0x3aa   : > { %15785 = vmatmul.mubr.msk.f32.gmra.mrb[10].mxu0 %vm171_vm1, %v18954_v10  ;;  %15713 = vmatprep.mubr.msk.f32.mxu1 %vm171_vm1, %v18960_v13  ;;  %v7533_v10 = vld [vmem:[#allocation2 + $0x121] sm:$0xff] }
 0x3ab   : > { %15787 = vmatprep.mubr.msk.f32.mxu0 %vm171_vm1, %v18962_v17  ;;  %v19025_v17 = vld [vmem:[#allocation2 + $0x120] sm:$0xff] }
 0x3ad   : > { %15714 = vmatmul.mubr.msk.f32.gmra.mrb[220].mxu1 %vm171_vm1, %v18975_v32 }
 0x3ae   : > { %15788 = vmatmul.mubr.msk.f32.gmra.mrb[12].mxu0 %vm171_vm1, %v18977_v34  ;;  %15716 = vmatprep.mubr.msk.f32.mxu1 %vm171_vm1, %v18983_v7  ;;  %v19020_v34 = vld [vmem:[#allocation2 + $0x118] sm:$0xff] }
 0x3af   : > { %15790 = vmatprep.mubr.msk.f32.mxu0 %vm171_vm1, %v18985_v43  ;;  %v7531_v43 = vld [vmem:[#allocation2 + $0x111] sm:$0xff] }
 0x3b1   : > { %15717 = vmatmul.mubr.msk.f32.gmra.mrb[222].mxu1 %vm171_vm1, %v18991_v54 }
 0x3b2   : > { %15791 = vmatmul.mubr.msk.f32.gmra.mrb[14].mxu0 %vm171_vm1, %v18993_v0  ;;  %15719 = vmatprep.mubr.msk.f32.mxu1 %vm171_vm1, %v18999_v8  ;;  %v19015_v0 = vld [vmem:[#allocation2 + $0x110] sm:$0xff] }
 0x3b3   : > { %15793 = vmatprep.mubr.msk.f32.mxu0 %vm171_vm1, %v19001_v27  ;;  %v7532_v27 = vld [vmem:[#allocation2 + $0x119] sm:$0xff] }
 0x3b5   : > { %15720 = vmatmul.mubr.msk.f32.gmra.mrb[224].mxu1 %vm171_vm1, %v19007_v52 }
 0x3b6   : > { %15794 = vmatmul.mubr.msk.f32.gmra.mrb[16].mxu0 %vm171_vm1, %v19009_v59  ;;  %15722 = vmatprep.mubr.msk.f32.mxu1 %vm171_vm1, %v19015_v0  ;;  %v19030_v59 = vld [vmem:[#allocation2 + $0x128] sm:$0xff] }
 0x3b7   : > { %15796 = vmatprep.mubr.msk.f32.mxu0 %vm171_vm1, %v7531_v43  ;;  %v19035_v43 = vld [vmem:[#allocation2 + $0x130] sm:$0xff] }
 0x3b9   : > { %15723 = vmatmul.mubr.msk.f32.gmra.mrb[226].mxu1 %vm171_vm1, %v19020_v34 }
 0x3ba   : > { %15797 = vmatmul.mubr.msk.f32.gmra.mrb[18].mxu0 %vm171_vm1, %v7532_v27  ;;  %15725 = vmatprep.mubr.msk.f32.mxu1 %vm171_vm1, %v19025_v17  ;;  %v19040_v27 = vld [vmem:[#allocation2 + $0x138] sm:$0xff] }
 0x3bb   : > { %15799 = vmatprep.mubr.msk.f32.mxu0 %vm171_vm1, %v7533_v10  ;;  %v19045_v10 = vld [vmem:[#allocation2 + $0x140] sm:$0xff] }
 0x3bd   : > { %15726 = vmatmul.mubr.msk.f32.gmra.mrb[228].mxu1 %vm171_vm1, %v19030_v59 }
 0x3be   : > { %15800 = vmatmul.mubr.msk.f32.gmra.mrb[20].mxu0 %vm171_vm1, %v7534_v29  ;;  %15728 = vmatprep.mubr.msk.f32.mxu1 %vm171_vm1, %v19035_v43  ;;  %v19050_v29 = vld [vmem:[#allocation2 + $0x148] sm:$0xff] }
 0x3bf   : > { %15802 = vmatprep.mubr.msk.f32.mxu0 %vm171_vm1, %v7535_v45  ;;  %v19055_v45 = vld [vmem:[#allocation2 + $0x150] sm:$0xff] }
 0x3c1   : > { %15729 = vmatmul.mubr.msk.f32.gmra.mrb[230].mxu1 %vm171_vm1, %v19040_v27 }
 0x3c2   : > { %15803 = vmatmul.mubr.msk.f32.gmra.mrb[22].mxu0 %vm171_vm1, %v7536_v51  ;;  %15731 = vmatprep.mubr.msk.f32.mxu1 %vm171_vm1, %v19045_v10  ;;  %v19060_v51 = vld [vmem:[#allocation2 + $0x158] sm:$0xff] }
 0x3c3   : > { %15805 = vmatprep.mubr.msk.f32.mxu0 %vm171_vm1, %v7537_v40  ;;  %v19065_v40 = vld [vmem:[#allocation2 + $0x160] sm:$0xff] }
 0x3c5   : > { %15732 = vmatmul.mubr.msk.f32.gmra.mrb[232].mxu1 %vm171_vm1, %v19050_v29 }
 0x3c6   : > { %15806 = vmatmul.mubr.msk.f32.gmra.mrb[24].mxu0 %vm171_vm1, %v7538_v55  ;;  %15734 = vmatprep.mubr.msk.f32.mxu1 %vm171_vm1, %v19055_v45  ;;  %v19070_v55 = vld [vmem:[#allocation2 + $0x168] sm:$0xff] }
 0x3c7   : > { %15808 = vmatprep.mubr.msk.f32.mxu0 %vm171_vm1, %v7539_v62  ;;  %v19075_v62 = vld [vmem:[#allocation2 + $0x170] sm:$0xff] }
 0x3c9   : > { %15735 = vmatmul.mubr.msk.f32.gmra.mrb[234].mxu1 %vm171_vm1, %v19060_v51 }
 0x3ca   : > { %15809 = vmatmul.mubr.msk.f32.gmra.mrb[26].mxu0 %vm171_vm1, %v7540_v9  ;;  %15737 = vmatprep.mubr.msk.f32.mxu1 %vm171_vm1, %v19065_v40  ;;  %v19080_v9 = vld [vmem:[#allocation2 + $0x178] sm:$0xff] }
 0x3cb   : > { %15811 = vmatprep.mubr.msk.f32.mxu0 %vm171_vm1, %v7541_v35  ;;  %v8143_v35 = vld [vmem:[#allocation2 + $0x2] sm:$0xff] }
 0x3cd   : > { %15738 = vmatmul.mubr.msk.f32.gmra.mrb[236].mxu1 %vm171_vm1, %v19070_v55 }
 0x3ce   : > { %15812 = vmatmul.mubr.msk.f32.gmra.mrb[28].mxu0 %vm171_vm1, %v7542_v57  ;;  %15740 = vmatprep.mubr.msk.f32.mxu1 %vm171_vm1, %v19075_v62  ;;  %v8144_v57 = vld [vmem:[#allocation2 + $0xa] sm:$0xff] }
 0x3cf   : > { %15814 = vmatprep.mubr.msk.f32.mxu0 %vm171_vm1, %v7543_v49  ;;  %v8145_v49 = vld [vmem:[#allocation2 + $0x12] sm:$0xff] }
 0x3d1   : > { %15741 = vmatmul.mubr.msk.f32.gmra.mrb[238].mxu1 %vm171_vm1, %v19080_v9 }
 0x3d2   : > { %15815 = vmatmul.mubr.msk.f32.gmra.mrb[30].mxu0 %vm171_vm1, %v7544_v25  ;;  %15819 = vmatprep.mubr.msk.f32.mxu1 %vm171_vm1, %v8143_v35  ;;  %v19195_v25 = vld [vmem:[#allocation2 + $0x92] sm:$0xff]  ;;  %v8835_v35 = vld [vmem:[#allocation2 + $0x188] sm:$0xff] }
 0x3d3   : > { %15893 = vmatprep.mubr.msk.f32.mxu0 %vm171_vm1, %v18758_v5  ;;  %v19103_v5 = vld [vmem:[#allocation2 + $0x1a] sm:$0xff] }
 0x3d5   : > { %15820 = vmatmul.mubr.msk.f32.vlgmr.msra.gmra.mrb[240].mxu1 %vm171_vm1, %v8144_v57  ;;  %v8836_v57 = vld [vmem:[#allocation2 + $0x190] sm:$0xff] }
 0x3d6   : > { %15894 = vmatmul.mubr.msk.f32.vlgmr.msra.gmra.mrb[32].mxu0 %vm171_vm1, %v18768_v50  ;;  %15966 = vmatpush3.msk.msra.mxu1 %vm696_vm0, %v18750_v53  ;;  %v19111_v53 = vld [vmem:[#allocation2 + $0x22] sm:$0xff]  ;;  %v19117_v50 = vld [vmem:[#allocation2 + $0x2a] sm:$0xff] }
 0x3d7   : > { %15822 = vmatprep.mubr.msk.f32.mxu1 %vm171_vm1, %v8145_v49  ;;  %15896 = vmatprep.mubr.msk.f32.mxu0 %vm171_vm1, %v18776_v60  ;;  %v19123_v60 = vld [vmem:[#allocation2 + $0x32] sm:$0xff] }
 0x3d8   : > { %16040 = vmatpush3.msk.msra.mxu0 %vm696_vm0, %v18971_v31  ;;  %16113 = vmatprep.subr.msk.mxu1 %vm696_vm0, %v19094_v23  ;;  %v19273_v31 = vld [vmem:[#allocation2 + $0xfa] sm:$0xff] }
 0x3d9   : > { %15823 = vmatmul.mubr.msk.f32.gmra.mrb[242].mxu1 %vm171_vm1, %v19103_v5 }
 0x3da   : > { %15897 = vmatmul.mubr.msk.f32.gmra.mrb[34].mxu0 %vm171_vm1, %v18784_v36  ;;  %15825 = vmatprep.mubr.msk.f32.mxu1 %vm171_vm1, %v19111_v53  ;;  %v19129_v36 = vld [vmem:[#allocation2 + $0x3a] sm:$0xff] }
 0x3db   : > { %15899 = vmatprep.mubr.msk.f32.mxu0 %vm171_vm1, %v18792_v3  ;;  %v19135_v3 = vld [vmem:[#allocation2 + $0x42] sm:$0xff] }
 0x3dd   : > { %15826 = vmatmul.mubr.msk.f32.gmra.mrb[244].mxu1 %vm171_vm1, %v19117_v50 }
 0x3de   : > { %15900 = vmatmul.mubr.msk.f32.gmra.mrb[36].mxu0 %vm171_vm1, %v18800_v14  ;;  %15828 = vmatprep.mubr.msk.f32.mxu1 %vm171_vm1, %v19123_v60  ;;  %v19141_v14 = vld [vmem:[#allocation2 + $0x4a] sm:$0xff] }
 0x3df   : > { %15902 = vmatprep.mubr.msk.f32.mxu0 %vm171_vm1, %v18808_v6  ;;  %v19147_v6 = vld [vmem:[#allocation2 + $0x52] sm:$0xff] }
 0x3e1   : > { %15829 = vmatmul.mubr.msk.f32.gmra.mrb[246].mxu1 %vm171_vm1, %v19129_v36 }
 0x3e2   : > { %15903 = vmatmul.mubr.msk.f32.gmra.mrb[38].mxu0 %vm171_vm1, %v18816_v19  ;;  %15831 = vmatprep.mubr.msk.f32.mxu1 %vm171_vm1, %v19135_v3  ;;  %v19153_v19 = vld [vmem:[#allocation2 + $0x5a] sm:$0xff] }
 0x3e3   : > { %15905 = vmatprep.mubr.msk.f32.mxu0 %vm171_vm1, %v18824_v58  ;;  %v19159_v58 = vld [vmem:[#allocation2 + $0x62] sm:$0xff] }
 0x3e5   : > { %15832 = vmatmul.mubr.msk.f32.gmra.mrb[248].mxu1 %vm171_vm1, %v19141_v14 }
 0x3e6   : > { %15906 = vmatmul.mubr.msk.f32.gmra.mrb[40].mxu0 %vm171_vm1, %v18832_v37  ;;  %15834 = vmatprep.mubr.msk.f32.mxu1 %vm171_vm1, %v19147_v6  ;;  %v19165_v37 = vld [vmem:[#allocation2 + $0x6a] sm:$0xff] }
 0x3e7   : > { %15908 = vmatprep.mubr.msk.f32.mxu0 %vm171_vm1, %v18840_v56  ;;  %v19171_v56 = vld [vmem:[#allocation2 + $0x72] sm:$0xff] }
 0x3e9   : > { %15835 = vmatmul.mubr.msk.f32.gmra.mrb[250].mxu1 %vm171_vm1, %v19153_v19 }
 0x3ea   : > { %15909 = vmatmul.mubr.msk.f32.gmra.mrb[42].mxu0 %vm171_vm1, %v18848_v39  ;;  %15837 = vmatprep.mubr.msk.f32.mxu1 %vm171_vm1, %v19159_v58  ;;  %v19177_v39 = vld [vmem:[#allocation2 + $0x7a] sm:$0xff] }
 0x3eb   : > { %15911 = vmatprep.mubr.msk.f32.mxu0 %vm171_vm1, %v18856_v15  ;;  %v19183_v15 = vld [vmem:[#allocation2 + $0x82] sm:$0xff] }
 0x3ed   : > { %15838 = vmatmul.mubr.msk.f32.gmra.mrb[252].mxu1 %vm171_vm1, %v19165_v37 }
 0x3ee   : > { %15912 = vmatmul.mubr.msk.f32.gmra.mrb[44].mxu0 %vm171_vm1, %v18864_v20  ;;  %15840 = vmatprep.mubr.msk.f32.mxu1 %vm171_vm1, %v19171_v56  ;;  %v19189_v20 = vld [vmem:[#allocation2 + $0x8a] sm:$0xff] }
 0x3ef   : > { %15914 = vmatprep.mubr.msk.f32.mxu0 %vm171_vm1, %v18872_v2  ;;  %v19201_v2 = vld [vmem:[#allocation2 + $0x9a] sm:$0xff] }
 0x3f1   : > { %15841 = vmatmul.mubr.msk.f32.gmra.mrb[254].mxu1 %vm171_vm1, %v19177_v39 }
 0x3f2   : > { %15915 = vmatmul.mubr.msk.f32.gmra.mrb[46].mxu0 %vm171_vm1, %v18880_v11  ;;  %15843 = vmatprep.mubr.msk.f32.mxu1 %vm171_vm1, %v19183_v15  ;;  %v19207_v11 = vld [vmem:[#allocation2 + $0xa2] sm:$0xff] }
 0x3f3   : > { %15917 = vmatprep.mubr.msk.f32.mxu0 %vm171_vm1, %v18888_v48  ;;  %v19213_v48 = vld [vmem:[#allocation2 + $0xaa] sm:$0xff] }
 0x3f5   : > { %15844 = vmatmul.mubr.msk.f32.gmra.mrb[0].mxu1 %vm171_vm1, %v19189_v20 }
 0x3f6   : > { %15918 = vmatmul.mubr.msk.f32.gmra.mrb[48].mxu0 %vm171_vm1, %v18896_v47  ;;  %15846 = vmatprep.mubr.msk.f32.mxu1 %vm171_vm1, %v19195_v25  ;;  %v19219_v47 = vld [vmem:[#allocation2 + $0xb2] sm:$0xff] }
 0x3f7   : > { %15920 = vmatprep.mubr.msk.f32.mxu0 %vm171_vm1, %v18904_v33  ;;  %v19225_v33 = vld [vmem:[#allocation2 + $0xba] sm:$0xff] }
 0x3f9   : > { %15847 = vmatmul.mubr.msk.f32.gmra.mrb[2].mxu1 %vm171_vm1, %v19201_v2 }
 0x3fa   : > { %15921 = vmatmul.mubr.msk.f32.gmra.mrb[50].mxu0 %vm171_vm1, %v18912_v46  ;;  %15849 = vmatprep.mubr.msk.f32.mxu1 %vm171_vm1, %v19207_v11  ;;  %v19231_v46 = vld [vmem:[#allocation2 + $0xc2] sm:$0xff] }
 0x3fb   : > { %15923 = vmatprep.mubr.msk.f32.mxu0 %vm171_vm1, %v18920_v21  ;;  %v19237_v21 = vld [vmem:[#allocation2 + $0xca] sm:$0xff] }
 0x3fd   : > { %15850 = vmatmul.mubr.msk.f32.gmra.mrb[4].mxu1 %vm171_vm1, %v19213_v48 }
 0x3fe   : > { %15924 = vmatmul.mubr.msk.f32.gmra.mrb[52].mxu0 %vm171_vm1, %v18928_v1  ;;  %15852 = vmatprep.mubr.msk.f32.mxu1 %vm171_vm1, %v19219_v47  ;;  %v19243_v1 = vld [vmem:[#allocation2 + $0xd2] sm:$0xff] }
 0x3ff   : > { %15926 = vmatprep.mubr.msk.f32.mxu0 %vm171_vm1, %v18936_v38  ;;  %v19249_v38 = vld [vmem:[#allocation2 + $0xda] sm:$0xff] }
 0x401   : > { %15853 = vmatmul.mubr.msk.f32.gmra.mrb[6].mxu1 %vm171_vm1, %v19225_v33 }
 0x402   : > { %15927 = vmatmul.mubr.msk.f32.gmra.mrb[54].mxu0 %vm171_vm1, %v18944_v30  ;;  %15855 = vmatprep.mubr.msk.f32.mxu1 %vm171_vm1, %v19231_v46  ;;  %v19255_v30 = vld [vmem:[#allocation2 + $0xe2] sm:$0xff] }
 0x403   : > { %15929 = vmatprep.mubr.msk.f32.mxu0 %vm171_vm1, %v18952_v26  ;;  %v19261_v26 = vld [vmem:[#allocation2 + $0xea] sm:$0xff] }
 0x405   : > { %15856 = vmatmul.mubr.msk.f32.gmra.mrb[8].mxu1 %vm171_vm1, %v19237_v21 }
 0x406   : > { %15930 = vmatmul.mubr.msk.f32.gmra.mrb[56].mxu0 %vm171_vm1, %v18960_v13  ;;  %15858 = vmatprep.mubr.msk.f32.mxu1 %vm171_vm1, %v19243_v1  ;;  %v19267_v13 = vld [vmem:[#allocation2 + $0xf2] sm:$0xff] }
 0x407   : > { %15932 = vmatprep.mubr.msk.f32.mxu0 %vm171_vm1, %v18975_v32  ;;  %v19279_v32 = vld [vmem:[#allocation2 + $0x102] sm:$0xff] }
 0x409   : > { %15859 = vmatmul.mubr.msk.f32.gmra.mrb[10].mxu1 %vm171_vm1, %v19249_v38 }
 0x40a   : > { %15933 = vmatmul.mubr.msk.f32.gmra.mrb[58].mxu0 %vm171_vm1, %v18983_v7  ;;  %15861 = vmatprep.mubr.msk.f32.mxu1 %vm171_vm1, %v19255_v30  ;;  %v19285_v7 = vld [vmem:[#allocation2 + $0x10a] sm:$0xff] }
 0x40b   : > { %15935 = vmatprep.mubr.msk.f32.mxu0 %vm171_vm1, %v18991_v54  ;;  %v14017_v54 = vld [vmem:[%s20761_s2 + $0x1c] sm:$0xf] }
 0x40c   : > { %16187 = vmatprep.subr.msk.mxu0 %vm696_vm0, %v14017_v54 }
 0x40d   : > { %15862 = vmatmul.mubr.msk.f32.gmra.mrb[12].mxu1 %vm171_vm1, %v19261_v26 }
 0x40e   : > { %15936 = vmatmul.mubr.msk.f32.gmra.mrb[60].mxu0 %vm171_vm1, %v18999_v8  ;;  %15864 = vmatprep.mubr.msk.f32.mxu1 %vm171_vm1, %v19267_v13  ;;  %v19307_v8 = vld [vmem:[#allocation2 + $0x122] sm:$0xff] }
 0x40f   : > { %15938 = vmatprep.mubr.msk.f32.mxu0 %vm171_vm1, %v19007_v52  ;;  %v19319_v52 = vld [vmem:[#allocation2 + $0x132] sm:$0xff] }
 0x411   : > { %15865 = vmatmul.mubr.msk.f32.gmra.mrb[14].mxu1 %vm171_vm1, %v19273_v31 }
 0x412   : > { %15939 = vmatmul.mubr.msk.f32.gmra.mrb[62].mxu0 %vm171_vm1, %v19015_v0  ;;  %15867 = vmatprep.mubr.msk.f32.mxu1 %vm171_vm1, %v19279_v32  ;;  %v19294_v0 = vld [vmem:[#allocation2 + $0x112] sm:$0xff] }
 0x413   : > { %15941 = vmatprep.mubr.msk.f32.mxu0 %vm171_vm1, %v19020_v34  ;;  %v19301_v34 = vld [vmem:[#allocation2 + $0x11a] sm:$0xff] }
 0x415   : > { %15868 = vmatmul.mubr.msk.f32.gmra.mrb[16].mxu1 %vm171_vm1, %v19285_v7 }
 0x416   : > { %15942 = vmatmul.mubr.msk.f32.gmra.mrb[64].mxu0 %vm171_vm1, %v19025_v17  ;;  %15870 = vmatprep.mubr.msk.f32.mxu1 %vm171_vm1, %v19294_v0  ;;  %v19313_v17 = vld [vmem:[#allocation2 + $0x12a] sm:$0xff] }
 0x417   : > { %15944 = vmatprep.mubr.msk.f32.mxu0 %vm171_vm1, %v19030_v59  ;;  %v19325_v59 = vld [vmem:[#allocation2 + $0x13a] sm:$0xff] }
 0x419   : > { %15871 = vmatmul.mubr.msk.f32.gmra.mrb[18].mxu1 %vm171_vm1, %v19301_v34 }
 0x41a   : > { %15945 = vmatmul.mubr.msk.f32.gmra.mrb[66].mxu0 %vm171_vm1, %v19035_v43  ;;  %15873 = vmatprep.mubr.msk.f32.mxu1 %vm171_vm1, %v19307_v8  ;;  %v19331_v43 = vld [vmem:[#allocation2 + $0x142] sm:$0xff] }
 0x41b   : > { %15947 = vmatprep.mubr.msk.f32.mxu0 %vm171_vm1, %v19040_v27  ;;  %v19337_v27 = vld [vmem:[#allocation2 + $0x14a] sm:$0xff] }
 0x41d   : > { %15874 = vmatmul.mubr.msk.f32.gmra.mrb[20].mxu1 %vm171_vm1, %v19313_v17 }
 0x41e   : > { %15948 = vmatmul.mubr.msk.f32.gmra.mrb[68].mxu0 %vm171_vm1, %v19045_v10  ;;  %15876 = vmatprep.mubr.msk.f32.mxu1 %vm171_vm1, %v19319_v52  ;;  %v19343_v10 = vld [vmem:[#allocation2 + $0x152] sm:$0xff] }
 0x41f   : > { %15950 = vmatprep.mubr.msk.f32.mxu0 %vm171_vm1, %v19050_v29  ;;  %v19349_v29 = vld [vmem:[#allocation2 + $0x15a] sm:$0xff] }
 0x421   : > { %15877 = vmatmul.mubr.msk.f32.gmra.mrb[22].mxu1 %vm171_vm1, %v19325_v59 }
 0x422   : > { %15951 = vmatmul.mubr.msk.f32.gmra.mrb[70].mxu0 %vm171_vm1, %v19055_v45  ;;  %15879 = vmatprep.mubr.msk.f32.mxu1 %vm171_vm1, %v19331_v43  ;;  %v19355_v45 = vld [vmem:[#allocation2 + $0x162] sm:$0xff] }
 0x423   : > { %15953 = vmatprep.mubr.msk.f32.mxu0 %vm171_vm1, %v19060_v51  ;;  %v19361_v51 = vld [vmem:[#allocation2 + $0x16a] sm:$0xff] }
 0x425   : > { %15880 = vmatmul.mubr.msk.f32.gmra.mrb[24].mxu1 %vm171_vm1, %v19337_v27 }
 0x426   : > { %15954 = vmatmul.mubr.msk.f32.gmra.mrb[72].mxu0 %vm171_vm1, %v19065_v40  ;;  %15882 = vmatprep.mubr.msk.f32.mxu1 %vm171_vm1, %v19343_v10  ;;  %v8834_v40 = vld [vmem:[#allocation2 + $0x180] sm:$0xff] }
 0x427   : > { %15956 = vmatprep.mubr.msk.f32.mxu0 %vm171_vm1, %v19070_v55  ;;  %v19366_v55 = vld [vmem:[#allocation2 + $0x172] sm:$0xff] }
 0x429   : > { %15883 = vmatmul.mubr.msk.f32.gmra.mrb[26].mxu1 %vm171_vm1, %v19349_v29 }
 0x42a   : > { %15957 = vmatmul.mubr.msk.f32.gmra.mrb[74].mxu0 %vm171_vm1, %v19075_v62  ;;  %15885 = vmatprep.mubr.msk.f32.mxu1 %vm171_vm1, %v19355_v45  ;;  %v19371_v62 = vld [vmem:[#allocation2 + $0x17a] sm:$0xff] }
 0x42b   : > { %15959 = vmatprep.mubr.msk.f32.mxu0 %vm171_vm1, %v19080_v9  ;;  %v19387_v9 = vld [vmem:[%s20761_s2 + $0x20] sm:$0xf] }
 0x42d   : > { %15886 = vmatmul.mubr.msk.f32.gmra.mrb[28].mxu1 %vm171_vm1, %v19361_v51 }
 0x42e   : > { %15960 = vmatmul.mubr.msk.f32.gmra.mrb[76].mxu0 %vm171_vm1, %v8834_v40  ;;  %15888 = vmatprep.mubr.msk.f32.mxu1 %vm171_vm1, %v19366_v55 }
 0x42f   : > { %15962 = vmatprep.mubr.msk.f32.mxu0 %vm171_vm1, %v8835_v35 }
 0x431   : > { %15889 = vmatmul.mubr.msk.f32.gmra.mrb[30].mxu1 %vm171_vm1, %v19371_v62 }
 0x432   : > { %15963 = vmatmul.mubr.msk.f32.gmra.mrb[78].mxu0 %vm171_vm1, %v8836_v57  ;;  %15967 = vmatprep.mubr.msk.f32.mxu1 %vm171_vm1, %v18760_v22 }
 0x433   : > { %16041 = vmatprep.mubr.msk.f32.mxu0 %vm171_vm1, %v19103_v5 }
 0x435   : > { %15968 = vmatmul.mubr.msk.f32.vlgmr.msra.gmra.mrb[32].mxu1 %vm171_vm1, %v18770_v28 }
 0x436   : > { %16042 = vmatmul.mubr.msk.f32.vlgmr.msra.gmra.mrb[80].mxu0 %vm171_vm1, %v19111_v53  ;;  %16114 = vmatpush3.msk.msra.mxu1 %vm696_vm0, %v19094_v23 }
 0x437   : > { %15970 = vmatprep.mubr.msk.f32.mxu1 %vm171_vm1, %v18778_v12  ;;  %16044 = vmatprep.mubr.msk.f32.mxu0 %vm171_vm1, %v19117_v50 }
 0x438   : > { %16188 = vmatpush3.msk.msra.mxu0 %vm696_vm0, %v14017_v54  ;;  %16261 = vmatprep.subr.msk.mxu1 %vm696_vm0, %v19387_v9 }
 0x439   : > { %15971 = vmatmul.mubr.msk.f32.gmra.mrb[34].mxu1 %vm171_vm1, %v18786_v61 }
 0x43a   : > { %16045 = vmatmul.mubr.msk.f32.gmra.mrb[82].mxu0 %vm171_vm1, %v19123_v60  ;;  %15973 = vmatprep.mubr.msk.f32.mxu1 %vm171_vm1, %v18794_v41  ;;  %v20881_v41 = vld [vmem:[#allocation8_spill] sm:$0xff] }
 0x43b   : > { %16047 = vmatprep.mubr.msk.f32.mxu0 %vm171_vm1, %v19129_v36  ;;  %v20884_v36 = vld [vmem:[#allocation11_spill] sm:$0xff] }
 0x43d   : > { %15974 = vmatmul.mubr.msk.f32.gmra.mrb[36].mxu1 %vm171_vm1, %v18802_v42 }
 0x43e   : > { %16048 = vmatmul.mubr.msk.f32.gmra.mrb[84].mxu0 %vm171_vm1, %v19135_v3  ;;  %15976 = vmatprep.mubr.msk.f32.mxu1 %vm171_vm1, %v18810_v24 }
 0x43f   : > { %16050 = vmatprep.mubr.msk.f32.mxu0 %vm171_vm1, %v19141_v14  ;;  %v20885_v14 = vld [vmem:[#allocation12_spill] sm:$0xff] }
 0x441   : > { %15977 = vmatmul.mubr.msk.f32.gmra.mrb[38].mxu1 %vm171_vm1, %v18818_v63 }
 0x442   : > { %16051 = vmatmul.mubr.msk.f32.gmra.mrb[86].mxu0 %vm171_vm1, %v19147_v6  ;;  %15979 = vmatprep.mubr.msk.f32.mxu1 %vm171_vm1, %v18826_v16 }
 0x443   : > { %16053 = vmatprep.mubr.msk.f32.mxu0 %vm171_vm1, %v19153_v19 }
 0x445   : > { %15980 = vmatmul.mubr.msk.f32.gmra.mrb[40].mxu1 %vm171_vm1, %v18834_v18  ;;  %v20882_v18 = vld [vmem:[#allocation9_spill] sm:$0xff] }
 0x446   : > { %16054 = vmatmul.mubr.msk.f32.gmra.mrb[88].mxu0 %vm171_vm1, %v19159_v58  ;;  %15982 = vmatprep.mubr.msk.f32.mxu1 %vm171_vm1, %v18842_v4  ;;  %v20883_v4 = vld [vmem:[#allocation10_spill] sm:$0xff] }
 0x447   : > { %16056 = vmatprep.mubr.msk.f32.mxu0 %vm171_vm1, %v19165_v37 }
 0x448   : > { %v15673_v22 = vpop.f32.mrb[192].mxu1 }
 0x449   : > { %v15747_v28 = vpop.f32.mrb[240].mxu0  ;;  %7450 = vst.msk [vmem:[#allocation3 + $0x8] sm:$0xff] %vm171_vm1, %v15673_v22  ;;  %v7210_v12 = vpop.f32.mrb[193].mxu1  ;;  %15983 = vmatmul.mubr.msk.f32.gmra.mrb[42].mxu1 %vm171_vm1, %v18850_v44 }
 0x44a   : > { %v7760_v61 = vpop.f32.mrb[241].mxu0  ;;  %16057 = vmatmul.mubr.msk.f32.gmra.mrb[90].mxu0 %vm171_vm1, %v19171_v56  ;;  %7449 = vst.msk [vmem:[#allocation3] sm:$0xff] %vm171_vm1, %v7210_v12  ;;  %15985 = vmatprep.mubr.msk.f32.mxu1 %vm171_vm1, %v20881_v41  ;;  %v20888_v12 = vld [vmem:[#allocation15_spill] sm:$0xff] }
 0x44b   : > { %16059 = vmatprep.mubr.msk.f32.mxu0 %vm171_vm1, %v19177_v39 }
 0x44c   : > { %v15676_v42 = vpop.f32.mrb[194].mxu1 }
 0x44d   : > { %v15750_v24 = vpop.f32.mrb[242].mxu0  ;;  %7452 = vst.msk [vmem:[#allocation3 + $0x18] sm:$0xff] %vm171_vm1, %v15676_v42  ;;  %v7220_v63 = vpop.f32.mrb[195].mxu1  ;;  %15986 = vmatmul.mubr.msk.f32.gmra.mrb[44].mxu1 %vm171_vm1, %v20882_v18 }
 0x44e   : > { %v7770_v16 = vpop.f32.mrb[243].mxu0  ;;  %16060 = vmatmul.mubr.msk.f32.gmra.mrb[92].mxu0 %vm171_vm1, %v19183_v15  ;;  %7451 = vst.msk [vmem:[#allocation3 + $0x10] sm:$0xff] %vm171_vm1, %v7220_v63  ;;  %15988 = vmatprep.mubr.msk.f32.mxu1 %vm171_vm1, %v20883_v4  ;;  %v20890_v4 = vld [vmem:[#allocation17_spill] sm:$0xff] }
 0x44f   : > { %16062 = vmatprep.mubr.msk.f32.mxu0 %vm171_vm1, %v19189_v20  ;;  %v20886_v20 = vld [vmem:[#allocation13_spill] sm:$0xff] }
 0x450   : > { %v8000_v44 = vld [vmem:[#allocation3 + $0x8] sm:$0xff]  ;;  %v15679_v23 = vpop.f32.mrb[196].mxu1 }
 0x451   : > { %v15753_v49 = vpop.f32.mrb[244].mxu0  ;;  %v8048_v5 = vadd.f32 %v15747_v28, %v8000_v44  ;;  %v7999_v53 = vld [vmem:[#allocation3] sm:$0xff]  ;;  %7454 = vst.msk [vmem:[#allocation3 + $0x28] sm:$0xff] %vm171_vm1, %v15679_v23  ;;  %v7230_v50 = vpop.f32.mrb[197].mxu1  ;;  %15989 = vmatmul.mubr.msk.f32.gmra.mrb[46].mxu1 %vm171_vm1, %v20884_v36  ;;  %v20891_v44 = vld [vmem:[#allocation18_spill] sm:$0xff]  ;;  %v20892_v36 = vld [vmem:[#allocation7_spill] sm:$0xff] }
 0x452   : > { %v7780_v60 = vpop.f32.mrb[245].mxu0  ;;  %16063 = vmatmul.mubr.msk.f32.gmra.mrb[94].mxu0 %vm171_vm1, %v19195_v25  ;;  %v8047_v3 = vadd.f32 %v7999_v53, %v7760_v61  ;;  %7453 = vst.msk [vmem:[#allocation3 + $0x20] sm:$0xff] %vm171_vm1, %v7230_v50  ;;  %15991 = vmatprep.mubr.msk.f32.mxu1 %vm171_vm1, %v20885_v14  ;;  %v20889_v61 = vld [vmem:[#allocation16_spill] sm:$0xff] }
 0x453   : > { %16065 = vmatprep.mubr.msk.f32.mxu0 %vm171_vm1, %v19201_v2  ;;  %8096 = vst.msk [vmem:[#allocation3 + $0x8] sm:$0xff] %vm171_vm1, %v8048_v5  ;;  %v20887_v2 = vld [vmem:[#allocation14_spill] sm:$0xff] }
 0x454   : > { %8095 = vst.msk [vmem:[#allocation3] sm:$0xff] %vm171_vm1, %v8047_v3  ;;  %v8002_v6 = vld [vmem:[#allocation3 + $0x18] sm:$0xff]  ;;  %v15682_v19 = vpop.f32.mrb[198].mxu1  ;;  %v20893_v3 = vld [vmem:[#allocation6_spill] sm:$0xff] }
 0x455   : > { %v15756_v58 = vpop.f32.mrb[246].mxu0  ;;  %v8050_v37 = vadd.f32 %v15750_v24, %v8002_v6  ;;  %v8001_v56 = vld [vmem:[#allocation3 + $0x10] sm:$0xff]  ;;  %7456 = vst.msk [vmem:[#allocation3 + $0x38] sm:$0xff] %vm171_vm1, %v15682_v19  ;;  %v7240_v39 = vpop.f32.mrb[199].mxu1  ;;  %15992 = vmatmul.mubr.msk.f32.gmra.mrb[48].mxu1 %vm171_vm1, %v20886_v20 }
 0x456   : > { %v7790_v15 = vpop.f32.mrb[247].mxu0  ;;  %16066 = vmatmul.mubr.msk.f32.gmra.mrb[96].mxu0 %vm171_vm1, %v19207_v11  ;;  %v8049_v25 = vadd.f32 %v8001_v56, %v7770_v16  ;;  %7455 = vst.msk [vmem:[#allocation3 + $0x30] sm:$0xff] %vm171_vm1, %v7240_v39  ;;  %15994 = vmatprep.mubr.msk.f32.mxu1 %vm171_vm1, %v20887_v2  ;;  %v20894_v39 = vld [vmem:[#allocation4_spill] sm:$0xff] }
 0x457   : > { %16068 = vmatprep.mubr.msk.f32.mxu0 %vm171_vm1, %v19213_v48  ;;  %8098 = vst.msk [vmem:[#allocation3 + $0x18] sm:$0xff] %vm171_vm1, %v8050_v37 }
 0x458   : > { %8097 = vst.msk [vmem:[#allocation3 + $0x10] sm:$0xff] %vm171_vm1, %v8049_v25  ;;  %v8004_v54 = vld [vmem:[#allocation3 + $0x28] sm:$0xff]  ;;  %v15685_v40 = vpop.f32.mrb[200].mxu1 }
 0x459   : > { %v15759_v35 = vpop.f32.mrb[248].mxu0  ;;  %v8052_v57 = vadd.f32 %v15753_v49, %v8004_v54  ;;  %v8003_v22 = vld [vmem:[#allocation3 + $0x20] sm:$0xff]  ;;  %7458 = vst.msk [vmem:[#allocation3 + $0x48] sm:$0xff] %vm171_vm1, %v15685_v40  ;;  %v7250_v11 = vpop.f32.mrb[201].mxu1  ;;  %15995 = vmatmul.mubr.msk.f32.gmra.mrb[50].mxu1 %vm171_vm1, %v20888_v12 }
 0x45a   : > { %v7800_v28 = vpop.f32.mrb[249].mxu0  ;;  %16069 = vmatmul.mubr.msk.f32.gmra.mrb[98].mxu0 %vm171_vm1, %v19219_v47  ;;  %v8051_v48 = vadd.f32 %v8003_v22, %v7780_v60  ;;  %7457 = vst.msk [vmem:[#allocation3 + $0x40] sm:$0xff] %vm171_vm1, %v7250_v11  ;;  %15997 = vmatprep.mubr.msk.f32.mxu1 %vm171_vm1, %v20889_v61  ;;  %v20897_v22 = vld [vmem:[#allocation20_spill] sm:$0xff] }
 0x45b   : > { %16071 = vmatprep.mubr.msk.f32.mxu0 %vm171_vm1, %v19225_v33  ;;  %8100 = vst.msk [vmem:[#allocation3 + $0x28] sm:$0xff] %vm171_vm1, %v8052_v57  ;;  %v20896_v57 = vld [vmem:[#allocation19_spill] sm:$0xff] }
 0x45c   : > { %8099 = vst.msk [vmem:[#allocation3 + $0x20] sm:$0xff] %vm171_vm1, %v8051_v48  ;;  %v8006_v41 = vld [vmem:[#allocation3 + $0x38] sm:$0xff]  ;;  %v15688_v42 = vpop.f32.mrb[202].mxu1 }
 0x45d   : > { %v15762_v24 = vpop.f32.mrb[250].mxu0  ;;  %v8054_v63 = vadd.f32 %v15756_v58, %v8006_v41  ;;  %v8005_v16 = vld [vmem:[#allocation3 + $0x30] sm:$0xff]  ;;  %7460 = vst.msk [vmem:[#allocation3 + $0x58] sm:$0xff] %vm171_vm1, %v15688_v42  ;;  %v7260_v47 = vpop.f32.mrb[203].mxu1  ;;  %15998 = vmatmul.mubr.msk.f32.gmra.mrb[52].mxu1 %vm171_vm1, %v20890_v4  ;;  %v20898_v42 = vld [vmem:[#allocation21_spill] sm:$0xff] }
 0x45e   : > { %v7810_v18 = vpop.f32.mrb[251].mxu0  ;;  %16072 = vmatmul.mubr.msk.f32.gmra.mrb[100].mxu0 %vm171_vm1, %v19231_v46  ;;  %v8053_v33 = vadd.f32 %v8005_v16, %v7790_v15  ;;  %7459 = vst.msk [vmem:[#allocation3 + $0x50] sm:$0xff] %vm171_vm1, %v7260_v47  ;;  %16000 = vmatprep.mubr.msk.f32.mxu1 %vm171_vm1, %v20891_v44  ;;  %v20895_v15 = vld [vmem:[#allocation5_spill] sm:$0xff] }
 0x45f   : > { %16074 = vmatprep.mubr.msk.f32.mxu0 %vm171_vm1, %v19237_v21  ;;  %8102 = vst.msk [vmem:[#allocation3 + $0x38] sm:$0xff] %vm171_vm1, %v8054_v63 }
 0x460   : > { %8101 = vst.msk [vmem:[#allocation3 + $0x30] sm:$0xff] %vm171_vm1, %v8053_v33  ;;  %v8008_v23 = vld [vmem:[#allocation3 + $0x48] sm:$0xff]  ;;  %v15691_v49 = vpop.f32.mrb[204].mxu1 }
 0x461   : > { %v15765_v5 = vpop.f32.mrb[252].mxu0  ;;  %v8056_v53 = vadd.f32 %v15759_v35, %v8008_v23  ;;  %v8007_v50 = vld [vmem:[#allocation3 + $0x40] sm:$0xff]  ;;  %7462 = vst.msk [vmem:[#allocation3 + $0x68] sm:$0xff] %vm171_vm1, %v15691_v49  ;;  %v7270_v46 = vpop.f32.mrb[205].mxu1  ;;  %16001 = vmatmul.mubr.msk.f32.gmra.mrb[54].mxu1 %vm171_vm1, %v20892_v36 }
 0x462   : > { %v7820_v60 = vpop.f32.mrb[253].mxu0  ;;  %16075 = vmatmul.mubr.msk.f32.gmra.mrb[102].mxu0 %vm171_vm1, %v19243_v1  ;;  %v8055_v21 = vadd.f32 %v8007_v50, %v7800_v28  ;;  %7461 = vst.msk [vmem:[#allocation3 + $0x60] sm:$0xff] %vm171_vm1, %v7270_v46  ;;  %16003 = vmatprep.mubr.msk.f32.mxu1 %vm171_vm1, %v20893_v3  ;;  %v19562_v50 = vld [vmem:[#allocation2 + $0x121] sm:$0xff] }
 0x463   : > { %16077 = vmatprep.mubr.msk.f32.mxu0 %vm171_vm1, %v19249_v38  ;;  %8104 = vst.msk [vmem:[#allocation3 + $0x48] sm:$0xff] %vm171_vm1, %v8056_v53 }
 0x464   : > { %8103 = vst.msk [vmem:[#allocation3 + $0x40] sm:$0xff] %vm171_vm1, %v8055_v21  ;;  %v8010_v14 = vld [vmem:[#allocation3 + $0x58] sm:$0xff]  ;;  %v15694_v6 = vpop.f32.mrb[206].mxu1 }
 0x465   : > { %v15768_v19 = vpop.f32.mrb[254].mxu0  ;;  %v8058_v58 = vadd.f32 %v15762_v24, %v8010_v14  ;;  %v8009_v37 = vld [vmem:[#allocation3 + $0x50] sm:$0xff]  ;;  %7464 = vst.msk [vmem:[#allocation3 + $0x78] sm:$0xff] %vm171_vm1, %v15694_v6  ;;  %v7280_v1 = vpop.f32.mrb[207].mxu1  ;;  %16004 = vmatmul.mubr.msk.f32.gmra.mrb[56].mxu1 %vm171_vm1, %v20894_v39 }
 0x466   : > { %v7830_v56 = vpop.f32.mrb[255].mxu0  ;;  %16078 = vmatmul.mubr.msk.f32.gmra.mrb[104].mxu0 %vm171_vm1, %v19255_v30  ;;  %v8057_v38 = vadd.f32 %v8009_v37, %v7810_v18  ;;  %7463 = vst.msk [vmem:[#allocation3 + $0x70] sm:$0xff] %vm171_vm1, %v7280_v1  ;;  %16006 = vmatprep.mubr.msk.f32.mxu1 %vm171_vm1, %v20895_v15  ;;  %v20899_v24 = vld [vmem:[#allocation22_spill] sm:$0xff] }
 0x467   : > { %16080 = vmatprep.mubr.msk.f32.mxu0 %vm171_vm1, %v19261_v26  ;;  %8106 = vst.msk [vmem:[#allocation3 + $0x58] sm:$0xff] %vm171_vm1, %v8058_v58  ;;  %v19546_v18 = vld [vmem:[#allocation2 + $0x111] sm:$0xff] }
 0x468   : > { %8105 = vst.msk [vmem:[#allocation3 + $0x50] sm:$0xff] %vm171_vm1, %v8057_v38  ;;  %v8012_v20 = vld [vmem:[#allocation3 + $0x68] sm:$0xff]  ;;  %v15697_v25 = vpop.f32.mrb[208].mxu1 }
 0x469   : > { %v15771_v2 = vpop.f32.mrb[0].mxu0  ;;  %v8060_v54 = vadd.f32 %v15765_v5, %v8012_v20  ;;  %v8011_v40 = vld [vmem:[#allocation3 + $0x60] sm:$0xff]  ;;  %7466 = vst.msk [vmem:[#allocation3 + $0x88] sm:$0xff] %vm171_vm1, %v15697_v25  ;;  %v7290_v30 = vpop.f32.mrb[209].mxu1  ;;  %16007 = vmatmul.mubr.msk.f32.gmra.mrb[58].mxu1 %vm171_vm1, %v20896_v57 }
 0x46a   : > { %v7840_v35 = vpop.f32.mrb[1].mxu0  ;;  %16081 = vmatmul.mubr.msk.f32.gmra.mrb[106].mxu0 %vm171_vm1, %v19267_v13  ;;  %v8059_v26 = vadd.f32 %v8011_v40, %v7820_v60  ;;  %7465 = vst.msk [vmem:[#allocation3 + $0x80] sm:$0xff] %vm171_vm1, %v7290_v30  ;;  %16009 = vmatprep.mubr.msk.f32.mxu1 %vm171_vm1, %v20897_v22  ;;  %v19594_v20 = vld [vmem:[#allocation2 + $0x141] sm:$0xff] }
 0x46b   : > { %16083 = vmatprep.mubr.msk.f32.mxu0 %vm171_vm1, %v19273_v31  ;;  %8108 = vst.msk [vmem:[#allocation3 + $0x68] sm:$0xff] %vm171_vm1, %v8060_v54 }
 0x46c   : > { %8107 = vst.msk [vmem:[#allocation3 + $0x60] sm:$0xff] %vm171_vm1, %v8059_v26  ;;  %v8014_v11 = vld [vmem:[#allocation3 + $0x78] sm:$0xff]  ;;  %v15700_v28 = vpop.f32.mrb[210].mxu1  ;;  %v19607_v26 = vld [vmem:[#allocation2 + $0x151] sm:$0xff] }
 0x46d   : > { %v15774_v12 = vpop.f32.mrb[2].mxu0  ;;  %v8062_v48 = vadd.f32 %v15768_v19, %v8014_v11  ;;  %v8013_v61 = vld [vmem:[#allocation3 + $0x70] sm:$0xff]  ;;  %7468 = vst.msk [vmem:[#allocation3 + $0x98] sm:$0xff] %vm171_vm1, %v15700_v28  ;;  %v7300_v13 = vpop.f32.mrb[211].mxu1  ;;  %16010 = vmatmul.mubr.msk.f32.gmra.mrb[60].mxu1 %vm171_vm1, %v20898_v42 }
 0x46e   : > { %v7850_v41 = vpop.f32.mrb[3].mxu0  ;;  %16084 = vmatmul.mubr.msk.f32.gmra.mrb[108].mxu0 %vm171_vm1, %v19279_v32  ;;  %v8061_v31 = vadd.f32 %v8013_v61, %v7830_v56  ;;  %7467 = vst.msk [vmem:[#allocation3 + $0x90] sm:$0xff] %vm171_vm1, %v7300_v13  ;;  %16012 = vmatprep.mubr.msk.f32.mxu1 %vm171_vm1, %v20899_v24  ;;  %v19578_v19 = vld [vmem:[#allocation2 + $0x131] sm:$0xff] }
 0x46f   : > { %16086 = vmatprep.mubr.msk.f32.mxu0 %vm171_vm1, %v19285_v7  ;;  %8110 = vst.msk [vmem:[#allocation3 + $0x78] sm:$0xff] %vm171_vm1, %v8062_v48  ;;  %v19553_v7 = vld [vmem:[#allocation2 + $0x119] sm:$0xff] }
 0x470   : > { %8109 = vst.msk [vmem:[#allocation3 + $0x70] sm:$0xff] %vm171_vm1, %v8061_v31  ;;  %v8016_v63 = vld [vmem:[#allocation3 + $0x88] sm:$0xff]  ;;  %v15703_v16 = vpop.f32.mrb[212].mxu1 }
 0x471   : > { %v15777_v47 = vpop.f32.mrb[4].mxu0  ;;  %v8064_v4 = vadd.f32 %v15771_v2, %v8016_v63  ;;  %v8015_v32 = vld [vmem:[#allocation3 + $0x80] sm:$0xff]  ;;  %7470 = vst.msk [vmem:[#allocation3 + $0xa8] sm:$0xff] %vm171_vm1, %v15703_v16  ;;  %v7310_v33 = vpop.f32.mrb[213].mxu1  ;;  %16013 = vmatmul.mubr.msk.f32.gmra.mrb[62].mxu1 %vm171_vm1, %v19546_v18 }
 0x472   : > { %v7860_v44 = vpop.f32.mrb[5].mxu0  ;;  %16087 = vmatmul.mubr.msk.f32.gmra.mrb[110].mxu0 %vm171_vm1, %v19294_v0  ;;  %v8063_v23 = vadd.f32 %v8015_v32, %v7840_v35  ;;  %7469 = vst.msk [vmem:[#allocation3 + $0xa0] sm:$0xff] %vm171_vm1, %v7310_v33  ;;  %16015 = vmatprep.mubr.msk.f32.mxu1 %vm171_vm1, %v19553_v7  ;;  %v19633_v32 = vld [vmem:[#allocation2 + $0x171] sm:$0xff] }
 0x473   : > { %16089 = vmatprep.mubr.msk.f32.mxu0 %vm171_vm1, %v19301_v34  ;;  %8112 = vst.msk [vmem:[#allocation3 + $0x88] sm:$0xff] %vm171_vm1, %v8064_v4  ;;  %v19569_v34 = vld [vmem:[#allocation2 + $0x129] sm:$0xff] }
 0x474   : > { %8111 = vst.msk [vmem:[#allocation3 + $0x80] sm:$0xff] %vm171_vm1, %v8063_v23  ;;  %v8018_v49 = vld [vmem:[#allocation3 + $0x98] sm:$0xff]  ;;  %v15706_v5 = vpop.f32.mrb[214].mxu1 }
 0x475   : > { %v15780_v53 = vpop.f32.mrb[6].mxu0  ;;  %v8066_v0 = vadd.f32 %v15774_v12, %v8018_v49  ;;  %v8017_v46 = vld [vmem:[#allocation3 + $0x90] sm:$0xff]  ;;  %7472 = vst.msk [vmem:[#allocation3 + $0xb8] sm:$0xff] %vm171_vm1, %v15706_v5  ;;  %v7320_v60 = vpop.f32.mrb[215].mxu1  ;;  %16016 = vmatmul.mubr.msk.f32.gmra.mrb[64].mxu1 %vm171_vm1, %v19562_v50 }
 0x476   : > { %v7870_v36 = vpop.f32.mrb[7].mxu0  ;;  %16090 = vmatmul.mubr.msk.f32.gmra.mrb[112].mxu0 %vm171_vm1, %v19307_v8  ;;  %v8065_v21 = vadd.f32 %v8017_v46, %v7850_v41  ;;  %7471 = vst.msk [vmem:[#allocation3 + $0xb0] sm:$0xff] %vm171_vm1, %v7320_v60  ;;  %16018 = vmatprep.mubr.msk.f32.mxu1 %vm171_vm1, %v19569_v34  ;;  %v19620_v41 = vld [vmem:[#allocation2 + $0x161] sm:$0xff] }
 0x477   : > { %16092 = vmatprep.mubr.msk.f32.mxu0 %vm171_vm1, %v19313_v17  ;;  %8114 = vst.msk [vmem:[#allocation3 + $0x98] sm:$0xff] %vm171_vm1, %v8066_v0  ;;  %v19585_v17 = vld [vmem:[#allocation2 + $0x139] sm:$0xff]  ;;  %v9480_v46 = vld [vmem:[#allocation2 + $0x181] sm:$0xff] }
 0x478   : > { %8113 = vst.msk [vmem:[#allocation3 + $0x90] sm:$0xff] %vm171_vm1, %v8065_v21  ;;  %v8020_v3 = vld [vmem:[#allocation3 + $0xa8] sm:$0xff]  ;;  %v15709_v14 = vpop.f32.mrb[216].mxu1  ;;  %v10126_v60 = vld [vmem:[#allocation2 + $0x182] sm:$0xff] }
 0x479   : > { %v15783_v6 = vpop.f32.mrb[8].mxu0  ;;  %v8068_v8 = vadd.f32 %v15777_v47, %v8020_v3  ;;  %v8019_v58 = vld [vmem:[#allocation3 + $0xa0] sm:$0xff]  ;;  %7474 = vst.msk [vmem:[#allocation3 + $0xc8] sm:$0xff] %vm171_vm1, %v15709_v14  ;;  %v7330_v37 = vpop.f32.mrb[217].mxu1  ;;  %16019 = vmatmul.mubr.msk.f32.gmra.mrb[66].mxu1 %vm171_vm1, %v19578_v19 }
 0x47a   : > { %v7880_v1 = vpop.f32.mrb[9].mxu0  ;;  %16093 = vmatmul.mubr.msk.f32.gmra.mrb[114].mxu0 %vm171_vm1, %v19319_v52  ;;  %v8067_v56 = vadd.f32 %v8019_v58, %v7860_v44  ;;  %7473 = vst.msk [vmem:[#allocation3 + $0xc0] sm:$0xff] %vm171_vm1, %v7330_v37  ;;  %16021 = vmatprep.mubr.msk.f32.mxu1 %vm171_vm1, %v19585_v17  ;;  %v10127_v14 = vld [vmem:[#allocation2 + $0x18a] sm:$0xff] }
 0x47b   : > { %16095 = vmatprep.mubr.msk.f32.mxu0 %vm171_vm1, %v19325_v59  ;;  %8116 = vst.msk [vmem:[#allocation3 + $0xa8] sm:$0xff] %vm171_vm1, %v8068_v8  ;;  %v9473_v59 = vld [vmem:[#allocation2 + $0x149] sm:$0xff] }
 0x47c   : > { %8115 = vst.msk [vmem:[#allocation3 + $0xa0] sm:$0xff] %vm171_vm1, %v8067_v56  ;;  %v8022_v39 = vld [vmem:[#allocation3 + $0xb8] sm:$0xff]  ;;  %v15712_v38 = vpop.f32.mrb[218].mxu1  ;;  %v10128_v56 = vld [vmem:[#allocation2 + $0x192] sm:$0xff] }
 0x47d   : > { %v15786_v15 = vpop.f32.mrb[10].mxu0  ;;  %v8070_v52 = vadd.f32 %v15780_v53, %v8022_v39  ;;  %v8021_v25 = vld [vmem:[#allocation3 + $0xb0] sm:$0xff]  ;;  %7476 = vst.msk [vmem:[#allocation3 + $0xd8] sm:$0xff] %vm171_vm1, %v15712_v38  ;;  %v7340_v2 = vpop.f32.mrb[219].mxu1  ;;  %16022 = vmatmul.mubr.msk.f32.gmra.mrb[68].mxu1 %vm171_vm1, %v19594_v20 }
 0x47e   : > { %v7890_v54 = vpop.f32.mrb[11].mxu0  ;;  %16096 = vmatmul.mubr.msk.f32.gmra.mrb[116].mxu0 %vm171_vm1, %v19331_v43  ;;  %v8069_v40 = vadd.f32 %v8021_v25, %v7870_v36  ;;  %7475 = vst.msk [vmem:[#allocation3 + $0xd0] sm:$0xff] %vm171_vm1, %v7340_v2  ;;  %16024 = vmatprep.mubr.msk.f32.mxu1 %vm171_vm1, %v9473_v59  ;;  %v10727_v25 = vld [vmem:[#allocation2 + $0x30] sm:$0xff] }
 0x47f   : > { %16098 = vmatprep.mubr.msk.f32.mxu0 %vm171_vm1, %v19337_v27  ;;  %8118 = vst.msk [vmem:[#allocation3 + $0xb8] sm:$0xff] %vm171_vm1, %v8070_v52  ;;  %v9475_v27 = vld [vmem:[#allocation2 + $0x159] sm:$0xff]  ;;  %v11373_v2 = vld [vmem:[#allocation2 + $0x31] sm:$0xff] }
 0x480   : > { %8117 = vst.msk [vmem:[#allocation3 + $0xb0] sm:$0xff] %vm171_vm1, %v8069_v40  ;;  %v8024_v30 = vld [vmem:[#allocation3 + $0xc8] sm:$0xff]  ;;  %v15715_v35 = vpop.f32.mrb[220].mxu1 }
 0x481   : > { %v15789_v57 = vpop.f32.mrb[12].mxu0  ;;  %v8072_v22 = vadd.f32 %v15783_v6, %v8024_v30  ;;  %v8023_v43 = vld [vmem:[#allocation3 + $0xc0] sm:$0xff]  ;;  %7478 = vst.msk [vmem:[#allocation3 + $0xe8] sm:$0xff] %vm171_vm1, %v15715_v35  ;;  %v7350_v11 = vpop.f32.mrb[221].mxu1  ;;  %16025 = vmatmul.mubr.msk.f32.gmra.mrb[70].mxu1 %vm171_vm1, %v19607_v26  ;;  %v10728_v35 = vld [vmem:[#allocation2 + $0x38] sm:$0xff] }
 0x482   : > { %v7900_v28 = vpop.f32.mrb[13].mxu0  ;;  %16099 = vmatmul.mubr.msk.f32.gmra.mrb[118].mxu0 %vm171_vm1, %v19343_v10  ;;  %v8071_v12 = vadd.f32 %v8023_v43, %v7880_v1  ;;  %7477 = vst.msk [vmem:[#allocation3 + $0xe0] sm:$0xff] %vm171_vm1, %v7350_v11  ;;  %16027 = vmatprep.mubr.msk.f32.mxu1 %vm171_vm1, %v9475_v27  ;;  %v9482_v1 = vld [vmem:[#allocation2 + $0x191] sm:$0xff]  ;;  %v10729_v27 = vld [vmem:[#allocation2 + $0x40] sm:$0xff] }
 0x483   : > { %16101 = vmatprep.mubr.msk.f32.mxu0 %vm171_vm1, %v19349_v29  ;;  %8120 = vst.msk [vmem:[#allocation3 + $0xc8] sm:$0xff] %vm171_vm1, %v8072_v22  ;;  %v9477_v29 = vld [vmem:[#allocation2 + $0x169] sm:$0xff] }
 0x484   : > { %8119 = vst.msk [vmem:[#allocation3 + $0xc0] sm:$0xff] %vm171_vm1, %v8071_v12  ;;  %v8026_v48 = vld [vmem:[#allocation3 + $0xd8] sm:$0xff]  ;;  %v15718_v61 = vpop.f32.mrb[222].mxu1 }
 0x485   : > { %v15792_v13 = vpop.f32.mrb[14].mxu0  ;;  %v8074_v42 = vadd.f32 %v15786_v15, %v8026_v48  ;;  %v8025_v10 = vld [vmem:[#allocation3 + $0xd0] sm:$0xff]  ;;  %7480 = vst.msk [vmem:[#allocation3 + $0xf8] sm:$0xff] %vm171_vm1, %v15718_v61  ;;  %v7360_v31 = vpop.f32.mrb[223].mxu1  ;;  %16028 = vmatmul.mubr.msk.f32.gmra.mrb[72].mxu1 %vm171_vm1, %v19620_v41  ;;  %v11375_v48 = vld [vmem:[#allocation2 + $0x41] sm:$0xff] }
 0x486   : > { %v7910_v24 = vpop.f32.mrb[15].mxu0  ;;  %16102 = vmatmul.mubr.msk.f32.gmra.mrb[120].mxu0 %vm171_vm1, %v19355_v45  ;;  %v8073_v63 = vadd.f32 %v8025_v10, %v7890_v54  ;;  %7479 = vst.msk [vmem:[#allocation3 + $0xf0] sm:$0xff] %vm171_vm1, %v7360_v31  ;;  %16030 = vmatprep.mubr.msk.f32.mxu1 %vm171_vm1, %v9477_v29  ;;  %v10730_v10 = vld [vmem:[#allocation2 + $0x48] sm:$0xff] }
 0x487   : > { %16104 = vmatprep.mubr.msk.f32.mxu0 %vm171_vm1, %v19361_v51  ;;  %8122 = vst.msk [vmem:[#allocation3 + $0xd8] sm:$0xff] %vm171_vm1, %v8074_v42  ;;  %v9479_v51 = vld [vmem:[#allocation2 + $0x179] sm:$0xff]  ;;  %v11376_v31 = vld [vmem:[#allocation2 + $0x49] sm:$0xff] }
 0x488   : > { %8121 = vst.msk [vmem:[#allocation3 + $0xd0] sm:$0xff] %vm171_vm1, %v8073_v63  ;;  %v8028_v16 = vld [vmem:[#allocation3 + $0xe8] sm:$0xff]  ;;  %v15721_v47 = vpop.f32.mrb[224].mxu1 }
 0x489   : > { %v15795_v4 = vpop.f32.mrb[16].mxu0  ;;  %v8076_v33 = vadd.f32 %v15789_v57, %v8028_v16  ;;  %v8027_v45 = vld [vmem:[#allocation3 + $0xe0] sm:$0xff]  ;;  %7482 = vst.msk [vmem:[#allocation3 + $0x108] sm:$0xff] %vm171_vm1, %v15721_v47  ;;  %v7370_v44 = vpop.f32.mrb[225].mxu1  ;;  %16031 = vmatmul.mubr.msk.f32.gmra.mrb[74].mxu1 %vm171_vm1, %v19633_v32  ;;  %v11374_v57 = vld [vmem:[#allocation2 + $0x39] sm:$0xff]  ;;  %v10731_v16 = vld [vmem:[#allocation2 + $0x50] sm:$0xff] }
 0x48a   : > { %v7920_v23 = vpop.f32.mrb[17].mxu0  ;;  %16105 = vmatmul.mubr.msk.f32.gmra.mrb[122].mxu0 %vm171_vm1, %v19366_v55  ;;  %v8075_v49 = vadd.f32 %v8027_v45, %v7900_v28  ;;  %7481 = vst.msk [vmem:[#allocation3 + $0x100] sm:$0xff] %vm171_vm1, %v7370_v44  ;;  %16033 = vmatprep.mubr.msk.f32.mxu1 %vm171_vm1, %v9479_v51  ;;  %v11377_v47 = vld [vmem:[#allocation2 + $0x51] sm:$0xff]  ;;  %v11378_v51 = vld [vmem:[#allocation2 + $0x59] sm:$0xff] }
 0x48b   : > { %16107 = vmatprep.mubr.msk.f32.mxu0 %vm171_vm1, %v19371_v62  ;;  %8124 = vst.msk [vmem:[#allocation3 + $0xe8] sm:$0xff] %vm171_vm1, %v8076_v33  ;;  %v9481_v62 = vld [vmem:[#allocation2 + $0x189] sm:$0xff] }
 0x48c   : > { %8123 = vst.msk [vmem:[#allocation3 + $0xe0] sm:$0xff] %vm171_vm1, %v8075_v49  ;;  %v8030_v5 = vld [vmem:[#allocation3 + $0xf8] sm:$0xff]  ;;  %v15724_v53 = vpop.f32.mrb[226].mxu1 }
 0x48d   : > { %v15798_v0 = vpop.f32.mrb[18].mxu0  ;;  %v8078_v36 = vadd.f32 %v15792_v13, %v8030_v5  ;;  %v8029_v55 = vld [vmem:[#allocation3 + $0xf0] sm:$0xff]  ;;  %7484 = vst.msk [vmem:[#allocation3 + $0x118] sm:$0xff] %vm171_vm1, %v15724_v53  ;;  %v7380_v21 = vpop.f32.mrb[227].mxu1  ;;  %16034 = vmatmul.mubr.msk.f32.gmra.mrb[76].mxu1 %vm171_vm1, %v9480_v46  ;;  %v10733_v46 = vld [vmem:[#allocation2 + $0x60] sm:$0xff] }
 0x48e   : > { %v7930_v3 = vpop.f32.mrb[19].mxu0  ;;  %16108 = vmatmul.mubr.msk.f32.gmra.mrb[124].mxu0 %vm171_vm1, %v10126_v60  ;;  %v8077_v6 = vadd.f32 %v8029_v55, %v7910_v24  ;;  %7483 = vst.msk [vmem:[#allocation3 + $0x110] sm:$0xff] %vm171_vm1, %v7380_v21  ;;  %16036 = vmatprep.mubr.msk.f32.mxu1 %vm171_vm1, %v9481_v62  ;;  %v11379_v60 = vld [vmem:[#allocation2 + $0x61] sm:$0xff] }
 0x48f   : > { %16110 = vmatprep.mubr.msk.f32.mxu0 %vm171_vm1, %v10127_v14  ;;  %8126 = vst.msk [vmem:[#allocation3 + $0xf8] sm:$0xff] %vm171_vm1, %v8078_v36  ;;  %v10734_v62 = vld [vmem:[#allocation2 + $0x68] sm:$0xff] }
 0x490   : > { %8125 = vst.msk [vmem:[#allocation3 + $0xf0] sm:$0xff] %vm171_vm1, %v8077_v6  ;;  %v8032_v8 = vld [vmem:[#allocation3 + $0x108] sm:$0xff]  ;;  %v15727_v58 = vpop.f32.mrb[228].mxu1 }
 0x491   : > { %v15801_v37 = vpop.f32.mrb[20].mxu0  ;;  %v8080_v39 = vadd.f32 %v15795_v4, %v8032_v8  ;;  %v8031_v38 = vld [vmem:[#allocation3 + $0x100] sm:$0xff]  ;;  %7486 = vst.msk [vmem:[#allocation3 + $0x128] sm:$0xff] %vm171_vm1, %v15727_v58  ;;  %v7390_v15 = vpop.f32.mrb[229].mxu1  ;;  %16037 = vmatmul.mubr.msk.f32.gmra.mrb[78].mxu1 %vm171_vm1, %v9482_v1  ;;  %v10735_v1 = vld [vmem:[#allocation2 + $0x70] sm:$0xff] }
 0x492   : > { %v7940_v52 = vpop.f32.mrb[21].mxu0  ;;  %16111 = vmatmul.mubr.msk.f32.gmra.mrb[126].mxu0 %vm171_vm1, %v10128_v56  ;;  %v8079_v54 = vadd.f32 %v8031_v38, %v7920_v23  ;;  %7485 = vst.msk [vmem:[#allocation3 + $0x120] sm:$0xff] %vm171_vm1, %v7390_v15  ;;  %16115 = vmatprep.mubr.msk.f32.mxu1 %vm171_vm1, %v10727_v25  ;;  %v10732_v23 = vld [vmem:[#allocation2 + $0x58] sm:$0xff]  ;;  %v11380_v14 = vld [vmem:[#allocation2 + $0x69] sm:$0xff] }
 0x493   : > { %16189 = vmatprep.mubr.msk.f32.mxu0 %vm171_vm1, %v11373_v2  ;;  %8128 = vst.msk [vmem:[#allocation3 + $0x108] sm:$0xff] %vm171_vm1, %v8080_v39  ;;  %v11381_v56 = vld [vmem:[#allocation2 + $0x71] sm:$0xff]  ;;  %v11382_v2 = vld [vmem:[#allocation2 + $0x79] sm:$0xff] }
 0x494   : > { %8127 = vst.msk [vmem:[#allocation3 + $0x100] sm:$0xff] %vm171_vm1, %v8079_v54  ;;  %v8034_v59 = vld [vmem:[#allocation3 + $0x118] sm:$0xff]  ;;  %v15730_v40 = vpop.f32.mrb[230].mxu1  ;;  %v10736_v25 = vld [vmem:[#allocation2 + $0x78] sm:$0xff] }
 0x495   : > { %v15804_v30 = vpop.f32.mrb[22].mxu0  ;;  %v8082_v22 = vadd.f32 %v15798_v0, %v8034_v59  ;;  %v8033_v43 = vld [vmem:[#allocation3 + $0x110] sm:$0xff]  ;;  %7488 = vst.msk [vmem:[#allocation3 + $0x138] sm:$0xff] %vm171_vm1, %v15730_v40  ;;  %v7400_v11 = vpop.f32.mrb[231].mxu1  ;;  %16116 = vmatmul.mubr.msk.f32.vlgmr.msra.gmra.mrb[80].mxu1 %vm171_vm1, %v10728_v35  ;;  %v10737_v35 = vld [vmem:[#allocation2 + $0x80] sm:$0xff] }
 0x496   : > { %v7950_v28 = vpop.f32.mrb[23].mxu0  ;;  %16190 = vmatmul.mubr.msk.f32.vlgmr.msra.gmra.mrb[128].mxu0 %vm171_vm1, %v11374_v57  ;;  %v8081_v12 = vadd.f32 %v8033_v43, %v7930_v3  ;;  %7487 = vst.msk [vmem:[#allocation3 + $0x130] sm:$0xff] %vm171_vm1, %v7400_v11  ;;  %16262 = vmatpush3.msk.msra.mxu1 %vm696_vm0, %v19387_v9  ;;  %v11383_v57 = vld [vmem:[#allocation2 + $0x81] sm:$0xff]  ;;  %v11384_v11 = vld [vmem:[#allocation2 + $0x89] sm:$0xff] }
 0x497   : > { %16118 = vmatprep.mubr.msk.f32.mxu1 %vm171_vm1, %v10729_v27  ;;  %8130 = vst.msk [vmem:[#allocation3 + $0x118] sm:$0xff] %vm171_vm1, %v8082_v22  ;;  %16192 = vmatprep.mubr.msk.f32.mxu0 %vm171_vm1, %v11375_v48  ;;  %v10738_v43 = vld [vmem:[#allocation2 + $0x88] sm:$0xff] }
 0x498   : > { %8129 = vst.msk [vmem:[#allocation3 + $0x110] sm:$0xff] %vm171_vm1, %v8081_v12  ;;  %v8036_v61 = vld [vmem:[#allocation3 + $0x128] sm:$0xff]  ;;  %v15733_v13 = vpop.f32.mrb[232].mxu1 }
 0x499   : > { %v15807_v42 = vpop.f32.mrb[24].mxu0  ;;  %v8084_v24 = vadd.f32 %v15801_v37, %v8036_v61  ;;  %v8035_v29 = vld [vmem:[#allocation3 + $0x120] sm:$0xff]  ;;  %7490 = vst.msk [vmem:[#allocation3 + $0x148] sm:$0xff] %vm171_vm1, %v15733_v13  ;;  %v7410_v63 = vpop.f32.mrb[233].mxu1  ;;  %16119 = vmatmul.mubr.msk.f32.gmra.mrb[82].mxu1 %vm171_vm1, %v10730_v10  ;;  %v8646_v12 = vld [vmem:[#allocation3 + $0x8] sm:$0xff] }
 0x49a   : > { %v7960_v9 = vpop.f32.mrb[25].mxu0  ;;  %16193 = vmatmul.mubr.msk.f32.gmra.mrb[130].mxu0 %vm171_vm1, %v11376_v31  ;;  %v8083_v4 = vadd.f32 %v8035_v29, %v7940_v52  ;;  %7489 = vst.msk [vmem:[#allocation3 + $0x140] sm:$0xff] %vm171_vm1, %v7410_v63  ;;  %16121 = vmatprep.mubr.msk.f32.mxu1 %vm171_vm1, %v10731_v16  ;;  %v10739_v61 = vld [vmem:[#allocation2 + $0x90] sm:$0xff] }
 0x49b   : > { %16195 = vmatprep.mubr.msk.f32.mxu0 %vm171_vm1, %v11377_v47  ;;  %8132 = vst.msk [vmem:[#allocation3 + $0x128] sm:$0xff] %vm171_vm1, %v8084_v24  ;;  %v8645_v24 = vld [vmem:[#allocation3] sm:$0xff]  ;;  %v11385_v63 = vld [vmem:[#allocation2 + $0x91] sm:$0xff] }
 0x49c   : > { %8131 = vst.msk [vmem:[#allocation3 + $0x120] sm:$0xff] %vm171_vm1, %v8083_v4  ;;  %v8038_v33 = vld [vmem:[#allocation3 + $0x138] sm:$0xff]  ;;  %v15736_v45 = vpop.f32.mrb[234].mxu1  ;;  %v10740_v47 = vld [vmem:[#allocation2 + $0x98] sm:$0xff] }
 0x49d   : > { %v15810_v44 = vpop.f32.mrb[26].mxu0  ;;  %v8086_v49 = vadd.f32 %v15804_v30, %v8038_v33  ;;  %v8037_v5 = vld [vmem:[#allocation3 + $0x130] sm:$0xff]  ;;  %7492 = vst.msk [vmem:[#allocation3 + $0x158] sm:$0xff] %vm171_vm1, %v15736_v45  ;;  %v7420_v53 = vpop.f32.mrb[235].mxu1  ;;  %16122 = vmatmul.mubr.msk.f32.gmra.mrb[84].mxu1 %vm171_vm1, %v10732_v23 }
 0x49e   : > { %v7970_v0 = vpop.f32.mrb[27].mxu0  ;;  %16196 = vmatmul.mubr.msk.f32.gmra.mrb[132].mxu0 %vm171_vm1, %v11378_v51  ;;  %v8085_v36 = vadd.f32 %v8037_v5, %v7950_v28  ;;  %7491 = vst.msk [vmem:[#allocation3 + $0x150] sm:$0xff] %vm171_vm1, %v7420_v53  ;;  %16124 = vmatprep.mubr.msk.f32.mxu1 %vm171_vm1, %v10733_v46  ;;  %v11386_v4 = vld [vmem:[#allocation2 + $0x99] sm:$0xff] }
 0x49f   : > { %16198 = vmatprep.mubr.msk.f32.mxu0 %vm171_vm1, %v11379_v60  ;;  %8134 = vst.msk [vmem:[#allocation3 + $0x138] sm:$0xff] %vm171_vm1, %v8086_v49  ;;  %v10741_v51 = vld [vmem:[#allocation2 + $0xa0] sm:$0xff]  ;;  %v8647_v46 = vld [vmem:[#allocation3 + $0x10] sm:$0xff] }
 0x4a0   : > { %8133 = vst.msk [vmem:[#allocation3 + $0x130] sm:$0xff] %vm171_vm1, %v8085_v36  ;;  %v8040_v55 = vld [vmem:[#allocation3 + $0x148] sm:$0xff]  ;;  %v15739_v21 = vpop.f32.mrb[236].mxu1  ;;  %v11387_v36 = vld [vmem:[#allocation2 + $0xa1] sm:$0xff] }
 0x4a1   : > { %v15813_v3 = vpop.f32.mrb[28].mxu0  ;;  %v8088_v6 = vadd.f32 %v15807_v42, %v8040_v55  ;;  %v8039_v8 = vld [vmem:[#allocation3 + $0x140] sm:$0xff]  ;;  %7494 = vst.msk [vmem:[#allocation3 + $0x168] sm:$0xff] %vm171_vm1, %v15739_v21  ;;  %v7430_v58 = vpop.f32.mrb[237].mxu1  ;;  %16125 = vmatmul.mubr.msk.f32.gmra.mrb[86].mxu1 %vm171_vm1, %v10734_v62  ;;  %v8650_v62 = vld [vmem:[#allocation3 + $0x28] sm:$0xff] }
 0x4a2   : > { %v7980_v37 = vpop.f32.mrb[29].mxu0  ;;  %16199 = vmatmul.mubr.msk.f32.gmra.mrb[134].mxu0 %vm171_vm1, %v11380_v14  ;;  %v8087_v39 = vadd.f32 %v8039_v8, %v7960_v9  ;;  %7493 = vst.msk [vmem:[#allocation3 + $0x160] sm:$0xff] %vm171_vm1, %v7430_v58  ;;  %16127 = vmatprep.mubr.msk.f32.mxu1 %vm171_vm1, %v10735_v1  ;;  %v11388_v8 = vld [vmem:[#allocation2 + $0xa9] sm:$0xff] }
 0x4a3   : > { %16201 = vmatprep.mubr.msk.f32.mxu0 %vm171_vm1, %v11381_v56  ;;  %8136 = vst.msk [vmem:[#allocation3 + $0x148] sm:$0xff] %vm171_vm1, %v8088_v6  ;;  %v10742_v6 = vld [vmem:[#allocation2 + $0xa8] sm:$0xff] }
 0x4a4   : > { %8135 = vst.msk [vmem:[#allocation3 + $0x140] sm:$0xff] %vm171_vm1, %v8087_v39  ;;  %v8042_v38 = vld [vmem:[#allocation3 + $0x158] sm:$0xff]  ;;  %v15742_v15 = vpop.f32.mrb[238].mxu1  ;;  %v8649_v1 = vld [vmem:[#allocation3 + $0x20] sm:$0xff]  ;;  %v10743_v39 = vld [vmem:[#allocation2 + $0xb0] sm:$0xff] }
 0x4a5   : > { %v15816_v52 = vpop.f32.mrb[30].mxu0  ;;  %v8090_v54 = vadd.f32 %v15810_v44, %v8042_v38  ;;  %v8041_v59 = vld [vmem:[#allocation3 + $0x150] sm:$0xff]  ;;  %7496 = vst.msk [vmem:[#allocation3 + $0x178] sm:$0xff] %vm171_vm1, %v15742_v15  ;;  %v7440_v40 = vpop.f32.mrb[239].mxu1  ;;  %16128 = vmatmul.mubr.msk.f32.gmra.mrb[88].mxu1 %vm171_vm1, %v10736_v25  ;;  %v8648_v44 = vld [vmem:[#allocation3 + $0x18] sm:$0xff] }
 0x4a6   : > { %v7990_v30 = vpop.f32.mrb[31].mxu0  ;;  %16202 = vmatmul.mubr.msk.f32.gmra.mrb[136].mxu0 %vm171_vm1, %v11382_v2  ;;  %v8089_v22 = vadd.f32 %v8041_v59, %v7970_v0  ;;  %7495 = vst.msk [vmem:[#allocation3 + $0x170] sm:$0xff] %vm171_vm1, %v7440_v40  ;;  %16130 = vmatprep.mubr.msk.f32.mxu1 %vm171_vm1, %v10737_v35  ;;  %v11389_v38 = vld [vmem:[#allocation2 + $0xb1] sm:$0xff]  ;;  %v8652_v40 = vld [vmem:[#allocation3 + $0x38] sm:$0xff] }
 0x4a7   : > { %16204 = vmatprep.mubr.msk.f32.mxu0 %vm171_vm1, %v11383_v57  ;;  %8138 = vst.msk [vmem:[#allocation3 + $0x158] sm:$0xff] %vm171_vm1, %v8090_v54  ;;  %v10744_v35 = vld [vmem:[#allocation2 + $0xb8] sm:$0xff] }
 0x4a8   : > { %8137 = vst.msk [vmem:[#allocation3 + $0x150] sm:$0xff] %vm171_vm1, %v8089_v22  ;;  %v8044_v28 = vld [vmem:[#allocation3 + $0x168] sm:$0xff]  ;;  %v15821_v27 = vpop.f32.mrb[240].mxu1  ;;  %v11390_v57 = vld [vmem:[#allocation2 + $0xb9] sm:$0xff] }
 0x4a9   : > { %v15895_v48 = vpop.f32.mrb[32].mxu0  ;;  %v8092_v13 = vadd.f32 %v15813_v3, %v8044_v28  ;;  %v8043_v42 = vld [vmem:[#allocation3 + $0x160] sm:$0xff]  ;;  %v8694_v10 = vadd.f32 %v15821_v27, %v8646_v12  ;;  %v8406_v31 = vpop.f32.mrb[241].mxu1  ;;  %16131 = vmatmul.mubr.msk.f32.gmra.mrb[90].mxu1 %vm171_vm1, %v10738_v43  ;;  %v10745_v27 = vld [vmem:[#allocation2 + $0xc0] sm:$0xff] }
 0x4aa   : > { %v9052_v29 = vpop.f32.mrb[33].mxu0  ;;  %16205 = vmatmul.mubr.msk.f32.gmra.mrb[138].mxu0 %vm171_vm1, %v11384_v11  ;;  %v8091_v9 = vadd.f32 %v8043_v42, %v7980_v37  ;;  %v8693_v16 = vadd.f32 %v8645_v24, %v8406_v31  ;;  %16133 = vmatprep.mubr.msk.f32.mxu1 %vm171_vm1, %v10739_v61  ;;  %v8651_v11 = vld [vmem:[#allocation3 + $0x30] sm:$0xff]  ;;  %v11391_v12 = vld [vmem:[#allocation2 + $0xc1] sm:$0xff]  ;;  %v8654_v24 = vld [vmem:[#allocation3 + $0x48] sm:$0xff] }
 0x4ab   : > { %16207 = vmatprep.mubr.msk.f32.mxu0 %vm171_vm1, %v11385_v63  ;;  %8140 = vst.msk [vmem:[#allocation3 + $0x168] sm:$0xff] %vm171_vm1, %v8092_v13  ;;  %8742 = vst.msk [vmem:[#allocation3 + $0x8] sm:$0xff] %vm171_vm1, %v8694_v10  ;;  %v10746_v63 = vld [vmem:[#allocation2 + $0xc8] sm:$0xff] }
 0x4ac   : > { %8139 = vst.msk [vmem:[#allocation3 + $0x160] sm:$0xff] %vm171_vm1, %v8091_v9  ;;  %v8046_v33 = vld [vmem:[#allocation3 + $0x178] sm:$0xff]  ;;  %8741 = vst.msk [vmem:[#allocation3] sm:$0xff] %vm171_vm1, %v8693_v16  ;;  %v15824_v45 = vpop.f32.mrb[242].mxu1  ;;  %v11392_v9 = vld [vmem:[#allocation2 + $0xc9] sm:$0xff] }
 0x4ad   : > { %v15898_v23 = vpop.f32.mrb[34].mxu0  ;;  %v8094_v49 = vadd.f32 %v15816_v52, %v8046_v33  ;;  %v8045_v5 = vld [vmem:[#allocation3 + $0x170] sm:$0xff]  ;;  %v8696_v53 = vadd.f32 %v15824_v45, %v8648_v44  ;;  %v8416_v0 = vpop.f32.mrb[243].mxu1  ;;  %16134 = vmatmul.mubr.msk.f32.gmra.mrb[92].mxu1 %vm171_vm1, %v10740_v47  ;;  %v10747_v45 = vld [vmem:[#allocation2 + $0xd0] sm:$0xff] }
 0x4ae   : > { %v9062_v60 = vpop.f32.mrb[35].mxu0  ;;  %16208 = vmatmul.mubr.msk.f32.gmra.mrb[140].mxu0 %vm171_vm1, %v11386_v4  ;;  %v8093_v55 = vadd.f32 %v8045_v5, %v7990_v30  ;;  %v8695_v21 = vadd.f32 %v8647_v46, %v8416_v0  ;;  %16136 = vmatprep.mubr.msk.f32.mxu1 %vm171_vm1, %v10741_v51  ;;  %v8653_v4 = vld [vmem:[#allocation3 + $0x40] sm:$0xff]  ;;  %v11393_v44 = vld [vmem:[#allocation2 + $0xd1] sm:$0xff]  ;;  %v8656_v46 = vld [vmem:[#allocation3 + $0x58] sm:$0xff] }
 0x4af   : > { %16210 = vmatprep.mubr.msk.f32.mxu0 %vm171_vm1, %v11387_v36  ;;  %8142 = vst.msk [vmem:[#allocation3 + $0x178] sm:$0xff] %vm171_vm1, %v8094_v49  ;;  %8744 = vst.msk [vmem:[#allocation3 + $0x18] sm:$0xff] %vm171_vm1, %v8696_v53  ;;  %v10748_v36 = vld [vmem:[#allocation2 + $0xd8] sm:$0xff] }
 0x4b0   : > { %8141 = vst.msk [vmem:[#allocation3 + $0x170] sm:$0xff] %vm171_vm1, %v8093_v55  ;;  %8743 = vst.msk [vmem:[#allocation3 + $0x10] sm:$0xff] %vm171_vm1, %v8695_v21  ;;  %v15827_v3 = vpop.f32.mrb[244].mxu1  ;;  %v11394_v55 = vld [vmem:[#allocation2 + $0xd9] sm:$0xff] }
 0x4b1   : > { %v19720_v14 = vpop.f32.mrb[36].mxu0  ;;  %v8698_v58 = vadd.f32 %v15827_v3, %v8650_v62  ;;  %v8426_v37 = vpop.f32.mrb[245].mxu1  ;;  %16137 = vmatmul.mubr.msk.f32.gmra.mrb[94].mxu1 %vm171_vm1, %v10742_v6  ;;  %v8655_v62 = vld [vmem:[#allocation3 + $0x50] sm:$0xff] }
 0x4b2   : > { %v9072_v56 = vpop.f32.mrb[37].mxu0  ;;  %16211 = vmatmul.mubr.msk.f32.gmra.mrb[142].mxu0 %vm171_vm1, %v11388_v8  ;;  %v9292_v15 = vld [vmem:[#allocation3 + $0x8] sm:$0xff]  ;;  %v8697_v52 = vadd.f32 %v8649_v1, %v8426_v37  ;;  %16139 = vmatprep.mubr.msk.f32.mxu1 %vm171_vm1, %v10743_v39  ;;  %v11395_v8 = vld [vmem:[#allocation2 + $0xe1] sm:$0xff] }
 0x4b3   : > { %16213 = vmatprep.mubr.msk.f32.mxu0 %vm171_vm1, %v11389_v38  ;;  %v9340_v25 = vadd.f32 %v15895_v48, %v9292_v15  ;;  %v9291_v2 = vld [vmem:[#allocation3] sm:$0xff]  ;;  %8746 = vst.msk [vmem:[#allocation3 + $0x28] sm:$0xff] %vm171_vm1, %v8698_v58  ;;  %v8658_v15 = vld [vmem:[#allocation3 + $0x68] sm:$0xff] }
 0x4b4   : > { %v9339_v54 = vadd.f32 %v9291_v2, %v9052_v29  ;;  %8745 = vst.msk [vmem:[#allocation3 + $0x20] sm:$0xff] %vm171_vm1, %v8697_v52  ;;  %v15830_v59 = vpop.f32.mrb[246].mxu1  ;;  %v11396_v2 = vld [vmem:[#allocation2 + $0xe9] sm:$0xff] }
 0x4b5   : > { %v19728_v30 = vpop.f32.mrb[38].mxu0  ;;  %9388 = vst.msk [vmem:[#allocation3 + $0x8] sm:$0xff] %vm171_vm1, %v9340_v25  ;;  %v8700_v22 = vadd.f32 %v15830_v59, %v8652_v40  ;;  %v8436_v43 = vpop.f32.mrb[247].mxu1  ;;  %16140 = vmatmul.mubr.msk.f32.gmra.mrb[96].mxu1 %vm171_vm1, %v10744_v35  ;;  %v10750_v25 = vld [vmem:[#allocation2 + $0xe8] sm:$0xff] }
 0x4b6   : > { %v9082_v28 = vpop.f32.mrb[39].mxu0  ;;  %16214 = vmatmul.mubr.msk.f32.gmra.mrb[144].mxu0 %vm171_vm1, %v11390_v57  ;;  %9387 = vst.msk [vmem:[#allocation3] sm:$0xff] %vm171_vm1, %v9339_v54  ;;  %v9294_v48 = vld [vmem:[#allocation3 + $0x18] sm:$0xff]  ;;  %v8699_v61 = vadd.f32 %v8651_v11, %v8436_v43  ;;  %16142 = vmatprep.mubr.msk.f32.mxu1 %vm171_vm1, %v10745_v27  ;;  %v8657_v40 = vld [vmem:[#allocation3 + $0x60] sm:$0xff]  ;;  %v11397_v57 = vld [vmem:[#allocation2 + $0xf1] sm:$0xff] }
 0x4b7   : > { %16216 = vmatprep.mubr.msk.f32.mxu0 %vm171_vm1, %v11391_v12  ;;  %v9342_v13 = vadd.f32 %v15898_v23, %v9294_v48  ;;  %v9293_v42 = vld [vmem:[#allocation3 + $0x10] sm:$0xff]  ;;  %8748 = vst.msk [vmem:[#allocation3 + $0x38] sm:$0xff] %vm171_vm1, %v8700_v22  ;;  %v8660_v48 = vld [vmem:[#allocation3 + $0x78] sm:$0xff] }
 0x4b8   : > { %v9341_v10 = vadd.f32 %v9293_v42, %v9062_v60  ;;  %8747 = vst.msk [vmem:[#allocation3 + $0x30] sm:$0xff] %vm171_vm1, %v8699_v61  ;;  %v15833_v31 = vpop.f32.mrb[248].mxu1  ;;  %v11398_v42 = vld [vmem:[#allocation2 + $0xf9] sm:$0xff] }
 0x4b9   : > { %v19738_v29 = vpop.f32.mrb[40].mxu0  ;;  %9390 = vst.msk [vmem:[#allocation3 + $0x18] sm:$0xff] %vm171_vm1, %v9342_v13  ;;  %v8702_v16 = vadd.f32 %v15833_v31, %v8654_v24  ;;  %v8446_v47 = vpop.f32.mrb[249].mxu1  ;;  %16143 = vmatmul.mubr.msk.f32.gmra.mrb[98].mxu1 %vm171_vm1, %v10746_v63  ;;  %v10752_v13 = vld [vmem:[#allocation2 + $0xf8] sm:$0xff] }
 0x4ba   : > { %v9092_v33 = vpop.f32.mrb[41].mxu0  ;;  %16217 = vmatmul.mubr.msk.f32.gmra.mrb[146].mxu0 %vm171_vm1, %v11392_v9  ;;  %9389 = vst.msk [vmem:[#allocation3 + $0x10] sm:$0xff] %vm171_vm1, %v9341_v10  ;;  %v9296_v23 = vld [vmem:[#allocation3 + $0x28] sm:$0xff]  ;;  %v8701_v51 = vadd.f32 %v8653_v4, %v8446_v47  ;;  %16145 = vmatprep.mubr.msk.f32.mxu1 %vm171_vm1, %v10747_v45  ;;  %v8659_v24 = vld [vmem:[#allocation3 + $0x70] sm:$0xff]  ;;  %v11399_v9 = vld [vmem:[#allocation2 + $0x101] sm:$0xff] }
 0x4bb   : > { %16219 = vmatprep.mubr.msk.f32.mxu0 %vm171_vm1, %v11393_v44  ;;  %v9344_v49 = vadd.f32 %v19720_v14, %v9296_v23  ;;  %v9295_v5 = vld [vmem:[#allocation3 + $0x20] sm:$0xff]  ;;  %8750 = vst.msk [vmem:[#allocation3 + $0x48] sm:$0xff] %vm171_vm1, %v8702_v16  ;;  %v10749_v14 = vld [vmem:[#allocation2 + $0xe0] sm:$0xff]  ;;  %v8662_v23 = vld [vmem:[#allocation3 + $0x88] sm:$0xff] }
 0x4bc   : > { %v9343_v53 = vadd.f32 %v9295_v5, %v9072_v56  ;;  %8749 = vst.msk [vmem:[#allocation3 + $0x40] sm:$0xff] %vm171_vm1, %v8701_v51  ;;  %v15836_v0 = vpop.f32.mrb[250].mxu1  ;;  %v11400_v5 = vld [vmem:[#allocation2 + $0x109] sm:$0xff] }
 0x4bd   : > { %v19749_v60 = vpop.f32.mrb[42].mxu0  ;;  %9392 = vst.msk [vmem:[#allocation3 + $0x28] sm:$0xff] %vm171_vm1, %v9344_v49  ;;  %v8704_v21 = vadd.f32 %v15836_v0, %v8656_v46  ;;  %v8456_v3 = vpop.f32.mrb[251].mxu1  ;;  %16146 = vmatmul.mubr.msk.f32.gmra.mrb[100].mxu1 %vm171_vm1, %v10748_v36  ;;  %v10754_v49 = vld [vmem:[#allocation2 + $0x108] sm:$0xff] }
 0x4be   : > { %v9102_v6 = vpop.f32.mrb[43].mxu0  ;;  %16220 = vmatmul.mubr.msk.f32.gmra.mrb[148].mxu0 %vm171_vm1, %v11394_v55  ;;  %9391 = vst.msk [vmem:[#allocation3 + $0x20] sm:$0xff] %vm171_vm1, %v9343_v53  ;;  %v9298_v58 = vld [vmem:[#allocation3 + $0x38] sm:$0xff]  ;;  %v8703_v37 = vadd.f32 %v8655_v62, %v8456_v3  ;;  %16148 = vmatprep.mubr.msk.f32.mxu1 %vm171_vm1, %v10749_v14  ;;  %v8661_v46 = vld [vmem:[#allocation3 + $0x80] sm:$0xff] }
 0x4bf   : > { %16222 = vmatprep.mubr.msk.f32.mxu0 %vm171_vm1, %v11395_v8  ;;  %v9346_v1 = vadd.f32 %v19728_v30, %v9298_v58  ;;  %v9297_v56 = vld [vmem:[#allocation3 + $0x30] sm:$0xff]  ;;  %8752 = vst.msk [vmem:[#allocation3 + $0x58] sm:$0xff] %vm171_vm1, %v8704_v21  ;;  %v10751_v30 = vld [vmem:[#allocation2 + $0xf0] sm:$0xff]  ;;  %v8664_v8 = vld [vmem:[#allocation3 + $0x98] sm:$0xff] }
 0x4c0   : > { %v9345_v39 = vadd.f32 %v9297_v56, %v9082_v28  ;;  %8751 = vst.msk [vmem:[#allocation3 + $0x50] sm:$0xff] %vm171_vm1, %v8703_v37  ;;  %v15839_v38 = vpop.f32.mrb[252].mxu1  ;;  %v10756_v37 = vld [vmem:[#allocation2 + $0x118] sm:$0xff] }
 0x4c1   : > { %v19760_v52 = vpop.f32.mrb[44].mxu0  ;;  %9394 = vst.msk [vmem:[#allocation3 + $0x38] sm:$0xff] %vm171_vm1, %v9346_v1  ;;  %v8706_v54 = vadd.f32 %v15839_v38, %v8658_v15  ;;  %v8466_v59 = vpop.f32.mrb[253].mxu1  ;;  %16149 = vmatmul.mubr.msk.f32.gmra.mrb[102].mxu1 %vm171_vm1, %v10750_v25 }
 0x4c2   : > { %v9112_v35 = vpop.f32.mrb[45].mxu0  ;;  %16223 = vmatmul.mubr.msk.f32.gmra.mrb[150].mxu0 %vm171_vm1, %v11396_v2  ;;  %9393 = vst.msk [vmem:[#allocation3 + $0x30] sm:$0xff] %vm171_vm1, %v9345_v39  ;;  %v9300_v22 = vld [vmem:[#allocation3 + $0x48] sm:$0xff]  ;;  %v8705_v43 = vadd.f32 %v8657_v40, %v8466_v59  ;;  %16151 = vmatprep.mubr.msk.f32.mxu1 %vm171_vm1, %v10751_v30  ;;  %v8663_v39 = vld [vmem:[#allocation3 + $0x90] sm:$0xff] }
 0x4c3   : > { %16225 = vmatprep.mubr.msk.f32.mxu0 %vm171_vm1, %v11397_v57  ;;  %v9348_v11 = vadd.f32 %v19738_v29, %v9300_v22  ;;  %v9299_v28 = vld [vmem:[#allocation3 + $0x40] sm:$0xff]  ;;  %8754 = vst.msk [vmem:[#allocation3 + $0x68] sm:$0xff] %vm171_vm1, %v8706_v54  ;;  %v10753_v29 = vld [vmem:[#allocation2 + $0x100] sm:$0xff]  ;;  %v8666_v40 = vld [vmem:[#allocation3 + $0xa8] sm:$0xff] }
 0x4c4   : > { %v9347_v27 = vadd.f32 %v9299_v28, %v9092_v33  ;;  %8753 = vst.msk [vmem:[#allocation3 + $0x60] sm:$0xff] %vm171_vm1, %v8705_v43  ;;  %v15842_v12 = vpop.f32.mrb[254].mxu1  ;;  %v8665_v22 = vld [vmem:[#allocation3 + $0xa0] sm:$0xff] }
 0x4c5   : > { %v15916_v61 = vpop.f32.mrb[46].mxu0  ;;  %9396 = vst.msk [vmem:[#allocation3 + $0x48] sm:$0xff] %vm171_vm1, %v9348_v11  ;;  %v8708_v10 = vadd.f32 %v15842_v12, %v8660_v48  ;;  %v8476_v31 = vpop.f32.mrb[255].mxu1  ;;  %16152 = vmatmul.mubr.msk.f32.gmra.mrb[104].mxu1 %vm171_vm1, %v10752_v13  ;;  %v8668_v13 = vld [vmem:[#allocation3 + $0xb8] sm:$0xff] }
 0x4c6   : > { %v9122_v63 = vpop.f32.mrb[47].mxu0  ;;  %16226 = vmatmul.mubr.msk.f32.gmra.mrb[152].mxu0 %vm171_vm1, %v11398_v42  ;;  %9395 = vst.msk [vmem:[#allocation3 + $0x40] sm:$0xff] %vm171_vm1, %v9347_v27  ;;  %v9302_v16 = vld [vmem:[#allocation3 + $0x58] sm:$0xff]  ;;  %v8707_v47 = vadd.f32 %v8659_v24, %v8476_v31  ;;  %16154 = vmatprep.mubr.msk.f32.mxu1 %vm171_vm1, %v10753_v29  ;;  %v10760_v42 = vld [vmem:[#allocation2 + $0x138] sm:$0xff] }
 0x4c7   : > { %16228 = vmatprep.mubr.msk.f32.mxu0 %vm171_vm1, %v11399_v9  ;;  %v9350_v4 = vadd.f32 %v19749_v60, %v9302_v16  ;;  %v9301_v33 = vld [vmem:[#allocation3 + $0x50] sm:$0xff]  ;;  %8756 = vst.msk [vmem:[#allocation3 + $0x78] sm:$0xff] %vm171_vm1, %v8708_v10  ;;  %v10755_v60 = vld [vmem:[#allocation2 + $0x110] sm:$0xff] }
 0x4c8   : > { %v9349_v45 = vadd.f32 %v9301_v33, %v9102_v6  ;;  %8755 = vst.msk [vmem:[#allocation3 + $0x70] sm:$0xff] %vm171_vm1, %v8707_v47  ;;  %v15845_v44 = vpop.f32.mrb[0].mxu1  ;;  %v8667_v24 = vld [vmem:[#allocation3 + $0xb0] sm:$0xff] }
 0x4c9   : > { %v15919_v51 = vpop.f32.mrb[48].mxu0  ;;  %9398 = vst.msk [vmem:[#allocation3 + $0x58] sm:$0xff] %vm171_vm1, %v9350_v4  ;;  %v8710_v53 = vadd.f32 %v15845_v44, %v8662_v23  ;;  %v8486_v0 = vpop.f32.mrb[1].mxu1  ;;  %16155 = vmatmul.mubr.msk.f32.gmra.mrb[106].mxu1 %vm171_vm1, %v10754_v49  ;;  %v10762_v44 = vld [vmem:[#allocation2 + $0x148] sm:$0xff] }
 0x4ca   : > { %v9132_v36 = vpop.f32.mrb[49].mxu0  ;;  %16229 = vmatmul.mubr.msk.f32.gmra.mrb[154].mxu0 %vm171_vm1, %v11400_v5  ;;  %9397 = vst.msk [vmem:[#allocation3 + $0x50] sm:$0xff] %vm171_vm1, %v9349_v45  ;;  %v9304_v55 = vld [vmem:[#allocation3 + $0x68] sm:$0xff]  ;;  %v8709_v21 = vadd.f32 %v8661_v46, %v8486_v0  ;;  %16157 = vmatprep.mubr.msk.f32.mxu1 %vm171_vm1, %v10755_v60  ;;  %v8669_v5 = vld [vmem:[#allocation3 + $0xc0] sm:$0xff] }
 0x4cb   : > { %16231 = vmatprep.mubr.msk.f32.mxu0 %vm171_vm1, %v19546_v18  ;;  %v9352_v3 = vadd.f32 %v19760_v52, %v9304_v55  ;;  %v9303_v62 = vld [vmem:[#allocation3 + $0x60] sm:$0xff]  ;;  %8758 = vst.msk [vmem:[#allocation3 + $0x88] sm:$0xff] %vm171_vm1, %v8710_v53  ;;  %v10757_v18 = vld [vmem:[#allocation2 + $0x120] sm:$0xff]  ;;  %v8670_v45 = vld [vmem:[#allocation3 + $0xc8] sm:$0xff] }
 0x4cc   : > { %v9351_v6 = vadd.f32 %v9303_v62, %v9112_v35  ;;  %8757 = vst.msk [vmem:[#allocation3 + $0x80] sm:$0xff] %vm171_vm1, %v8709_v21  ;;  %v15848_v14 = vpop.f32.mrb[2].mxu1  ;;  %v10758_v35 = vld [vmem:[#allocation2 + $0x128] sm:$0xff] }
 0x4cd   : > { %v15922_v58 = vpop.f32.mrb[50].mxu0  ;;  %9400 = vst.msk [vmem:[#allocation3 + $0x68] sm:$0xff] %vm171_vm1, %v9352_v3  ;;  %v8712_v1 = vadd.f32 %v15848_v14, %v8664_v8  ;;  %v8496_v56 = vpop.f32.mrb[3].mxu1  ;;  %16158 = vmatmul.mubr.msk.f32.gmra.mrb[108].mxu1 %vm171_vm1, %v10756_v37  ;;  %v11408_v23 = vld [vmem:[#allocation2 + $0x149] sm:$0xff]  ;;  %v8672_v3 = vld [vmem:[#allocation3 + $0xd8] sm:$0xff]  ;;  %v8671_v37 = vld [vmem:[#allocation3 + $0xd0] sm:$0xff] }
 0x4ce   : > { %v9142_v38 = vpop.f32.mrb[51].mxu0  ;;  %16232 = vmatmul.mubr.msk.f32.gmra.mrb[156].mxu0 %vm171_vm1, %v19553_v7  ;;  %9399 = vst.msk [vmem:[#allocation3 + $0x60] sm:$0xff] %vm171_vm1, %v9351_v6  ;;  %v9306_v15 = vld [vmem:[#allocation3 + $0x78] sm:$0xff]  ;;  %v8711_v52 = vadd.f32 %v8663_v39, %v8496_v56  ;;  %16160 = vmatprep.mubr.msk.f32.mxu1 %vm171_vm1, %v10757_v18  ;;  %v10764_v6 = vld [vmem:[#allocation2 + $0x158] sm:$0xff] }
 0x4cf   : > { %16234 = vmatprep.mubr.msk.f32.mxu0 %vm171_vm1, %v19562_v50  ;;  %v9354_v25 = vadd.f32 %v15916_v61, %v9306_v15  ;;  %v9305_v2 = vld [vmem:[#allocation3 + $0x70] sm:$0xff]  ;;  %8760 = vst.msk [vmem:[#allocation3 + $0x98] sm:$0xff] %vm171_vm1, %v8712_v1  ;;  %v10759_v50 = vld [vmem:[#allocation2 + $0x130] sm:$0xff] }
 0x4d0   : > { %v9353_v54 = vadd.f32 %v9305_v2, %v9122_v63  ;;  %8759 = vst.msk [vmem:[#allocation3 + $0x90] sm:$0xff] %vm171_vm1, %v8711_v52  ;;  %v15851_v59 = vpop.f32.mrb[4].mxu1  ;;  %v11410_v14 = vld [vmem:[#allocation2 + $0x159] sm:$0xff] }
 0x4d1   : > { %v15925_v7 = vpop.f32.mrb[52].mxu0  ;;  %9402 = vst.msk [vmem:[#allocation3 + $0x78] sm:$0xff] %vm171_vm1, %v9354_v25  ;;  %v8714_v30 = vadd.f32 %v15851_v59, %v8666_v40  ;;  %v8506_v57 = vpop.f32.mrb[5].mxu1  ;;  %16161 = vmatmul.mubr.msk.f32.gmra.mrb[110].mxu1 %vm171_vm1, %v10758_v35  ;;  %v8674_v25 = vld [vmem:[#allocation3 + $0xe8] sm:$0xff]  ;;  %v8673_v35 = vld [vmem:[#allocation3 + $0xe0] sm:$0xff] }
 0x4d2   : > { %v9152_v43 = vpop.f32.mrb[53].mxu0  ;;  %16235 = vmatmul.mubr.msk.f32.gmra.mrb[158].mxu0 %vm171_vm1, %v19569_v34  ;;  %9401 = vst.msk [vmem:[#allocation3 + $0x70] sm:$0xff] %vm171_vm1, %v9353_v54  ;;  %v9308_v11 = vld [vmem:[#allocation3 + $0x88] sm:$0xff]  ;;  %v8713_v28 = vadd.f32 %v8665_v22, %v8506_v57  ;;  %16163 = vmatprep.mubr.msk.f32.mxu1 %vm171_vm1, %v10759_v50  ;;  %v10766_v54 = vld [vmem:[#allocation2 + $0x168] sm:$0xff] }
 0x4d3   : > { %16237 = vmatprep.mubr.msk.f32.mxu0 %vm171_vm1, %v19578_v19  ;;  %v9356_v27 = vadd.f32 %v15919_v51, %v9308_v11  ;;  %v9307_v12 = vld [vmem:[#allocation3 + $0x80] sm:$0xff]  ;;  %8762 = vst.msk [vmem:[#allocation3 + $0xa8] sm:$0xff] %vm171_vm1, %v8714_v30  ;;  %v10761_v19 = vld [vmem:[#allocation2 + $0x140] sm:$0xff] }
 0x4d4   : > { %v9355_v48 = vadd.f32 %v9307_v12, %v9132_v36  ;;  %8761 = vst.msk [vmem:[#allocation3 + $0xa0] sm:$0xff] %vm171_vm1, %v8713_v28  ;;  %v15854_v61 = vpop.f32.mrb[6].mxu1  ;;  %v11412_v59 = vld [vmem:[#allocation2 + $0x169] sm:$0xff] }
 0x4d5   : > { %v15928_v34 = vpop.f32.mrb[54].mxu0  ;;  %9404 = vst.msk [vmem:[#allocation3 + $0x88] sm:$0xff] %vm171_vm1, %v9356_v27  ;;  %v8716_v10 = vadd.f32 %v15854_v61, %v8668_v13  ;;  %v8516_v31 = vpop.f32.mrb[7].mxu1  ;;  %16164 = vmatmul.mubr.msk.f32.gmra.mrb[112].mxu1 %vm171_vm1, %v10760_v42  ;;  %v8676_v27 = vld [vmem:[#allocation3 + $0xf8] sm:$0xff]  ;;  %v8675_v42 = vld [vmem:[#allocation3 + $0xf0] sm:$0xff] }
 0x4d6   : > { %v9162_v63 = vpop.f32.mrb[55].mxu0  ;;  %16238 = vmatmul.mubr.msk.f32.gmra.mrb[160].mxu0 %vm171_vm1, %v19585_v17  ;;  %9403 = vst.msk [vmem:[#allocation3 + $0x80] sm:$0xff] %vm171_vm1, %v9355_v48  ;;  %v9310_v29 = vld [vmem:[#allocation3 + $0x98] sm:$0xff]  ;;  %v8715_v9 = vadd.f32 %v8667_v24, %v8516_v31  ;;  %16166 = vmatprep.mubr.msk.f32.mxu1 %vm171_vm1, %v10761_v19  ;;  %v10768_v48 = vld [vmem:[#allocation2 + $0x178] sm:$0xff] }
 0x4d7   : > { %16240 = vmatprep.mubr.msk.f32.mxu0 %vm171_vm1, %v19594_v20  ;;  %v9358_v16 = vadd.f32 %v15922_v58, %v9310_v29  ;;  %v9309_v47 = vld [vmem:[#allocation3 + $0x90] sm:$0xff]  ;;  %8764 = vst.msk [vmem:[#allocation3 + $0xb8] sm:$0xff] %vm171_vm1, %v8716_v10  ;;  %v10763_v20 = vld [vmem:[#allocation2 + $0x150] sm:$0xff]  ;;  %v11415_v31 = vld [vmem:[#allocation2 + $0x181] sm:$0xff] }
 0x4d8   : > { %v9357_v4 = vadd.f32 %v9309_v47, %v9142_v38  ;;  %8763 = vst.msk [vmem:[#allocation3 + $0xb0] sm:$0xff] %vm171_vm1, %v8715_v9  ;;  %v15857_v33 = vpop.f32.mrb[8].mxu1  ;;  %v11414_v61 = vld [vmem:[#allocation2 + $0x179] sm:$0xff]  ;;  %v8678_v47 = vld [vmem:[#allocation3 + $0x108] sm:$0xff] }
 0x4d9   : > { %v15931_v17 = vpop.f32.mrb[56].mxu0  ;;  %9406 = vst.msk [vmem:[#allocation3 + $0x98] sm:$0xff] %vm171_vm1, %v9358_v16  ;;  %v8718_v51 = vadd.f32 %v15857_v33, %v8670_v45  ;;  %v8526_v49 = vpop.f32.mrb[9].mxu1  ;;  %16167 = vmatmul.mubr.msk.f32.gmra.mrb[114].mxu1 %vm171_vm1, %v10762_v44  ;;  %v10770_v33 = vld [vmem:[#allocation2 + $0x188] sm:$0xff] }
 0x4da   : > { %v9172_v53 = vpop.f32.mrb[57].mxu0  ;;  %16241 = vmatmul.mubr.msk.f32.gmra.mrb[162].mxu0 %vm171_vm1, %v11408_v23  ;;  %9405 = vst.msk [vmem:[#allocation3 + $0x90] sm:$0xff] %vm171_vm1, %v9357_v4  ;;  %v9312_v0 = vld [vmem:[#allocation3 + $0xa8] sm:$0xff]  ;;  %v8717_v46 = vadd.f32 %v8669_v5, %v8526_v49  ;;  %16169 = vmatprep.mubr.msk.f32.mxu1 %vm171_vm1, %v10763_v20  ;;  %v8677_v23 = vld [vmem:[#allocation3 + $0x100] sm:$0xff] }
 0x4db   : > { %16243 = vmatprep.mubr.msk.f32.mxu0 %vm171_vm1, %v19607_v26  ;;  %v9360_v36 = vadd.f32 %v15925_v7, %v9312_v0  ;;  %v9311_v60 = vld [vmem:[#allocation3 + $0xa0] sm:$0xff]  ;;  %8766 = vst.msk [vmem:[#allocation3 + $0xc8] sm:$0xff] %vm171_vm1, %v8718_v51  ;;  %v10765_v26 = vld [vmem:[#allocation2 + $0x160] sm:$0xff]  ;;  %v10771_v49 = vld [vmem:[#allocation2 + $0x190] sm:$0xff] }
 0x4dc   : > { %v9359_v55 = vadd.f32 %v9311_v60, %v9152_v43  ;;  %8765 = vst.msk [vmem:[#allocation3 + $0xc0] sm:$0xff] %vm171_vm1, %v8717_v46  ;;  %v15860_v21 = vpop.f32.mrb[10].mxu1  ;;  %v11416_v45 = vld [vmem:[#allocation2 + $0x189] sm:$0xff]  ;;  %v11417_v5 = vld [vmem:[#allocation2 + $0x191] sm:$0xff] }
 0x4dd   : > { %v19829_v62 = vpop.f32.mrb[58].mxu0  ;;  %9408 = vst.msk [vmem:[#allocation3 + $0xa8] sm:$0xff] %vm171_vm1, %v9360_v36  ;;  %v8720_v8 = vadd.f32 %v15860_v21, %v8672_v3  ;;  %v8536_v58 = vpop.f32.mrb[11].mxu1  ;;  %16170 = vmatmul.mubr.msk.f32.gmra.mrb[116].mxu1 %vm171_vm1, %v10764_v6  ;;  %v10772_v3 = vld [vmem:[#allocation2 + $0x198] sm:$0xff] }
 0x4de   : > { %v9182_v1 = vpop.f32.mrb[59].mxu0  ;;  %16244 = vmatmul.mubr.msk.f32.gmra.mrb[164].mxu0 %vm171_vm1, %v11410_v14  ;;  %9407 = vst.msk [vmem:[#allocation3 + $0xa0] sm:$0xff] %vm171_vm1, %v9359_v55  ;;  %v9314_v56 = vld [vmem:[#allocation3 + $0xb8] sm:$0xff]  ;;  %v8719_v39 = vadd.f32 %v8671_v37, %v8536_v58  ;;  %16172 = vmatprep.mubr.msk.f32.mxu1 %vm171_vm1, %v10765_v26 }
 0x4df   : > { %16246 = vmatprep.mubr.msk.f32.mxu0 %vm171_vm1, %v19620_v41  ;;  %v9362_v38 = vadd.f32 %v15928_v34, %v9314_v56  ;;  %v9313_v18 = vld [vmem:[#allocation3 + $0xb0] sm:$0xff]  ;;  %8768 = vst.msk [vmem:[#allocation3 + $0xd8] sm:$0xff] %vm171_vm1, %v8720_v8  ;;  %v10767_v41 = vld [vmem:[#allocation2 + $0x170] sm:$0xff]  ;;  %v8680_v55 = vld [vmem:[#allocation3 + $0x118] sm:$0xff] }
 0x4e0   : > { %v9361_v15 = vadd.f32 %v9313_v18, %v9162_v63  ;;  %8767 = vst.msk [vmem:[#allocation3 + $0xd0] sm:$0xff] %vm171_vm1, %v8719_v39  ;;  %v15863_v52 = vpop.f32.mrb[12].mxu1  ;;  %v8679_v8 = vld [vmem:[#allocation3 + $0x110] sm:$0xff]  ;;  %v10773_v37 = vld [vmem:[#allocation2 + $0x1a0] sm:$0xff] }
 0x4e1   : > { %v19840_v2 = vpop.f32.mrb[60].mxu0  ;;  %9410 = vst.msk [vmem:[#allocation3 + $0xb8] sm:$0xff] %vm171_vm1, %v9362_v38  ;;  %v8722_v40 = vadd.f32 %v15863_v52, %v8674_v25  ;;  %v8546_v7 = vpop.f32.mrb[13].mxu1  ;;  %16173 = vmatmul.mubr.msk.f32.gmra.mrb[118].mxu1 %vm171_vm1, %v10766_v54  ;;  %v8682_v52 = vld [vmem:[#allocation3 + $0x128] sm:$0xff] }
 0x4e2   : > { %v9192_v30 = vpop.f32.mrb[61].mxu0  ;;  %16247 = vmatmul.mubr.msk.f32.gmra.mrb[166].mxu0 %vm171_vm1, %v11412_v59  ;;  %9409 = vst.msk [vmem:[#allocation3 + $0xb0] sm:$0xff] %vm171_vm1, %v9361_v15  ;;  %v9316_v57 = vld [vmem:[#allocation3 + $0xc8] sm:$0xff]  ;;  %v8721_v22 = vadd.f32 %v8673_v35, %v8546_v7  ;;  %16175 = vmatprep.mubr.msk.f32.mxu1 %vm171_vm1, %v10767_v41  ;;  %v8681_v7 = vld [vmem:[#allocation3 + $0x120] sm:$0xff] }
 0x4e3   : > { %16249 = vmatprep.mubr.msk.f32.mxu0 %vm171_vm1, %v19633_v32  ;;  %v9364_v43 = vadd.f32 %v15931_v17, %v9316_v57  ;;  %v9315_v50 = vld [vmem:[#allocation3 + $0xc0] sm:$0xff]  ;;  %8770 = vst.msk [vmem:[#allocation3 + $0xe8] sm:$0xff] %vm171_vm1, %v8722_v40  ;;  %v10769_v32 = vld [vmem:[#allocation2 + $0x180] sm:$0xff] }
 0x4e4   : > { %v9363_v11 = vadd.f32 %v9315_v50, %v9172_v53  ;;  %8769 = vst.msk [vmem:[#allocation3 + $0xe0] sm:$0xff] %vm171_vm1, %v8721_v22  ;;  %v15866_v28 = vpop.f32.mrb[14].mxu1  ;;  %v11420_v54 = vld [vmem:[#allocation2 + $0x1a9] sm:$0xff] }
 0x4e5   : > { %v19851_v12 = vpop.f32.mrb[62].mxu0  ;;  %9412 = vst.msk [vmem:[#allocation3 + $0xc8] sm:$0xff] %vm171_vm1, %v9364_v43  ;;  %v8724_v13 = vadd.f32 %v15866_v28, %v8676_v27  ;;  %v8556_v34 = vpop.f32.mrb[15].mxu1  ;;  %16176 = vmatmul.mubr.msk.f32.gmra.mrb[120].mxu1 %vm171_vm1, %v10768_v48  ;;  %v8684_v28 = vld [vmem:[#allocation3 + $0x138] sm:$0xff] }
 0x4e6   : > { %v9202_v10 = vpop.f32.mrb[63].mxu0  ;;  %16250 = vmatmul.mubr.msk.f32.gmra.mrb[168].mxu0 %vm171_vm1, %v11414_v61  ;;  %9411 = vst.msk [vmem:[#allocation3 + $0xc0] sm:$0xff] %vm171_vm1, %v9363_v11  ;;  %v9318_v24 = vld [vmem:[#allocation3 + $0xd8] sm:$0xff]  ;;  %v8723_v63 = vadd.f32 %v8675_v42, %v8556_v34  ;;  %16178 = vmatprep.mubr.msk.f32.mxu1 %vm171_vm1, %v10769_v32 }
 0x4e7   : > { %16252 = vmatprep.mubr.msk.f32.mxu0 %vm171_vm1, %v11415_v31  ;;  %v9366_v19 = vadd.f32 %v19829_v62, %v9318_v24  ;;  %v9317_v29 = vld [vmem:[#allocation3 + $0xd0] sm:$0xff]  ;;  %8772 = vst.msk [vmem:[#allocation3 + $0xf8] sm:$0xff] %vm171_vm1, %v8724_v13  ;;  %v12021_v42 = vld [vmem:[#allocation2 + $0x42] sm:$0xff] }
 0x4e8   : > { %v9365_v9 = vadd.f32 %v9317_v29, %v9182_v1  ;;  %8771 = vst.msk [vmem:[#allocation3 + $0xf0] sm:$0xff] %vm171_vm1, %v8723_v63  ;;  %v15869_v16 = vpop.f32.mrb[16].mxu1  ;;  %v11418_v62 = vld [vmem:[#allocation2 + $0x199] sm:$0xff]  ;;  %v11419_v1 = vld [vmem:[#allocation2 + $0x1a1] sm:$0xff]  ;;  %v8686_v29 = vld [vmem:[#allocation3 + $0x148] sm:$0xff] }
 0x4e9   : > { %v19862_v4 = vpop.f32.mrb[64].mxu0  ;;  %9414 = vst.msk [vmem:[#allocation3 + $0xd8] sm:$0xff] %vm171_vm1, %v9366_v19  ;;  %v8726_v17 = vadd.f32 %v15869_v16, %v8678_v47  ;;  %v8566_v44 = vpop.f32.mrb[17].mxu1  ;;  %16179 = vmatmul.mubr.msk.f32.gmra.mrb[122].mxu1 %vm171_vm1, %v10770_v33  ;;  %v8683_v13 = vld [vmem:[#allocation3 + $0x130] sm:$0xff]  ;;  %v12022_v16 = vld [vmem:[#allocation2 + $0x4a] sm:$0xff] }
 0x4ea   : > { %v9212_v51 = vpop.f32.mrb[65].mxu0  ;;  %16253 = vmatmul.mubr.msk.f32.gmra.mrb[170].mxu0 %vm171_vm1, %v11416_v45  ;;  %9413 = vst.msk [vmem:[#allocation3 + $0xd0] sm:$0xff] %vm171_vm1, %v9365_v9  ;;  %v9320_v53 = vld [vmem:[#allocation3 + $0xe8] sm:$0xff]  ;;  %v8725_v20 = vadd.f32 %v8677_v23, %v8566_v44  ;;  %16181 = vmatprep.mubr.msk.f32.mxu1 %vm171_vm1, %v10771_v49  ;;  %v8685_v33 = vld [vmem:[#allocation3 + $0x140] sm:$0xff] }
 0x4eb   : > { %16255 = vmatprep.mubr.msk.f32.mxu0 %vm171_vm1, %v11417_v5  ;;  %v9368_v0 = vadd.f32 %v19840_v2, %v9320_v53  ;;  %v9319_v46 = vld [vmem:[#allocation3 + $0xe0] sm:$0xff]  ;;  %8774 = vst.msk [vmem:[#allocation3 + $0x108] sm:$0xff] %vm171_vm1, %v8726_v17  ;;  %v12023_v17 = vld [vmem:[#allocation2 + $0x52] sm:$0xff] }
 0x4ec   : > { %v9367_v36 = vadd.f32 %v9319_v46, %v9192_v30  ;;  %8773 = vst.msk [vmem:[#allocation3 + $0x100] sm:$0xff] %vm171_vm1, %v8725_v20  ;;  %v15872_v60 = vpop.f32.mrb[18].mxu1  ;;  %v10774_v2 = vld [vmem:[#allocation2 + $0x1a8] sm:$0xff]  ;;  %v12019_v30 = vld [vmem:[#allocation2 + $0x32] sm:$0xff]  ;;  %v8688_v20 = vld [vmem:[#allocation3 + $0x158] sm:$0xff] }
 0x4ed   : > { %v15946_v21 = vpop.f32.mrb[66].mxu0  ;;  %9416 = vst.msk [vmem:[#allocation3 + $0xe8] sm:$0xff] %vm171_vm1, %v9368_v0  ;;  %v8728_v6 = vadd.f32 %v15872_v60, %v8680_v55  ;;  %v8576_v14 = vpop.f32.mrb[19].mxu1  ;;  %16182 = vmatmul.mubr.msk.f32.gmra.mrb[124].mxu1 %vm171_vm1, %v10772_v3  ;;  %v12024_v46 = vld [vmem:[#allocation2 + $0x5a] sm:$0xff]  ;;  %v12025_v3 = vld [vmem:[#allocation2 + $0x62] sm:$0xff] }
 0x4ee   : > { %v9222_v58 = vpop.f32.mrb[67].mxu0  ;;  %16256 = vmatmul.mubr.msk.f32.gmra.mrb[172].mxu0 %vm171_vm1, %v11418_v62  ;;  %9415 = vst.msk [vmem:[#allocation3 + $0xe0] sm:$0xff] %vm171_vm1, %v9367_v36  ;;  %v9322_v26 = vld [vmem:[#allocation3 + $0xf8] sm:$0xff]  ;;  %v8727_v56 = vadd.f32 %v8679_v8, %v8576_v14  ;;  %16184 = vmatprep.mubr.msk.f32.mxu1 %vm171_vm1, %v10773_v37  ;;  %v8687_v55 = vld [vmem:[#allocation3 + $0x150] sm:$0xff] }
 0x4ef   : > { %16258 = vmatprep.mubr.msk.f32.mxu0 %vm171_vm1, %v11419_v1  ;;  %v9370_v39 = vadd.f32 %v19851_v12, %v9322_v26  ;;  %v9321_v38 = vld [vmem:[#allocation3 + $0xf0] sm:$0xff]  ;;  %8776 = vst.msk [vmem:[#allocation3 + $0x118] sm:$0xff] %vm171_vm1, %v8728_v6  ;;  %v8690_v1 = vld [vmem:[#allocation3 + $0x168] sm:$0xff] }
 0x4f0   : > { %v9369_v18 = vadd.f32 %v9321_v38, %v9202_v10  ;;  %8775 = vst.msk [vmem:[#allocation3 + $0x110] sm:$0xff] %vm171_vm1, %v8727_v56  ;;  %v15875_v15 = vpop.f32.mrb[20].mxu1  ;;  %v12020_v12 = vld [vmem:[#allocation2 + $0x3a] sm:$0xff]  ;;  %v12026_v56 = vld [vmem:[#allocation2 + $0x6a] sm:$0xff] }
 0x4f1   : > { %v15949_v25 = vpop.f32.mrb[68].mxu0  ;;  %9418 = vst.msk [vmem:[#allocation3 + $0xf8] sm:$0xff] %vm171_vm1, %v9370_v39  ;;  %v8730_v59 = vadd.f32 %v15875_v15, %v8682_v52  ;;  %v8586_v40 = vpop.f32.mrb[21].mxu1  ;;  %16185 = vmatmul.mubr.msk.f32.gmra.mrb[126].mxu1 %vm171_vm1, %v10774_v2  ;;  %v12027_v52 = vld [vmem:[#allocation2 + $0x72] sm:$0xff] }
 0x4f2   : > { %v9232_v35 = vpop.f32.mrb[69].mxu0  ;;  %16259 = vmatmul.mubr.msk.f32.gmra.mrb[174].mxu0 %vm171_vm1, %v11420_v54  ;;  %9417 = vst.msk [vmem:[#allocation3 + $0xf0] sm:$0xff] %vm171_vm1, %v9369_v18  ;;  %v9324_v41 = vld [vmem:[#allocation3 + $0x108] sm:$0xff]  ;;  %v8729_v57 = vadd.f32 %v8681_v7, %v8586_v40  ;;  %16263 = vmatprep.mubr.msk.f32.mxu1 %vm171_vm1, %v12019_v30  ;;  %v8689_v18 = vld [vmem:[#allocation3 + $0x160] sm:$0xff] }
 0x4f3   : > { %v9372_v22 = vadd.f32 %v19862_v4, %v9324_v41  ;;  %v9323_v43 = vld [vmem:[#allocation3 + $0x100] sm:$0xff]  ;;  %8778 = vst.msk [vmem:[#allocation3 + $0x128] sm:$0xff] %vm171_vm1, %v8730_v59  ;;  %v12028_v41 = vld [vmem:[#allocation2 + $0x7a] sm:$0xff] }
 0x4f4   : > { %v9371_v50 = vadd.f32 %v9323_v43, %v9212_v51  ;;  %8777 = vst.msk [vmem:[#allocation3 + $0x120] sm:$0xff] %vm171_vm1, %v8729_v57  ;;  %v15878_v11 = vpop.f32.mrb[22].mxu1  ;;  %v8691_v43 = vld [vmem:[#allocation3 + $0x170] sm:$0xff] }
 0x4f5   : > { %v15952_v27 = vpop.f32.mrb[70].mxu0  ;;  %9420 = vst.msk [vmem:[#allocation3 + $0x108] sm:$0xff] %vm171_vm1, %v9372_v22  ;;  %v8732_v48 = vadd.f32 %v15878_v11, %v8684_v28  ;;  %v8596_v61 = vpop.f32.mrb[23].mxu1  ;;  %16264 = vmatmul.mubr.msk.f32.vlgmr.msra.gmra.mrb[128].mxu1 %vm171_vm1, %v12020_v12  ;;  %v12029_v11 = vld [vmem:[#allocation2 + $0x82] sm:$0xff] }
 0x4f6   : > { %v9242_v34 = vpop.f32.mrb[71].mxu0  ;;  %9419 = vst.msk [vmem:[#allocation3 + $0x100] sm:$0xff] %vm171_vm1, %v9371_v50  ;;  %v9326_v10 = vld [vmem:[#allocation3 + $0x118] sm:$0xff]  ;;  %v8731_v32 = vadd.f32 %v8683_v13, %v8596_v61  ;;  %16266 = vmatprep.mubr.msk.f32.mxu1 %vm171_vm1, %v12021_v42 }
 0x4f7   : > { %v9374_v31 = vadd.f32 %v15946_v21, %v9326_v10  ;;  %v9325_v24 = vld [vmem:[#allocation3 + $0x110] sm:$0xff]  ;;  %8780 = vst.msk [vmem:[#allocation3 + $0x138] sm:$0xff] %vm171_vm1, %v8732_v48  ;;  %v12030_v10 = vld [vmem:[#allocation2 + $0x8a] sm:$0xff] }
 0x4f8   : > { %v9373_v63 = vadd.f32 %v9325_v24, %v9222_v58  ;;  %8779 = vst.msk [vmem:[#allocation3 + $0x130] sm:$0xff] %vm171_vm1, %v8731_v32  ;;  %v15881_v19 = vpop.f32.mrb[24].mxu1  ;;  %v9937_v24 = vld [vmem:[#allocation3] sm:$0xff] }
 0x4f9   : > { %v15955_v9 = vpop.f32.mrb[72].mxu0  ;;  %9422 = vst.msk [vmem:[#allocation3 + $0x118] sm:$0xff] %vm171_vm1, %v9374_v31  ;;  %v8734_v47 = vadd.f32 %v15881_v19, %v8686_v29  ;;  %v8606_v4 = vpop.f32.mrb[25].mxu1  ;;  %16267 = vmatmul.mubr.msk.f32.gmra.mrb[130].mxu1 %vm171_vm1, %v12022_v16  ;;  %v12031_v19 = vld [vmem:[#allocation2 + $0x92] sm:$0xff] }
 0x4fa   : > { %v9252_v45 = vpop.f32.mrb[73].mxu0  ;;  %9421 = vst.msk [vmem:[#allocation3 + $0x110] sm:$0xff] %vm171_vm1, %v9373_v63  ;;  %v9328_v44 = vld [vmem:[#allocation3 + $0x128] sm:$0xff]  ;;  %v8733_v23 = vadd.f32 %v8685_v33, %v8606_v4  ;;  %16269 = vmatprep.mubr.msk.f32.mxu1 %vm171_vm1, %v12023_v17 }
 0x4fb   : > { %v9376_v51 = vadd.f32 %v15949_v25, %v9328_v44  ;;  %v9327_v49 = vld [vmem:[#allocation3 + $0x120] sm:$0xff]  ;;  %8782 = vst.msk [vmem:[#allocation3 + $0x148] sm:$0xff] %vm171_vm1, %v8734_v47  ;;  %v12032_v44 = vld [vmem:[#allocation2 + $0x9a] sm:$0xff] }
 0x4fc   : > { %v9375_v5 = vadd.f32 %v9327_v49, %v9232_v35  ;;  %8781 = vst.msk [vmem:[#allocation3 + $0x140] sm:$0xff] %vm171_vm1, %v8733_v23  ;;  %v15884_v53 = vpop.f32.mrb[26].mxu1  ;;  %v8692_v35 = vld [vmem:[#allocation3 + $0x178] sm:$0xff]  ;;  %v9939_v49 = vld [vmem:[#allocation3 + $0x10] sm:$0xff] }
 0x4fd   : > { %v15958_v0 = vpop.f32.mrb[74].mxu0  ;;  %9424 = vst.msk [vmem:[#allocation3 + $0x128] sm:$0xff] %vm171_vm1, %v9376_v51  ;;  %v8736_v36 = vadd.f32 %v15884_v53, %v8688_v20  ;;  %v8616_v60 = vpop.f32.mrb[27].mxu1  ;;  %16270 = vmatmul.mubr.msk.f32.gmra.mrb[132].mxu1 %vm171_vm1, %v12024_v46  ;;  %v12033_v53 = vld [vmem:[#allocation2 + $0xa2] sm:$0xff] }
 0x4fe   : > { %v9262_v21 = vpop.f32.mrb[75].mxu0  ;;  %9423 = vst.msk [vmem:[#allocation3 + $0x120] sm:$0xff] %vm171_vm1, %v9375_v5  ;;  %v9330_v62 = vld [vmem:[#allocation3 + $0x138] sm:$0xff]  ;;  %v8735_v6 = vadd.f32 %v8687_v55, %v8616_v60  ;;  %16272 = vmatprep.mubr.msk.f32.mxu1 %vm171_vm1, %v12025_v3 }
 0x4ff   : > { %v9378_v14 = vadd.f32 %v15952_v27, %v9330_v62  ;;  %v9329_v8 = vld [vmem:[#allocation3 + $0x130] sm:$0xff]  ;;  %8784 = vst.msk [vmem:[#allocation3 + $0x158] sm:$0xff] %vm171_vm1, %v8736_v36  ;;  %v12034_v62 = vld [vmem:[#allocation2 + $0xaa] sm:$0xff] }
 0x500   : > { %v9377_v58 = vadd.f32 %v9329_v8, %v9242_v34  ;;  %8783 = vst.msk [vmem:[#allocation3 + $0x150] sm:$0xff] %vm171_vm1, %v8735_v6  ;;  %v15887_v37 = vpop.f32.mrb[28].mxu1  ;;  %v9938_v34 = vld [vmem:[#allocation3 + $0x8] sm:$0xff]  ;;  %v9941_v8 = vld [vmem:[#allocation3 + $0x20] sm:$0xff] }
 0x501   : > { %v15961_v26 = vpop.f32.mrb[76].mxu0  ;;  %9426 = vst.msk [vmem:[#allocation3 + $0x138] sm:$0xff] %vm171_vm1, %v9378_v14  ;;  %v8738_v39 = vadd.f32 %v15887_v37, %v8690_v1  ;;  %v8626_v38 = vpop.f32.mrb[29].mxu1  ;;  %16273 = vmatmul.mubr.msk.f32.gmra.mrb[134].mxu1 %vm171_vm1, %v12026_v56  ;;  %v12035_v37 = vld [vmem:[#allocation2 + $0xb2] sm:$0xff] }
 0x502   : > { %v9272_v15 = vpop.f32.mrb[77].mxu0  ;;  %9425 = vst.msk [vmem:[#allocation3 + $0x130] sm:$0xff] %vm171_vm1, %v9377_v58  ;;  %v9332_v25 = vld [vmem:[#allocation3 + $0x148] sm:$0xff]  ;;  %v8737_v2 = vadd.f32 %v8689_v18, %v8626_v38  ;;  %16275 = vmatprep.mubr.msk.f32.mxu1 %vm171_vm1, %v12027_v52 }
 0x503   : > { %v9380_v54 = vadd.f32 %v15955_v9, %v9332_v25  ;;  %v9331_v59 = vld [vmem:[#allocation3 + $0x140] sm:$0xff]  ;;  %8786 = vst.msk [vmem:[#allocation3 + $0x168] sm:$0xff] %vm171_vm1, %v8738_v39  ;;  %v12036_v25 = vld [vmem:[#allocation2 + $0xba] sm:$0xff] }
 0x504   : > { %v9379_v40 = vadd.f32 %v9331_v59, %v9252_v45  ;;  %8785 = vst.msk [vmem:[#allocation3 + $0x160] sm:$0xff] %vm171_vm1, %v8737_v2  ;;  %v15890_v7 = vpop.f32.mrb[30].mxu1  ;;  %v9940_v45 = vld [vmem:[#allocation3 + $0x18] sm:$0xff]  ;;  %v9943_v59 = vld [vmem:[#allocation3 + $0x30] sm:$0xff] }
 0x505   : > { %v15964_v30 = vpop.f32.mrb[78].mxu0  ;;  %9428 = vst.msk [vmem:[#allocation3 + $0x148] sm:$0xff] %vm171_vm1, %v9380_v54  ;;  %v8740_v57 = vadd.f32 %v15890_v7, %v8692_v35  ;;  %v8636_v22 = vpop.f32.mrb[31].mxu1  ;;  %16276 = vmatmul.mubr.msk.f32.gmra.mrb[136].mxu1 %vm171_vm1, %v12028_v41  ;;  %v12037_v7 = vld [vmem:[#allocation2 + $0xc2] sm:$0xff] }
 0x506   : > { %v9282_v50 = vpop.f32.mrb[79].mxu0  ;;  %9427 = vst.msk [vmem:[#allocation3 + $0x140] sm:$0xff] %vm171_vm1, %v9379_v40  ;;  %v9334_v28 = vld [vmem:[#allocation3 + $0x158] sm:$0xff]  ;;  %v8739_v27 = vadd.f32 %v8691_v43, %v8636_v22  ;;  %16278 = vmatprep.mubr.msk.f32.mxu1 %vm171_vm1, %v12029_v11 }
 0x507   : > { %v9382_v12 = vadd.f32 %v15958_v0, %v9334_v28  ;;  %v9333_v48 = vld [vmem:[#allocation3 + $0x150] sm:$0xff]  ;;  %8788 = vst.msk [vmem:[#allocation3 + $0x178] sm:$0xff] %vm171_vm1, %v8740_v57  ;;  %v12038_v28 = vld [vmem:[#allocation2 + $0xca] sm:$0xff] }
 0x508   : > { %v9381_v61 = vadd.f32 %v9333_v48, %v9262_v21  ;;  %8787 = vst.msk [vmem:[#allocation3 + $0x170] sm:$0xff] %vm171_vm1, %v8739_v27  ;;  %v15969_v13 = vpop.f32.mrb[32].mxu1  ;;  %v9942_v21 = vld [vmem:[#allocation3 + $0x28] sm:$0xff]  ;;  %v9945_v48 = vld [vmem:[#allocation3 + $0x40] sm:$0xff] }
 0x509   : > { %v16043_v42 = vpop.f32.mrb[80].mxu0  ;;  %9430 = vst.msk [vmem:[#allocation3 + $0x158] sm:$0xff] %vm171_vm1, %v9382_v12  ;;  %v9986_v32 = vadd.f32 %v15969_v13, %v9938_v34  ;;  %v9698_v31 = vpop.f32.mrb[33].mxu1  ;;  %16279 = vmatmul.mubr.msk.f32.gmra.mrb[138].mxu1 %vm171_vm1, %v12030_v10  ;;  %v12039_v13 = vld [vmem:[#allocation2 + $0xd2] sm:$0xff] }
 0x50a   : > { %v10344_v63 = vpop.f32.mrb[81].mxu0  ;;  %9429 = vst.msk [vmem:[#allocation3 + $0x150] sm:$0xff] %vm171_vm1, %v9381_v61  ;;  %v9336_v29 = vld [vmem:[#allocation3 + $0x168] sm:$0xff]  ;;  %v9985_v9 = vadd.f32 %v9937_v24, %v9698_v31  ;;  %16281 = vmatprep.mubr.msk.f32.mxu1 %vm171_vm1, %v12031_v19 }
 0x50b   : > { %v9384_v16 = vadd.f32 %v15961_v26, %v9336_v29  ;;  %v9335_v47 = vld [vmem:[#allocation3 + $0x160] sm:$0xff]  ;;  %10034 = vst.msk [vmem:[#allocation3 + $0x8] sm:$0xff] %vm171_vm1, %v9986_v32  ;;  %v12040_v29 = vld [vmem:[#allocation2 + $0xda] sm:$0xff] }
 0x50c   : > { %v9383_v4 = vadd.f32 %v9335_v47, %v9272_v15  ;;  %10033 = vst.msk [vmem:[#allocation3] sm:$0xff] %vm171_vm1, %v9985_v9  ;;  %v15972_v33 = vpop.f32.mrb[34].mxu1  ;;  %v9944_v15 = vld [vmem:[#allocation3 + $0x38] sm:$0xff]  ;;  %v9947_v47 = vld [vmem:[#allocation3 + $0x50] sm:$0xff] }
 0x50d   : > { %v16046_v17 = vpop.f32.mrb[82].mxu0  ;;  %9432 = vst.msk [vmem:[#allocation3 + $0x168] sm:$0xff] %vm171_vm1, %v9384_v16  ;;  %v9988_v23 = vadd.f32 %v15972_v33, %v9940_v45  ;;  %v9708_v51 = vpop.f32.mrb[35].mxu1  ;;  %16282 = vmatmul.mubr.msk.f32.gmra.mrb[140].mxu1 %vm171_vm1, %v12032_v44  ;;  %v12041_v33 = vld [vmem:[#allocation2 + $0xe2] sm:$0xff] }
 0x50e   : > { %v10354_v5 = vpop.f32.mrb[83].mxu0  ;;  %9431 = vst.msk [vmem:[#allocation3 + $0x160] sm:$0xff] %vm171_vm1, %v9383_v4  ;;  %v9338_v20 = vld [vmem:[#allocation3 + $0x178] sm:$0xff]  ;;  %v9987_v0 = vadd.f32 %v9939_v49, %v9708_v51  ;;  %16284 = vmatprep.mubr.msk.f32.mxu1 %vm171_vm1, %v12033_v53 }
 0x50f   : > { %v9386_v46 = vadd.f32 %v15964_v30, %v9338_v20  ;;  %v9337_v36 = vld [vmem:[#allocation3 + $0x170] sm:$0xff]  ;;  %10036 = vst.msk [vmem:[#allocation3 + $0x18] sm:$0xff] %vm171_vm1, %v9988_v23  ;;  %v12042_v20 = vld [vmem:[#allocation2 + $0xea] sm:$0xff] }
 0x510   : > { %v9385_v60 = vadd.f32 %v9337_v36, %v9282_v50  ;;  %10035 = vst.msk [vmem:[#allocation3 + $0x10] sm:$0xff] %vm171_vm1, %v9987_v0  ;;  %v15975_v55 = vpop.f32.mrb[36].mxu1  ;;  %v9946_v50 = vld [vmem:[#allocation3 + $0x48] sm:$0xff]  ;;  %v9949_v36 = vld [vmem:[#allocation3 + $0x60] sm:$0xff] }
 0x511   : > { %v16049_v3 = vpop.f32.mrb[84].mxu0  ;;  %9434 = vst.msk [vmem:[#allocation3 + $0x178] sm:$0xff] %vm171_vm1, %v9386_v46  ;;  %v9990_v6 = vadd.f32 %v15975_v55, %v9942_v21  ;;  %v9718_v14 = vpop.f32.mrb[37].mxu1  ;;  %16285 = vmatmul.mubr.msk.f32.gmra.mrb[142].mxu1 %vm171_vm1, %v12034_v62  ;;  %v12043_v55 = vld [vmem:[#allocation2 + $0xf2] sm:$0xff] }
 0x512   : > { %v10364_v58 = vpop.f32.mrb[85].mxu0  ;;  %9433 = vst.msk [vmem:[#allocation3 + $0x170] sm:$0xff] %vm171_vm1, %v9385_v60  ;;  %v10584_v1 = vld [vmem:[#allocation3 + $0x8] sm:$0xff]  ;;  %v9989_v26 = vadd.f32 %v9941_v8, %v9718_v14  ;;  %16287 = vmatprep.mubr.msk.f32.mxu1 %vm171_vm1, %v12035_v37 }
 0x513   : > { %v10632_v56 = vadd.f32 %v16043_v42, %v10584_v1  ;;  %v10583_v39 = vld [vmem:[#allocation3] sm:$0xff]  ;;  %10038 = vst.msk [vmem:[#allocation3 + $0x28] sm:$0xff] %vm171_vm1, %v9990_v6  ;;  %v12044_v1 = vld [vmem:[#allocation2 + $0xfa] sm:$0xff] }
 0x514   : > { %v10631_v38 = vadd.f32 %v10583_v39, %v10344_v63  ;;  %10037 = vst.msk [vmem:[#allocation3 + $0x20] sm:$0xff] %vm171_vm1, %v9989_v26  ;;  %v15978_v18 = vpop.f32.mrb[38].mxu1  ;;  %v9948_v63 = vld [vmem:[#allocation3 + $0x58] sm:$0xff]  ;;  %v9951_v39 = vld [vmem:[#allocation3 + $0x70] sm:$0xff] }
 0x515   : > { %v16052_v52 = vpop.f32.mrb[86].mxu0  ;;  %10680 = vst.msk [vmem:[#allocation3 + $0x8] sm:$0xff] %vm171_vm1, %v10632_v56  ;;  %v9992_v2 = vadd.f32 %v15978_v18, %v9944_v15  ;;  %v9728_v54 = vpop.f32.mrb[39].mxu1  ;;  %16288 = vmatmul.mubr.msk.f32.gmra.mrb[144].mxu1 %vm171_vm1, %v12036_v25  ;;  %v12045_v18 = vld [vmem:[#allocation2 + $0x102] sm:$0xff] }
 0x516   : > { %v10374_v40 = vpop.f32.mrb[87].mxu0  ;;  %10679 = vst.msk [vmem:[#allocation3] sm:$0xff] %vm171_vm1, %v10631_v38  ;;  %v10586_v35 = vld [vmem:[#allocation3 + $0x18] sm:$0xff]  ;;  %v9991_v30 = vadd.f32 %v9943_v59, %v9728_v54  ;;  %16290 = vmatprep.mubr.msk.f32.mxu1 %vm171_vm1, %v12037_v7 }
 0x517   : > { %v10634_v41 = vadd.f32 %v16046_v17, %v10586_v35  ;;  %v10585_v57 = vld [vmem:[#allocation3 + $0x10] sm:$0xff]  ;;  %10040 = vst.msk [vmem:[#allocation3 + $0x38] sm:$0xff] %vm171_vm1, %v9992_v2  ;;  %v12046_v35 = vld [vmem:[#allocation2 + $0x10a] sm:$0xff] }
 0x518   : > { %v10633_v22 = vadd.f32 %v10585_v57, %v10354_v5  ;;  %10039 = vst.msk [vmem:[#allocation3 + $0x30] sm:$0xff] %vm171_vm1, %v9991_v30  ;;  %v15981_v43 = vpop.f32.mrb[40].mxu1  ;;  %v9950_v5 = vld [vmem:[#allocation3 + $0x68] sm:$0xff]  ;;  %v9953_v57 = vld [vmem:[#allocation3 + $0x80] sm:$0xff] }
 0x519   : > { %v16055_v11 = vpop.f32.mrb[88].mxu0  ;;  %10682 = vst.msk [vmem:[#allocation3 + $0x18] sm:$0xff] %vm171_vm1, %v10634_v41  ;;  %v9994_v27 = vadd.f32 %v15981_v43, %v9946_v50  ;;  %v9738_v12 = vpop.f32.mrb[41].mxu1  ;;  %16291 = vmatmul.mubr.msk.f32.gmra.mrb[146].mxu1 %vm171_vm1, %v12038_v28  ;;  %v12047_v43 = vld [vmem:[#allocation2 + $0x112] sm:$0xff] }
 0x51a   : > { %v10384_v61 = vpop.f32.mrb[89].mxu0  ;;  %10681 = vst.msk [vmem:[#allocation3 + $0x10] sm:$0xff] %vm171_vm1, %v10633_v22  ;;  %v10588_v34 = vld [vmem:[#allocation3 + $0x28] sm:$0xff]  ;;  %v9993_v42 = vadd.f32 %v9945_v48, %v9738_v12  ;;  %16293 = vmatprep.mubr.msk.f32.mxu1 %vm171_vm1, %v12039_v13 }
 0x51b   : > { %v10636_v10 = vadd.f32 %v16049_v3, %v10588_v34  ;;  %v10587_v32 = vld [vmem:[#allocation3 + $0x20] sm:$0xff]  ;;  %10042 = vst.msk [vmem:[#allocation3 + $0x48] sm:$0xff] %vm171_vm1, %v9994_v27  ;;  %v12048_v34 = vld [vmem:[#allocation2 + $0x11a] sm:$0xff] }
 0x51c   : > { %v10635_v31 = vadd.f32 %v10587_v32, %v10364_v58  ;;  %10041 = vst.msk [vmem:[#allocation3 + $0x40] sm:$0xff] %vm171_vm1, %v9993_v42  ;;  %v15984_v24 = vpop.f32.mrb[42].mxu1  ;;  %v9952_v58 = vld [vmem:[#allocation3 + $0x78] sm:$0xff]  ;;  %v9955_v32 = vld [vmem:[#allocation3 + $0x90] sm:$0xff] }
 0x51d   : > { %v16058_v19 = vpop.f32.mrb[90].mxu0  ;;  %10684 = vst.msk [vmem:[#allocation3 + $0x28] sm:$0xff] %vm171_vm1, %v10636_v10  ;;  %v9996_v9 = vadd.f32 %v15984_v24, %v9948_v63  ;;  %v9748_v16 = vpop.f32.mrb[43].mxu1  ;;  %16294 = vmatmul.mubr.msk.f32.gmra.mrb[148].mxu1 %vm171_vm1, %v12040_v29  ;;  %v12049_v24 = vld [vmem:[#allocation2 + $0x122] sm:$0xff] }
 0x51e   : > { %v10394_v4 = vpop.f32.mrb[91].mxu0  ;;  %10683 = vst.msk [vmem:[#allocation3 + $0x20] sm:$0xff] %vm171_vm1, %v10635_v31  ;;  %v10590_v45 = vld [vmem:[#allocation3 + $0x38] sm:$0xff]  ;;  %v9995_v17 = vadd.f32 %v9947_v47, %v9748_v16  ;;  %16296 = vmatprep.mubr.msk.f32.mxu1 %vm171_vm1, %v12041_v33 }
 0x51f   : > { %v10638_v44 = vadd.f32 %v16052_v52, %v10590_v45  ;;  %v10589_v23 = vld [vmem:[#allocation3 + $0x30] sm:$0xff]  ;;  %10044 = vst.msk [vmem:[#allocation3 + $0x58] sm:$0xff] %vm171_vm1, %v9996_v9  ;;  %v12050_v45 = vld [vmem:[#allocation2 + $0x12a] sm:$0xff] }
 0x520   : > { %v10637_v51 = vadd.f32 %v10589_v23, %v10374_v40  ;;  %10043 = vst.msk [vmem:[#allocation3 + $0x50] sm:$0xff] %vm171_vm1, %v9995_v17  ;;  %v15987_v49 = vpop.f32.mrb[44].mxu1  ;;  %v9954_v40 = vld [vmem:[#allocation3 + $0x88] sm:$0xff]  ;;  %v9957_v23 = vld [vmem:[#allocation3 + $0xa0] sm:$0xff] }
 0x521   : > { %v16061_v53 = vpop.f32.mrb[92].mxu0  ;;  %10686 = vst.msk [vmem:[#allocation3 + $0x38] sm:$0xff] %vm171_vm1, %v10638_v44  ;;  %v9998_v0 = vadd.f32 %v15987_v49, %v9950_v5  ;;  %v9758_v46 = vpop.f32.mrb[45].mxu1  ;;  %16297 = vmatmul.mubr.msk.f32.gmra.mrb[150].mxu1 %vm171_vm1, %v12042_v20  ;;  %v12051_v49 = vld [vmem:[#allocation2 + $0x132] sm:$0xff] }
 0x522   : > { %v10404_v60 = vpop.f32.mrb[93].mxu0  ;;  %10685 = vst.msk [vmem:[#allocation3 + $0x30] sm:$0xff] %vm171_vm1, %v10637_v51  ;;  %v10592_v21 = vld [vmem:[#allocation3 + $0x48] sm:$0xff]  ;;  %v9997_v3 = vadd.f32 %v9949_v36, %v9758_v46  ;;  %16299 = vmatprep.mubr.msk.f32.mxu1 %vm171_vm1, %v12043_v55 }
 0x523   : > { %v10640_v62 = vadd.f32 %v16055_v11, %v10592_v21  ;;  %v10591_v6 = vld [vmem:[#allocation3 + $0x40] sm:$0xff]  ;;  %10046 = vst.msk [vmem:[#allocation3 + $0x68] sm:$0xff] %vm171_vm1, %v9998_v0  ;;  %v12052_v21 = vld [vmem:[#allocation2 + $0x13a] sm:$0xff] }
 0x524   : > { %v10639_v14 = vadd.f32 %v10591_v6, %v10384_v61  ;;  %10045 = vst.msk [vmem:[#allocation3 + $0x60] sm:$0xff] %vm171_vm1, %v9997_v3  ;;  %v15990_v8 = vpop.f32.mrb[46].mxu1  ;;  %v9956_v61 = vld [vmem:[#allocation3 + $0x98] sm:$0xff]  ;;  %v9959_v6 = vld [vmem:[#allocation3 + $0xb0] sm:$0xff] }
 0x525   : > { %v16064_v37 = vpop.f32.mrb[94].mxu0  ;;  %10688 = vst.msk [vmem:[#allocation3 + $0x48] sm:$0xff] %vm171_vm1, %v10640_v62  ;;  %v10000_v26 = vadd.f32 %v15990_v8, %v9952_v58  ;;  %v9768_v56 = vpop.f32.mrb[47].mxu1  ;;  %16300 = vmatmul.mubr.msk.f32.gmra.mrb[152].mxu1 %vm171_vm1, %v12044_v1  ;;  %v12053_v8 = vld [vmem:[#allocation2 + $0x142] sm:$0xff] }
 0x526   : > { %v10414_v38 = vpop.f32.mrb[95].mxu0  ;;  %10687 = vst.msk [vmem:[#allocation3 + $0x40] sm:$0xff] %vm171_vm1, %v10639_v14  ;;  %v10594_v15 = vld [vmem:[#allocation3 + $0x58] sm:$0xff]  ;;  %v9999_v52 = vadd.f32 %v9951_v39, %v9768_v56  ;;  %16302 = vmatprep.mubr.msk.f32.mxu1 %vm171_vm1, %v12045_v18 }
 0x527   : > { %v10642_v25 = vadd.f32 %v16058_v19, %v10594_v15  ;;  %v10593_v2 = vld [vmem:[#allocation3 + $0x50] sm:$0xff]  ;;  %10048 = vst.msk [vmem:[#allocation3 + $0x78] sm:$0xff] %vm171_vm1, %v10000_v26  ;;  %v12054_v15 = vld [vmem:[#allocation2 + $0x14a] sm:$0xff] }
 0x528   : > { %v10641_v54 = vadd.f32 %v10593_v2, %v10394_v4  ;;  %10047 = vst.msk [vmem:[#allocation3 + $0x70] sm:$0xff] %vm171_vm1, %v9999_v52  ;;  %v15993_v59 = vpop.f32.mrb[48].mxu1  ;;  %v9958_v4 = vld [vmem:[#allocation3 + $0xa8] sm:$0xff]  ;;  %v9961_v2 = vld [vmem:[#allocation3 + $0xc0] sm:$0xff] }
 0x529   : > { %v16067_v7 = vpop.f32.mrb[96].mxu0  ;;  %10690 = vst.msk [vmem:[#allocation3 + $0x58] sm:$0xff] %vm171_vm1, %v10642_v25  ;;  %v10002_v30 = vadd.f32 %v15993_v59, %v9954_v40  ;;  %v9778_v41 = vpop.f32.mrb[49].mxu1  ;;  %16303 = vmatmul.mubr.msk.f32.gmra.mrb[154].mxu1 %vm171_vm1, %v12046_v35  ;;  %v12055_v59 = vld [vmem:[#allocation2 + $0x152] sm:$0xff] }
 0x52a   : > { %v10424_v22 = vpop.f32.mrb[97].mxu0  ;;  %10689 = vst.msk [vmem:[#allocation3 + $0x50] sm:$0xff] %vm171_vm1, %v10641_v54  ;;  %v10596_v50 = vld [vmem:[#allocation3 + $0x68] sm:$0xff]  ;;  %v10001_v11 = vadd.f32 %v9953_v57, %v9778_v41  ;;  %16305 = vmatprep.mubr.msk.f32.mxu1 %vm171_vm1, %v12047_v43 }
 0x52b   : > { %v10644_v28 = vadd.f32 %v16061_v53, %v10596_v50  ;;  %v10595_v27 = vld [vmem:[#allocation3 + $0x60] sm:$0xff]  ;;  %10050 = vst.msk [vmem:[#allocation3 + $0x88] sm:$0xff] %vm171_vm1, %v10002_v30  ;;  %v12056_v50 = vld [vmem:[#allocation2 + $0x15a] sm:$0xff] }
 0x52c   : > { %v10643_v12 = vadd.f32 %v10595_v27, %v10404_v60  ;;  %10049 = vst.msk [vmem:[#allocation3 + $0x80] sm:$0xff] %vm171_vm1, %v10001_v11  ;;  %v15996_v48 = vpop.f32.mrb[50].mxu1  ;;  %v9960_v60 = vld [vmem:[#allocation3 + $0xb8] sm:$0xff]  ;;  %v9963_v27 = vld [vmem:[#allocation3 + $0xd0] sm:$0xff] }
 0x52d   : > { %v16070_v13 = vpop.f32.mrb[98].mxu0  ;;  %10692 = vst.msk [vmem:[#allocation3 + $0x68] sm:$0xff] %vm171_vm1, %v10644_v28  ;;  %v10004_v42 = vadd.f32 %v15996_v48, %v9956_v61  ;;  %v9788_v10 = vpop.f32.mrb[51].mxu1  ;;  %16306 = vmatmul.mubr.msk.f32.gmra.mrb[156].mxu1 %vm171_vm1, %v12048_v34  ;;  %v12057_v48 = vld [vmem:[#allocation2 + $0x162] sm:$0xff] }
 0x52e   : > { %v10434_v31 = vpop.f32.mrb[99].mxu0  ;;  %10691 = vst.msk [vmem:[#allocation3 + $0x60] sm:$0xff] %vm171_vm1, %v10643_v12  ;;  %v10598_v63 = vld [vmem:[#allocation3 + $0x78] sm:$0xff]  ;;  %v10003_v19 = vadd.f32 %v9955_v32, %v9788_v10  ;;  %16308 = vmatprep.mubr.msk.f32.mxu1 %vm171_vm1, %v12049_v24 }
 0x52f   : > { %v10646_v29 = vadd.f32 %v16064_v37, %v10598_v63  ;;  %v10597_v9 = vld [vmem:[#allocation3 + $0x70] sm:$0xff]  ;;  %10052 = vst.msk [vmem:[#allocation3 + $0x98] sm:$0xff] %vm171_vm1, %v10004_v42  ;;  %v12058_v63 = vld [vmem:[#allocation2 + $0x16a] sm:$0xff] }
 0x530   : > { %v10645_v16 = vadd.f32 %v10597_v9, %v10414_v38  ;;  %10051 = vst.msk [vmem:[#allocation3 + $0x90] sm:$0xff] %vm171_vm1, %v10003_v19  ;;  %v15999_v47 = vpop.f32.mrb[52].mxu1  ;;  %v9962_v38 = vld [vmem:[#allocation3 + $0xc8] sm:$0xff]  ;;  %v9965_v9 = vld [vmem:[#allocation3 + $0xe0] sm:$0xff] }
 0x531   : > { %v16073_v33 = vpop.f32.mrb[100].mxu0  ;;  %10694 = vst.msk [vmem:[#allocation3 + $0x78] sm:$0xff] %vm171_vm1, %v10646_v29  ;;  %v10006_v17 = vadd.f32 %v15999_v47, %v9958_v4  ;;  %v9798_v44 = vpop.f32.mrb[53].mxu1  ;;  %16309 = vmatmul.mubr.msk.f32.gmra.mrb[158].mxu1 %vm171_vm1, %v12050_v45  ;;  %v12059_v47 = vld [vmem:[#allocation2 + $0x172] sm:$0xff] }
 0x532   : > { %v10444_v51 = vpop.f32.mrb[101].mxu0  ;;  %10693 = vst.msk [vmem:[#allocation3 + $0x70] sm:$0xff] %vm171_vm1, %v10645_v16  ;;  %v10600_v5 = vld [vmem:[#allocation3 + $0x88] sm:$0xff]  ;;  %v10005_v53 = vadd.f32 %v9957_v23, %v9798_v44  ;;  %16311 = vmatprep.mubr.msk.f32.mxu1 %vm171_vm1, %v12051_v49 }
 0x533   : > { %v10648_v20 = vadd.f32 %v16067_v7, %v10600_v5  ;;  %v10599_v0 = vld [vmem:[#allocation3 + $0x80] sm:$0xff]  ;;  %10054 = vst.msk [vmem:[#allocation3 + $0xa8] sm:$0xff] %vm171_vm1, %v10006_v17  ;;  %v12060_v5 = vld [vmem:[#allocation2 + $0x17a] sm:$0xff] }
 0x534   : > { %v10647_v46 = vadd.f32 %v10599_v0, %v10424_v22  ;;  %10053 = vst.msk [vmem:[#allocation3 + $0xa0] sm:$0xff] %vm171_vm1, %v10005_v53  ;;  %v16002_v36 = vpop.f32.mrb[54].mxu1  ;;  %v9964_v22 = vld [vmem:[#allocation3 + $0xd8] sm:$0xff]  ;;  %v9967_v0 = vld [vmem:[#allocation3 + $0xf0] sm:$0xff] }
 0x535   : > { %v16076_v55 = vpop.f32.mrb[102].mxu0  ;;  %10696 = vst.msk [vmem:[#allocation3 + $0x88] sm:$0xff] %vm171_vm1, %v10648_v20  ;;  %v10008_v3 = vadd.f32 %v16002_v36, %v9960_v60  ;;  %v9808_v62 = vpop.f32.mrb[55].mxu1  ;;  %16312 = vmatmul.mubr.msk.f32.gmra.mrb[160].mxu1 %vm171_vm1, %v12052_v21  ;;  %v12061_v36 = vld [vmem:[#allocation2 + $0x182] sm:$0xff] }
 0x536   : > { %v10454_v14 = vpop.f32.mrb[103].mxu0  ;;  %10695 = vst.msk [vmem:[#allocation3 + $0x80] sm:$0xff] %vm171_vm1, %v10647_v46  ;;  %v10602_v58 = vld [vmem:[#allocation3 + $0x98] sm:$0xff]  ;;  %v10007_v37 = vadd.f32 %v9959_v6, %v9808_v62  ;;  %16314 = vmatprep.mubr.msk.f32.mxu1 %vm171_vm1, %v12053_v8 }
 0x537   : > { %v10650_v1 = vadd.f32 %v16070_v13, %v10602_v58  ;;  %v10601_v26 = vld [vmem:[#allocation3 + $0x90] sm:$0xff]  ;;  %10056 = vst.msk [vmem:[#allocation3 + $0xb8] sm:$0xff] %vm171_vm1, %v10008_v3  ;;  %v12062_v58 = vld [vmem:[#allocation2 + $0x18a] sm:$0xff] }
 0x538   : > { %v10649_v56 = vadd.f32 %v10601_v26, %v10434_v31  ;;  %10055 = vst.msk [vmem:[#allocation3 + $0xb0] sm:$0xff] %vm171_vm1, %v10007_v37  ;;  %v16005_v39 = vpop.f32.mrb[56].mxu1  ;;  %v9966_v31 = vld [vmem:[#allocation3 + $0xe8] sm:$0xff]  ;;  %v9969_v26 = vld [vmem:[#allocation3 + $0x100] sm:$0xff] }
 0x539   : > { %v16079_v18 = vpop.f32.mrb[104].mxu0  ;;  %10698 = vst.msk [vmem:[#allocation3 + $0x98] sm:$0xff] %vm171_vm1, %v10650_v1  ;;  %v10010_v52 = vadd.f32 %v16005_v39, %v9962_v38  ;;  %v9818_v25 = vpop.f32.mrb[57].mxu1  ;;  %16315 = vmatmul.mubr.msk.f32.gmra.mrb[162].mxu1 %vm171_vm1, %v12054_v15  ;;  %v12063_v39 = vld [vmem:[#allocation2 + $0x192] sm:$0xff] }
 0x53a   : > { %v10464_v54 = vpop.f32.mrb[105].mxu0  ;;  %10697 = vst.msk [vmem:[#allocation3 + $0x90] sm:$0xff] %vm171_vm1, %v10649_v56  ;;  %v10604_v40 = vld [vmem:[#allocation3 + $0xa8] sm:$0xff]  ;;  %v10009_v7 = vadd.f32 %v9961_v2, %v9818_v25  ;;  %16317 = vmatprep.mubr.msk.f32.mxu1 %vm171_vm1, %v12055_v59 }
 0x53b   : > { %v10652_v35 = vadd.f32 %v16073_v33, %v10604_v40  ;;  %v10603_v30 = vld [vmem:[#allocation3 + $0xa0] sm:$0xff]  ;;  %10058 = vst.msk [vmem:[#allocation3 + $0xc8] sm:$0xff] %vm171_vm1, %v10010_v52  ;;  %v12064_v40 = vld [vmem:[#allocation2 + $0x19a] sm:$0xff] }
 0x53c   : > { %v10651_v41 = vadd.f32 %v10603_v30, %v10444_v51  ;;  %10057 = vst.msk [vmem:[#allocation3 + $0xc0] sm:$0xff] %vm171_vm1, %v10009_v7  ;;  %v16008_v57 = vpop.f32.mrb[58].mxu1  ;;  %v9968_v51 = vld [vmem:[#allocation3 + $0xf8] sm:$0xff]  ;;  %v9971_v30 = vld [vmem:[#allocation3 + $0x110] sm:$0xff] }
 0x53d   : > { %v16082_v43 = vpop.f32.mrb[106].mxu0  ;;  %10700 = vst.msk [vmem:[#allocation3 + $0xa8] sm:$0xff] %vm171_vm1, %v10652_v35  ;;  %v10012_v11 = vadd.f32 %v16008_v57, %v9964_v22  ;;  %v9828_v28 = vpop.f32.mrb[59].mxu1  ;;  %16318 = vmatmul.mubr.msk.f32.gmra.mrb[164].mxu1 %vm171_vm1, %v12056_v50  ;;  %v12065_v57 = vld [vmem:[#allocation2 + $0x1a2] sm:$0xff] }
 0x53e   : > { %v10474_v12 = vpop.f32.mrb[107].mxu0  ;;  %10699 = vst.msk [vmem:[#allocation3 + $0xa0] sm:$0xff] %vm171_vm1, %v10651_v41  ;;  %v10606_v61 = vld [vmem:[#allocation3 + $0xb8] sm:$0xff]  ;;  %v10011_v13 = vadd.f32 %v9963_v27, %v9828_v28  ;;  %16320 = vmatprep.mubr.msk.f32.mxu1 %vm171_vm1, %v12057_v48 }
 0x53f   : > { %v10654_v34 = vadd.f32 %v16076_v55, %v10606_v61  ;;  %v10605_v42 = vld [vmem:[#allocation3 + $0xb0] sm:$0xff]  ;;  %10060 = vst.msk [vmem:[#allocation3 + $0xd8] sm:$0xff] %vm171_vm1, %v10012_v11  ;;  %v12066_v61 = vld [vmem:[#allocation2 + $0x1aa] sm:$0xff] }
 0x540   : > { %v10653_v10 = vadd.f32 %v10605_v42, %v10454_v14  ;;  %10059 = vst.msk [vmem:[#allocation3 + $0xd0] sm:$0xff] %vm171_vm1, %v10011_v13  ;;  %v16011_v32 = vpop.f32.mrb[60].mxu1  ;;  %v9970_v14 = vld [vmem:[#allocation3 + $0x108] sm:$0xff]  ;;  %v9973_v42 = vld [vmem:[#allocation3 + $0x120] sm:$0xff] }
 0x541   : > { %v16085_v24 = vpop.f32.mrb[108].mxu0  ;;  %10702 = vst.msk [vmem:[#allocation3 + $0xb8] sm:$0xff] %vm171_vm1, %v10654_v34  ;;  %v10014_v19 = vadd.f32 %v16011_v32, %v9966_v31  ;;  %v9838_v29 = vpop.f32.mrb[61].mxu1  ;;  %16321 = vmatmul.mubr.msk.f32.gmra.mrb[166].mxu1 %vm171_vm1, %v12058_v63 }
 0x542   : > { %v10484_v16 = vpop.f32.mrb[109].mxu0  ;;  %10701 = vst.msk [vmem:[#allocation3 + $0xb0] sm:$0xff] %vm171_vm1, %v10653_v10  ;;  %v10608_v4 = vld [vmem:[#allocation3 + $0xc8] sm:$0xff]  ;;  %v10013_v33 = vadd.f32 %v9965_v9, %v9838_v29  ;;  %16323 = vmatprep.mubr.msk.f32.mxu1 %vm171_vm1, %v12059_v47  ;;  %v9976_v9 = vld [vmem:[#allocation3 + $0x138] sm:$0xff] }
 0x543   : > { %v10656_v45 = vadd.f32 %v16079_v18, %v10608_v4  ;;  %v10607_v17 = vld [vmem:[#allocation3 + $0xc0] sm:$0xff]  ;;  %10062 = vst.msk [vmem:[#allocation3 + $0xe8] sm:$0xff] %vm171_vm1, %v10014_v19 }
 0x544   : > { %v10655_v44 = vadd.f32 %v10607_v17, %v10464_v54  ;;  %10061 = vst.msk [vmem:[#allocation3 + $0xe0] sm:$0xff] %vm171_vm1, %v10013_v33  ;;  %v16014_v23 = vpop.f32.mrb[62].mxu1  ;;  %v9972_v54 = vld [vmem:[#allocation3 + $0x118] sm:$0xff]  ;;  %v9975_v33 = vld [vmem:[#allocation3 + $0x130] sm:$0xff] }
 0x545   : > { %v16088_v49 = vpop.f32.mrb[110].mxu0  ;;  %10704 = vst.msk [vmem:[#allocation3 + $0xc8] sm:$0xff] %vm171_vm1, %v10656_v45  ;;  %v10016_v53 = vadd.f32 %v16014_v23, %v9968_v51  ;;  %v9848_v20 = vpop.f32.mrb[63].mxu1  ;;  %16324 = vmatmul.mubr.msk.f32.gmra.mrb[168].mxu1 %vm171_vm1, %v12060_v5 }
 0x546   : > { %v10494_v46 = vpop.f32.mrb[111].mxu0  ;;  %10703 = vst.msk [vmem:[#allocation3 + $0xc0] sm:$0xff] %vm171_vm1, %v10655_v44  ;;  %v10610_v60 = vld [vmem:[#allocation3 + $0xd8] sm:$0xff]  ;;  %v10015_v55 = vadd.f32 %v9967_v0, %v9848_v20  ;;  %16326 = vmatprep.mubr.msk.f32.mxu1 %vm171_vm1, %v12061_v36  ;;  %v9977_v36 = vld [vmem:[#allocation3 + $0x140] sm:$0xff] }
 0x547   : > { %v10658_v21 = vadd.f32 %v16082_v43, %v10610_v60  ;;  %v10609_v3 = vld [vmem:[#allocation3 + $0xd0] sm:$0xff]  ;;  %10064 = vst.msk [vmem:[#allocation3 + $0xf8] sm:$0xff] %vm171_vm1, %v10016_v53  ;;  %v9978_v53 = vld [vmem:[#allocation3 + $0x148] sm:$0xff] }
 0x548   : > { %v10657_v62 = vadd.f32 %v10609_v3, %v10474_v12  ;;  %10063 = vst.msk [vmem:[#allocation3 + $0xf0] sm:$0xff] %vm171_vm1, %v10015_v55  ;;  %v16017_v6 = vpop.f32.mrb[64].mxu1  ;;  %v9974_v12 = vld [vmem:[#allocation3 + $0x128] sm:$0xff] }
 0x549   : > { %v16091_v8 = vpop.f32.mrb[112].mxu0  ;;  %10706 = vst.msk [vmem:[#allocation3 + $0xd8] sm:$0xff] %vm171_vm1, %v10658_v21  ;;  %v10018_v37 = vadd.f32 %v16017_v6, %v9970_v14  ;;  %v9858_v1 = vpop.f32.mrb[65].mxu1  ;;  %16327 = vmatmul.mubr.msk.f32.gmra.mrb[170].mxu1 %vm171_vm1, %v12062_v58 }
 0x54a   : > { %v10504_v56 = vpop.f32.mrb[113].mxu0  ;;  %10705 = vst.msk [vmem:[#allocation3 + $0xd0] sm:$0xff] %vm171_vm1, %v10657_v62  ;;  %v10612_v38 = vld [vmem:[#allocation3 + $0xe8] sm:$0xff]  ;;  %v10017_v18 = vadd.f32 %v9969_v26, %v9858_v1  ;;  %16329 = vmatprep.mubr.msk.f32.mxu1 %vm171_vm1, %v12063_v39  ;;  %v9979_v26 = vld [vmem:[#allocation3 + $0x150] sm:$0xff] }
 0x54b   : > { %v10660_v15 = vadd.f32 %v16085_v24, %v10612_v38  ;;  %v10611_v52 = vld [vmem:[#allocation3 + $0xe0] sm:$0xff]  ;;  %10066 = vst.msk [vmem:[#allocation3 + $0x108] sm:$0xff] %vm171_vm1, %v10018_v37 }
 0x54c   : > { %v10659_v25 = vadd.f32 %v10611_v52, %v10484_v16  ;;  %10065 = vst.msk [vmem:[#allocation3 + $0x100] sm:$0xff] %vm171_vm1, %v10017_v18  ;;  %v16020_v2 = vpop.f32.mrb[66].mxu1 }
 0x54d   : > { %v16094_v59 = vpop.f32.mrb[114].mxu0  ;;  %10708 = vst.msk [vmem:[#allocation3 + $0xe8] sm:$0xff] %vm171_vm1, %v10660_v15  ;;  %v10020_v7 = vadd.f32 %v16020_v2, %v9972_v54  ;;  %v9868_v35 = vpop.f32.mrb[67].mxu1  ;;  %16330 = vmatmul.mubr.msk.f32.gmra.mrb[172].mxu1 %vm171_vm1, %v12064_v40  ;;  %v9982_v2 = vld [vmem:[#allocation3 + $0x168] sm:$0xff] }
 0x54e   : > { %v10514_v41 = vpop.f32.mrb[115].mxu0  ;;  %10707 = vst.msk [vmem:[#allocation3 + $0xe0] sm:$0xff] %vm171_vm1, %v10659_v25  ;;  %v10614_v22 = vld [vmem:[#allocation3 + $0xf8] sm:$0xff]  ;;  %v10019_v43 = vadd.f32 %v9971_v30, %v9868_v35  ;;  %16332 = vmatprep.mubr.msk.f32.mxu1 %vm171_vm1, %v12065_v57 }
 0x54f   : > { %v10662_v50 = vadd.f32 %v16088_v49, %v10614_v22  ;;  %v10613_v11 = vld [vmem:[#allocation3 + $0xf0] sm:$0xff]  ;;  %10068 = vst.msk [vmem:[#allocation3 + $0x118] sm:$0xff] %vm171_vm1, %v10020_v7  ;;  %v9981_v7 = vld [vmem:[#allocation3 + $0x160] sm:$0xff] }
 0x550   : > { %v10661_v28 = vadd.f32 %v10613_v11, %v10494_v46  ;;  %10067 = vst.msk [vmem:[#allocation3 + $0x110] sm:$0xff] %vm171_vm1, %v10019_v43  ;;  %v16023_v27 = vpop.f32.mrb[68].mxu1  ;;  %v9984_v11 = vld [vmem:[#allocation3 + $0x178] sm:$0xff] }
 0x551   : > { %v16097_v48 = vpop.f32.mrb[116].mxu0  ;;  %10710 = vst.msk [vmem:[#allocation3 + $0xf8] sm:$0xff] %vm171_vm1, %v10662_v50  ;;  %v10022_v13 = vadd.f32 %v16023_v27, %v9974_v12  ;;  %v9878_v34 = vpop.f32.mrb[69].mxu1  ;;  %16333 = vmatmul.mubr.msk.f32.gmra.mrb[174].mxu1 %vm171_vm1, %v12066_v61 }
 0x552   : > { %v10524_v10 = vpop.f32.mrb[117].mxu0  ;;  %10709 = vst.msk [vmem:[#allocation3 + $0xf0] sm:$0xff] %vm171_vm1, %v10661_v28  ;;  %v10616_v32 = vld [vmem:[#allocation3 + $0x108] sm:$0xff]  ;;  %v10021_v31 = vadd.f32 %v9973_v42, %v9878_v34 }
 0x553   : > { %v10664_v24 = vadd.f32 %v16091_v8, %v10616_v32  ;;  %v10615_v63 = vld [vmem:[#allocation3 + $0x100] sm:$0xff]  ;;  %10070 = vst.msk [vmem:[#allocation3 + $0x128] sm:$0xff] %vm171_vm1, %v10022_v13  ;;  %v9980_v8 = vld [vmem:[#allocation3 + $0x158] sm:$0xff] }
 0x554   : > { %v10663_v19 = vadd.f32 %v10615_v63, %v10504_v56  ;;  %10069 = vst.msk [vmem:[#allocation3 + $0x120] sm:$0xff] %vm171_vm1, %v10021_v31  ;;  %v16026_v29 = vpop.f32.mrb[70].mxu1 }
 0x555   : > { %v16100_v16 = vpop.f32.mrb[118].mxu0  ;;  %10712 = vst.msk [vmem:[#allocation3 + $0x108] sm:$0xff] %vm171_vm1, %v10664_v24  ;;  %v10024_v47 = vadd.f32 %v16026_v29, %v9976_v9  ;;  %v9888_v4 = vpop.f32.mrb[71].mxu1  ;;  %v11230_v24 = vld [vmem:[#allocation3 + $0x8] sm:$0xff]  ;;  %v11229_v9 = vld [vmem:[#allocation3] sm:$0xff] }
 0x556   : > { %v10534_v45 = vpop.f32.mrb[119].mxu0  ;;  %10711 = vst.msk [vmem:[#allocation3 + $0x100] sm:$0xff] %vm171_vm1, %v10663_v19  ;;  %v10618_v17 = vld [vmem:[#allocation3 + $0x118] sm:$0xff]  ;;  %v10023_v44 = vadd.f32 %v9975_v33, %v9888_v4 }
 0x557   : > { %v10666_v23 = vadd.f32 %v16094_v59, %v10618_v17  ;;  %v10617_v51 = vld [vmem:[#allocation3 + $0x110] sm:$0xff]  ;;  %10072 = vst.msk [vmem:[#allocation3 + $0x138] sm:$0xff] %vm171_vm1, %v10024_v47 }
 0x558   : > { %v10665_v49 = vadd.f32 %v10617_v51, %v10514_v41  ;;  %10071 = vst.msk [vmem:[#allocation3 + $0x130] sm:$0xff] %vm171_vm1, %v10023_v44  ;;  %v16029_v5 = vpop.f32.mrb[72].mxu1 }
 0x559   : > { %v16103_v20 = vpop.f32.mrb[120].mxu0  ;;  %10714 = vst.msk [vmem:[#allocation3 + $0x118] sm:$0xff] %vm171_vm1, %v10666_v23  ;;  %v10026_v0 = vadd.f32 %v16029_v5, %v9978_v53  ;;  %v9898_v46 = vpop.f32.mrb[73].mxu1  ;;  %v11232_v23 = vld [vmem:[#allocation3 + $0x18] sm:$0xff]  ;;  %v11231_v53 = vld [vmem:[#allocation3 + $0x10] sm:$0xff] }
 0x55a   : > { %v10544_v60 = vpop.f32.mrb[121].mxu0  ;;  %10713 = vst.msk [vmem:[#allocation3 + $0x110] sm:$0xff] %vm171_vm1, %v10665_v49  ;;  %v10620_v55 = vld [vmem:[#allocation3 + $0x128] sm:$0xff]  ;;  %v10025_v21 = vadd.f32 %v9977_v36, %v9898_v46 }
 0x55b   : > { %v10668_v3 = vadd.f32 %v16097_v48, %v10620_v55  ;;  %v10619_v62 = vld [vmem:[#allocation3 + $0x120] sm:$0xff]  ;;  %10074 = vst.msk [vmem:[#allocation3 + $0x148] sm:$0xff] %vm171_vm1, %v10026_v0  ;;  %v9983_v48 = vld [vmem:[#allocation3 + $0x170] sm:$0xff] }
 0x55c   : > { %v10667_v6 = vadd.f32 %v10619_v62, %v10524_v10  ;;  %10073 = vst.msk [vmem:[#allocation3 + $0x140] sm:$0xff] %vm171_vm1, %v10025_v21  ;;  %v16032_v14 = vpop.f32.mrb[74].mxu1 }
 0x55d   : > { %v16106_v58 = vpop.f32.mrb[122].mxu0  ;;  %10716 = vst.msk [vmem:[#allocation3 + $0x128] sm:$0xff] %vm171_vm1, %v10668_v3  ;;  %v10028_v37 = vadd.f32 %v16032_v14, %v9980_v8  ;;  %v9908_v1 = vpop.f32.mrb[75].mxu1  ;;  %v11234_v3 = vld [vmem:[#allocation3 + $0x28] sm:$0xff]  ;;  %v11233_v8 = vld [vmem:[#allocation3 + $0x20] sm:$0xff] }
 0x55e   : > { %v10554_v56 = vpop.f32.mrb[123].mxu0  ;;  %10715 = vst.msk [vmem:[#allocation3 + $0x120] sm:$0xff] %vm171_vm1, %v10667_v6  ;;  %v10622_v39 = vld [vmem:[#allocation3 + $0x138] sm:$0xff]  ;;  %v10027_v38 = vadd.f32 %v9979_v26, %v9908_v1 }
 0x55f   : > { %v10670_v18 = vadd.f32 %v16100_v16, %v10622_v39  ;;  %v10621_v15 = vld [vmem:[#allocation3 + $0x130] sm:$0xff]  ;;  %10076 = vst.msk [vmem:[#allocation3 + $0x158] sm:$0xff] %vm171_vm1, %v10028_v37 }
 0x560   : > { %v10669_v52 = vadd.f32 %v10621_v15, %v10534_v45  ;;  %10075 = vst.msk [vmem:[#allocation3 + $0x150] sm:$0xff] %vm171_vm1, %v10027_v38  ;;  %v16035_v25 = vpop.f32.mrb[76].mxu1 }
 0x561   : > { %v16109_v54 = vpop.f32.mrb[124].mxu0  ;;  %10718 = vst.msk [vmem:[#allocation3 + $0x138] sm:$0xff] %vm171_vm1, %v10670_v18  ;;  %v10030_v59 = vadd.f32 %v16035_v25, %v9982_v2  ;;  %v9918_v40 = vpop.f32.mrb[77].mxu1  ;;  %v11236_v18 = vld [vmem:[#allocation3 + $0x38] sm:$0xff]  ;;  %v11235_v2 = vld [vmem:[#allocation3 + $0x30] sm:$0xff] }
 0x562   : > { %v10564_v35 = vpop.f32.mrb[125].mxu0  ;;  %10717 = vst.msk [vmem:[#allocation3 + $0x130] sm:$0xff] %vm171_vm1, %v10669_v52  ;;  %v10624_v30 = vld [vmem:[#allocation3 + $0x148] sm:$0xff]  ;;  %v10029_v41 = vadd.f32 %v9981_v7, %v9918_v40 }
 0x563   : > { %v10672_v57 = vadd.f32 %v16103_v20, %v10624_v30  ;;  %v10623_v22 = vld [vmem:[#allocation3 + $0x140] sm:$0xff]  ;;  %10078 = vst.msk [vmem:[#allocation3 + $0x168] sm:$0xff] %vm171_vm1, %v10030_v59 }
 0x564   : > { %v10671_v43 = vadd.f32 %v10623_v22, %v10544_v60  ;;  %10077 = vst.msk [vmem:[#allocation3 + $0x160] sm:$0xff] %vm171_vm1, %v10029_v41  ;;  %v16038_v50 = vpop.f32.mrb[78].mxu1 }
 0x565   : > { %v16112_v28 = vpop.f32.mrb[126].mxu0  ;;  %10720 = vst.msk [vmem:[#allocation3 + $0x148] sm:$0xff] %vm171_vm1, %v10672_v57  ;;  %v10032_v27 = vadd.f32 %v16038_v50, %v9984_v11  ;;  %v9928_v12 = vpop.f32.mrb[79].mxu1  ;;  %v11238_v57 = vld [vmem:[#allocation3 + $0x48] sm:$0xff]  ;;  %v11237_v11 = vld [vmem:[#allocation3 + $0x40] sm:$0xff] }
 0x566   : > { %v10574_v61 = vpop.f32.mrb[127].mxu0  ;;  %10719 = vst.msk [vmem:[#allocation3 + $0x140] sm:$0xff] %vm171_vm1, %v10671_v43  ;;  %v10626_v13 = vld [vmem:[#allocation3 + $0x158] sm:$0xff]  ;;  %v10031_v34 = vadd.f32 %v9983_v48, %v9928_v12 }
 0x567   : > { %v10674_v42 = vadd.f32 %v16106_v58, %v10626_v13  ;;  %v10625_v10 = vld [vmem:[#allocation3 + $0x150] sm:$0xff]  ;;  %10080 = vst.msk [vmem:[#allocation3 + $0x178] sm:$0xff] %vm171_vm1, %v10032_v27 }
 0x568   : > { %v10673_v32 = vadd.f32 %v10625_v10, %v10554_v56  ;;  %10079 = vst.msk [vmem:[#allocation3 + $0x170] sm:$0xff] %vm171_vm1, %v10031_v34  ;;  %v16117_v31 = vpop.f32.mrb[80].mxu1 }
 0x569   : > { %v16191_v63 = vpop.f32.mrb[128].mxu0  ;;  %10722 = vst.msk [vmem:[#allocation3 + $0x158] sm:$0xff] %vm171_vm1, %v10674_v42  ;;  %v11278_v19 = vadd.f32 %v16117_v31, %v11230_v24  ;;  %v10990_v29 = vpop.f32.mrb[81].mxu1  ;;  %v11240_v42 = vld [vmem:[#allocation3 + $0x58] sm:$0xff]  ;;  %v11239_v24 = vld [vmem:[#allocation3 + $0x50] sm:$0xff] }
 0x56a   : > { %v11636_v16 = vpop.f32.mrb[129].mxu0  ;;  %10721 = vst.msk [vmem:[#allocation3 + $0x150] sm:$0xff] %vm171_vm1, %v10673_v32  ;;  %v10628_v47 = vld [vmem:[#allocation3 + $0x168] sm:$0xff]  ;;  %v11277_v4 = vadd.f32 %v11229_v9, %v10990_v29 }
 0x56b   : > { %v10676_v33 = vadd.f32 %v16109_v54, %v10628_v47  ;;  %v10627_v45 = vld [vmem:[#allocation3 + $0x160] sm:$0xff]  ;;  %11326 = vst.msk [vmem:[#allocation3 + $0x8] sm:$0xff] %vm171_vm1, %v11278_v19 }
 0x56c   : > { %v10675_v17 = vadd.f32 %v10627_v45, %v10564_v35  ;;  %11325 = vst.msk [vmem:[#allocation3] sm:$0xff] %vm171_vm1, %v11277_v4  ;;  %v16120_v44 = vpop.f32.mrb[82].mxu1 }
 0x56d   : > { %v16194_v51 = vpop.f32.mrb[130].mxu0  ;;  %10724 = vst.msk [vmem:[#allocation3 + $0x168] sm:$0xff] %vm171_vm1, %v10676_v33  ;;  %v11280_v49 = vadd.f32 %v16120_v44, %v11232_v23  ;;  %v11000_v5 = vpop.f32.mrb[83].mxu1  ;;  %v11242_v33 = vld [vmem:[#allocation3 + $0x68] sm:$0xff]  ;;  %v11241_v23 = vld [vmem:[#allocation3 + $0x60] sm:$0xff] }
 0x56e   : > { %v11646_v20 = vpop.f32.mrb[131].mxu0  ;;  %10723 = vst.msk [vmem:[#allocation3 + $0x160] sm:$0xff] %vm171_vm1, %v10675_v17  ;;  %v10630_v0 = vld [vmem:[#allocation3 + $0x178] sm:$0xff]  ;;  %v11279_v46 = vadd.f32 %v11231_v53, %v11000_v5 }
 0x56f   : > { %v10678_v36 = vadd.f32 %v16112_v28, %v10630_v0  ;;  %v10629_v60 = vld [vmem:[#allocation3 + $0x170] sm:$0xff]  ;;  %11328 = vst.msk [vmem:[#allocation3 + $0x18] sm:$0xff] %vm171_vm1, %v11280_v49 }
 0x570   : > { %v10677_v55 = vadd.f32 %v10629_v60, %v10574_v61  ;;  %11327 = vst.msk [vmem:[#allocation3 + $0x10] sm:$0xff] %vm171_vm1, %v11279_v46  ;;  %v16123_v21 = vpop.f32.mrb[84].mxu1 }
 0x571   : > { %v16197_v62 = vpop.f32.mrb[132].mxu0  ;;  %10726 = vst.msk [vmem:[#allocation3 + $0x178] sm:$0xff] %vm171_vm1, %v10678_v36  ;;  %v11282_v6 = vadd.f32 %v16123_v21, %v11234_v3  ;;  %v11010_v14 = vpop.f32.mrb[85].mxu1  ;;  %v11244_v36 = vld [vmem:[#allocation3 + $0x78] sm:$0xff]  ;;  %v11243_v3 = vld [vmem:[#allocation3 + $0x70] sm:$0xff] }
 0x572   : > { %v11656_v58 = vpop.f32.mrb[133].mxu0  ;;  %10725 = vst.msk [vmem:[#allocation3 + $0x170] sm:$0xff] %vm171_vm1, %v10677_v55  ;;  %v11876_v37 = vld [vmem:[#allocation3 + $0x8] sm:$0xff]  ;;  %v11281_v1 = vadd.f32 %v11233_v8, %v11010_v14 }
 0x573   : > { %v11924_v26 = vadd.f32 %v16191_v63, %v11876_v37  ;;  %v11875_v56 = vld [vmem:[#allocation3] sm:$0xff]  ;;  %11330 = vst.msk [vmem:[#allocation3 + $0x28] sm:$0xff] %vm171_vm1, %v11282_v6 }
 0x574   : > { %v11923_v39 = vadd.f32 %v11875_v56, %v11636_v16  ;;  %11329 = vst.msk [vmem:[#allocation3 + $0x20] sm:$0xff] %vm171_vm1, %v11281_v1  ;;  %v16126_v38 = vpop.f32.mrb[86].mxu1 }
 0x575   : > { %v16200_v15 = vpop.f32.mrb[134].mxu0  ;;  %11972 = vst.msk [vmem:[#allocation3 + $0x8] sm:$0xff] %vm171_vm1, %v11924_v26  ;;  %v11284_v52 = vadd.f32 %v16126_v38, %v11236_v18  ;;  %v11020_v25 = vpop.f32.mrb[87].mxu1  ;;  %v11246_v26 = vld [vmem:[#allocation3 + $0x88] sm:$0xff]  ;;  %v11245_v18 = vld [vmem:[#allocation3 + $0x80] sm:$0xff] }
 0x576   : > { %v11666_v54 = vpop.f32.mrb[135].mxu0  ;;  %11971 = vst.msk [vmem:[#allocation3] sm:$0xff] %vm171_vm1, %v11923_v39  ;;  %v11878_v59 = vld [vmem:[#allocation3 + $0x18] sm:$0xff]  ;;  %v11283_v40 = vadd.f32 %v11235_v2, %v11020_v25 }
 0x577   : > { %v11926_v7 = vadd.f32 %v16194_v51, %v11878_v59  ;;  %v11877_v35 = vld [vmem:[#allocation3 + $0x10] sm:$0xff]  ;;  %11332 = vst.msk [vmem:[#allocation3 + $0x38] sm:$0xff] %vm171_vm1, %v11284_v52 }
 0x578   : > { %v11925_v30 = vadd.f32 %v11877_v35, %v11646_v20  ;;  %11331 = vst.msk [vmem:[#allocation3 + $0x30] sm:$0xff] %vm171_vm1, %v11283_v40  ;;  %v16129_v41 = vpop.f32.mrb[88].mxu1 }
 0x579   : > { %v16203_v22 = vpop.f32.mrb[136].mxu0  ;;  %11974 = vst.msk [vmem:[#allocation3 + $0x18] sm:$0xff] %vm171_vm1, %v11926_v7  ;;  %v11286_v43 = vadd.f32 %v16129_v41, %v11238_v57  ;;  %v11030_v50 = vpop.f32.mrb[89].mxu1  ;;  %v11248_v7 = vld [vmem:[#allocation3 + $0x98] sm:$0xff]  ;;  %v11247_v57 = vld [vmem:[#allocation3 + $0x90] sm:$0xff] }
 0x57a   : > { %v11676_v28 = vpop.f32.mrb[137].mxu0  ;;  %11973 = vst.msk [vmem:[#allocation3 + $0x10] sm:$0xff] %vm171_vm1, %v11925_v30  ;;  %v11880_v27 = vld [vmem:[#allocation3 + $0x28] sm:$0xff]  ;;  %v11285_v12 = vadd.f32 %v11237_v11, %v11030_v50 }
 0x57b   : > { %v11928_v48 = vadd.f32 %v16197_v62, %v11880_v27  ;;  %v11879_v61 = vld [vmem:[#allocation3 + $0x20] sm:$0xff]  ;;  %11334 = vst.msk [vmem:[#allocation3 + $0x48] sm:$0xff] %vm171_vm1, %v11286_v43 }
 0x57c   : > { %v11927_v13 = vadd.f32 %v11879_v61, %v11656_v58  ;;  %11333 = vst.msk [vmem:[#allocation3 + $0x40] sm:$0xff] %vm171_vm1, %v11285_v12  ;;  %v16132_v34 = vpop.f32.mrb[90].mxu1 }
 0x57d   : > { %v16206_v10 = vpop.f32.mrb[138].mxu0  ;;  %11976 = vst.msk [vmem:[#allocation3 + $0x28] sm:$0xff] %vm171_vm1, %v11928_v48  ;;  %v11288_v32 = vadd.f32 %v16132_v34, %v11240_v42  ;;  %v11040_v31 = vpop.f32.mrb[91].mxu1  ;;  %v11250_v48 = vld [vmem:[#allocation3 + $0xa8] sm:$0xff]  ;;  %v11249_v42 = vld [vmem:[#allocation3 + $0xa0] sm:$0xff] }
 0x57e   : > { %v11686_v63 = vpop.f32.mrb[139].mxu0  ;;  %11975 = vst.msk [vmem:[#allocation3 + $0x20] sm:$0xff] %vm171_vm1, %v11927_v13  ;;  %v11882_v19 = vld [vmem:[#allocation3 + $0x38] sm:$0xff]  ;;  %v11287_v29 = vadd.f32 %v11239_v24, %v11040_v31 }
 0x57f   : > { %v11930_v9 = vadd.f32 %v16200_v15, %v11882_v19  ;;  %v11881_v16 = vld [vmem:[#allocation3 + $0x30] sm:$0xff]  ;;  %11336 = vst.msk [vmem:[#allocation3 + $0x58] sm:$0xff] %vm171_vm1, %v11288_v32 }
 0x580   : > { %v11929_v47 = vadd.f32 %v11881_v16, %v11666_v54  ;;  %11335 = vst.msk [vmem:[#allocation3 + $0x50] sm:$0xff] %vm171_vm1, %v11287_v29  ;;  %v16135_v4 = vpop.f32.mrb[92].mxu1 }
 0x581   : > { %v16209_v45 = vpop.f32.mrb[140].mxu0  ;;  %11978 = vst.msk [vmem:[#allocation3 + $0x38] sm:$0xff] %vm171_vm1, %v11930_v9  ;;  %v11290_v17 = vadd.f32 %v16135_v4, %v11242_v33  ;;  %v11050_v44 = vpop.f32.mrb[93].mxu1  ;;  %v11252_v9 = vld [vmem:[#allocation3 + $0xb8] sm:$0xff]  ;;  %v11251_v33 = vld [vmem:[#allocation3 + $0xb0] sm:$0xff] }
 0x582   : > { %v11696_v51 = vpop.f32.mrb[141].mxu0  ;;  %11977 = vst.msk [vmem:[#allocation3 + $0x30] sm:$0xff] %vm171_vm1, %v11929_v47  ;;  %v11884_v49 = vld [vmem:[#allocation3 + $0x48] sm:$0xff]  ;;  %v11289_v5 = vadd.f32 %v11241_v23, %v11050_v44 }
 0x583   : > { %v11932_v53 = vadd.f32 %v16203_v22, %v11884_v49  ;;  %v11883_v20 = vld [vmem:[#allocation3 + $0x40] sm:$0xff]  ;;  %11338 = vst.msk [vmem:[#allocation3 + $0x68] sm:$0xff] %vm171_vm1, %v11290_v17 }
 0x584   : > { %v11931_v0 = vadd.f32 %v11883_v20, %v11676_v28  ;;  %11337 = vst.msk [vmem:[#allocation3 + $0x60] sm:$0xff] %vm171_vm1, %v11289_v5  ;;  %v16138_v46 = vpop.f32.mrb[94].mxu1 }
 0x585   : > { %v16212_v60 = vpop.f32.mrb[142].mxu0  ;;  %11980 = vst.msk [vmem:[#allocation3 + $0x48] sm:$0xff] %vm171_vm1, %v11932_v53  ;;  %v11292_v55 = vadd.f32 %v16138_v46, %v11244_v36  ;;  %v11060_v21 = vpop.f32.mrb[95].mxu1  ;;  %v11254_v53 = vld [vmem:[#allocation3 + $0xc8] sm:$0xff]  ;;  %v11253_v36 = vld [vmem:[#allocation3 + $0xc0] sm:$0xff] }
 0x586   : > { %v11706_v62 = vpop.f32.mrb[143].mxu0  ;;  %11979 = vst.msk [vmem:[#allocation3 + $0x40] sm:$0xff] %vm171_vm1, %v11931_v0  ;;  %v11886_v6 = vld [vmem:[#allocation3 + $0x58] sm:$0xff]  ;;  %v11291_v14 = vadd.f32 %v11243_v3, %v11060_v21 }
 0x587   : > { %v11934_v8 = vadd.f32 %v16206_v10, %v11886_v6  ;;  %v11885_v58 = vld [vmem:[#allocation3 + $0x50] sm:$0xff]  ;;  %11340 = vst.msk [vmem:[#allocation3 + $0x78] sm:$0xff] %vm171_vm1, %v11292_v55 }
 0x588   : > { %v11933_v37 = vadd.f32 %v11885_v58, %v11686_v63  ;;  %11339 = vst.msk [vmem:[#allocation3 + $0x70] sm:$0xff] %vm171_vm1, %v11291_v14  ;;  %v16141_v1 = vpop.f32.mrb[96].mxu1 }
 0x589   : > { %v16215_v56 = vpop.f32.mrb[144].mxu0  ;;  %11982 = vst.msk [vmem:[#allocation3 + $0x58] sm:$0xff] %vm171_vm1, %v11934_v8  ;;  %v11294_v39 = vadd.f32 %v16141_v1, %v11246_v26  ;;  %v11070_v38 = vpop.f32.mrb[97].mxu1  ;;  %v11256_v8 = vld [vmem:[#allocation3 + $0xd8] sm:$0xff]  ;;  %v11255_v26 = vld [vmem:[#allocation3 + $0xd0] sm:$0xff] }
 0x58a   : > { %v11716_v15 = vpop.f32.mrb[145].mxu0  ;;  %11981 = vst.msk [vmem:[#allocation3 + $0x50] sm:$0xff] %vm171_vm1, %v11933_v37  ;;  %v11888_v52 = vld [vmem:[#allocation3 + $0x68] sm:$0xff]  ;;  %v11293_v25 = vadd.f32 %v11245_v18, %v11070_v38 }
 0x58b   : > { %v11936_v2 = vadd.f32 %v16209_v45, %v11888_v52  ;;  %v11887_v54 = vld [vmem:[#allocation3 + $0x60] sm:$0xff]  ;;  %11342 = vst.msk [vmem:[#allocation3 + $0x88] sm:$0xff] %vm171_vm1, %v11294_v39 }
 0x58c   : > { %v11935_v59 = vadd.f32 %v11887_v54, %v11696_v51  ;;  %11341 = vst.msk [vmem:[#allocation3 + $0x80] sm:$0xff] %vm171_vm1, %v11293_v25  ;;  %v16144_v40 = vpop.f32.mrb[98].mxu1 }
 0x58d   : > { %v16218_v35 = vpop.f32.mrb[146].mxu0  ;;  %11984 = vst.msk [vmem:[#allocation3 + $0x68] sm:$0xff] %vm171_vm1, %v11936_v2  ;;  %v11296_v30 = vadd.f32 %v16144_v40, %v11248_v7  ;;  %v11080_v41 = vpop.f32.mrb[99].mxu1  ;;  %v11258_v2 = vld [vmem:[#allocation3 + $0xe8] sm:$0xff]  ;;  %v11257_v7 = vld [vmem:[#allocation3 + $0xe0] sm:$0xff] }
 0x58e   : > { %v11726_v22 = vpop.f32.mrb[147].mxu0  ;;  %11983 = vst.msk [vmem:[#allocation3 + $0x60] sm:$0xff] %vm171_vm1, %v11935_v59  ;;  %v11890_v43 = vld [vmem:[#allocation3 + $0x78] sm:$0xff]  ;;  %v11295_v50 = vadd.f32 %v11247_v57, %v11080_v41 }
 0x58f   : > { %v11938_v11 = vadd.f32 %v16212_v60, %v11890_v43  ;;  %v11889_v28 = vld [vmem:[#allocation3 + $0x70] sm:$0xff]  ;;  %11344 = vst.msk [vmem:[#allocation3 + $0x98] sm:$0xff] %vm171_vm1, %v11296_v30 }
 0x590   : > { %v11937_v27 = vadd.f32 %v11889_v28, %v11706_v62  ;;  %11343 = vst.msk [vmem:[#allocation3 + $0x90] sm:$0xff] %vm171_vm1, %v11295_v50  ;;  %v16147_v12 = vpop.f32.mrb[100].mxu1 }
 0x591   : > { %v16221_v61 = vpop.f32.mrb[148].mxu0  ;;  %11986 = vst.msk [vmem:[#allocation3 + $0x78] sm:$0xff] %vm171_vm1, %v11938_v11  ;;  %v11298_v13 = vadd.f32 %v16147_v12, %v11250_v48  ;;  %v11090_v34 = vpop.f32.mrb[101].mxu1  ;;  %v11260_v11 = vld [vmem:[#allocation3 + $0xf8] sm:$0xff]  ;;  %v11259_v48 = vld [vmem:[#allocation3 + $0xf0] sm:$0xff] }
 0x592   : > { %v11736_v10 = vpop.f32.mrb[149].mxu0  ;;  %11985 = vst.msk [vmem:[#allocation3 + $0x70] sm:$0xff] %vm171_vm1, %v11937_v27  ;;  %v11892_v32 = vld [vmem:[#allocation3 + $0x88] sm:$0xff]  ;;  %v11297_v31 = vadd.f32 %v11249_v42, %v11090_v34 }
 0x593   : > { %v11940_v24 = vadd.f32 %v16215_v56, %v11892_v32  ;;  %v11891_v63 = vld [vmem:[#allocation3 + $0x80] sm:$0xff]  ;;  %11346 = vst.msk [vmem:[#allocation3 + $0xa8] sm:$0xff] %vm171_vm1, %v11298_v13 }
 0x594   : > { %v11939_v19 = vadd.f32 %v11891_v63, %v11716_v15  ;;  %11345 = vst.msk [vmem:[#allocation3 + $0xa0] sm:$0xff] %vm171_vm1, %v11297_v31  ;;  %v16150_v29 = vpop.f32.mrb[102].mxu1 }
 0x595   : > { %v16224_v16 = vpop.f32.mrb[150].mxu0  ;;  %11988 = vst.msk [vmem:[#allocation3 + $0x88] sm:$0xff] %vm171_vm1, %v11940_v24  ;;  %v11300_v47 = vadd.f32 %v16150_v29, %v11252_v9  ;;  %v11100_v4 = vpop.f32.mrb[103].mxu1  ;;  %v11262_v24 = vld [vmem:[#allocation3 + $0x108] sm:$0xff]  ;;  %v11261_v9 = vld [vmem:[#allocation3 + $0x100] sm:$0xff] }
 0x596   : > { %v11746_v45 = vpop.f32.mrb[151].mxu0  ;;  %11987 = vst.msk [vmem:[#allocation3 + $0x80] sm:$0xff] %vm171_vm1, %v11939_v19  ;;  %v11894_v17 = vld [vmem:[#allocation3 + $0x98] sm:$0xff]  ;;  %v11299_v44 = vadd.f32 %v11251_v33, %v11100_v4 }
 0x597   : > { %v11942_v23 = vadd.f32 %v16218_v35, %v11894_v17  ;;  %v11893_v51 = vld [vmem:[#allocation3 + $0x90] sm:$0xff]  ;;  %11348 = vst.msk [vmem:[#allocation3 + $0xb8] sm:$0xff] %vm171_vm1, %v11300_v47 }
 0x598   : > { %v11941_v49 = vadd.f32 %v11893_v51, %v11726_v22  ;;  %11347 = vst.msk [vmem:[#allocation3 + $0xb0] sm:$0xff] %vm171_vm1, %v11299_v44  ;;  %v16153_v5 = vpop.f32.mrb[104].mxu1 }
 0x599   : > { %v16227_v20 = vpop.f32.mrb[152].mxu0  ;;  %11990 = vst.msk [vmem:[#allocation3 + $0x98] sm:$0xff] %vm171_vm1, %v11942_v23  ;;  %v11302_v0 = vadd.f32 %v16153_v5, %v11254_v53  ;;  %v11110_v46 = vpop.f32.mrb[105].mxu1  ;;  %v11264_v23 = vld [vmem:[#allocation3 + $0x118] sm:$0xff]  ;;  %v11263_v53 = vld [vmem:[#allocation3 + $0x110] sm:$0xff] }
 0x59a   : > { %v11756_v60 = vpop.f32.mrb[153].mxu0  ;;  %11989 = vst.msk [vmem:[#allocation3 + $0x90] sm:$0xff] %vm171_vm1, %v11941_v49  ;;  %v11896_v55 = vld [vmem:[#allocation3 + $0xa8] sm:$0xff]  ;;  %v11301_v21 = vadd.f32 %v11253_v36, %v11110_v46 }
 0x59b   : > { %v11944_v3 = vadd.f32 %v16221_v61, %v11896_v55  ;;  %v11895_v62 = vld [vmem:[#allocation3 + $0xa0] sm:$0xff]  ;;  %11350 = vst.msk [vmem:[#allocation3 + $0xc8] sm:$0xff] %vm171_vm1, %v11302_v0 }
 0x59c   : > { %v11943_v6 = vadd.f32 %v11895_v62, %v11736_v10  ;;  %11349 = vst.msk [vmem:[#allocation3 + $0xc0] sm:$0xff] %vm171_vm1, %v11301_v21  ;;  %v16156_v14 = vpop.f32.mrb[106].mxu1 }
 0x59d   : > { %v16230_v58 = vpop.f32.mrb[154].mxu0  ;;  %11992 = vst.msk [vmem:[#allocation3 + $0xa8] sm:$0xff] %vm171_vm1, %v11944_v3  ;;  %v11304_v37 = vadd.f32 %v16156_v14, %v11256_v8  ;;  %v11120_v1 = vpop.f32.mrb[107].mxu1  ;;  %v11266_v3 = vld [vmem:[#allocation3 + $0x128] sm:$0xff]  ;;  %v11265_v8 = vld [vmem:[#allocation3 + $0x120] sm:$0xff] }
 0x59e   : > { %v11766_v56 = vpop.f32.mrb[155].mxu0  ;;  %11991 = vst.msk [vmem:[#allocation3 + $0xa0] sm:$0xff] %vm171_vm1, %v11943_v6  ;;  %v11898_v39 = vld [vmem:[#allocation3 + $0xb8] sm:$0xff]  ;;  %v11303_v38 = vadd.f32 %v11255_v26, %v11120_v1 }
 0x59f   : > { %v11946_v18 = vadd.f32 %v16224_v16, %v11898_v39  ;;  %v11897_v15 = vld [vmem:[#allocation3 + $0xb0] sm:$0xff]  ;;  %11352 = vst.msk [vmem:[#allocation3 + $0xd8] sm:$0xff] %vm171_vm1, %v11304_v37 }
 0x5a0   : > { %v11945_v52 = vadd.f32 %v11897_v15, %v11746_v45  ;;  %11351 = vst.msk [vmem:[#allocation3 + $0xd0] sm:$0xff] %vm171_vm1, %v11303_v38  ;;  %v16159_v25 = vpop.f32.mrb[108].mxu1 }
 0x5a1   : > { %v16233_v54 = vpop.f32.mrb[156].mxu0  ;;  %11994 = vst.msk [vmem:[#allocation3 + $0xb8] sm:$0xff] %vm171_vm1, %v11946_v18  ;;  %v11306_v59 = vadd.f32 %v16159_v25, %v11258_v2  ;;  %v11130_v40 = vpop.f32.mrb[109].mxu1  ;;  %v11268_v18 = vld [vmem:[#allocation3 + $0x138] sm:$0xff]  ;;  %v11267_v2 = vld [vmem:[#allocation3 + $0x130] sm:$0xff] }
 0x5a2   : > { %v11776_v35 = vpop.f32.mrb[157].mxu0  ;;  %11993 = vst.msk [vmem:[#allocation3 + $0xb0] sm:$0xff] %vm171_vm1, %v11945_v52  ;;  %v11900_v30 = vld [vmem:[#allocation3 + $0xc8] sm:$0xff]  ;;  %v11305_v41 = vadd.f32 %v11257_v7, %v11130_v40 }
 0x5a3   : > { %v11948_v57 = vadd.f32 %v16227_v20, %v11900_v30  ;;  %v11899_v22 = vld [vmem:[#allocation3 + $0xc0] sm:$0xff]  ;;  %11354 = vst.msk [vmem:[#allocation3 + $0xe8] sm:$0xff] %vm171_vm1, %v11306_v59 }
 0x5a4   : > { %v11947_v43 = vadd.f32 %v11899_v22, %v11756_v60  ;;  %11353 = vst.msk [vmem:[#allocation3 + $0xe0] sm:$0xff] %vm171_vm1, %v11305_v41  ;;  %v16162_v50 = vpop.f32.mrb[110].mxu1 }
 0x5a5   : > { %v16236_v28 = vpop.f32.mrb[158].mxu0  ;;  %11996 = vst.msk [vmem:[#allocation3 + $0xc8] sm:$0xff] %vm171_vm1, %v11948_v57  ;;  %v11308_v27 = vadd.f32 %v16162_v50, %v11260_v11  ;;  %v11140_v12 = vpop.f32.mrb[111].mxu1  ;;  %v11270_v57 = vld [vmem:[#allocation3 + $0x148] sm:$0xff]  ;;  %v11269_v11 = vld [vmem:[#allocation3 + $0x140] sm:$0xff] }
 0x5a6   : > { %v11786_v61 = vpop.f32.mrb[159].mxu0  ;;  %11995 = vst.msk [vmem:[#allocation3 + $0xc0] sm:$0xff] %vm171_vm1, %v11947_v43  ;;  %v11902_v13 = vld [vmem:[#allocation3 + $0xd8] sm:$0xff]  ;;  %v11307_v34 = vadd.f32 %v11259_v48, %v11140_v12 }
 0x5a7   : > { %v11950_v42 = vadd.f32 %v16230_v58, %v11902_v13  ;;  %v11901_v10 = vld [vmem:[#allocation3 + $0xd0] sm:$0xff]  ;;  %11356 = vst.msk [vmem:[#allocation3 + $0xf8] sm:$0xff] %vm171_vm1, %v11308_v27 }
 0x5a8   : > { %v11949_v32 = vadd.f32 %v11901_v10, %v11766_v56  ;;  %11355 = vst.msk [vmem:[#allocation3 + $0xf0] sm:$0xff] %vm171_vm1, %v11307_v34  ;;  %v16165_v31 = vpop.f32.mrb[112].mxu1 }
 0x5a9   : > { %v16239_v63 = vpop.f32.mrb[160].mxu0  ;;  %11998 = vst.msk [vmem:[#allocation3 + $0xd8] sm:$0xff] %vm171_vm1, %v11950_v42  ;;  %v11310_v19 = vadd.f32 %v16165_v31, %v11262_v24  ;;  %v11150_v29 = vpop.f32.mrb[113].mxu1  ;;  %v11272_v42 = vld [vmem:[#allocation3 + $0x158] sm:$0xff]  ;;  %v11271_v24 = vld [vmem:[#allocation3 + $0x150] sm:$0xff] }
 0x5aa   : > { %v11796_v16 = vpop.f32.mrb[161].mxu0  ;;  %11997 = vst.msk [vmem:[#allocation3 + $0xd0] sm:$0xff] %vm171_vm1, %v11949_v32  ;;  %v11904_v47 = vld [vmem:[#allocation3 + $0xe8] sm:$0xff]  ;;  %v11309_v4 = vadd.f32 %v11261_v9, %v11150_v29 }
 0x5ab   : > { %v11952_v33 = vadd.f32 %v16233_v54, %v11904_v47  ;;  %v11903_v45 = vld [vmem:[#allocation3 + $0xe0] sm:$0xff]  ;;  %11358 = vst.msk [vmem:[#allocation3 + $0x108] sm:$0xff] %vm171_vm1, %v11310_v19 }
 0x5ac   : > { %v11951_v17 = vadd.f32 %v11903_v45, %v11776_v35  ;;  %11357 = vst.msk [vmem:[#allocation3 + $0x100] sm:$0xff] %vm171_vm1, %v11309_v4  ;;  %v16168_v44 = vpop.f32.mrb[114].mxu1 }
 0x5ad   : > { %v16242_v51 = vpop.f32.mrb[162].mxu0  ;;  %12000 = vst.msk [vmem:[#allocation3 + $0xe8] sm:$0xff] %vm171_vm1, %v11952_v33  ;;  %v11312_v49 = vadd.f32 %v16168_v44, %v11264_v23  ;;  %v11160_v5 = vpop.f32.mrb[115].mxu1  ;;  %v11274_v33 = vld [vmem:[#allocation3 + $0x168] sm:$0xff]  ;;  %v11273_v23 = vld [vmem:[#allocation3 + $0x160] sm:$0xff] }
 0x5ae   : > { %v11806_v20 = vpop.f32.mrb[163].mxu0  ;;  %11999 = vst.msk [vmem:[#allocation3 + $0xe0] sm:$0xff] %vm171_vm1, %v11951_v17  ;;  %v11906_v0 = vld [vmem:[#allocation3 + $0xf8] sm:$0xff]  ;;  %v11311_v46 = vadd.f32 %v11263_v53, %v11160_v5 }
 0x5af   : > { %v11954_v36 = vadd.f32 %v16236_v28, %v11906_v0  ;;  %v11905_v60 = vld [vmem:[#allocation3 + $0xf0] sm:$0xff]  ;;  %11360 = vst.msk [vmem:[#allocation3 + $0x118] sm:$0xff] %vm171_vm1, %v11312_v49 }
 0x5b0   : > { %v11953_v55 = vadd.f32 %v11905_v60, %v11786_v61  ;;  %11359 = vst.msk [vmem:[#allocation3 + $0x110] sm:$0xff] %vm171_vm1, %v11311_v46  ;;  %v16171_v21 = vpop.f32.mrb[116].mxu1 }
 0x5b1   : > { %v16245_v62 = vpop.f32.mrb[164].mxu0  ;;  %12002 = vst.msk [vmem:[#allocation3 + $0xf8] sm:$0xff] %vm171_vm1, %v11954_v36  ;;  %v11314_v6 = vadd.f32 %v16171_v21, %v11266_v3  ;;  %v11170_v14 = vpop.f32.mrb[117].mxu1  ;;  %v11276_v36 = vld [vmem:[#allocation3 + $0x178] sm:$0xff]  ;;  %v11275_v3 = vld [vmem:[#allocation3 + $0x170] sm:$0xff] }
 0x5b2   : > { %v11816_v58 = vpop.f32.mrb[165].mxu0  ;;  %12001 = vst.msk [vmem:[#allocation3 + $0xf0] sm:$0xff] %vm171_vm1, %v11953_v55  ;;  %v11908_v37 = vld [vmem:[#allocation3 + $0x108] sm:$0xff]  ;;  %v11313_v1 = vadd.f32 %v11265_v8, %v11170_v14 }
 0x5b3   : > { %v11956_v26 = vadd.f32 %v16239_v63, %v11908_v37  ;;  %v11907_v56 = vld [vmem:[#allocation3 + $0x100] sm:$0xff]  ;;  %11362 = vst.msk [vmem:[#allocation3 + $0x128] sm:$0xff] %vm171_vm1, %v11314_v6 }
 0x5b4   : > { %v11955_v39 = vadd.f32 %v11907_v56, %v11796_v16  ;;  %11361 = vst.msk [vmem:[#allocation3 + $0x120] sm:$0xff] %vm171_vm1, %v11313_v1  ;;  %v16174_v38 = vpop.f32.mrb[118].mxu1 }
 0x5b5   : > { %v16248_v15 = vpop.f32.mrb[166].mxu0  ;;  %12004 = vst.msk [vmem:[#allocation3 + $0x108] sm:$0xff] %vm171_vm1, %v11956_v26  ;;  %v11316_v52 = vadd.f32 %v16174_v38, %v11268_v18  ;;  %v11180_v25 = vpop.f32.mrb[119].mxu1  ;;  %v12522_v26 = vld [vmem:[#allocation3 + $0x8] sm:$0xff]  ;;  %v12521_v38 = vld [vmem:[#allocation3] sm:$0xff] }
 0x5b6   : > { %v11826_v54 = vpop.f32.mrb[167].mxu0  ;;  %12003 = vst.msk [vmem:[#allocation3 + $0x100] sm:$0xff] %vm171_vm1, %v11955_v39  ;;  %v11910_v59 = vld [vmem:[#allocation3 + $0x118] sm:$0xff]  ;;  %v11315_v40 = vadd.f32 %v11267_v2, %v11180_v25 }
 0x5b7   : > { %v11958_v7 = vadd.f32 %v16242_v51, %v11910_v59  ;;  %v11909_v35 = vld [vmem:[#allocation3 + $0x110] sm:$0xff]  ;;  %11364 = vst.msk [vmem:[#allocation3 + $0x138] sm:$0xff] %vm171_vm1, %v11316_v52  ;;  %v12524_v59 = vld [vmem:[#allocation3 + $0x18] sm:$0xff] }
 0x5b8   : > { %v11957_v30 = vadd.f32 %v11909_v35, %v11806_v20  ;;  %11363 = vst.msk [vmem:[#allocation3 + $0x130] sm:$0xff] %vm171_vm1, %v11315_v40  ;;  %v16177_v41 = vpop.f32.mrb[120].mxu1  ;;  %v12523_v35 = vld [vmem:[#allocation3 + $0x10] sm:$0xff] }
 0x5b9   : > { %v16251_v22 = vpop.f32.mrb[168].mxu0  ;;  %12006 = vst.msk [vmem:[#allocation3 + $0x118] sm:$0xff] %vm171_vm1, %v11958_v7  ;;  %v11318_v43 = vadd.f32 %v16177_v41, %v11270_v57  ;;  %v11190_v50 = vpop.f32.mrb[121].mxu1 }
 0x5ba   : > { %v11836_v28 = vpop.f32.mrb[169].mxu0  ;;  %12005 = vst.msk [vmem:[#allocation3 + $0x110] sm:$0xff] %vm171_vm1, %v11957_v30  ;;  %v11912_v27 = vld [vmem:[#allocation3 + $0x128] sm:$0xff]  ;;  %v11317_v12 = vadd.f32 %v11269_v11, %v11190_v50 }
 0x5bb   : > { %v11960_v48 = vadd.f32 %v16245_v62, %v11912_v27  ;;  %v11911_v61 = vld [vmem:[#allocation3 + $0x120] sm:$0xff]  ;;  %11366 = vst.msk [vmem:[#allocation3 + $0x148] sm:$0xff] %vm171_vm1, %v11318_v43  ;;  %v12526_v11 = vld [vmem:[#allocation3 + $0x28] sm:$0xff] }
 0x5bc   : > { %v11959_v13 = vadd.f32 %v11911_v61, %v11816_v58  ;;  %11365 = vst.msk [vmem:[#allocation3 + $0x140] sm:$0xff] %vm171_vm1, %v11317_v12  ;;  %v16180_v34 = vpop.f32.mrb[122].mxu1  ;;  %v12525_v12 = vld [vmem:[#allocation3 + $0x20] sm:$0xff] }
 0x5bd   : > { %v16254_v10 = vpop.f32.mrb[170].mxu0  ;;  %12008 = vst.msk [vmem:[#allocation3 + $0x128] sm:$0xff] %vm171_vm1, %v11960_v48  ;;  %v11320_v32 = vadd.f32 %v16180_v34, %v11272_v42  ;;  %v11200_v31 = vpop.f32.mrb[123].mxu1 }
 0x5be   : > { %v11846_v63 = vpop.f32.mrb[171].mxu0  ;;  %12007 = vst.msk [vmem:[#allocation3 + $0x120] sm:$0xff] %vm171_vm1, %v11959_v13  ;;  %v11914_v19 = vld [vmem:[#allocation3 + $0x138] sm:$0xff]  ;;  %v11319_v29 = vadd.f32 %v11271_v24, %v11200_v31  ;;  %v12530_v24 = vld [vmem:[#allocation3 + $0x48] sm:$0xff] }
 0x5bf   : > { %v11962_v9 = vadd.f32 %v16248_v15, %v11914_v19  ;;  %v11913_v16 = vld [vmem:[#allocation3 + $0x130] sm:$0xff]  ;;  %11368 = vst.msk [vmem:[#allocation3 + $0x158] sm:$0xff] %vm171_vm1, %v11320_v32  ;;  %v12528_v13 = vld [vmem:[#allocation3 + $0x38] sm:$0xff] }
 0x5c0   : > { %v11961_v47 = vadd.f32 %v11913_v16, %v11826_v54  ;;  %11367 = vst.msk [vmem:[#allocation3 + $0x150] sm:$0xff] %vm171_vm1, %v11319_v29  ;;  %v16183_v4 = vpop.f32.mrb[124].mxu1  ;;  %v12529_v29 = vld [vmem:[#allocation3 + $0x40] sm:$0xff] }
 0x5c1   : > { %v16257_v45 = vpop.f32.mrb[172].mxu0  ;;  %12010 = vst.msk [vmem:[#allocation3 + $0x138] sm:$0xff] %vm171_vm1, %v11962_v9  ;;  %v11322_v17 = vadd.f32 %v16183_v4, %v11274_v33  ;;  %v11210_v44 = vpop.f32.mrb[125].mxu1 }
 0x5c2   : > { %v11856_v51 = vpop.f32.mrb[173].mxu0  ;;  %12009 = vst.msk [vmem:[#allocation3 + $0x130] sm:$0xff] %vm171_vm1, %v11961_v47  ;;  %v11916_v49 = vld [vmem:[#allocation3 + $0x148] sm:$0xff]  ;;  %v11321_v5 = vadd.f32 %v11273_v23, %v11210_v44  ;;  %v12532_v47 = vld [vmem:[#allocation3 + $0x58] sm:$0xff] }
 0x5c3   : > { %v11964_v53 = vadd.f32 %v16251_v22, %v11916_v49  ;;  %v11915_v20 = vld [vmem:[#allocation3 + $0x140] sm:$0xff]  ;;  %11370 = vst.msk [vmem:[#allocation3 + $0x168] sm:$0xff] %vm171_vm1, %v11322_v17  ;;  %v12534_v23 = vld [vmem:[#allocation3 + $0x68] sm:$0xff] }
 0x5c4   : > { %v11963_v0 = vadd.f32 %v11915_v20, %v11836_v28  ;;  %11369 = vst.msk [vmem:[#allocation3 + $0x160] sm:$0xff] %vm171_vm1, %v11321_v5  ;;  %v16186_v46 = vpop.f32.mrb[126].mxu1  ;;  %v12533_v5 = vld [vmem:[#allocation3 + $0x60] sm:$0xff] }
 0x5c5   : > { %v16260_v60 = vpop.f32.mrb[174].mxu0  ;;  %12012 = vst.msk [vmem:[#allocation3 + $0x148] sm:$0xff] %vm171_vm1, %v11964_v53  ;;  %v11324_v55 = vadd.f32 %v16186_v46, %v11276_v36  ;;  %v11220_v21 = vpop.f32.mrb[127].mxu1 }
 0x5c6   : > { %v11866_v62 = vpop.f32.mrb[175].mxu0  ;;  %12011 = vst.msk [vmem:[#allocation3 + $0x140] sm:$0xff] %vm171_vm1, %v11963_v0  ;;  %v11918_v6 = vld [vmem:[#allocation3 + $0x158] sm:$0xff]  ;;  %v11323_v14 = vadd.f32 %v11275_v3, %v11220_v21  ;;  %v12538_v3 = vld [vmem:[#allocation3 + $0x88] sm:$0xff] }
 0x5c7   : > { %v11966_v8 = vadd.f32 %v16254_v10, %v11918_v6  ;;  %v11917_v58 = vld [vmem:[#allocation3 + $0x150] sm:$0xff]  ;;  %11372 = vst.msk [vmem:[#allocation3 + $0x178] sm:$0xff] %vm171_vm1, %v11324_v55  ;;  %v12536_v0 = vld [vmem:[#allocation3 + $0x78] sm:$0xff] }
 0x5c8   : > { %v11965_v37 = vadd.f32 %v11917_v58, %v11846_v63  ;;  %11371 = vst.msk [vmem:[#allocation3 + $0x170] sm:$0xff] %vm171_vm1, %v11323_v14  ;;  %v16265_v1 = vpop.f32.mrb[128].mxu1  ;;  %v12527_v10 = vld [vmem:[#allocation3 + $0x30] sm:$0xff]  ;;  %v12537_v14 = vld [vmem:[#allocation3 + $0x80] sm:$0xff] }
 0x5c9   : > { %12014 = vst.msk [vmem:[#allocation3 + $0x158] sm:$0xff] %vm171_vm1, %v11966_v8  ;;  %v12570_v56 = vadd.f32 %v16265_v1, %v12522_v26  ;;  %v12282_v39 = vpop.f32.mrb[129].mxu1 }
 0x5ca   : > { %12013 = vst.msk [vmem:[#allocation3 + $0x150] sm:$0xff] %vm171_vm1, %v11965_v37  ;;  %v11920_v18 = vld [vmem:[#allocation3 + $0x168] sm:$0xff]  ;;  %v12569_v15 = vadd.f32 %v12521_v38, %v12282_v39  ;;  %v12540_v37 = vld [vmem:[#allocation3 + $0x98] sm:$0xff] }
 0x5cb   : > { %v11968_v52 = vadd.f32 %v16257_v45, %v11920_v18  ;;  %v11919_v25 = vld [vmem:[#allocation3 + $0x160] sm:$0xff]  ;;  %12618 = vst.msk [vmem:[#allocation3 + $0x8] sm:$0xff] %vm171_vm1, %v12570_v56  ;;  %v12531_v45 = vld [vmem:[#allocation3 + $0x50] sm:$0xff]  ;;  %v12542_v18 = vld [vmem:[#allocation3 + $0xa8] sm:$0xff] }
 0x5cc   : > { %v11967_v2 = vadd.f32 %v11919_v25, %v11856_v51  ;;  %12617 = vst.msk [vmem:[#allocation3] sm:$0xff] %vm171_vm1, %v12569_v15  ;;  %v16268_v54 = vpop.f32.mrb[130].mxu1  ;;  %v12539_v56 = vld [vmem:[#allocation3 + $0x90] sm:$0xff]  ;;  %v12541_v25 = vld [vmem:[#allocation3 + $0xa0] sm:$0xff] }
 0x5cd   : > { %12016 = vst.msk [vmem:[#allocation3 + $0x168] sm:$0xff] %vm171_vm1, %v11968_v52  ;;  %v12572_v40 = vadd.f32 %v16268_v54, %v12524_v59  ;;  %v12292_v7 = vpop.f32.mrb[131].mxu1  ;;  %v12544_v59 = vld [vmem:[#allocation3 + $0xb8] sm:$0xff] }
 0x5ce   : > { %12015 = vst.msk [vmem:[#allocation3 + $0x160] sm:$0xff] %vm171_vm1, %v11967_v2  ;;  %v11922_v30 = vld [vmem:[#allocation3 + $0x178] sm:$0xff]  ;;  %v12571_v41 = vadd.f32 %v12523_v35, %v12292_v7  ;;  %v12543_v35 = vld [vmem:[#allocation3 + $0xb0] sm:$0xff] }
 0x5cf   : > { %v11970_v57 = vadd.f32 %v16260_v60, %v11922_v30  ;;  %v11921_v22 = vld [vmem:[#allocation3 + $0x170] sm:$0xff]  ;;  %12620 = vst.msk [vmem:[#allocation3 + $0x18] sm:$0xff] %vm171_vm1, %v12572_v40 }
 0x5d0   : > { %v11969_v43 = vadd.f32 %v11921_v22, %v11866_v62  ;;  %12619 = vst.msk [vmem:[#allocation3 + $0x10] sm:$0xff] %vm171_vm1, %v12571_v41  ;;  %v16271_v50 = vpop.f32.mrb[132].mxu1  ;;  %v12535_v60 = vld [vmem:[#allocation3 + $0x70] sm:$0xff] }
 0x5d1   : > { %12018 = vst.msk [vmem:[#allocation3 + $0x178] sm:$0xff] %vm171_vm1, %v11970_v57  ;;  %v12574_v28 = vadd.f32 %v16271_v50, %v12526_v11  ;;  %v12302_v27 = vpop.f32.mrb[133].mxu1  ;;  %v12546_v57 = vld [vmem:[#allocation3 + $0xc8] sm:$0xff]  ;;  %v12545_v50 = vld [vmem:[#allocation3 + $0xc0] sm:$0xff] }
 0x5d2   : > { %12017 = vst.msk [vmem:[#allocation3 + $0x170] sm:$0xff] %vm171_vm1, %v11969_v43  ;;  %v12573_v48 = vadd.f32 %v12525_v12, %v12302_v27  ;;  %v12548_v27 = vld [vmem:[#allocation3 + $0xd8] sm:$0xff] }
 0x5d3   : > { %12622 = vst.msk [vmem:[#allocation3 + $0x28] sm:$0xff] %vm171_vm1, %v12574_v28 }
 0x5d4   : > { %12621 = vst.msk [vmem:[#allocation3 + $0x20] sm:$0xff] %vm171_vm1, %v12573_v48  ;;  %v16274_v61 = vpop.f32.mrb[134].mxu1 }
 0x5d5   : > { %v12576_v34 = vadd.f32 %v16274_v61, %v12528_v13  ;;  %v12312_v42 = vpop.f32.mrb[135].mxu1  ;;  %v12547_v61 = vld [vmem:[#allocation3 + $0xd0] sm:$0xff] }
 0x5d6   : > { %v12575_v32 = vadd.f32 %v12527_v10, %v12312_v42  ;;  %v12550_v10 = vld [vmem:[#allocation3 + $0xe8] sm:$0xff] }
 0x5d7   : > { %12624 = vst.msk [vmem:[#allocation3 + $0x38] sm:$0xff] %vm171_vm1, %v12576_v34  ;;  %v20181_v34 = vld [vmem:[#allocation3 + $0x18] sm:$0xff] }
 0x5d8   : > { %12623 = vst.msk [vmem:[#allocation3 + $0x30] sm:$0xff] %vm171_vm1, %v12575_v32  ;;  %v16277_v31 = vpop.f32.mrb[136].mxu1  ;;  %v12549_v32 = vld [vmem:[#allocation3 + $0xe0] sm:$0xff] }
 0x5d9   : > { %v12578_v63 = vadd.f32 %v16277_v31, %v12530_v24  ;;  %v12322_v19 = vpop.f32.mrb[137].mxu1  ;;  %v20185_v31 = vld [vmem:[#allocation3] sm:$0xff] }
 0x5da   : > { %v12577_v9 = vadd.f32 %v12529_v29, %v12322_v19 }
 0x5db   : > { %12626 = vst.msk [vmem:[#allocation3 + $0x48] sm:$0xff] %vm171_vm1, %v12578_v63  ;;  %v20187_v24 = vld [vmem:[#allocation3 + $0x20] sm:$0xff] }
 0x5dc   : > { %12625 = vst.msk [vmem:[#allocation3 + $0x40] sm:$0xff] %vm171_vm1, %v12577_v9  ;;  %v16280_v16 = vpop.f32.mrb[138].mxu1  ;;  %v12714_v9 = vsel %vm171_vm1, %v20181_v34, 0.0 }
 0x5dd   : > { %v12580_v4 = vadd.f32 %v16280_v16, %v12532_v47  ;;  %v12332_v33 = vpop.f32.mrb[139].mxu1  ;;  %v20193_v47 = vld [vmem:[#allocation3 + $0x8] sm:$0xff] }
 0x5de   : > { %v12579_v17 = vadd.f32 %v12531_v45, %v12332_v33  ;;  %v12745_v33 = vsel %vm171_vm1, %v20187_v24, 0.0 }
 0x5df   : > { %12628 = vst.msk [vmem:[#allocation3 + $0x58] sm:$0xff] %vm171_vm1, %v12580_v4  ;;  %v20189_v63 = vld [vmem:[#allocation3 + $0x30] sm:$0xff]  ;;  %v12713_v4 = vsel %vm171_vm1, %v20185_v31, 0.0 }
 0x5e0   : > { %12627 = vst.msk [vmem:[#allocation3 + $0x50] sm:$0xff] %vm171_vm1, %v12579_v17  ;;  %v16283_v44 = vpop.f32.mrb[140].mxu1  ;;  %v12716_v45 = vsel %vm171_vm1, %v20189_v63, 0.0 }
 0x5e1   : > { %v12582_v51 = vadd.f32 %v16283_v44, %v12534_v23  ;;  %v12342_v49 = vpop.f32.mrb[141].mxu1  ;;  %v12552_v44 = vld [vmem:[#allocation3 + $0xf8] sm:$0xff]  ;;  %v12715_v23 = vadd.f32 %v12714_v9, %v12713_v4 }
 0x5e2   : > { %v12581_v53 = vadd.f32 %v12533_v5, %v12342_v49  ;;  %v20205_v49 = vld [vmem:[#allocation3 + $0x48] sm:$0xff] }
 0x5e3   : > { %12630 = vst.msk [vmem:[#allocation3 + $0x68] sm:$0xff] %vm171_vm1, %v12582_v51  ;;  %v20203_v51 = vld [vmem:[#allocation3 + $0x38] sm:$0xff] }
 0x5e4   : > { %12629 = vst.msk [vmem:[#allocation3 + $0x60] sm:$0xff] %vm171_vm1, %v12581_v53  ;;  %v16286_v20 = vpop.f32.mrb[142].mxu1 }
 0x5e5   : > { %v12584_v46 = vadd.f32 %v16286_v20, %v12536_v0  ;;  %v12352_v36 = vpop.f32.mrb[143].mxu1  ;;  %v12551_v20 = vld [vmem:[#allocation3 + $0xf0] sm:$0xff]  ;;  %v12744_v0 = vsel %vm171_vm1, %v20193_v47, 0.0 }
 0x5e6   : > { %v12583_v55 = vadd.f32 %v12535_v60, %v12352_v36  ;;  %v12746_v36 = vadd.f32 %v12745_v33, %v12744_v0  ;;  %v12717_v60 = vadd.f32 %v12716_v45, %v12715_v23 }
 0x5e7   : > { %12632 = vst.msk [vmem:[#allocation3 + $0x78] sm:$0xff] %vm171_vm1, %v12584_v46 }
 0x5e8   : > { %12631 = vst.msk [vmem:[#allocation3 + $0x70] sm:$0xff] %vm171_vm1, %v12583_v55  ;;  %v16289_v21 = vpop.f32.mrb[144].mxu1  ;;  %v20209_v55 = vld [vmem:[#allocation3 + $0x50] sm:$0xff] }
 0x5e9   : > { %v12586_v62 = vadd.f32 %v16289_v21, %v12538_v3  ;;  %v12362_v6 = vpop.f32.mrb[145].mxu1  ;;  %v12747_v3 = vsel %vm171_vm1, %v20203_v51, 0.0 }
 0x5ea   : > { %v12585_v8 = vadd.f32 %v12537_v14, %v12362_v6  ;;  %v12554_v14 = vld [vmem:[#allocation3 + $0x108] sm:$0xff] }
 0x5eb   : > { %12634 = vst.msk [vmem:[#allocation3 + $0x88] sm:$0xff] %vm171_vm1, %v12586_v62  ;;  %v20211_v21 = vld [vmem:[#allocation3 + $0x60] sm:$0xff]  ;;  %v12718_v62 = vsel %vm171_vm1, %v20205_v49, 0.0 }
 0x5ec   : > { %12633 = vst.msk [vmem:[#allocation3 + $0x80] sm:$0xff] %vm171_vm1, %v12585_v8  ;;  %v16292_v58 = vpop.f32.mrb[146].mxu1 }
 0x5ed   : > { %v12588_v1 = vadd.f32 %v16292_v58, %v12540_v37  ;;  %v12372_v26 = vpop.f32.mrb[147].mxu1  ;;  %v12553_v37 = vld [vmem:[#allocation3 + $0x100] sm:$0xff] }
 0x5ee   : > { %v12587_v39 = vadd.f32 %v12539_v56, %v12372_v26  ;;  %v12720_v26 = vsel %vm171_vm1, %v20211_v21, 0.0 }
 0x5ef   : > { %12636 = vst.msk [vmem:[#allocation3 + $0x98] sm:$0xff] %vm171_vm1, %v12588_v1  ;;  %v12749_v1 = vsel %vm171_vm1, %v20209_v55, 0.0 }
 0x5f0   : > { %12635 = vst.msk [vmem:[#allocation3 + $0x90] sm:$0xff] %vm171_vm1, %v12587_v39  ;;  %v16295_v38 = vpop.f32.mrb[148].mxu1  ;;  %v12748_v39 = vadd.f32 %v12747_v3, %v12746_v36 }
 0x5f1   : > { %v12590_v15 = vadd.f32 %v16295_v38, %v12542_v18  ;;  %v12382_v52 = vpop.f32.mrb[149].mxu1  ;;  %v12719_v38 = vadd.f32 %v12718_v62, %v12717_v60  ;;  %v20223_v18 = vld [vmem:[#allocation3 + $0x68] sm:$0xff] }
 0x5f2   : > { %v12589_v2 = vadd.f32 %v12541_v25, %v12382_v52  ;;  %v12556_v25 = vld [vmem:[#allocation3 + $0x118] sm:$0xff] }
 0x5f3   : > { %12638 = vst.msk [vmem:[#allocation3 + $0xa8] sm:$0xff] %vm171_vm1, %v12590_v15  ;;  %v20225_v15 = vld [vmem:[#allocation3 + $0x78] sm:$0xff] }
 0x5f4   : > { %12637 = vst.msk [vmem:[#allocation3 + $0xa0] sm:$0xff] %vm171_vm1, %v12589_v2  ;;  %v16298_v54 = vpop.f32.mrb[150].mxu1  ;;  %v12750_v2 = vadd.f32 %v12749_v1, %v12748_v39 }
 0x5f5   : > { %v12592_v40 = vadd.f32 %v16298_v54, %v12544_v59  ;;  %v12392_v7 = vpop.f32.mrb[151].mxu1  ;;  %v12721_v54 = vadd.f32 %v12720_v26, %v12719_v38  ;;  %v20229_v59 = vld [vmem:[#allocation3 + $0x80] sm:$0xff] }
 0x5f6   : > { %v12591_v30 = vadd.f32 %v12543_v35, %v12392_v7 }
 0x5f7   : > { %12640 = vst.msk [vmem:[#allocation3 + $0xb8] sm:$0xff] %vm171_vm1, %v12592_v40  ;;  %v20231_v40 = vld [vmem:[#allocation3 + $0x90] sm:$0xff] }
 0x5f8   : > { %12639 = vst.msk [vmem:[#allocation3 + $0xb0] sm:$0xff] %vm171_vm1, %v12591_v30  ;;  %v16301_v41 = vpop.f32.mrb[152].mxu1  ;;  %v12555_v30 = vld [vmem:[#allocation3 + $0x110] sm:$0xff] }
 0x5f9   : > { %v12594_v22 = vadd.f32 %v16301_v41, %v12546_v57  ;;  %v12402_v43 = vpop.f32.mrb[153].mxu1  ;;  %v12751_v41 = vsel %vm171_vm1, %v20223_v18, 0.0  ;;  %v12722_v57 = vsel %vm171_vm1, %v20225_v15, 0.0 }
 0x5fa   : > { %v12593_v11 = vadd.f32 %v12545_v50, %v12402_v43  ;;  %v12753_v43 = vsel %vm171_vm1, %v20229_v59, 0.0  ;;  %v12724_v50 = vsel %vm171_vm1, %v20231_v40, 0.0 }
 0x5fb   : > { %12642 = vst.msk [vmem:[#allocation3 + $0xc8] sm:$0xff] %vm171_vm1, %v12594_v22 }
 0x5fc   : > { %12641 = vst.msk [vmem:[#allocation3 + $0xc0] sm:$0xff] %vm171_vm1, %v12593_v11  ;;  %v16304_v28 = vpop.f32.mrb[154].mxu1 }
 0x5fd   : > { %v12596_v12 = vadd.f32 %v16304_v28, %v12548_v27  ;;  %v12412_v48 = vpop.f32.mrb[155].mxu1  ;;  %v12558_v28 = vld [vmem:[#allocation3 + $0x128] sm:$0xff]  ;;  %v12752_v27 = vadd.f32 %v12751_v41, %v12750_v2 }
 0x5fe   : > { %v12595_v13 = vadd.f32 %v12547_v61, %v12412_v48  ;;  %v20243_v48 = vld [vmem:[#allocation3 + $0x98] sm:$0xff]  ;;  %v20245_v61 = vld [vmem:[#allocation3 + $0xa8] sm:$0xff] }
 0x5ff   : > { %12644 = vst.msk [vmem:[#allocation3 + $0xd8] sm:$0xff] %vm171_vm1, %v12596_v12  ;;  %v12723_v12 = vadd.f32 %v12722_v57, %v12721_v54  ;;  %v20247_v9 = vld [vmem:[#allocation3 + $0xb0] sm:$0xff]  ;;  %v12755_v4 = vsel %vm171_vm1, %v20243_v48, 0.0  ;;  %v12726_v33 = vsel %vm171_vm1, %v20245_v61, 0.0 }
 0x600   : > { %12643 = vst.msk [vmem:[#allocation3 + $0xd0] sm:$0xff] %vm171_vm1, %v12595_v13  ;;  %v16307_v42 = vpop.f32.mrb[156].mxu1 }
 0x601   : > { %v12598_v19 = vadd.f32 %v16307_v42, %v12550_v10  ;;  %v12422_v29 = vpop.f32.mrb[157].mxu1  ;;  %v12557_v10 = vld [vmem:[#allocation3 + $0x120] sm:$0xff] }
 0x602   : > { %v12597_v16 = vadd.f32 %v12549_v32, %v12422_v29  ;;  %v12725_v29 = vadd.f32 %v12724_v50, %v12723_v12  ;;  %v20261_v60 = vld [vmem:[#allocation3 + $0xc8] sm:$0xff]  ;;  %v12563_v50 = vld [vmem:[#allocation3 + $0x150] sm:$0xff] }
 0x603   : > { %12646 = vst.msk [vmem:[#allocation3 + $0xe8] sm:$0xff] %vm171_vm1, %v12598_v19  ;;  %v12754_v19 = vadd.f32 %v12753_v43, %v12752_v27  ;;  %v12759_v39 = vsel %vm171_vm1, %v20261_v60, 0.0 }
 0x604   : > { %12645 = vst.msk [vmem:[#allocation3 + $0xe0] sm:$0xff] %vm171_vm1, %v12597_v16  ;;  %v16310_v17 = vpop.f32.mrb[158].mxu1  ;;  %v20249_v16 = vld [vmem:[#allocation3 + $0xc0] sm:$0xff]  ;;  %v12727_v36 = vadd.f32 %v12726_v33, %v12725_v29 }
 0x605   : > { %v12600_v5 = vadd.f32 %v16310_v17, %v12552_v44  ;;  %v12432_v53 = vpop.f32.mrb[159].mxu1  ;;  %v12560_v17 = vld [vmem:[#allocation3 + $0x138] sm:$0xff]  ;;  %v12565_v33 = vld [vmem:[#allocation3 + $0x160] sm:$0xff] }
 0x606   : > { %v12599_v46 = vadd.f32 %v12551_v20, %v12432_v53  ;;  %v12757_v53 = vsel %vm171_vm1, %v20247_v9, 0.0  ;;  %v12728_v20 = vsel %vm171_vm1, %v20249_v16, 0.0  ;;  %v20263_v3 = vld [vmem:[#allocation3 + $0xd8] sm:$0xff] }
 0x607   : > { %12648 = vst.msk [vmem:[#allocation3 + $0xf8] sm:$0xff] %vm171_vm1, %v12600_v5  ;;  %v12559_v5 = vld [vmem:[#allocation3 + $0x130] sm:$0xff]  ;;  %v12730_v38 = vsel %vm171_vm1, %v20263_v3, 0.0 }
 0x608   : > { %12647 = vst.msk [vmem:[#allocation3 + $0xf0] sm:$0xff] %vm171_vm1, %v12599_v46  ;;  %v16313_v6 = vpop.f32.mrb[160].mxu1  ;;  %v12756_v46 = vadd.f32 %v12755_v4, %v12754_v19  ;;  %v12566_v19 = vld [vmem:[#allocation3 + $0x168] sm:$0xff] }
 0x609   : > { %v12602_v8 = vadd.f32 %v16313_v6, %v12554_v14  ;;  %v12442_v58 = vpop.f32.mrb[161].mxu1  ;;  %v12562_v6 = vld [vmem:[#allocation3 + $0x148] sm:$0xff] }
 0x60a   : > { %v12601_v56 = vadd.f32 %v12553_v37, %v12442_v58  ;;  %v12758_v14 = vadd.f32 %v12757_v53, %v12756_v46  ;;  %v12568_v46 = vld [vmem:[#allocation3 + $0x178] sm:$0xff] }
 0x60b   : > { %12650 = vst.msk [vmem:[#allocation3 + $0x108] sm:$0xff] %vm171_vm1, %v12602_v8  ;;  %v12729_v8 = vadd.f32 %v12728_v20, %v12727_v36  ;;  %v20267_v58 = vld [vmem:[#allocation3 + $0xe0] sm:$0xff] }
 0x60c   : > { %12649 = vst.msk [vmem:[#allocation3 + $0x100] sm:$0xff] %vm171_vm1, %v12601_v56  ;;  %v16316_v52 = vpop.f32.mrb[162].mxu1  ;;  %v12561_v56 = vld [vmem:[#allocation3 + $0x140] sm:$0xff] }
 0x60d   : > { %v12604_v7 = vadd.f32 %v16316_v52, %v12556_v25  ;;  %v12452_v35 = vpop.f32.mrb[163].mxu1  ;;  %v12761_v25 = vsel %vm171_vm1, %v20267_v58, 0.0 }
 0x60e   : > { %v12603_v22 = vadd.f32 %v12555_v30, %v12452_v35  ;;  %v12760_v35 = vadd.f32 %v12759_v39, %v12758_v14  ;;  %v12731_v30 = vadd.f32 %v12730_v38, %v12729_v8  ;;  %v20281_v41 = vld [vmem:[#allocation3 + $0xf8] sm:$0xff] }
 0x60f   : > { %12652 = vst.msk [vmem:[#allocation3 + $0x118] sm:$0xff] %vm171_vm1, %v12604_v7  ;;  %v20269_v37 = vld [vmem:[#allocation3 + $0xf0] sm:$0xff]  ;;  %v12564_v7 = vld [vmem:[#allocation3 + $0x158] sm:$0xff] }
 0x610   : > { %12651 = vst.msk [vmem:[#allocation3 + $0x110] sm:$0xff] %vm171_vm1, %v12603_v22  ;;  %v16319_v11 = vpop.f32.mrb[164].mxu1  ;;  %v12732_v2 = vsel %vm171_vm1, %v20269_v37, 0.0 }
 0x611   : > { %v12606_v13 = vadd.f32 %v16319_v11, %v12558_v28  ;;  %v12462_v42 = vpop.f32.mrb[165].mxu1  ;;  %v12762_v28 = vadd.f32 %v12761_v25, %v12760_v35  ;;  %v12733_v27 = vadd.f32 %v12732_v2, %v12731_v30 }
 0x612   : > { %v12605_v32 = vadd.f32 %v12557_v10, %v12462_v42  ;;  %v20283_v57 = vld [vmem:[#allocation3 + $0x108] sm:$0xff]  ;;  %v12763_v42 = vsel %vm171_vm1, %v20281_v41, 0.0 }
 0x613   : > { %12654 = vst.msk [vmem:[#allocation3 + $0x128] sm:$0xff] %vm171_vm1, %v12606_v13  ;;  %v12734_v10 = vsel %vm171_vm1, %v20283_v57, 0.0 }
 0x614   : > { %12653 = vst.msk [vmem:[#allocation3 + $0x120] sm:$0xff] %vm171_vm1, %v12605_v32  ;;  %v16322_v45 = vpop.f32.mrb[166].mxu1 }
 0x615   : > { %v12608_v44 = vadd.f32 %v16322_v45, %v12560_v17  ;;  %v12472_v23 = vpop.f32.mrb[167].mxu1 }
 0x616   : > { %v12607_v0 = vadd.f32 %v12559_v5, %v12472_v23  ;;  %v12764_v23 = vadd.f32 %v12763_v42, %v12762_v28  ;;  %v12735_v5 = vadd.f32 %v12734_v10, %v12733_v27 }
 0x617   : > { %12656 = vst.msk [vmem:[#allocation3 + $0x138] sm:$0xff] %vm171_vm1, %v12608_v44  ;;  %v20285_v12 = vld [vmem:[#allocation3 + $0x110] sm:$0xff] }
 0x618   : > { %12655 = vst.msk [vmem:[#allocation3 + $0x130] sm:$0xff] %vm171_vm1, %v12607_v0  ;;  %v16325_v62 = vpop.f32.mrb[168].mxu1  ;;  %v12765_v45 = vsel %vm171_vm1, %v20285_v12, 0.0 }
 0x619   : > { %v12610_v1 = vadd.f32 %v16325_v62, %v12562_v6  ;;  %v12482_v26 = vpop.f32.mrb[169].mxu1  ;;  %v12766_v36 = vadd.f32 %v12765_v45, %v12764_v23 }
 0x61a   : > { %v12609_v52 = vadd.f32 %v12561_v56, %v12482_v26  ;;  %v20299_v53 = vld [vmem:[#allocation3 + $0x128] sm:$0xff] }
 0x61b   : > { %12658 = vst.msk [vmem:[#allocation3 + $0x148] sm:$0xff] %vm171_vm1, %v12610_v1  ;;  %v20287_v13 = vld [vmem:[#allocation3 + $0x120] sm:$0xff]  ;;  %v12567_v1 = vld [vmem:[#allocation3 + $0x170] sm:$0xff]  ;;  %v12767_v26 = vsel %vm171_vm1, %v20299_v53, 0.0 }
 0x61c   : > { %12657 = vst.msk [vmem:[#allocation3 + $0x140] sm:$0xff] %vm171_vm1, %v12609_v52  ;;  %v16328_v54 = vpop.f32.mrb[170].mxu1  ;;  %v12736_v17 = vsel %vm171_vm1, %v20287_v13, 0.0  ;;  %v12768_v2 = vadd.f32 %v12767_v26, %v12766_v36 }
 0x61d   : > { %v12612_v22 = vadd.f32 %v16328_v54, %v12564_v7  ;;  %v12492_v43 = vpop.f32.mrb[171].mxu1  ;;  %v12737_v62 = vadd.f32 %v12736_v17, %v12735_v5 }
 0x61e   : > { %v12611_v11 = vadd.f32 %v12563_v50, %v12492_v43  ;;  %v20301_v20 = vld [vmem:[#allocation3 + $0x138] sm:$0xff] }
 0x61f   : > { %12660 = vst.msk [vmem:[#allocation3 + $0x158] sm:$0xff] %vm171_vm1, %v12612_v22  ;;  %v12738_v56 = vsel %vm171_vm1, %v20301_v20, 0.0 }
 0x620   : > { %12659 = vst.msk [vmem:[#allocation3 + $0x150] sm:$0xff] %vm171_vm1, %v12611_v11  ;;  %v16331_v32 = vpop.f32.mrb[172].mxu1  ;;  %v12739_v54 = vadd.f32 %v12738_v56, %v12737_v62 }
 0x621   : > { %v12614_v29 = vadd.f32 %v16331_v32, %v12566_v19  ;;  %v12502_v4 = vpop.f32.mrb[173].mxu1 }
 0x622   : > { %v12613_v44 = vadd.f32 %v12565_v33, %v12502_v4 }
 0x623   : > { %12662 = vst.msk [vmem:[#allocation3 + $0x168] sm:$0xff] %vm171_vm1, %v12614_v29  ;;  %v20305_v6 = vld [vmem:[#allocation3 + $0x140] sm:$0xff] }
 0x624   : > { %12661 = vst.msk [vmem:[#allocation3 + $0x160] sm:$0xff] %vm171_vm1, %v12613_v44  ;;  %v16334_v0 = vpop.f32.mrb[174].mxu1  ;;  %v12769_v52 = vsel %vm171_vm1, %v20305_v6, 0.0 }
 0x625   : > { %v12616_v14 = vadd.f32 %v16334_v0, %v12568_v46  ;;  %v12512_v8 = vpop.f32.mrb[175].mxu1  ;;  %v12770_v30 = vadd.f32 %v12769_v52, %v12768_v2 }
 0x626   : > { %v12615_v39 = vadd.f32 %v12567_v1, %v12512_v8  ;;  %v20319_v7 = vld [vmem:[#allocation3 + $0x158] sm:$0xff] }
 0x627   : > { %v20311_v38 = vld [vmem:[#allocation3 + $0x150] sm:$0xff]  ;;  %12664 = vst.msk [vmem:[#allocation3 + $0x178] sm:$0xff] %vm171_vm1, %v12616_v14  ;;  %v12771_v43 = vsel %vm171_vm1, %v20319_v7, 0.0 }
 0x628   : > { %v12740_v25 = vsel %vm171_vm1, %v20311_v38, 0.0  ;;  %12663 = vst.msk [vmem:[#allocation3 + $0x170] sm:$0xff] %vm171_vm1, %v12615_v39  ;;  %v12772_v11 = vadd.f32 %v12771_v43, %v12770_v30 }
 0x629   : > { %v12741_v22 = vadd.f32 %v12740_v25, %v12739_v54 }
 0x62a   : > { %v20321_v35 = vld [vmem:[#allocation3 + $0x168] sm:$0xff] }
 0x62b   : > { %v12742_v50 = vsel %vm171_vm1, %v20321_v35, 0.0 }
 0x62c   : > { %v12743_v28 = vadd.f32 %v12742_v50, %v12741_v22 }
 0x62e   : > { %v12809_v32 = vsel %vm171_vm1, %v12743_v28, 0.0 }
 0x62f   : > { %v20327_v27 = vld [vmem:[#allocation3 + $0x170] sm:$0xff] }
 0x630   : > { %v12773_v42 = vsel %vm171_vm1, %v20327_v27, 0.0 }
 0x631   : > { %v12774_v10 = vadd.f32 %v12773_v42, %v12772_v11 }
 0x633   : > { %v12810_v19 = vsel %vm171_vm1, %v12774_v10, 0.0 }
 0x634   : > { %v12811_v29 = vadd.f32 %v12810_v19, %v12809_v32 }
 0x636   : > { %v12814_v4 = vrot.slane %v12811_v29, 4 }
 0x638   : > { %v12815_v33 = vadd.f32 %v12814_v4, %v12811_v29 }
 0x63a   : > { %v12816_v45 = vrot.slane %v12815_v33, 2 }
 0x63c   : > { %v12817_v17 = vadd.f32 %v12816_v45, %v12815_v33 }
 0x63e   : > { %v12818_v44 = vrot.slane %v12817_v17, 1 }
 0x640   : > { %v12819_v23 = vadd.f32 %v12818_v44, %v12817_v17 }
 0x642   : > { %v20333_v5 = vmul.f32 0.00390625, %v12819_v23 }
 0x644   : > { %v20337_v0 = vsub.f32 %v20185_v31, %v20333_v5  ;;  %v20341_v46 = vsub.f32 %v20181_v34, %v20333_v5  ;;  %v20345_v36 = vsub.f32 %v20189_v63, %v20333_v5  ;;  %v20349_v62 = vsub.f32 %v20193_v47, %v20333_v5 }
 0x645   : > { %v20353_v14 = vsub.f32 %v20187_v24, %v20333_v5  ;;  %v20357_v31 = vsub.f32 %v20205_v49, %v20333_v5  ;;  %v20365_v63 = vsub.f32 %v20203_v51, %v20333_v5  ;;  %v20369_v47 = vsub.f32 %v20211_v21, %v20333_v5 }
 0x646   : > { %v12869_v34 = vmul.f32 %v20337_v0, %v20337_v0  ;;  %v12872_v8 = vmul.f32 %v20341_v46, %v20341_v46  ;;  %v12875_v24 = vmul.f32 %v20345_v36, %v20345_v36  ;;  %v20375_v49 = vsub.f32 %v20209_v55, %v20333_v5 }
 0x647   : > { %v20379_v1 = vsub.f32 %v20225_v15, %v20333_v5  ;;  %v12870_v26 = vmul.f32 %v20349_v62, %v20349_v62  ;;  %v12873_v51 = vmul.f32 %v20353_v14, %v20353_v14  ;;  %v12878_v21 = vmul.f32 %v20357_v31, %v20357_v31 }
 0x648   : > { %v12917_v56 = vsel %vm171_vm1, %v12869_v34, 0.0  ;;  %v12918_v39 = vsel %vm171_vm1, %v12872_v8, 0.0  ;;  %v20391_v55 = vsub.f32 %v20223_v18, %v20333_v5  ;;  %v20395_v15 = vsub.f32 %v20231_v40, %v20333_v5 }
 0x649   : > { %v12919_v52 = vadd.f32 %v12918_v39, %v12917_v56  ;;  %v12876_v25 = vmul.f32 %v20365_v63, %v20365_v63  ;;  %v12881_v2 = vmul.f32 %v20369_v47, %v20369_v47  ;;  %v12920_v54 = vsel %vm171_vm1, %v12875_v24, 0.0 }
 0x64a   : > { %v20404_v30 = vsub.f32 %v20229_v59, %v20333_v5  ;;  %v20408_v18 = vsub.f32 %v20245_v61, %v20333_v5  ;;  %v12879_v40 = vmul.f32 %v20375_v49, %v20375_v49  ;;  %v12884_v43 = vmul.f32 %v20379_v1, %v20379_v1 }
 0x64b   : > { %v12921_v22 = vadd.f32 %v12920_v54, %v12919_v52  ;;  %v12922_v50 = vsel %vm171_vm1, %v12878_v21, 0.0  ;;  %v12948_v11 = vsel %vm171_vm1, %v12870_v26, 0.0  ;;  %v12949_v28 = vsel %vm171_vm1, %v12873_v51, 0.0 }
 0x64c   : > { %v20419_v59 = vsub.f32 %v20243_v48, %v20333_v5  ;;  %v20423_v61 = vsub.f32 %v20249_v16, %v20333_v5  ;;  %v12950_v10 = vadd.f32 %v12949_v28, %v12948_v11  ;;  %v12882_v32 = vmul.f32 %v20391_v55, %v20391_v55 }
 0x64d   : > { %v12923_v42 = vadd.f32 %v12922_v50, %v12921_v22  ;;  %v12887_v19 = vmul.f32 %v20395_v15, %v20395_v15  ;;  %v12924_v29 = vsel %vm171_vm1, %v12881_v2, 0.0  ;;  %v12951_v4 = vsel %vm171_vm1, %v12876_v25, 0.0 }
 0x64e   : > { %v20433_v48 = vsub.f32 %v20247_v9, %v20333_v5  ;;  %v20437_v16 = vsub.f32 %v20263_v3, %v20333_v5  ;;  %v12952_v45 = vadd.f32 %v12951_v4, %v12950_v10  ;;  %v12885_v17 = vmul.f32 %v20404_v30, %v20404_v30 }
 0x64f   : > { %v12925_v33 = vadd.f32 %v12924_v29, %v12923_v42  ;;  %v12890_v44 = vmul.f32 %v20408_v18, %v20408_v18  ;;  %v12926_v23 = vsel %vm171_vm1, %v12884_v43, 0.0  ;;  %v12953_v34 = vsel %vm171_vm1, %v12879_v40, 0.0 }
 0x650   : > { %v20447_v9 = vsub.f32 %v20261_v60, %v20333_v5  ;;  %v20451_v3 = vsub.f32 %v20269_v37, %v20333_v5  ;;  %v12954_v24 = vadd.f32 %v12953_v34, %v12952_v45  ;;  %v12888_v26 = vmul.f32 %v20419_v59, %v20419_v59 }
 0x651   : > { %v12927_v8 = vadd.f32 %v12926_v23, %v12925_v33  ;;  %v12893_v51 = vmul.f32 %v20423_v61, %v20423_v61  ;;  %v12928_v21 = vsel %vm171_vm1, %v12887_v19, 0.0  ;;  %v12955_v56 = vsel %vm171_vm1, %v12882_v32, 0.0 }
 0x652   : > { %v20461_v60 = vsub.f32 %v20267_v58, %v20333_v5  ;;  %v20465_v37 = vsub.f32 %v20283_v57, %v20333_v5  ;;  %v12956_v52 = vadd.f32 %v12955_v56, %v12954_v24  ;;  %v12891_v25 = vmul.f32 %v20433_v48, %v20433_v48 }
 0x653   : > { %v12929_v39 = vadd.f32 %v12928_v21, %v12927_v8  ;;  %v12896_v2 = vmul.f32 %v20437_v16, %v20437_v16  ;;  %v12930_v54 = vsel %vm171_vm1, %v12890_v44, 0.0  ;;  %v12957_v40 = vsel %vm171_vm1, %v12885_v17, 0.0 }
 0x654   : > { %v20475_v58 = vsub.f32 %v20281_v41, %v20333_v5  ;;  %v20479_v57 = vsub.f32 %v20287_v13, %v20333_v5  ;;  %v12958_v43 = vadd.f32 %v12957_v40, %v12956_v52  ;;  %v12894_v50 = vmul.f32 %v20447_v9, %v20447_v9 }
 0x655   : > { %v12931_v22 = vadd.f32 %v12930_v54, %v12929_v39  ;;  %v12899_v11 = vmul.f32 %v20451_v3, %v20451_v3  ;;  %v12932_v28 = vsel %vm171_vm1, %v12893_v51, 0.0  ;;  %v12959_v42 = vsel %vm171_vm1, %v12888_v26, 0.0 }
 0x656   : > { %v20489_v41 = vsub.f32 %v20285_v12, %v20333_v5  ;;  %v20493_v13 = vsub.f32 %v20301_v20, %v20333_v5  ;;  %v12960_v32 = vadd.f32 %v12959_v42, %v12958_v43  ;;  %v12897_v19 = vmul.f32 %v20461_v60, %v20461_v60 }
 0x657   : > { %v12933_v10 = vadd.f32 %v12932_v28, %v12931_v22  ;;  %v12902_v29 = vmul.f32 %v20465_v37, %v20465_v37  ;;  %v12934_v4 = vsel %vm171_vm1, %v12896_v2, 0.0  ;;  %v12961_v33 = vsel %vm171_vm1, %v12891_v25, 0.0 }
 0x658   : > { %v20503_v12 = vsub.f32 %v20299_v53, %v20333_v5  ;;  %v20507_v20 = vsub.f32 %v20311_v38, %v20333_v5  ;;  %v12962_v17 = vadd.f32 %v12961_v33, %v12960_v32  ;;  %v12900_v44 = vmul.f32 %v20475_v58, %v20475_v58 }
 0x659   : > { %v12935_v45 = vadd.f32 %v12934_v4, %v12933_v10  ;;  %v12905_v23 = vmul.f32 %v20479_v57, %v20479_v57  ;;  %v12936_v34 = vsel %vm171_vm1, %v12899_v11, 0.0  ;;  %v12963_v8 = vsel %vm171_vm1, %v12894_v50, 0.0 }
 0x65a   : > { %v20517_v53 = vsub.f32 %v20305_v6, %v20333_v5  ;;  %v20521_v38 = vsub.f32 %v20321_v35, %v20333_v5  ;;  %v12964_v26 = vadd.f32 %v12963_v8, %v12962_v17  ;;  %v12903_v51 = vmul.f32 %v20489_v41, %v20489_v41 }
 0x65b   : > { %v12937_v24 = vadd.f32 %v12936_v34, %v12935_v45  ;;  %v12908_v21 = vmul.f32 %v20493_v13, %v20493_v13  ;;  %v12938_v56 = vsel %vm171_vm1, %v12902_v29, 0.0  ;;  %v12965_v39 = vsel %vm171_vm1, %v12897_v19, 0.0 }
 0x65c   : > { %v20531_v6 = vsub.f32 %v20319_v7, %v20333_v5  ;;  %v12966_v25 = vadd.f32 %v12965_v39, %v12964_v26  ;;  %v12906_v35 = vmul.f32 %v20503_v12, %v20503_v12  ;;  %v12911_v2 = vmul.f32 %v20507_v20, %v20507_v20 }
 0x65d   : > { %v12939_v52 = vadd.f32 %v12938_v56, %v12937_v24  ;;  %v12940_v54 = vsel %vm171_vm1, %v12905_v23, 0.0  ;;  %v12967_v40 = vsel %vm171_vm1, %v12900_v44, 0.0  ;;  %v20541_v22 = vsub.f32 %v20327_v27, %v20333_v5 }
 0x65e   : > { %v12968_v50 = vadd.f32 %v12967_v40, %v12966_v25  ;;  %v12909_v7 = vmul.f32 %v20517_v53, %v20517_v53  ;;  %v12914_v11 = vmul.f32 %v20521_v38, %v20521_v38  ;;  %v12942_v28 = vsel %vm171_vm1, %v12908_v21, 0.0 }
 0x65f   : > { %v12941_v43 = vadd.f32 %v12940_v54, %v12939_v52  ;;  %v12969_v42 = vsel %vm171_vm1, %v12903_v51, 0.0  ;;  %v12912_v19 = vmul.f32 %v20531_v6, %v20531_v6  ;;  %v12944_v27 = vsel %vm171_vm1, %v12911_v2, 0.0 }
 0x660   : > { %v12970_v32 = vadd.f32 %v12969_v42, %v12968_v50  ;;  %v12971_v5 = vsel %vm171_vm1, %v12906_v35, 0.0  ;;  %v12915_v33 = vmul.f32 %v20541_v22, %v20541_v22  ;;  %v12946_v45 = vsel %vm171_vm1, %v12914_v11, 0.0 }
 0x661   : > { %v12943_v10 = vadd.f32 %v12942_v28, %v12941_v43  ;;  %v12973_v17 = vsel %vm171_vm1, %v12909_v7, 0.0  ;;  %v12975_v34 = vsel %vm171_vm1, %v12912_v19, 0.0 }
 0x662   : > { %v12972_v4 = vadd.f32 %v12971_v5, %v12970_v32  ;;  %v12977_v24 = vsel %vm171_vm1, %v12915_v33, 0.0  ;;  %v13066_v33 = vld [vmem:[%s16417_s25 + $0x38] sm:$0xff] }
 0x663   : > { %v12945_v29 = vadd.f32 %v12944_v27, %v12943_v10 }
 0x664   : > { %v12974_v23 = vadd.f32 %v12973_v17, %v12972_v4  ;;  %v13065_v4 = vld [vmem:[%s16417_s25 + $0x30] sm:$0xff]  ;;  %v13068_v17 = vld [vmem:[%s16417_s25 + $0x48] sm:$0xff] }
 0x665   : > { %v12947_v44 = vadd.f32 %v12946_v45, %v12945_v29  ;;  %v13064_v29 = vld [vmem:[%s16417_s25 + $0x28] sm:$0xff]  ;;  %v13067_v45 = vld [vmem:[%s16417_s25 + $0x40] sm:$0xff] }
 0x666   : > { %v12976_v8 = vadd.f32 %v12975_v34, %v12974_v23  ;;  %v13071_v34 = vld [vmem:[%s16417_s25 + $0x60] sm:$0xff] }
 0x667   : > { %v13013_v51 = vsel %vm171_vm1, %v12947_v44, 0.0  ;;  %v13069_v44 = vld [vmem:[%s16417_s25 + $0x50] sm:$0xff] }
 0x668   : > { %v12978_v26 = vadd.f32 %v12977_v24, %v12976_v8  ;;  %v13072_v8 = vld [vmem:[%s16417_s25 + $0x68] sm:$0xff]  ;;  %v13073_v24 = vld [vmem:[%s16417_s25 + $0x70] sm:$0xff] }
 0x66a   : > { %v13014_v21 = vsel %vm171_vm1, %v12978_v26, 0.0  ;;  %v13074_v26 = vld [vmem:[%s16417_s25 + $0x78] sm:$0xff] }
 0x66b   : > { %v13015_v56 = vadd.f32 %v13014_v21, %v13013_v51  ;;  %v13075_v51 = vld [vmem:[%s16417_s25 + $0x80] sm:$0xff]  ;;  %v13076_v21 = vld [vmem:[%s16417_s25 + $0x88] sm:$0xff] }
 0x66d   : > { %v13018_v39 = vrot.slane %v13015_v56, 4 }
 0x66f   : > { %v13019_v52 = vadd.f32 %v13018_v39, %v13015_v56  ;;  %v13077_v56 = vld [vmem:[%s16417_s25 + $0x90] sm:$0xff] }
 0x671   : > { %v13020_v25 = vrot.slane %v13019_v52, 2 }
 0x673   : > { %v13021_v35 = vadd.f32 %v13020_v25, %v13019_v52 }
 0x675   : > { %v13022_v2 = vrot.slane %v13021_v35, 1 }
 0x677   : > { %v13023_v54 = vadd.f32 %v13022_v2, %v13021_v35  ;;  %v13080_v35 = vld [vmem:[%s16417_s25 + $0xa8] sm:$0xff] }
 0x679   : > { %v13024_v40 = vmul.f32 0.00390625, %v13023_v54 }
 0x67b   : > { %v13025_v43 = vadd.f32 1e-05, %v13024_v40 }
 0x67d   : > { %16346 = vrsqrt.f32 %v13025_v43 }
 0x687   : > { %v16347_v50 = vpop.eup %16346 }
 0x688   : > { %v13027_v7 = vmul.f32 %v16347_v50, %v20337_v0  ;;  %v13028_v11 = vmul.f32 %v16347_v50, %v20349_v62  ;;  %v13029_v28 = vmul.f32 %v16347_v50, %v20341_v46  ;;  %v13030_v42 = vmul.f32 %v16347_v50, %v20353_v14 }
 0x689   : > { %v13031_v10 = vmul.f32 %v16347_v50, %v20345_v36  ;;  %v13032_v32 = vmul.f32 %v16347_v50, %v20365_v63  ;;  %v13033_v19 = vmul.f32 %v16347_v50, %v20357_v31  ;;  %v13034_v27 = vmul.f32 %v16347_v50, %v20375_v49  ;;  %v13059_v49 = vld [vmem:[%s16417_s25] sm:$0xff] }
 0x68a   : > { %v13035_v0 = vmul.f32 %v16347_v50, %v20369_v47  ;;  %v13036_v62 = vmul.f32 %v16347_v50, %v20391_v55  ;;  %v13037_v46 = vmul.f32 %v16347_v50, %v20379_v1  ;;  %v13038_v14 = vmul.f32 %v16347_v50, %v20404_v30  ;;  %v13060_v55 = vld [vmem:[%s16417_s25 + $0x8] sm:$0xff]  ;;  %v13061_v1 = vld [vmem:[%s16417_s25 + $0x10] sm:$0xff]  ;;  %v13062_v30 = vld [vmem:[%s16417_s25 + $0x18] sm:$0xff] }
 0x68b   : > { %v20574_v36 = vmul.f32 %v16347_v50, %v20395_v15  ;;  %v20577_v63 = vmul.f32 %v16347_v50, %v20419_v59  ;;  %v20580_v31 = vmul.f32 %v16347_v50, %v20408_v18  ;;  %v20583_v47 = vmul.f32 %v16347_v50, %v20433_v48  ;;  %v13063_v48 = vld [vmem:[%s16417_s25 + $0x20] sm:$0xff] }
 0x68c   : > { %v20590_v5 = vmul.f32 %v16347_v50, %v20423_v61  ;;  %v20593_v15 = vmul.f32 %v16347_v50, %v20447_v9  ;;  %v20596_v59 = vmul.f32 %v16347_v50, %v20437_v16  ;;  %v20599_v18 = vmul.f32 %v16347_v50, %v20461_v60 }
 0x68d   : > { %v20606_v61 = vmul.f32 %v16347_v50, %v20451_v3  ;;  %v20609_v9 = vmul.f32 %v16347_v50, %v20475_v58  ;;  %v20612_v16 = vmul.f32 %v16347_v50, %v20465_v37  ;;  %v20615_v60 = vmul.f32 %v16347_v50, %v20489_v41  ;;  %v13070_v41 = vld [vmem:[%s16417_s25 + $0x58] sm:$0xff] }
 0x68e   : > { %v20621_v23 = vmul.f32 %v16347_v50, %v20479_v57  ;;  %v20624_v3 = vmul.f32 %v16347_v50, %v20503_v12  ;;  %v20627_v37 = vmul.f32 %v16347_v50, %v20493_v13  ;;  %v20630_v58 = vmul.f32 %v16347_v50, %v20517_v53 }
 0x68f   : > { %v20643_v57 = vmul.f32 %v16347_v50, %v20507_v20  ;;  %v20646_v13 = vmul.f32 %v16347_v50, %v20531_v6  ;;  %v20649_v12 = vmul.f32 %v16347_v50, %v20521_v38  ;;  %v20652_v53 = vmul.f32 %v16347_v50, %v20541_v22  ;;  %v13078_v20 = vld [vmem:[%s16417_s25 + $0x98] sm:$0xff]  ;;  %v13079_v38 = vld [vmem:[%s16417_s25 + $0xa0] sm:$0xff]  ;;  %v13081_v22 = vld [vmem:[%s16417_s25 + $0xb0] sm:$0xff] }
 0x690   : > { %v13091_v39 = vadd.f32 %v13059_v49, %v13027_v7  ;;  %v13092_v52 = vadd.f32 %v13060_v55, %v13028_v11  ;;  %v13093_v25 = vadd.f32 %v13061_v1, %v13029_v28  ;;  %v13094_v6 = vadd.f32 %v13062_v30, %v13030_v42  ;;  %v13082_v50 = vld [vmem:[%s16417_s25 + $0xb8] sm:$0xff]  ;;  %v13084_v7 = vld [vmem:[%s16417_s25 + $0xc8] sm:$0xff] }
 0x691   : > { %20900 = vst [vmem:[#allocation8_spill] sm:$0xff] %v20652_v53  ;;  %v13095_v2 = vadd.f32 %v13063_v48, %v13031_v10  ;;  %v13096_v54 = vadd.f32 %v13064_v29, %v13032_v32  ;;  %v13097_v40 = vadd.f32 %v13065_v4, %v13033_v19  ;;  %v13098_v43 = vadd.f32 %v13066_v33, %v13034_v27  ;;  %v13083_v53 = vld [vmem:[%s16417_s25 + $0xc0] sm:$0xff]  ;;  %v13085_v10 = vld [vmem:[%s16417_s25 + $0xd0] sm:$0xff]  ;;  %v13086_v32 = vld [vmem:[%s16417_s25 + $0xd8] sm:$0xff] }
 0x692   : > { %v13099_v11 = vadd.f32 %v13067_v45, %v13035_v0  ;;  %v13100_v28 = vadd.f32 %v13068_v17, %v13036_v62  ;;  %v13101_v42 = vadd.f32 %v13069_v44, %v13037_v46  ;;  %v13102_v49 = vadd.f32 %v13070_v41, %v13038_v14  ;;  %13123 = vst.msk [vmem:[%s20640_s6] sm:$0xff] %vm171_vm1, %v13091_v39  ;;  %v13087_v19 = vld [vmem:[%s16417_s25 + $0xe0] sm:$0xff]  ;;  %v13088_v14 = vld [vmem:[%s16417_s25 + $0xe8] sm:$0xff] }
 0x693   : > { %13124 = vst.msk [vmem:[%s20640_s6 + $0x8] sm:$0xff] %vm171_vm1, %v13092_v52  ;;  %13125 = vst.msk [vmem:[%s20640_s6 + $0x10] sm:$0xff] %vm171_vm1, %v13093_v25  ;;  %v13103_v27 = vadd.f32 %v13071_v34, %v20574_v36  ;;  %v13104_v0 = vadd.f32 %v13072_v8, %v20577_v63  ;;  %v13105_v62 = vadd.f32 %v13073_v24, %v20580_v31  ;;  %v13089_v36 = vld [vmem:[%s16417_s25 + $0xf0] sm:$0xff]  ;;  %v13090_v63 = vld [vmem:[%s16417_s25 + $0xf8] sm:$0xff] }
 0x694   : > { %13126 = vst.msk [vmem:[%s20640_s6 + $0x18] sm:$0xff] %vm171_vm1, %v13094_v6  ;;  %v13106_v46 = vadd.f32 %v13074_v26, %v20583_v47  ;;  %13127 = vst.msk [vmem:[%s20640_s6 + $0x20] sm:$0xff] %vm171_vm1, %v13095_v2  ;;  %v13107_v31 = vadd.f32 %v13075_v51, %v20590_v5  ;;  %v13108_v55 = vadd.f32 %v13076_v21, %v20593_v15 }
 0x695   : > { %13128 = vst.msk [vmem:[%s20640_s6 + $0x28] sm:$0xff] %vm171_vm1, %v13096_v54  ;;  %13129 = vst.msk [vmem:[%s20640_s6 + $0x30] sm:$0xff] %vm171_vm1, %v13097_v40  ;;  %v13109_v47 = vadd.f32 %v13077_v56, %v20596_v59  ;;  %v13110_v1 = vadd.f32 %v13078_v20, %v20599_v18  ;;  %v13111_v30 = vadd.f32 %v13079_v38, %v20606_v61 }
 0x696   : > { %13130 = vst.msk [vmem:[%s20640_s6 + $0x38] sm:$0xff] %vm171_vm1, %v13098_v43  ;;  %13131 = vst.msk [vmem:[%s20640_s6 + $0x40] sm:$0xff] %vm171_vm1, %v13099_v11  ;;  %v13112_v5 = vadd.f32 %v13080_v35, %v20609_v9  ;;  %v13113_v15 = vadd.f32 %v13081_v22, %v20612_v16  ;;  %v13114_v59 = vadd.f32 %v13082_v50, %v20615_v60 }
 0x697   : > { %13132 = vst.msk [vmem:[%s20640_s6 + $0x48] sm:$0xff] %vm171_vm1, %v13100_v28  ;;  %13133 = vst.msk [vmem:[%s20640_s6 + $0x50] sm:$0xff] %vm171_vm1, %v13101_v42  ;;  %v13115_v18 = vadd.f32 %v13083_v53, %v20621_v23  ;;  %v13116_v48 = vadd.f32 %v13084_v7, %v20624_v3  ;;  %v13117_v29 = vadd.f32 %v13085_v10, %v20627_v37 }
 0x698   : > { %13134 = vst.msk [vmem:[%s20640_s6 + $0x58] sm:$0xff] %vm171_vm1, %v13102_v49  ;;  %13135 = vst.msk [vmem:[%s20640_s6 + $0x60] sm:$0xff] %vm171_vm1, %v13103_v27  ;;  %v13118_v4 = vadd.f32 %v13086_v32, %v20630_v58  ;;  %v13119_v33 = vadd.f32 %v13087_v19, %v20643_v57  ;;  %v13120_v61 = vadd.f32 %v13088_v14, %v20646_v13  ;;  %v20901_v16 = vld [vmem:[#allocation8_spill] sm:$0xff] }
 0x699   : > { %13136 = vst.msk [vmem:[%s20640_s6 + $0x68] sm:$0xff] %vm171_vm1, %v13104_v0  ;;  %13137 = vst.msk [vmem:[%s20640_s6 + $0x70] sm:$0xff] %vm171_vm1, %v13105_v62  ;;  %v13121_v9 = vadd.f32 %v13089_v36, %v20649_v12  ;;  %v13122_v60 = vadd.f32 %v13090_v63, %v20901_v16 }
 0x69a   : > { %13138 = vst.msk [vmem:[%s20640_s6 + $0x78] sm:$0xff] %vm171_vm1, %v13106_v46  ;;  %13139 = vst.msk [vmem:[%s20640_s6 + $0x80] sm:$0xff] %vm171_vm1, %v13107_v31 }
 0x69b   : > { %13140 = vst.msk [vmem:[%s20640_s6 + $0x88] sm:$0xff] %vm171_vm1, %v13108_v55  ;;  %13141 = vst.msk [vmem:[%s20640_s6 + $0x90] sm:$0xff] %vm171_vm1, %v13109_v47 }
 0x69c   : > { %13142 = vst.msk [vmem:[%s20640_s6 + $0x98] sm:$0xff] %vm171_vm1, %v13110_v1  ;;  %13143 = vst.msk [vmem:[%s20640_s6 + $0xa0] sm:$0xff] %vm171_vm1, %v13111_v30 }
 0x69d   : > { %13144 = vst.msk [vmem:[%s20640_s6 + $0xa8] sm:$0xff] %vm171_vm1, %v13112_v5  ;;  %13145 = vst.msk [vmem:[%s20640_s6 + $0xb0] sm:$0xff] %vm171_vm1, %v13113_v15 }
 0x69e   : > { %13146 = vst.msk [vmem:[%s20640_s6 + $0xb8] sm:$0xff] %vm171_vm1, %v13114_v59  ;;  %13147 = vst.msk [vmem:[%s20640_s6 + $0xc0] sm:$0xff] %vm171_vm1, %v13115_v18 }
 0x69f   : > { %13148 = vst.msk [vmem:[%s20640_s6 + $0xc8] sm:$0xff] %vm171_vm1, %v13116_v48  ;;  %13149 = vst.msk [vmem:[%s20640_s6 + $0xd0] sm:$0xff] %vm171_vm1, %v13117_v29 }
 0x6a0   : > { %13150 = vst.msk [vmem:[%s20640_s6 + $0xd8] sm:$0xff] %vm171_vm1, %v13118_v4  ;;  %13151 = vst.msk [vmem:[%s20640_s6 + $0xe0] sm:$0xff] %vm171_vm1, %v13119_v33 }
 0x6a1   : > { %13152 = vst.msk [vmem:[%s20640_s6 + $0xe8] sm:$0xff] %vm171_vm1, %v13120_v61  ;;  %13153 = vst.msk [vmem:[%s20640_s6 + $0xf0] sm:$0xff] %vm171_vm1, %v13121_v9 }
 0x6a2   : > { %13154 = vst.msk [vmem:[%s20640_s6 + $0xf8] sm:$0xff] %vm171_vm1, %v13122_v60 }
 0x6a3 PF: > { %s13_s12 = sadd.s32 1, %s16354_s12  }
 0x6a4   : > { %p10_p4 = scmp.ge.s32.totalorder %s13_s12, 4  }
 0x6a6   :  { %12 = sbr.rel (!%p10_p4) target bundleno = 1 (0x1), region = 78 }

</bundles_post_ra>
